<compile_context>
chip_gen: v6e
topology: v6e:2x2x1
jax: 0.10.0
libtpu: 0.0.40
codegen_flags: <defaults>
</compile_context>

<pallas_src>
import jax
import jax.numpy as jnp
from jax.experimental import pallas as pl
from jax.experimental.pallas import tpu as pltpu

# ---- synthetic CLIP-text-model configuration (small, deterministic) ----
D       = 32          # hidden size
H       = 4           # attention heads
DH      = D // H      # head dim
MLP     = 4 * D       # MLP inner dim
LAYERS  = 2           # transformer layers
VOCAB   = 64
MAX_POS = 64
EPS     = 1e-5
NEG     = -1e9


# ---------------------------------------------------------------------------
# Fully fused CLIP text-transformer kernel (all layers + final LN, one call).
#   x_ref    : (NB, L, D)  f32 activations block (NB sequences)
#   bias_ref : (NB, L, L)  f32 additive attention bias (causal + padding)
#   vecd_ref : (LAYERS, 6, D)  f32 [ln1_g, ln1_b, ln2_g, ln2_b, bo, b2]
#   wqkv_ref : (LAYERS, D, 3D) bf16 (q-scale folded in)
#   bqkv_ref : (LAYERS, 1, 3D) f32  (q-scale folded in)
#   wo_ref   : (LAYERS, H, DH, D) bf16
#   w1_ref   : (LAYERS, D, MLP) bf16 ; b1_ref : (LAYERS, 1, MLP) f32
#   w2_ref   : (LAYERS, MLP, D) bf16
#   lnf_ref  : (2, D) f32 [gamma, beta]
# ---------------------------------------------------------------------------
def _clip_text_stack_kernel(x_ref, bias_ref,
                            vecd_ref, wqkv_ref, bqkv_ref, wo_ref,
                            w1_ref, b1_ref, w2_ref, lnf_ref,
                            out_ref):
    NB, L, Dd = x_ref.shape
    R = NB * L
    x = x_ref[...].reshape(R, Dd)          # (R, D) activation slab, f32
    bias = bias_ref[...]                   # (NB, L, L)

    for li in range(LAYERS):               # layers unrolled; weights stay in VMEM
        vd = vecd_ref[li]                  # (6, D)

        # --- pre-LN 1 (f32 statistics) ---
        mu = jnp.mean(x, axis=-1, keepdims=True)
        var = jnp.mean((x - mu) ** 2, axis=-1, keepdims=True)
        h = (x - mu) * jax.lax.rsqrt(var + EPS) * vd[0:1, :] + vd[1:2, :]

        # --- fused QKV projection over all rows (bf16 MXU inputs, f32 accum) ---
        qkv = jnp.dot(h.astype(jnp.bfloat16), wqkv_ref[li],
                      preferred_element_type=jnp.float32) + bqkv_ref[li]   # (R, 3D)
        q = qkv[:, 0 * Dd:1 * Dd].reshape(NB, L, Dd)
        k = qkv[:, 1 * Dd:2 * Dd].reshape(NB, L, Dd)
        v = qkv[:, 2 * Dd:3 * Dd].reshape(NB, L, Dd)

        # --- multi-head attention, batched over sequences; per-head W_o accumulate ---
        attn = jnp.zeros((R, Dd), jnp.float32)
        for hh in range(H):
            lo, hi = hh * DH, (hh + 1) * DH
            # scale already folded into Wq/bq
            s = jnp.einsum('nqd,nkd->nqk', q[:, :, lo:hi], k[:, :, lo:hi],
                           preferred_element_type=jnp.float32) + bias      # (NB, L, L)
            s = s - jnp.max(s, axis=-1, keepdims=True)
            p = jnp.exp(s)
            # NOTE: a fully padded sequence softmaxes over all-NEG scores and
            # returns a uniform average of V (finite, standard behavior).
            p = p * pl.reciprocal(jnp.sum(p, axis=-1, keepdims=True), approx=True)
            ctx = jnp.einsum('nqk,nkd->nqd', p, v[:, :, lo:hi],
                             preferred_element_type=jnp.float32)           # (NB, L, DH)
            attn = attn + jnp.dot(ctx.reshape(R, DH).astype(jnp.bfloat16),
                                  wo_ref[li, hh],
                                  preferred_element_type=jnp.float32)
        x = x + attn + vd[4:5, :]          # residual + bo

        # --- pre-LN 2 + quick-GELU MLP over all rows ---
        mu2 = jnp.mean(x, axis=-1, keepdims=True)
        var2 = jnp.mean((x - mu2) ** 2, axis=-1, keepdims=True)
        h2 = (x - mu2) * jax.lax.rsqrt(var2 + EPS) * vd[2:3, :] + vd[3:4, :]
        f = jnp.dot(h2.astype(jnp.bfloat16), w1_ref[li],
                    preferred_element_type=jnp.float32) + b1_ref[li]       # (R, MLP)
        f = f * jax.nn.sigmoid(1.702 * f)                                  # quick_gelu (f32)
        f = jnp.dot(f.astype(jnp.bfloat16), w2_ref[li],
                    preferred_element_type=jnp.float32)
        x = x + f + vd[5:6, :]             # residual + b2

    # --- final LayerNorm (fused) ---
    mu = jnp.mean(x, axis=-1, keepdims=True)
    var = jnp.mean((x - mu) ** 2, axis=-1, keepdims=True)
    y = (x - mu) * jax.lax.rsqrt(var + EPS) * lnf_ref[0:1, :] + lnf_ref[1:2, :]
    out_ref[...] = y.reshape(NB, L, Dd)


# ---------------------------------------------------------------------------
# Parameter init (mirrors the CLIP text model structure) + packing for the kernel.
# ---------------------------------------------------------------------------
def init_params(key):
    def nrm(k, shape):
        return (0.02 * jax.random.normal(k, shape)).astype(jnp.float32)

    keys = jax.random.split(key, 2 + LAYERS)
    params = {
        "tok_emb": nrm(keys[0], (VOCAB, D)),
        "pos_emb": nrm(keys[1], (MAX_POS, D)),
        "ln_f_g": jnp.ones((1, D), jnp.float32),
        "ln_f_b": jnp.zeros((1, D), jnp.float32),
        "layers": [],
    }
    for li in range(LAYERS):
        lk = jax.random.split(keys[2 + li], 6)
        params["layers"].append({
            "ln1_g": jnp.ones((1, D), jnp.float32),
            "ln1_b": jnp.zeros((1, D), jnp.float32),
            "wq": nrm(lk[0], (D, D)), "bq": jnp.zeros((1, D), jnp.float32),
            "wk": nrm(lk[1], (D, D)), "bk": jnp.zeros((1, D), jnp.float32),
            "wv": nrm(lk[2], (D, D)), "bv": jnp.zeros((1, D), jnp.float32),
            "wo": nrm(lk[3], (D, D)), "bo": jnp.zeros((1, D), jnp.float32),
            "ln2_g": jnp.ones((1, D), jnp.float32),
            "ln2_b": jnp.zeros((1, D), jnp.float32),
            "w1": nrm(lk[4], (D, MLP)), "b1": jnp.zeros((1, MLP), jnp.float32),
            "w2": nrm(lk[5], (MLP, D)), "b2": jnp.zeros((1, D), jnp.float32),
        })
    return params


def pack_params(params):
    """Pack per-layer weights into a few stacked slabs for the fused kernel."""
    scale = 1.0 / (DH ** 0.5)
    vec_d, wqkv, bqkv, wo, w1, b1, w2 = [], [], [], [], [], [], []
    for lp in params["layers"]:
        vec_d.append(jnp.stack([lp["ln1_g"][0], lp["ln1_b"][0],
                                lp["ln2_g"][0], lp["ln2_b"][0],
                                lp["bo"][0], lp["b2"][0]], axis=0))         # (6, D)
        # fold attention scale into Wq / bq (numerically equivalent)
        wqkv.append(jnp.concatenate([lp["wq"] * scale, lp["wk"], lp["wv"]], axis=1))
        bqkv.append(jnp.concatenate([lp["bq"] * scale, lp["bk"], lp["bv"]], axis=1))
        wo.append(lp["wo"].reshape(H, DH, D))                               # head-major rows
        w1.append(lp["w1"]); b1.append(lp["b1"]); w2.append(lp["w2"])
    return {
        "tok_emb": params["tok_emb"],
        "pos_emb": params["pos_emb"],
        "vec_d": jnp.stack(vec_d).astype(jnp.float32),        # (LAYERS, 6, D)
        "wqkv":  jnp.stack(wqkv).astype(jnp.bfloat16),        # (LAYERS, D, 3D)
        "bqkv":  jnp.stack(bqkv).astype(jnp.float32),         # (LAYERS, 1, 3D)
        "wo":    jnp.stack(wo).astype(jnp.bfloat16),          # (LAYERS, H, DH, D)
        "w1":    jnp.stack(w1).astype(jnp.bfloat16),          # (LAYERS, D, MLP)
        "b1":    jnp.stack(b1).astype(jnp.float32),           # (LAYERS, 1, MLP)
        "w2":    jnp.stack(w2).astype(jnp.bfloat16),          # (LAYERS, MLP, D)
        "ln_f":  jnp.concatenate([params["ln_f_g"], params["ln_f_b"]], axis=0),  # (2, D)
    }


# ---------------------------------------------------------------------------
# CLIP text model: embedding glue in JAX, fused transformer stack in Pallas.
# ---------------------------------------------------------------------------
def clip_text_model(packed, input_ids, attention_mask):
    """input_ids/attention_mask: (N, L). Returns last_hidden_state (N, L, D)."""
    N, L = input_ids.shape
    x = jnp.take(packed["tok_emb"], input_ids, axis=0) + packed["pos_emb"][None, :L, :]
    x = x.astype(jnp.float32)

    # Additive attention bias (causal + padding) precomputed once per call.
    row = jnp.arange(L, dtype=jnp.int32)[:, None]
    col = jnp.arange(L, dtype=jnp.int32)[None, :]
    causal = jnp.where(col <= row, 0.0, NEG).astype(jnp.float32)            # (L, L)
    pad = (1.0 - attention_mask.astype(jnp.float32)) * NEG                  # (N, L)
    bias = causal[None, :, :] + pad[:, None, :]                             # (N, L, L)

    # Small "parallel" grid over sequence blocks so v7x can shard both TCs.
    G = 2 if (N % 2 == 0 and N >= 2) else 1
    NB = N // G

    def wfull(arr):
        nd = arr.ndim
        return pl.BlockSpec(arr.shape, lambda g, _nd=nd: (0,) * _nd)

    w_ops = [packed["vec_d"], packed["wqkv"], packed["bqkv"], packed["wo"],
             packed["w1"], packed["b1"], packed["w2"], packed["ln_f"]]

    return pl.pallas_call(
        _clip_text_stack_kernel,
        out_shape=jax.ShapeDtypeStruct((N, L, D), jnp.float32),
        grid_spec=pltpu.PrefetchScalarGridSpec(
            num_scalar_prefetch=0,
            grid=(G,),
            in_specs=[pl.BlockSpec((NB, L, D), lambda g: (g, 0, 0)),
                      pl.BlockSpec((NB, L, L), lambda g: (g, 0, 0))]
                     + [wfull(w) for w in w_ops],
            out_specs=pl.BlockSpec((NB, L, D), lambda g: (g, 0, 0)),
        ),
        compiler_params=pltpu.CompilerParams(dimension_semantics=("parallel",)),
    )(x, bias, *w_ops)


# ---------------------------------------------------------------------------
# Encoder3.forward equivalent (use_image=False, use_attributes=True).
# ---------------------------------------------------------------------------
def encoder3_forward(packed, input_ids, attention_mask, max_candidate_num,
                     use_attributes=True):
    sequence_num = max_candidate_num
    batch_size, textual_sequence_num, sequence_len = input_ids.shape

    reshaped_ids = input_ids.reshape(batch_size * textual_sequence_num, sequence_len)
    reshaped_mask = attention_mask.reshape(batch_size * textual_sequence_num, sequence_len)

    # use_image=False path: clip.text_model(...).last_hidden_state
    # TODO(synk): use_image=True path calls the full CLIP (vision+text) model; the
    # reference forward never defines the embeds in that branch, so it is omitted.
    embeds = clip_text_model(packed, reshaped_ids, reshaped_mask)

    if use_attributes:
        full = embeds.reshape(batch_size, textual_sequence_num, sequence_len, -1)
        text_embeds = full[:, :sequence_num + 1, :, :]
        attr_embeds = full[:, sequence_num + 1:, :, :]
        mention_attr_embed, entity_attr_embeds = attr_embeds[:, 0:1], attr_embeds[:, 1:]
        mention_text_embed, entity_text_embeds = text_embeds[:, 0:1], text_embeds[:, 1:]

        sn = attention_mask.shape[1] // 2
        text_mask = attention_mask[:, :sn, :]
        attr_mask = attention_mask[:, sn:, :]
        return (mention_text_embed, entity_text_embeds,
                mention_attr_embed, entity_attr_embeds,
                text_mask[:, 0:1, :], text_mask[:, 1:, :],
                attr_mask[:, 0:1, :], attr_mask[:, 1:, :],
                batch_size)
    else:
        full = embeds.reshape(batch_size, textual_sequence_num, sequence_len, -1)
        mention_text_embed, entity_text_embeds = full[:, 0:1], full[:, 1:]
        sn = attention_mask.shape[1]
        text_mask = attention_mask[:, :sn, :]
        return (mention_text_embed, entity_text_embeds,
                text_mask[:, 0:1, :], text_mask[:, 1:, :], batch_size)


if __name__ == "__main__":
    key = jax.random.PRNGKey(0)
    k_ids, k_len, k_par = jax.random.split(key, 3)

    batch_size = 2
    max_candidate_num = 3                       # args.max_candidate_num
    seq_len = 16
    # with use_attributes=True: (1 mention + max_candidate_num entities) x {text, attr}
    textual_sequence_num = 2 * (max_candidate_num + 1)   # 8

    input_ids = jax.random.randint(
        k_ids, (batch_size, textual_sequence_num, seq_len), 0, VOCAB, dtype=jnp.int32)
    lens = jax.random.randint(
        k_len, (batch_size, textual_sequence_num, 1), 4, seq_len + 1, dtype=jnp.int32)
    attention_mask = (jnp.arange(seq_len)[None, None, :] < lens).astype(jnp.int32)

    params = init_params(k_par)
    packed = pack_params(params)

    outs = encoder3_forward(packed, input_ids, attention_mask,
                            max_candidate_num, use_attributes=True)
    for o in outs[:-1]:                         # last element is python int batch_size
        jax.block_until_ready(o)

    # sanity checks on shapes implied by the reference module
    assert outs[0].shape == (batch_size, 1, seq_len, D)
    assert outs[1].shape == (batch_size, max_candidate_num, seq_len, D)
    assert outs[2].shape == (batch_size, 1, seq_len, D)
    assert outs[3].shape == (batch_size, max_candidate_num, seq_len, D)
    assert outs[4].shape == (batch_size, 1, seq_len)
    assert outs[5].shape == (batch_size, max_candidate_num, seq_len)

    print("KERNEL_OK")
</pallas_src>

<mosaic_0001>
module attributes {stable_mosaic.version = 11 : i64} {
  func.func @_clip_text_stack_kernel(%arg0: i32, %arg1: memref<8x16x32xf32, #tpu.memory_space<vmem>>, %arg2: memref<8x16x16xf32, #tpu.memory_space<vmem>>, %arg3: memref<2x6x32xf32, #tpu.memory_space<vmem>>, %arg4: memref<2x32x96xbf16, #tpu.memory_space<vmem>>, %arg5: memref<2x1x96xf32, #tpu.memory_space<vmem>>, %arg6: memref<2x4x8x32xbf16, #tpu.memory_space<vmem>>, %arg7: memref<2x32x128xbf16, #tpu.memory_space<vmem>>, %arg8: memref<2x1x128xf32, #tpu.memory_space<vmem>>, %arg9: memref<2x128x32xbf16, #tpu.memory_space<vmem>>, %arg10: memref<2x32xf32, #tpu.memory_space<vmem>>, %arg11: memref<8x16x32xf32, #tpu.memory_space<vmem>>) attributes {dimension_semantics = [#tpu.dimension_semantics<parallel>], iteration_bounds = array<i64: 2>, scalar_prefetch = 0 : i64, scratch_operands = 0 : i64, tpu.core_type = #tpu.core_type<tc>, window_params = [{transform_indices = @transform_0, window_bounds = array<i64: 8, 16, 32>}, {transform_indices = @transform_1, window_bounds = array<i64: 8, 16, 16>}, {pipeline_mode = #tpu.pipeline_mode<synchronous>, transform_indices = @transform_2, window_bounds = array<i64: 2, 6, 32>}, {pipeline_mode = #tpu.pipeline_mode<synchronous>, transform_indices = @transform_3, window_bounds = array<i64: 2, 32, 96>}, {pipeline_mode = #tpu.pipeline_mode<synchronous>, transform_indices = @transform_4, window_bounds = array<i64: 2, 1, 96>}, {pipeline_mode = #tpu.pipeline_mode<synchronous>, transform_indices = @transform_5, window_bounds = array<i64: 2, 4, 8, 32>}, {pipeline_mode = #tpu.pipeline_mode<synchronous>, transform_indices = @transform_6, window_bounds = array<i64: 2, 32, 128>}, {pipeline_mode = #tpu.pipeline_mode<synchronous>, transform_indices = @transform_7, window_bounds = array<i64: 2, 1, 128>}, {pipeline_mode = #tpu.pipeline_mode<synchronous>, transform_indices = @transform_8, window_bounds = array<i64: 2, 128, 32>}, {pipeline_mode = #tpu.pipeline_mode<synchronous>, transform_indices = @transform_9, window_bounds = array<i64: 2, 32>}, {transform_indices = @transform_10, window_bounds = array<i64: 8, 16, 32>}]} {
    %c0 = arith.constant 0 : index
    %c0_0 = arith.constant 0 : index
    %c0_1 = arith.constant 0 : index
    %0 = vector.load %arg1[%c0, %c0_0, %c0_1] : memref<8x16x32xf32, #tpu.memory_space<vmem>>, vector<8x16x32xf32>
    %1 = vector.shape_cast %0 : vector<8x16x32xf32> to vector<128x32xf32>
    %c0_2 = arith.constant 0 : index
    %c0_3 = arith.constant 0 : index
    %c0_4 = arith.constant 0 : index
    %2 = vector.load %arg2[%c0_2, %c0_3, %c0_4] : memref<8x16x16xf32, #tpu.memory_space<vmem>>, vector<8x16x16xf32>
    %c0_5 = arith.constant 0 : index
    %c0_6 = arith.constant 0 : index
    %c0_7 = arith.constant 0 : index
    %3 = vector.load %arg3[%c0_5, %c0_6, %c0_7] : memref<2x6x32xf32, #tpu.memory_space<vmem>>, vector<1x6x32xf32>
    %4 = vector.shape_cast %3 : vector<1x6x32xf32> to vector<6x32xf32>
    %cst = arith.constant dense<0.000000e+00> : vector<128xf32>
    %5 = vector.multi_reduction <add>, %1, %cst [1] : vector<128x32xf32> to vector<128xf32>
    %6 = vector.shape_cast %5 : vector<128xf32> to vector<128x1xf32>
    %cst_8 = arith.constant 3.200000e+01 : f32
    %7 = vector.broadcast %cst_8 : f32 to vector<128x1xf32>
    %8 = arith.divf %6, %7 : vector<128x1xf32>
    %9 = vector.broadcast %8 : vector<128x1xf32> to vector<128x32xf32>
    %10 = arith.subf %1, %9 : vector<128x32xf32>
    %11 = arith.mulf %10, %10 : vector<128x32xf32>
    %cst_9 = arith.constant dense<0.000000e+00> : vector<128xf32>
    %12 = vector.multi_reduction <add>, %11, %cst_9 [1] : vector<128x32xf32> to vector<128xf32>
    %13 = vector.shape_cast %12 : vector<128xf32> to vector<128x1xf32>
    %cst_10 = arith.constant 3.200000e+01 : f32
    %14 = vector.broadcast %cst_10 : f32 to vector<128x1xf32>
    %15 = arith.divf %13, %14 : vector<128x1xf32>
    %16 = vector.broadcast %8 : vector<128x1xf32> to vector<128x32xf32>
    %17 = arith.subf %1, %16 : vector<128x32xf32>
    %cst_11 = arith.constant 9.99999974E-6 : f32
    %18 = vector.broadcast %cst_11 : f32 to vector<128x1xf32>
    %19 = arith.addf %15, %18 : vector<128x1xf32>
    %20 = math.rsqrt %19 : vector<128x1xf32>
    %21 = vector.broadcast %20 : vector<128x1xf32> to vector<128x32xf32>
    %22 = arith.mulf %17, %21 : vector<128x32xf32>
    %23 = vector.extract_strided_slice %4 {offsets = [0, 0], sizes = [1, 32], strides = [1, 1]} : vector<6x32xf32> to vector<1x32xf32>
    %24 = vector.broadcast %23 : vector<1x32xf32> to vector<128x32xf32>
    %25 = arith.mulf %22, %24 : vector<128x32xf32>
    %26 = vector.extract_strided_slice %4 {offsets = [1, 0], sizes = [1, 32], strides = [1, 1]} : vector<6x32xf32> to vector<1x32xf32>
    %27 = vector.broadcast %26 : vector<1x32xf32> to vector<128x32xf32>
    %28 = arith.addf %25, %27 : vector<128x32xf32>
    %29 = arith.truncf %28 : vector<128x32xf32> to vector<128x32xbf16>
    %c0_12 = arith.constant 0 : index
    %c0_13 = arith.constant 0 : index
    %c0_14 = arith.constant 0 : index
    %30 = vector.load %arg4[%c0_12, %c0_13, %c0_14] : memref<2x32x96xbf16, #tpu.memory_space<vmem>>, vector<1x32x96xbf16>
    %31 = vector.shape_cast %30 : vector<1x32x96xbf16> to vector<32x96xbf16>
    %cst_15 = arith.constant dense<0.000000e+00> : vector<128x96xf32>
    %32 = tpu.matmul %29, %31, %cst_15 {dimension_numbers = #tpu.dot_dimension_numbers<[1], [0], [0], [1], [0, 0, 1, 1], [], []>} : vector<128x32xbf16>, vector<32x96xbf16>, vector<128x96xf32> -> vector<128x96xf32>
    %c0_16 = arith.constant 0 : index
    %c0_17 = arith.constant 0 : index
    %c0_18 = arith.constant 0 : index
    %33 = vector.load %arg5[%c0_16, %c0_17, %c0_18] : memref<2x1x96xf32, #tpu.memory_space<vmem>>, vector<1x1x96xf32>
    %34 = vector.shape_cast %33 : vector<1x1x96xf32> to vector<1x96xf32>
    %35 = vector.broadcast %34 : vector<1x96xf32> to vector<128x96xf32>
    %36 = arith.addf %32, %35 : vector<128x96xf32>
    %37 = vector.extract_strided_slice %36 {offsets = [0, 0], sizes = [128, 32], strides = [1, 1]} : vector<128x96xf32> to vector<128x32xf32>
    %38 = vector.shape_cast %37 : vector<128x32xf32> to vector<8x16x32xf32>
    %39 = vector.extract_strided_slice %36 {offsets = [0, 32], sizes = [128, 32], strides = [1, 1]} : vector<128x96xf32> to vector<128x32xf32>
    %40 = vector.shape_cast %39 : vector<128x32xf32> to vector<8x16x32xf32>
    %41 = vector.extract_strided_slice %36 {offsets = [0, 64], sizes = [128, 32], strides = [1, 1]} : vector<128x96xf32> to vector<128x32xf32>
    %42 = vector.shape_cast %41 : vector<128x32xf32> to vector<8x16x32xf32>
    %cst_19 = arith.constant 0.000000e+00 : f32
    %43 = vector.broadcast %cst_19 : f32 to vector<128x32xf32>
    %44 = vector.extract_strided_slice %38 {offsets = [0, 0, 0], sizes = [8, 16, 8], strides = [1, 1, 1]} : vector<8x16x32xf32> to vector<8x16x8xf32>
    %45 = vector.extract_strided_slice %40 {offsets = [0, 0, 0], sizes = [8, 16, 8], strides = [1, 1, 1]} : vector<8x16x32xf32> to vector<8x16x8xf32>
    "tpu.trace_start"() <{level = 10 : i32, message = "nqd,nkd->nqk"}> : () -> ()
    %cst_20 = arith.constant dense<0.000000e+00> : vector<8x16x16xf32>
    %46 = tpu.matmul %44, %45, %cst_20 {dimension_numbers = #tpu.dot_dimension_numbers<[2], [2], [1], [1], [0, 0, 0, 1, 1, 1], [0], [0]>} : vector<8x16x8xf32>, vector<8x16x8xf32>, vector<8x16x16xf32> -> vector<8x16x16xf32>
    "tpu.trace_stop"() : () -> ()
    %47 = arith.addf %46, %2 : vector<8x16x16xf32>
    %cst_21 = arith.constant dense<0xFF800000> : vector<8x16xf32>
    %48 = vector.multi_reduction <maximumf>, %47, %cst_21 [2] : vector<8x16x16xf32> to vector<8x16xf32>
    %49 = vector.shape_cast %48 : vector<8x16xf32> to vector<8x16x1xf32>
    %50 = vector.broadcast %49 : vector<8x16x1xf32> to vector<8x16x16xf32>
    %51 = arith.subf %47, %50 : vector<8x16x16xf32>
    %52 = math.exp %51 : vector<8x16x16xf32>
    %cst_22 = arith.constant dense<0.000000e+00> : vector<8x16xf32>
    %53 = vector.multi_reduction <add>, %52, %cst_22 [2] : vector<8x16x16xf32> to vector<8x16xf32>
    %54 = vector.shape_cast %53 : vector<8x16xf32> to vector<8x16x1xf32>
    %55 = tpu.reciprocal %54 {approx = true} : vector<8x16x1xf32> -> vector<8x16x1xf32>
    %56 = vector.broadcast %55 : vector<8x16x1xf32> to vector<8x16x16xf32>
    %57 = arith.mulf %52, %56 : vector<8x16x16xf32>
    %58 = vector.extract_strided_slice %42 {offsets = [0, 0, 0], sizes = [8, 16, 8], strides = [1, 1, 1]} : vector<8x16x32xf32> to vector<8x16x8xf32>
    "tpu.trace_start"() <{level = 10 : i32, message = "nqk,nkd->nqd"}> : () -> ()
    %cst_23 = arith.constant dense<0.000000e+00> : vector<8x16x8xf32>
    %59 = tpu.matmul %57, %58, %cst_23 {dimension_numbers = #tpu.dot_dimension_numbers<[2], [1], [1], [2], [0, 0, 0, 1, 1, 2], [0], [0]>} : vector<8x16x16xf32>, vector<8x16x8xf32>, vector<8x16x8xf32> -> vector<8x16x8xf32>
    "tpu.trace_stop"() : () -> ()
    %60 = vector.shape_cast %59 : vector<8x16x8xf32> to vector<128x8xf32>
    %61 = arith.truncf %60 : vector<128x8xf32> to vector<128x8xbf16>
    %c0_24 = arith.constant 0 : index
    %c0_25 = arith.constant 0 : index
    %c0_26 = arith.constant 0 : index
    %c0_27 = arith.constant 0 : index
    %62 = vector.load %arg6[%c0_24, %c0_25, %c0_26, %c0_27] : memref<2x4x8x32xbf16, #tpu.memory_space<vmem>>, vector<1x1x8x32xbf16>
    %63 = vector.shape_cast %62 : vector<1x1x8x32xbf16> to vector<8x32xbf16>
    %cst_28 = arith.constant dense<0.000000e+00> : vector<128x32xf32>
    %64 = tpu.matmul %61, %63, %cst_28 {dimension_numbers = #tpu.dot_dimension_numbers<[1], [0], [0], [1], [0, 0, 1, 1], [], []>} : vector<128x8xbf16>, vector<8x32xbf16>, vector<128x32xf32> -> vector<128x32xf32>
    %65 = arith.addf %43, %64 : vector<128x32xf32>
    %66 = vector.extract_strided_slice %38 {offsets = [0, 0, 8], sizes = [8, 16, 8], strides = [1, 1, 1]} : vector<8x16x32xf32> to vector<8x16x8xf32>
    %67 = vector.extract_strided_slice %40 {offsets = [0, 0, 8], sizes = [8, 16, 8], strides = [1, 1, 1]} : vector<8x16x32xf32> to vector<8x16x8xf32>
    "tpu.trace_start"() <{level = 10 : i32, message = "nqd,nkd->nqk"}> : () -> ()
    %cst_29 = arith.constant dense<0.000000e+00> : vector<8x16x16xf32>
    %68 = tpu.matmul %66, %67, %cst_29 {dimension_numbers = #tpu.dot_dimension_numbers<[2], [2], [1], [1], [0, 0, 0, 1, 1, 1], [0], [0]>} : vector<8x16x8xf32>, vector<8x16x8xf32>, vector<8x16x16xf32> -> vector<8x16x16xf32>
    "tpu.trace_stop"() : () -> ()
    %69 = arith.addf %68, %2 : vector<8x16x16xf32>
    %cst_30 = arith.constant dense<0xFF800000> : vector<8x16xf32>
    %70 = vector.multi_reduction <maximumf>, %69, %cst_30 [2] : vector<8x16x16xf32> to vector<8x16xf32>
    %71 = vector.shape_cast %70 : vector<8x16xf32> to vector<8x16x1xf32>
    %72 = vector.broadcast %71 : vector<8x16x1xf32> to vector<8x16x16xf32>
    %73 = arith.subf %69, %72 : vector<8x16x16xf32>
    %74 = math.exp %73 : vector<8x16x16xf32>
    %cst_31 = arith.constant dense<0.000000e+00> : vector<8x16xf32>
    %75 = vector.multi_reduction <add>, %74, %cst_31 [2] : vector<8x16x16xf32> to vector<8x16xf32>
    %76 = vector.shape_cast %75 : vector<8x16xf32> to vector<8x16x1xf32>
    %77 = tpu.reciprocal %76 {approx = true} : vector<8x16x1xf32> -> vector<8x16x1xf32>
    %78 = vector.broadcast %77 : vector<8x16x1xf32> to vector<8x16x16xf32>
    %79 = arith.mulf %74, %78 : vector<8x16x16xf32>
    %80 = vector.extract_strided_slice %42 {offsets = [0, 0, 8], sizes = [8, 16, 8], strides = [1, 1, 1]} : vector<8x16x32xf32> to vector<8x16x8xf32>
    "tpu.trace_start"() <{level = 10 : i32, message = "nqk,nkd->nqd"}> : () -> ()
    %cst_32 = arith.constant dense<0.000000e+00> : vector<8x16x8xf32>
    %81 = tpu.matmul %79, %80, %cst_32 {dimension_numbers = #tpu.dot_dimension_numbers<[2], [1], [1], [2], [0, 0, 0, 1, 1, 2], [0], [0]>} : vector<8x16x16xf32>, vector<8x16x8xf32>, vector<8x16x8xf32> -> vector<8x16x8xf32>
    "tpu.trace_stop"() : () -> ()
    %82 = vector.shape_cast %81 : vector<8x16x8xf32> to vector<128x8xf32>
    %83 = arith.truncf %82 : vector<128x8xf32> to vector<128x8xbf16>
    %c0_33 = arith.constant 0 : index
    %c1 = arith.constant 1 : index
    %c0_34 = arith.constant 0 : index
    %c0_35 = arith.constant 0 : index
    %84 = vector.load %arg6[%c0_33, %c1, %c0_34, %c0_35] : memref<2x4x8x32xbf16, #tpu.memory_space<vmem>>, vector<1x1x8x32xbf16>
    %85 = vector.shape_cast %84 : vector<1x1x8x32xbf16> to vector<8x32xbf16>
    %cst_36 = arith.constant dense<0.000000e+00> : vector<128x32xf32>
    %86 = tpu.matmul %83, %85, %cst_36 {dimension_numbers = #tpu.dot_dimension_numbers<[1], [0], [0], [1], [0, 0, 1, 1], [], []>} : vector<128x8xbf16>, vector<8x32xbf16>, vector<128x32xf32> -> vector<128x32xf32>
    %87 = arith.addf %65, %86 : vector<128x32xf32>
    %88 = vector.extract_strided_slice %38 {offsets = [0, 0, 16], sizes = [8, 16, 8], strides = [1, 1, 1]} : vector<8x16x32xf32> to vector<8x16x8xf32>
    %89 = vector.extract_strided_slice %40 {offsets = [0, 0, 16], sizes = [8, 16, 8], strides = [1, 1, 1]} : vector<8x16x32xf32> to vector<8x16x8xf32>
    "tpu.trace_start"() <{level = 10 : i32, message = "nqd,nkd->nqk"}> : () -> ()
    %cst_37 = arith.constant dense<0.000000e+00> : vector<8x16x16xf32>
    %90 = tpu.matmul %88, %89, %cst_37 {dimension_numbers = #tpu.dot_dimension_numbers<[2], [2], [1], [1], [0, 0, 0, 1, 1, 1], [0], [0]>} : vector<8x16x8xf32>, vector<8x16x8xf32>, vector<8x16x16xf32> -> vector<8x16x16xf32>
    "tpu.trace_stop"() : () -> ()
    %91 = arith.addf %90, %2 : vector<8x16x16xf32>
    %cst_38 = arith.constant dense<0xFF800000> : vector<8x16xf32>
    %92 = vector.multi_reduction <maximumf>, %91, %cst_38 [2] : vector<8x16x16xf32> to vector<8x16xf32>
    %93 = vector.shape_cast %92 : vector<8x16xf32> to vector<8x16x1xf32>
    %94 = vector.broadcast %93 : vector<8x16x1xf32> to vector<8x16x16xf32>
    %95 = arith.subf %91, %94 : vector<8x16x16xf32>
    %96 = math.exp %95 : vector<8x16x16xf32>
    %cst_39 = arith.constant dense<0.000000e+00> : vector<8x16xf32>
    %97 = vector.multi_reduction <add>, %96, %cst_39 [2] : vector<8x16x16xf32> to vector<8x16xf32>
    %98 = vector.shape_cast %97 : vector<8x16xf32> to vector<8x16x1xf32>
    %99 = tpu.reciprocal %98 {approx = true} : vector<8x16x1xf32> -> vector<8x16x1xf32>
    %100 = vector.broadcast %99 : vector<8x16x1xf32> to vector<8x16x16xf32>
    %101 = arith.mulf %96, %100 : vector<8x16x16xf32>
    %102 = vector.extract_strided_slice %42 {offsets = [0, 0, 16], sizes = [8, 16, 8], strides = [1, 1, 1]} : vector<8x16x32xf32> to vector<8x16x8xf32>
    "tpu.trace_start"() <{level = 10 : i32, message = "nqk,nkd->nqd"}> : () -> ()
    %cst_40 = arith.constant dense<0.000000e+00> : vector<8x16x8xf32>
    %103 = tpu.matmul %101, %102, %cst_40 {dimension_numbers = #tpu.dot_dimension_numbers<[2], [1], [1], [2], [0, 0, 0, 1, 1, 2], [0], [0]>} : vector<8x16x16xf32>, vector<8x16x8xf32>, vector<8x16x8xf32> -> vector<8x16x8xf32>
    "tpu.trace_stop"() : () -> ()
    %104 = vector.shape_cast %103 : vector<8x16x8xf32> to vector<128x8xf32>
    %105 = arith.truncf %104 : vector<128x8xf32> to vector<128x8xbf16>
    %c0_41 = arith.constant 0 : index
    %c2 = arith.constant 2 : index
    %c0_42 = arith.constant 0 : index
    %c0_43 = arith.constant 0 : index
    %106 = vector.load %arg6[%c0_41, %c2, %c0_42, %c0_43] : memref<2x4x8x32xbf16, #tpu.memory_space<vmem>>, vector<1x1x8x32xbf16>
    %107 = vector.shape_cast %106 : vector<1x1x8x32xbf16> to vector<8x32xbf16>
    %cst_44 = arith.constant dense<0.000000e+00> : vector<128x32xf32>
    %108 = tpu.matmul %105, %107, %cst_44 {dimension_numbers = #tpu.dot_dimension_numbers<[1], [0], [0], [1], [0, 0, 1, 1], [], []>} : vector<128x8xbf16>, vector<8x32xbf16>, vector<128x32xf32> -> vector<128x32xf32>
    %109 = arith.addf %87, %108 : vector<128x32xf32>
    %110 = vector.extract_strided_slice %38 {offsets = [0, 0, 24], sizes = [8, 16, 8], strides = [1, 1, 1]} : vector<8x16x32xf32> to vector<8x16x8xf32>
    %111 = vector.extract_strided_slice %40 {offsets = [0, 0, 24], sizes = [8, 16, 8], strides = [1, 1, 1]} : vector<8x16x32xf32> to vector<8x16x8xf32>
    "tpu.trace_start"() <{level = 10 : i32, message = "nqd,nkd->nqk"}> : () -> ()
    %cst_45 = arith.constant dense<0.000000e+00> : vector<8x16x16xf32>
    %112 = tpu.matmul %110, %111, %cst_45 {dimension_numbers = #tpu.dot_dimension_numbers<[2], [2], [1], [1], [0, 0, 0, 1, 1, 1], [0], [0]>} : vector<8x16x8xf32>, vector<8x16x8xf32>, vector<8x16x16xf32> -> vector<8x16x16xf32>
    "tpu.trace_stop"() : () -> ()
    %113 = arith.addf %112, %2 : vector<8x16x16xf32>
    %cst_46 = arith.constant dense<0xFF800000> : vector<8x16xf32>
    %114 = vector.multi_reduction <maximumf>, %113, %cst_46 [2] : vector<8x16x16xf32> to vector<8x16xf32>
    %115 = vector.shape_cast %114 : vector<8x16xf32> to vector<8x16x1xf32>
    %116 = vector.broadcast %115 : vector<8x16x1xf32> to vector<8x16x16xf32>
    %117 = arith.subf %113, %116 : vector<8x16x16xf32>
    %118 = math.exp %117 : vector<8x16x16xf32>
    %cst_47 = arith.constant dense<0.000000e+00> : vector<8x16xf32>
    %119 = vector.multi_reduction <add>, %118, %cst_47 [2] : vector<8x16x16xf32> to vector<8x16xf32>
    %120 = vector.shape_cast %119 : vector<8x16xf32> to vector<8x16x1xf32>
    %121 = tpu.reciprocal %120 {approx = true} : vector<8x16x1xf32> -> vector<8x16x1xf32>
    %122 = vector.broadcast %121 : vector<8x16x1xf32> to vector<8x16x16xf32>
    %123 = arith.mulf %118, %122 : vector<8x16x16xf32>
    %124 = vector.extract_strided_slice %42 {offsets = [0, 0, 24], sizes = [8, 16, 8], strides = [1, 1, 1]} : vector<8x16x32xf32> to vector<8x16x8xf32>
    "tpu.trace_start"() <{level = 10 : i32, message = "nqk,nkd->nqd"}> : () -> ()
    %cst_48 = arith.constant dense<0.000000e+00> : vector<8x16x8xf32>
    %125 = tpu.matmul %123, %124, %cst_48 {dimension_numbers = #tpu.dot_dimension_numbers<[2], [1], [1], [2], [0, 0, 0, 1, 1, 2], [0], [0]>} : vector<8x16x16xf32>, vector<8x16x8xf32>, vector<8x16x8xf32> -> vector<8x16x8xf32>
    "tpu.trace_stop"() : () -> ()
    %126 = vector.shape_cast %125 : vector<8x16x8xf32> to vector<128x8xf32>
    %127 = arith.truncf %126 : vector<128x8xf32> to vector<128x8xbf16>
    %c0_49 = arith.constant 0 : index
    %c3 = arith.constant 3 : index
    %c0_50 = arith.constant 0 : index
    %c0_51 = arith.constant 0 : index
    %128 = vector.load %arg6[%c0_49, %c3, %c0_50, %c0_51] : memref<2x4x8x32xbf16, #tpu.memory_space<vmem>>, vector<1x1x8x32xbf16>
    %129 = vector.shape_cast %128 : vector<1x1x8x32xbf16> to vector<8x32xbf16>
    %cst_52 = arith.constant dense<0.000000e+00> : vector<128x32xf32>
    %130 = tpu.matmul %127, %129, %cst_52 {dimension_numbers = #tpu.dot_dimension_numbers<[1], [0], [0], [1], [0, 0, 1, 1], [], []>} : vector<128x8xbf16>, vector<8x32xbf16>, vector<128x32xf32> -> vector<128x32xf32>
    %131 = arith.addf %109, %130 : vector<128x32xf32>
    %132 = arith.addf %1, %131 : vector<128x32xf32>
    %133 = vector.extract_strided_slice %4 {offsets = [4, 0], sizes = [1, 32], strides = [1, 1]} : vector<6x32xf32> to vector<1x32xf32>
    %134 = vector.broadcast %133 : vector<1x32xf32> to vector<128x32xf32>
    %135 = arith.addf %132, %134 : vector<128x32xf32>
    %cst_53 = arith.constant dense<0.000000e+00> : vector<128xf32>
    %136 = vector.multi_reduction <add>, %135, %cst_53 [1] : vector<128x32xf32> to vector<128xf32>
    %137 = vector.shape_cast %136 : vector<128xf32> to vector<128x1xf32>
    %cst_54 = arith.constant 3.200000e+01 : f32
    %138 = vector.broadcast %cst_54 : f32 to vector<128x1xf32>
    %139 = arith.divf %137, %138 : vector<128x1xf32>
    %140 = vector.broadcast %139 : vector<128x1xf32> to vector<128x32xf32>
    %141 = arith.subf %135, %140 : vector<128x32xf32>
    %142 = arith.mulf %141, %141 : vector<128x32xf32>
    %cst_55 = arith.constant dense<0.000000e+00> : vector<128xf32>
    %143 = vector.multi_reduction <add>, %142, %cst_55 [1] : vector<128x32xf32> to vector<128xf32>
    %144 = vector.shape_cast %143 : vector<128xf32> to vector<128x1xf32>
    %cst_56 = arith.constant 3.200000e+01 : f32
    %145 = vector.broadcast %cst_56 : f32 to vector<128x1xf32>
    %146 = arith.divf %144, %145 : vector<128x1xf32>
    %147 = vector.broadcast %139 : vector<128x1xf32> to vector<128x32xf32>
    %148 = arith.subf %135, %147 : vector<128x32xf32>
    %cst_57 = arith.constant 9.99999974E-6 : f32
    %149 = vector.broadcast %cst_57 : f32 to vector<128x1xf32>
    %150 = arith.addf %146, %149 : vector<128x1xf32>
    %151 = math.rsqrt %150 : vector<128x1xf32>
    %152 = vector.broadcast %151 : vector<128x1xf32> to vector<128x32xf32>
    %153 = arith.mulf %148, %152 : vector<128x32xf32>
    %154 = vector.extract_strided_slice %4 {offsets = [2, 0], sizes = [1, 32], strides = [1, 1]} : vector<6x32xf32> to vector<1x32xf32>
    %155 = vector.broadcast %154 : vector<1x32xf32> to vector<128x32xf32>
    %156 = arith.mulf %153, %155 : vector<128x32xf32>
    %157 = vector.extract_strided_slice %4 {offsets = [3, 0], sizes = [1, 32], strides = [1, 1]} : vector<6x32xf32> to vector<1x32xf32>
    %158 = vector.broadcast %157 : vector<1x32xf32> to vector<128x32xf32>
    %159 = arith.addf %156, %158 : vector<128x32xf32>
    %160 = arith.truncf %159 : vector<128x32xf32> to vector<128x32xbf16>
    %c0_58 = arith.constant 0 : index
    %c0_59 = arith.constant 0 : index
    %c0_60 = arith.constant 0 : index
    %161 = vector.load %arg7[%c0_58, %c0_59, %c0_60] : memref<2x32x128xbf16, #tpu.memory_space<vmem>>, vector<1x32x128xbf16>
    %162 = vector.shape_cast %161 : vector<1x32x128xbf16> to vector<32x128xbf16>
    %cst_61 = arith.constant dense<0.000000e+00> : vector<128x128xf32>
    %163 = tpu.matmul %160, %162, %cst_61 {dimension_numbers = #tpu.dot_dimension_numbers<[1], [0], [0], [1], [0, 0, 1, 1], [], []>} : vector<128x32xbf16>, vector<32x128xbf16>, vector<128x128xf32> -> vector<128x128xf32>
    %c0_62 = arith.constant 0 : index
    %c0_63 = arith.constant 0 : index
    %c0_64 = arith.constant 0 : index
    %164 = vector.load %arg8[%c0_62, %c0_63, %c0_64] : memref<2x1x128xf32, #tpu.memory_space<vmem>>, vector<1x1x128xf32>
    %165 = vector.shape_cast %164 : vector<1x1x128xf32> to vector<1x128xf32>
    %166 = vector.broadcast %165 : vector<1x128xf32> to vector<128x128xf32>
    %167 = arith.addf %163, %166 : vector<128x128xf32>
    %cst_65 = arith.constant 1.702000e+00 : f32
    %168 = vector.broadcast %cst_65 : f32 to vector<128x128xf32>
    %169 = arith.mulf %168, %167 : vector<128x128xf32>
    %170 = arith.negf %169 : vector<128x128xf32>
    %171 = math.exp %170 : vector<128x128xf32>
    %cst_66 = arith.constant 1.000000e+00 : f32
    %172 = vector.broadcast %cst_66 : f32 to vector<128x128xf32>
    %173 = arith.addf %172, %171 : vector<128x128xf32>
    %174 = arith.divf %172, %173 : vector<128x128xf32>
    %175 = arith.mulf %167, %174 : vector<128x128xf32>
    %176 = arith.truncf %175 : vector<128x128xf32> to vector<128x128xbf16>
    %c0_67 = arith.constant 0 : index
    %c0_68 = arith.constant 0 : index
    %c0_69 = arith.constant 0 : index
    %177 = vector.load %arg9[%c0_67, %c0_68, %c0_69] : memref<2x128x32xbf16, #tpu.memory_space<vmem>>, vector<1x128x32xbf16>
    %178 = vector.shape_cast %177 : vector<1x128x32xbf16> to vector<128x32xbf16>
    %cst_70 = arith.constant dense<0.000000e+00> : vector<128x32xf32>
    %179 = tpu.matmul %176, %178, %cst_70 {dimension_numbers = #tpu.dot_dimension_numbers<[1], [0], [0], [1], [0, 0, 1, 1], [], []>} : vector<128x128xbf16>, vector<128x32xbf16>, vector<128x32xf32> -> vector<128x32xf32>
    %180 = arith.addf %135, %179 : vector<128x32xf32>
    %181 = vector.extract_strided_slice %4 {offsets = [5, 0], sizes = [1, 32], strides = [1, 1]} : vector<6x32xf32> to vector<1x32xf32>
    %182 = vector.broadcast %181 : vector<1x32xf32> to vector<128x32xf32>
    %183 = arith.addf %180, %182 : vector<128x32xf32>
    %c1_71 = arith.constant 1 : index
    %c0_72 = arith.constant 0 : index
    %c0_73 = arith.constant 0 : index
    %184 = vector.load %arg3[%c1_71, %c0_72, %c0_73] : memref<2x6x32xf32, #tpu.memory_space<vmem>>, vector<1x6x32xf32>
    %185 = vector.shape_cast %184 : vector<1x6x32xf32> to vector<6x32xf32>
    %cst_74 = arith.constant dense<0.000000e+00> : vector<128xf32>
    %186 = vector.multi_reduction <add>, %183, %cst_74 [1] : vector<128x32xf32> to vector<128xf32>
    %187 = vector.shape_cast %186 : vector<128xf32> to vector<128x1xf32>
    %cst_75 = arith.constant 3.200000e+01 : f32
    %188 = vector.broadcast %cst_75 : f32 to vector<128x1xf32>
    %189 = arith.divf %187, %188 : vector<128x1xf32>
    %190 = vector.broadcast %189 : vector<128x1xf32> to vector<128x32xf32>
    %191 = arith.subf %183, %190 : vector<128x32xf32>
    %192 = arith.mulf %191, %191 : vector<128x32xf32>
    %cst_76 = arith.constant dense<0.000000e+00> : vector<128xf32>
    %193 = vector.multi_reduction <add>, %192, %cst_76 [1] : vector<128x32xf32> to vector<128xf32>
    %194 = vector.shape_cast %193 : vector<128xf32> to vector<128x1xf32>
    %cst_77 = arith.constant 3.200000e+01 : f32
    %195 = vector.broadcast %cst_77 : f32 to vector<128x1xf32>
    %196 = arith.divf %194, %195 : vector<128x1xf32>
    %197 = vector.broadcast %189 : vector<128x1xf32> to vector<128x32xf32>
    %198 = arith.subf %183, %197 : vector<128x32xf32>
    %cst_78 = arith.constant 9.99999974E-6 : f32
    %199 = vector.broadcast %cst_78 : f32 to vector<128x1xf32>
    %200 = arith.addf %196, %199 : vector<128x1xf32>
    %201 = math.rsqrt %200 : vector<128x1xf32>
    %202 = vector.broadcast %201 : vector<128x1xf32> to vector<128x32xf32>
    %203 = arith.mulf %198, %202 : vector<128x32xf32>
    %204 = vector.extract_strided_slice %185 {offsets = [0, 0], sizes = [1, 32], strides = [1, 1]} : vector<6x32xf32> to vector<1x32xf32>
    %205 = vector.broadcast %204 : vector<1x32xf32> to vector<128x32xf32>
    %206 = arith.mulf %203, %205 : vector<128x32xf32>
    %207 = vector.extract_strided_slice %185 {offsets = [1, 0], sizes = [1, 32], strides = [1, 1]} : vector<6x32xf32> to vector<1x32xf32>
    %208 = vector.broadcast %207 : vector<1x32xf32> to vector<128x32xf32>
    %209 = arith.addf %206, %208 : vector<128x32xf32>
    %210 = arith.truncf %209 : vector<128x32xf32> to vector<128x32xbf16>
    %c1_79 = arith.constant 1 : index
    %c0_80 = arith.constant 0 : index
    %c0_81 = arith.constant 0 : index
    %211 = vector.load %arg4[%c1_79, %c0_80, %c0_81] : memref<2x32x96xbf16, #tpu.memory_space<vmem>>, vector<1x32x96xbf16>
    %212 = vector.shape_cast %211 : vector<1x32x96xbf16> to vector<32x96xbf16>
    %cst_82 = arith.constant dense<0.000000e+00> : vector<128x96xf32>
    %213 = tpu.matmul %210, %212, %cst_82 {dimension_numbers = #tpu.dot_dimension_numbers<[1], [0], [0], [1], [0, 0, 1, 1], [], []>} : vector<128x32xbf16>, vector<32x96xbf16>, vector<128x96xf32> -> vector<128x96xf32>
    %c1_83 = arith.constant 1 : index
    %c0_84 = arith.constant 0 : index
    %c0_85 = arith.constant 0 : index
    %214 = vector.load %arg5[%c1_83, %c0_84, %c0_85] : memref<2x1x96xf32, #tpu.memory_space<vmem>>, vector<1x1x96xf32>
    %215 = vector.shape_cast %214 : vector<1x1x96xf32> to vector<1x96xf32>
    %216 = vector.broadcast %215 : vector<1x96xf32> to vector<128x96xf32>
    %217 = arith.addf %213, %216 : vector<128x96xf32>
    %218 = vector.extract_strided_slice %217 {offsets = [0, 0], sizes = [128, 32], strides = [1, 1]} : vector<128x96xf32> to vector<128x32xf32>
    %219 = vector.shape_cast %218 : vector<128x32xf32> to vector<8x16x32xf32>
    %220 = vector.extract_strided_slice %217 {offsets = [0, 32], sizes = [128, 32], strides = [1, 1]} : vector<128x96xf32> to vector<128x32xf32>
    %221 = vector.shape_cast %220 : vector<128x32xf32> to vector<8x16x32xf32>
    %222 = vector.extract_strided_slice %217 {offsets = [0, 64], sizes = [128, 32], strides = [1, 1]} : vector<128x96xf32> to vector<128x32xf32>
    %223 = vector.shape_cast %222 : vector<128x32xf32> to vector<8x16x32xf32>
    %cst_86 = arith.constant 0.000000e+00 : f32
    %224 = vector.broadcast %cst_86 : f32 to vector<128x32xf32>
    %225 = vector.extract_strided_slice %219 {offsets = [0, 0, 0], sizes = [8, 16, 8], strides = [1, 1, 1]} : vector<8x16x32xf32> to vector<8x16x8xf32>
    %226 = vector.extract_strided_slice %221 {offsets = [0, 0, 0], sizes = [8, 16, 8], strides = [1, 1, 1]} : vector<8x16x32xf32> to vector<8x16x8xf32>
    "tpu.trace_start"() <{level = 10 : i32, message = "nqd,nkd->nqk"}> : () -> ()
    %cst_87 = arith.constant dense<0.000000e+00> : vector<8x16x16xf32>
    %227 = tpu.matmul %225, %226, %cst_87 {dimension_numbers = #tpu.dot_dimension_numbers<[2], [2], [1], [1], [0, 0, 0, 1, 1, 1], [0], [0]>} : vector<8x16x8xf32>, vector<8x16x8xf32>, vector<8x16x16xf32> -> vector<8x16x16xf32>
    "tpu.trace_stop"() : () -> ()
    %228 = arith.addf %227, %2 : vector<8x16x16xf32>
    %cst_88 = arith.constant dense<0xFF800000> : vector<8x16xf32>
    %229 = vector.multi_reduction <maximumf>, %228, %cst_88 [2] : vector<8x16x16xf32> to vector<8x16xf32>
    %230 = vector.shape_cast %229 : vector<8x16xf32> to vector<8x16x1xf32>
    %231 = vector.broadcast %230 : vector<8x16x1xf32> to vector<8x16x16xf32>
    %232 = arith.subf %228, %231 : vector<8x16x16xf32>
    %233 = math.exp %232 : vector<8x16x16xf32>
    %cst_89 = arith.constant dense<0.000000e+00> : vector<8x16xf32>
    %234 = vector.multi_reduction <add>, %233, %cst_89 [2] : vector<8x16x16xf32> to vector<8x16xf32>
    %235 = vector.shape_cast %234 : vector<8x16xf32> to vector<8x16x1xf32>
    %236 = tpu.reciprocal %235 {approx = true} : vector<8x16x1xf32> -> vector<8x16x1xf32>
    %237 = vector.broadcast %236 : vector<8x16x1xf32> to vector<8x16x16xf32>
    %238 = arith.mulf %233, %237 : vector<8x16x16xf32>
    %239 = vector.extract_strided_slice %223 {offsets = [0, 0, 0], sizes = [8, 16, 8], strides = [1, 1, 1]} : vector<8x16x32xf32> to vector<8x16x8xf32>
    "tpu.trace_start"() <{level = 10 : i32, message = "nqk,nkd->nqd"}> : () -> ()
    %cst_90 = arith.constant dense<0.000000e+00> : vector<8x16x8xf32>
    %240 = tpu.matmul %238, %239, %cst_90 {dimension_numbers = #tpu.dot_dimension_numbers<[2], [1], [1], [2], [0, 0, 0, 1, 1, 2], [0], [0]>} : vector<8x16x16xf32>, vector<8x16x8xf32>, vector<8x16x8xf32> -> vector<8x16x8xf32>
    "tpu.trace_stop"() : () -> ()
    %241 = vector.shape_cast %240 : vector<8x16x8xf32> to vector<128x8xf32>
    %242 = arith.truncf %241 : vector<128x8xf32> to vector<128x8xbf16>
    %c1_91 = arith.constant 1 : index
    %c0_92 = arith.constant 0 : index
    %c0_93 = arith.constant 0 : index
    %c0_94 = arith.constant 0 : index
    %243 = vector.load %arg6[%c1_91, %c0_92, %c0_93, %c0_94] : memref<2x4x8x32xbf16, #tpu.memory_space<vmem>>, vector<1x1x8x32xbf16>
    %244 = vector.shape_cast %243 : vector<1x1x8x32xbf16> to vector<8x32xbf16>
    %cst_95 = arith.constant dense<0.000000e+00> : vector<128x32xf32>
    %245 = tpu.matmul %242, %244, %cst_95 {dimension_numbers = #tpu.dot_dimension_numbers<[1], [0], [0], [1], [0, 0, 1, 1], [], []>} : vector<128x8xbf16>, vector<8x32xbf16>, vector<128x32xf32> -> vector<128x32xf32>
    %246 = arith.addf %224, %245 : vector<128x32xf32>
    %247 = vector.extract_strided_slice %219 {offsets = [0, 0, 8], sizes = [8, 16, 8], strides = [1, 1, 1]} : vector<8x16x32xf32> to vector<8x16x8xf32>
    %248 = vector.extract_strided_slice %221 {offsets = [0, 0, 8], sizes = [8, 16, 8], strides = [1, 1, 1]} : vector<8x16x32xf32> to vector<8x16x8xf32>
    "tpu.trace_start"() <{level = 10 : i32, message = "nqd,nkd->nqk"}> : () -> ()
    %cst_96 = arith.constant dense<0.000000e+00> : vector<8x16x16xf32>
    %249 = tpu.matmul %247, %248, %cst_96 {dimension_numbers = #tpu.dot_dimension_numbers<[2], [2], [1], [1], [0, 0, 0, 1, 1, 1], [0], [0]>} : vector<8x16x8xf32>, vector<8x16x8xf32>, vector<8x16x16xf32> -> vector<8x16x16xf32>
    "tpu.trace_stop"() : () -> ()
    %250 = arith.addf %249, %2 : vector<8x16x16xf32>
    %cst_97 = arith.constant dense<0xFF800000> : vector<8x16xf32>
    %251 = vector.multi_reduction <maximumf>, %250, %cst_97 [2] : vector<8x16x16xf32> to vector<8x16xf32>
    %252 = vector.shape_cast %251 : vector<8x16xf32> to vector<8x16x1xf32>
    %253 = vector.broadcast %252 : vector<8x16x1xf32> to vector<8x16x16xf32>
    %254 = arith.subf %250, %253 : vector<8x16x16xf32>
    %255 = math.exp %254 : vector<8x16x16xf32>
    %cst_98 = arith.constant dense<0.000000e+00> : vector<8x16xf32>
    %256 = vector.multi_reduction <add>, %255, %cst_98 [2] : vector<8x16x16xf32> to vector<8x16xf32>
    %257 = vector.shape_cast %256 : vector<8x16xf32> to vector<8x16x1xf32>
    %258 = tpu.reciprocal %257 {approx = true} : vector<8x16x1xf32> -> vector<8x16x1xf32>
    %259 = vector.broadcast %258 : vector<8x16x1xf32> to vector<8x16x16xf32>
    %260 = arith.mulf %255, %259 : vector<8x16x16xf32>
    %261 = vector.extract_strided_slice %223 {offsets = [0, 0, 8], sizes = [8, 16, 8], strides = [1, 1, 1]} : vector<8x16x32xf32> to vector<8x16x8xf32>
    "tpu.trace_start"() <{level = 10 : i32, message = "nqk,nkd->nqd"}> : () -> ()
    %cst_99 = arith.constant dense<0.000000e+00> : vector<8x16x8xf32>
    %262 = tpu.matmul %260, %261, %cst_99 {dimension_numbers = #tpu.dot_dimension_numbers<[2], [1], [1], [2], [0, 0, 0, 1, 1, 2], [0], [0]>} : vector<8x16x16xf32>, vector<8x16x8xf32>, vector<8x16x8xf32> -> vector<8x16x8xf32>
    "tpu.trace_stop"() : () -> ()
    %263 = vector.shape_cast %262 : vector<8x16x8xf32> to vector<128x8xf32>
    %264 = arith.truncf %263 : vector<128x8xf32> to vector<128x8xbf16>
    %c1_100 = arith.constant 1 : index
    %c1_101 = arith.constant 1 : index
    %c0_102 = arith.constant 0 : index
    %c0_103 = arith.constant 0 : index
    %265 = vector.load %arg6[%c1_100, %c1_101, %c0_102, %c0_103] : memref<2x4x8x32xbf16, #tpu.memory_space<vmem>>, vector<1x1x8x32xbf16>
    %266 = vector.shape_cast %265 : vector<1x1x8x32xbf16> to vector<8x32xbf16>
    %cst_104 = arith.constant dense<0.000000e+00> : vector<128x32xf32>
    %267 = tpu.matmul %264, %266, %cst_104 {dimension_numbers = #tpu.dot_dimension_numbers<[1], [0], [0], [1], [0, 0, 1, 1], [], []>} : vector<128x8xbf16>, vector<8x32xbf16>, vector<128x32xf32> -> vector<128x32xf32>
    %268 = arith.addf %246, %267 : vector<128x32xf32>
    %269 = vector.extract_strided_slice %219 {offsets = [0, 0, 16], sizes = [8, 16, 8], strides = [1, 1, 1]} : vector<8x16x32xf32> to vector<8x16x8xf32>
    %270 = vector.extract_strided_slice %221 {offsets = [0, 0, 16], sizes = [8, 16, 8], strides = [1, 1, 1]} : vector<8x16x32xf32> to vector<8x16x8xf32>
    "tpu.trace_start"() <{level = 10 : i32, message = "nqd,nkd->nqk"}> : () -> ()
    %cst_105 = arith.constant dense<0.000000e+00> : vector<8x16x16xf32>
    %271 = tpu.matmul %269, %270, %cst_105 {dimension_numbers = #tpu.dot_dimension_numbers<[2], [2], [1], [1], [0, 0, 0, 1, 1, 1], [0], [0]>} : vector<8x16x8xf32>, vector<8x16x8xf32>, vector<8x16x16xf32> -> vector<8x16x16xf32>
    "tpu.trace_stop"() : () -> ()
    %272 = arith.addf %271, %2 : vector<8x16x16xf32>
    %cst_106 = arith.constant dense<0xFF800000> : vector<8x16xf32>
    %273 = vector.multi_reduction <maximumf>, %272, %cst_106 [2] : vector<8x16x16xf32> to vector<8x16xf32>
    %274 = vector.shape_cast %273 : vector<8x16xf32> to vector<8x16x1xf32>
    %275 = vector.broadcast %274 : vector<8x16x1xf32> to vector<8x16x16xf32>
    %276 = arith.subf %272, %275 : vector<8x16x16xf32>
    %277 = math.exp %276 : vector<8x16x16xf32>
    %cst_107 = arith.constant dense<0.000000e+00> : vector<8x16xf32>
    %278 = vector.multi_reduction <add>, %277, %cst_107 [2] : vector<8x16x16xf32> to vector<8x16xf32>
    %279 = vector.shape_cast %278 : vector<8x16xf32> to vector<8x16x1xf32>
    %280 = tpu.reciprocal %279 {approx = true} : vector<8x16x1xf32> -> vector<8x16x1xf32>
    %281 = vector.broadcast %280 : vector<8x16x1xf32> to vector<8x16x16xf32>
    %282 = arith.mulf %277, %281 : vector<8x16x16xf32>
    %283 = vector.extract_strided_slice %223 {offsets = [0, 0, 16], sizes = [8, 16, 8], strides = [1, 1, 1]} : vector<8x16x32xf32> to vector<8x16x8xf32>
    "tpu.trace_start"() <{level = 10 : i32, message = "nqk,nkd->nqd"}> : () -> ()
    %cst_108 = arith.constant dense<0.000000e+00> : vector<8x16x8xf32>
    %284 = tpu.matmul %282, %283, %cst_108 {dimension_numbers = #tpu.dot_dimension_numbers<[2], [1], [1], [2], [0, 0, 0, 1, 1, 2], [0], [0]>} : vector<8x16x16xf32>, vector<8x16x8xf32>, vector<8x16x8xf32> -> vector<8x16x8xf32>
    "tpu.trace_stop"() : () -> ()
    %285 = vector.shape_cast %284 : vector<8x16x8xf32> to vector<128x8xf32>
    %286 = arith.truncf %285 : vector<128x8xf32> to vector<128x8xbf16>
    %c1_109 = arith.constant 1 : index
    %c2_110 = arith.constant 2 : index
    %c0_111 = arith.constant 0 : index
    %c0_112 = arith.constant 0 : index
    %287 = vector.load %arg6[%c1_109, %c2_110, %c0_111, %c0_112] : memref<2x4x8x32xbf16, #tpu.memory_space<vmem>>, vector<1x1x8x32xbf16>
    %288 = vector.shape_cast %287 : vector<1x1x8x32xbf16> to vector<8x32xbf16>
    %cst_113 = arith.constant dense<0.000000e+00> : vector<128x32xf32>
    %289 = tpu.matmul %286, %288, %cst_113 {dimension_numbers = #tpu.dot_dimension_numbers<[1], [0], [0], [1], [0, 0, 1, 1], [], []>} : vector<128x8xbf16>, vector<8x32xbf16>, vector<128x32xf32> -> vector<128x32xf32>
    %290 = arith.addf %268, %289 : vector<128x32xf32>
    %291 = vector.extract_strided_slice %219 {offsets = [0, 0, 24], sizes = [8, 16, 8], strides = [1, 1, 1]} : vector<8x16x32xf32> to vector<8x16x8xf32>
    %292 = vector.extract_strided_slice %221 {offsets = [0, 0, 24], sizes = [8, 16, 8], strides = [1, 1, 1]} : vector<8x16x32xf32> to vector<8x16x8xf32>
    "tpu.trace_start"() <{level = 10 : i32, message = "nqd,nkd->nqk"}> : () -> ()
    %cst_114 = arith.constant dense<0.000000e+00> : vector<8x16x16xf32>
    %293 = tpu.matmul %291, %292, %cst_114 {dimension_numbers = #tpu.dot_dimension_numbers<[2], [2], [1], [1], [0, 0, 0, 1, 1, 1], [0], [0]>} : vector<8x16x8xf32>, vector<8x16x8xf32>, vector<8x16x16xf32> -> vector<8x16x16xf32>
    "tpu.trace_stop"() : () -> ()
    %294 = arith.addf %293, %2 : vector<8x16x16xf32>
    %cst_115 = arith.constant dense<0xFF800000> : vector<8x16xf32>
    %295 = vector.multi_reduction <maximumf>, %294, %cst_115 [2] : vector<8x16x16xf32> to vector<8x16xf32>
    %296 = vector.shape_cast %295 : vector<8x16xf32> to vector<8x16x1xf32>
    %297 = vector.broadcast %296 : vector<8x16x1xf32> to vector<8x16x16xf32>
    %298 = arith.subf %294, %297 : vector<8x16x16xf32>
    %299 = math.exp %298 : vector<8x16x16xf32>
    %cst_116 = arith.constant dense<0.000000e+00> : vector<8x16xf32>
    %300 = vector.multi_reduction <add>, %299, %cst_116 [2] : vector<8x16x16xf32> to vector<8x16xf32>
    %301 = vector.shape_cast %300 : vector<8x16xf32> to vector<8x16x1xf32>
    %302 = tpu.reciprocal %301 {approx = true} : vector<8x16x1xf32> -> vector<8x16x1xf32>
    %303 = vector.broadcast %302 : vector<8x16x1xf32> to vector<8x16x16xf32>
    %304 = arith.mulf %299, %303 : vector<8x16x16xf32>
    %305 = vector.extract_strided_slice %223 {offsets = [0, 0, 24], sizes = [8, 16, 8], strides = [1, 1, 1]} : vector<8x16x32xf32> to vector<8x16x8xf32>
    "tpu.trace_start"() <{level = 10 : i32, message = "nqk,nkd->nqd"}> : () -> ()
    %cst_117 = arith.constant dense<0.000000e+00> : vector<8x16x8xf32>
    %306 = tpu.matmul %304, %305, %cst_117 {dimension_numbers = #tpu.dot_dimension_numbers<[2], [1], [1], [2], [0, 0, 0, 1, 1, 2], [0], [0]>} : vector<8x16x16xf32>, vector<8x16x8xf32>, vector<8x16x8xf32> -> vector<8x16x8xf32>
    "tpu.trace_stop"() : () -> ()
    %307 = vector.shape_cast %306 : vector<8x16x8xf32> to vector<128x8xf32>
    %308 = arith.truncf %307 : vector<128x8xf32> to vector<128x8xbf16>
    %c1_118 = arith.constant 1 : index
    %c3_119 = arith.constant 3 : index
    %c0_120 = arith.constant 0 : index
    %c0_121 = arith.constant 0 : index
    %309 = vector.load %arg6[%c1_118, %c3_119, %c0_120, %c0_121] : memref<2x4x8x32xbf16, #tpu.memory_space<vmem>>, vector<1x1x8x32xbf16>
    %310 = vector.shape_cast %309 : vector<1x1x8x32xbf16> to vector<8x32xbf16>
    %cst_122 = arith.constant dense<0.000000e+00> : vector<128x32xf32>
    %311 = tpu.matmul %308, %310, %cst_122 {dimension_numbers = #tpu.dot_dimension_numbers<[1], [0], [0], [1], [0, 0, 1, 1], [], []>} : vector<128x8xbf16>, vector<8x32xbf16>, vector<128x32xf32> -> vector<128x32xf32>
    %312 = arith.addf %290, %311 : vector<128x32xf32>
    %313 = arith.addf %183, %312 : vector<128x32xf32>
    %314 = vector.extract_strided_slice %185 {offsets = [4, 0], sizes = [1, 32], strides = [1, 1]} : vector<6x32xf32> to vector<1x32xf32>
    %315 = vector.broadcast %314 : vector<1x32xf32> to vector<128x32xf32>
    %316 = arith.addf %313, %315 : vector<128x32xf32>
    %cst_123 = arith.constant dense<0.000000e+00> : vector<128xf32>
    %317 = vector.multi_reduction <add>, %316, %cst_123 [1] : vector<128x32xf32> to vector<128xf32>
    %318 = vector.shape_cast %317 : vector<128xf32> to vector<128x1xf32>
    %cst_124 = arith.constant 3.200000e+01 : f32
    %319 = vector.broadcast %cst_124 : f32 to vector<128x1xf32>
    %320 = arith.divf %318, %319 : vector<128x1xf32>
    %321 = vector.broadcast %320 : vector<128x1xf32> to vector<128x32xf32>
    %322 = arith.subf %316, %321 : vector<128x32xf32>
    %323 = arith.mulf %322, %322 : vector<128x32xf32>
    %cst_125 = arith.constant dense<0.000000e+00> : vector<128xf32>
    %324 = vector.multi_reduction <add>, %323, %cst_125 [1] : vector<128x32xf32> to vector<128xf32>
    %325 = vector.shape_cast %324 : vector<128xf32> to vector<128x1xf32>
    %cst_126 = arith.constant 3.200000e+01 : f32
    %326 = vector.broadcast %cst_126 : f32 to vector<128x1xf32>
    %327 = arith.divf %325, %326 : vector<128x1xf32>
    %328 = vector.broadcast %320 : vector<128x1xf32> to vector<128x32xf32>
    %329 = arith.subf %316, %328 : vector<128x32xf32>
    %cst_127 = arith.constant 9.99999974E-6 : f32
    %330 = vector.broadcast %cst_127 : f32 to vector<128x1xf32>
    %331 = arith.addf %327, %330 : vector<128x1xf32>
    %332 = math.rsqrt %331 : vector<128x1xf32>
    %333 = vector.broadcast %332 : vector<128x1xf32> to vector<128x32xf32>
    %334 = arith.mulf %329, %333 : vector<128x32xf32>
    %335 = vector.extract_strided_slice %185 {offsets = [2, 0], sizes = [1, 32], strides = [1, 1]} : vector<6x32xf32> to vector<1x32xf32>
    %336 = vector.broadcast %335 : vector<1x32xf32> to vector<128x32xf32>
    %337 = arith.mulf %334, %336 : vector<128x32xf32>
    %338 = vector.extract_strided_slice %185 {offsets = [3, 0], sizes = [1, 32], strides = [1, 1]} : vector<6x32xf32> to vector<1x32xf32>
    %339 = vector.broadcast %338 : vector<1x32xf32> to vector<128x32xf32>
    %340 = arith.addf %337, %339 : vector<128x32xf32>
    %341 = arith.truncf %340 : vector<128x32xf32> to vector<128x32xbf16>
    %c1_128 = arith.constant 1 : index
    %c0_129 = arith.constant 0 : index
    %c0_130 = arith.constant 0 : index
    %342 = vector.load %arg7[%c1_128, %c0_129, %c0_130] : memref<2x32x128xbf16, #tpu.memory_space<vmem>>, vector<1x32x128xbf16>
    %343 = vector.shape_cast %342 : vector<1x32x128xbf16> to vector<32x128xbf16>
    %cst_131 = arith.constant dense<0.000000e+00> : vector<128x128xf32>
    %344 = tpu.matmul %341, %343, %cst_131 {dimension_numbers = #tpu.dot_dimension_numbers<[1], [0], [0], [1], [0, 0, 1, 1], [], []>} : vector<128x32xbf16>, vector<32x128xbf16>, vector<128x128xf32> -> vector<128x128xf32>
    %c1_132 = arith.constant 1 : index
    %c0_133 = arith.constant 0 : index
    %c0_134 = arith.constant 0 : index
    %345 = vector.load %arg8[%c1_132, %c0_133, %c0_134] : memref<2x1x128xf32, #tpu.memory_space<vmem>>, vector<1x1x128xf32>
    %346 = vector.shape_cast %345 : vector<1x1x128xf32> to vector<1x128xf32>
    %347 = vector.broadcast %346 : vector<1x128xf32> to vector<128x128xf32>
    %348 = arith.addf %344, %347 : vector<128x128xf32>
    %cst_135 = arith.constant 1.702000e+00 : f32
    %349 = vector.broadcast %cst_135 : f32 to vector<128x128xf32>
    %350 = arith.mulf %349, %348 : vector<128x128xf32>
    %351 = arith.negf %350 : vector<128x128xf32>
    %352 = math.exp %351 : vector<128x128xf32>
    %cst_136 = arith.constant 1.000000e+00 : f32
    %353 = vector.broadcast %cst_136 : f32 to vector<128x128xf32>
    %354 = arith.addf %353, %352 : vector<128x128xf32>
    %355 = arith.divf %353, %354 : vector<128x128xf32>
    %356 = arith.mulf %348, %355 : vector<128x128xf32>
    %357 = arith.truncf %356 : vector<128x128xf32> to vector<128x128xbf16>
    %c1_137 = arith.constant 1 : index
    %c0_138 = arith.constant 0 : index
    %c0_139 = arith.constant 0 : index
    %358 = vector.load %arg9[%c1_137, %c0_138, %c0_139] : memref<2x128x32xbf16, #tpu.memory_space<vmem>>, vector<1x128x32xbf16>
    %359 = vector.shape_cast %358 : vector<1x128x32xbf16> to vector<128x32xbf16>
    %cst_140 = arith.constant dense<0.000000e+00> : vector<128x32xf32>
    %360 = tpu.matmul %357, %359, %cst_140 {dimension_numbers = #tpu.dot_dimension_numbers<[1], [0], [0], [1], [0, 0, 1, 1], [], []>} : vector<128x128xbf16>, vector<128x32xbf16>, vector<128x32xf32> -> vector<128x32xf32>
    %361 = arith.addf %316, %360 : vector<128x32xf32>
    %362 = vector.extract_strided_slice %185 {offsets = [5, 0], sizes = [1, 32], strides = [1, 1]} : vector<6x32xf32> to vector<1x32xf32>
    %363 = vector.broadcast %362 : vector<1x32xf32> to vector<128x32xf32>
    %364 = arith.addf %361, %363 : vector<128x32xf32>
    %cst_141 = arith.constant dense<0.000000e+00> : vector<128xf32>
    %365 = vector.multi_reduction <add>, %364, %cst_141 [1] : vector<128x32xf32> to vector<128xf32>
    %366 = vector.shape_cast %365 : vector<128xf32> to vector<128x1xf32>
    %cst_142 = arith.constant 3.200000e+01 : f32
    %367 = vector.broadcast %cst_142 : f32 to vector<128x1xf32>
    %368 = arith.divf %366, %367 : vector<128x1xf32>
    %369 = vector.broadcast %368 : vector<128x1xf32> to vector<128x32xf32>
    %370 = arith.subf %364, %369 : vector<128x32xf32>
    %371 = arith.mulf %370, %370 : vector<128x32xf32>
    %cst_143 = arith.constant dense<0.000000e+00> : vector<128xf32>
    %372 = vector.multi_reduction <add>, %371, %cst_143 [1] : vector<128x32xf32> to vector<128xf32>
    %373 = vector.shape_cast %372 : vector<128xf32> to vector<128x1xf32>
    %cst_144 = arith.constant 3.200000e+01 : f32
    %374 = vector.broadcast %cst_144 : f32 to vector<128x1xf32>
    %375 = arith.divf %373, %374 : vector<128x1xf32>
    %376 = vector.broadcast %368 : vector<128x1xf32> to vector<128x32xf32>
    %377 = arith.subf %364, %376 : vector<128x32xf32>
    %cst_145 = arith.constant 9.99999974E-6 : f32
    %378 = vector.broadcast %cst_145 : f32 to vector<128x1xf32>
    %379 = arith.addf %375, %378 : vector<128x1xf32>
    %380 = math.rsqrt %379 : vector<128x1xf32>
    %381 = vector.broadcast %380 : vector<128x1xf32> to vector<128x32xf32>
    %382 = arith.mulf %377, %381 : vector<128x32xf32>
    %c0_146 = arith.constant 0 : index
    %c0_147 = arith.constant 0 : index
    %383 = vector.load %arg10[%c0_146, %c0_147] : memref<2x32xf32, #tpu.memory_space<vmem>>, vector<1x32xf32>
    %384 = vector.broadcast %383 : vector<1x32xf32> to vector<128x32xf32>
    %385 = arith.mulf %382, %384 : vector<128x32xf32>
    %c1_148 = arith.constant 1 : index
    %c0_149 = arith.constant 0 : index
    %386 = vector.load %arg10[%c1_148, %c0_149] : memref<2x32xf32, #tpu.memory_space<vmem>>, vector<1x32xf32>
    %387 = vector.broadcast %386 : vector<1x32xf32> to vector<128x32xf32>
    %388 = arith.addf %385, %387 : vector<128x32xf32>
    %389 = vector.shape_cast %388 : vector<128x32xf32> to vector<8x16x32xf32>
    %c0_150 = arith.constant 0 : index
    %c0_151 = arith.constant 0 : index
    %c0_152 = arith.constant 0 : index
    %390 = vector.load %arg11[%c0_150, %c0_151, %c0_152] : memref<8x16x32xf32, #tpu.memory_space<vmem>>, vector<8x16x32xf32>
    tpu.vector_store %arg11[%c0_150, %c0_151, %c0_152], %389 {strides = array<i32>} : memref<8x16x32xf32, #tpu.memory_space<vmem>>, vector<8x16x32xf32>,
    return
  }
  func.func @transform_0(%arg0: i32) -> (i32, i32, i32) {
    %c0_i32 = arith.constant 0 : i32
    %c0_i32_0 = arith.constant 0 : i32
    %c0_i32_1 = arith.constant 0 : i32
    return %arg0, %c0_i32, %c0_i32_0 : i32, i32, i32
  }
  func.func @transform_1(%arg0: i32) -> (i32, i32, i32) {
    %c0_i32 = arith.constant 0 : i32
    %c0_i32_0 = arith.constant 0 : i32
    %c0_i32_1 = arith.constant 0 : i32
    return %arg0, %c0_i32, %c0_i32_0 : i32, i32, i32
  }
  func.func @transform_2(%arg0: i32) -> (i32, i32, i32) {
    %c0_i32 = arith.constant 0 : i32
    %c0_i32_0 = arith.constant 0 : i32
    %c0_i32_1 = arith.constant 0 : i32
    %c0_i32_2 = arith.constant 0 : i32
    return %c0_i32, %c0_i32_0, %c0_i32_1 : i32, i32, i32
  }
  func.func @transform_3(%arg0: i32) -> (i32, i32, i32) {
    %c0_i32 = arith.constant 0 : i32
    %c0_i32_0 = arith.constant 0 : i32
    %c0_i32_1 = arith.constant 0 : i32
    %c0_i32_2 = arith.constant 0 : i32
    return %c0_i32, %c0_i32_0, %c0_i32_1 : i32, i32, i32
  }
  func.func @transform_4(%arg0: i32) -> (i32, i32, i32) {
    %c0_i32 = arith.constant 0 : i32
    %c0_i32_0 = arith.constant 0 : i32
    %c0_i32_1 = arith.constant 0 : i32
    %c0_i32_2 = arith.constant 0 : i32
    return %c0_i32, %c0_i32_0, %c0_i32_1 : i32, i32, i32
  }
  func.func @transform_5(%arg0: i32) -> (i32, i32, i32, i32) {
    %c0_i32 = arith.constant 0 : i32
    %c0_i32_0 = arith.constant 0 : i32
    %c0_i32_1 = arith.constant 0 : i32
    %c0_i32_2 = arith.constant 0 : i32
    %c0_i32_3 = arith.constant 0 : i32
    return %c0_i32, %c0_i32_0, %c0_i32_1, %c0_i32_2 : i32, i32, i32, i32
  }
  func.func @transform_6(%arg0: i32) -> (i32, i32, i32) {
    %c0_i32 = arith.constant 0 : i32
    %c0_i32_0 = arith.constant 0 : i32
    %c0_i32_1 = arith.constant 0 : i32
    %c0_i32_2 = arith.constant 0 : i32
    return %c0_i32, %c0_i32_0, %c0_i32_1 : i32, i32, i32
  }
  func.func @transform_7(%arg0: i32) -> (i32, i32, i32) {
    %c0_i32 = arith.constant 0 : i32
    %c0_i32_0 = arith.constant 0 : i32
    %c0_i32_1 = arith.constant 0 : i32
    %c0_i32_2 = arith.constant 0 : i32
    return %c0_i32, %c0_i32_0, %c0_i32_1 : i32, i32, i32
  }
  func.func @transform_8(%arg0: i32) -> (i32, i32, i32) {
    %c0_i32 = arith.constant 0 : i32
    %c0_i32_0 = arith.constant 0 : i32
    %c0_i32_1 = arith.constant 0 : i32
    %c0_i32_2 = arith.constant 0 : i32
    return %c0_i32, %c0_i32_0, %c0_i32_1 : i32, i32, i32
  }
  func.func @transform_9(%arg0: i32) -> (i32, i32) {
    %c0_i32 = arith.constant 0 : i32
    %c0_i32_0 = arith.constant 0 : i32
    %c0_i32_1 = arith.constant 0 : i32
    return %c0_i32, %c0_i32_0 : i32, i32
  }
  func.func @transform_10(%arg0: i32) -> (i32, i32, i32) {
    %c0_i32 = arith.constant 0 : i32
    %c0_i32_0 = arith.constant 0 : i32
    %c0_i32_1 = arith.constant 0 : i32
    return %arg0, %c0_i32, %c0_i32_0 : i32, i32, i32
  }
}

</mosaic_0001>

<bundles_post_ra>
// kernel: tpu_custom_call.1
= control target key start
LH: loop header
LB: loop body
LE: loop exit
PB: predicated region body
PF: predicated region fallthrough
CT: control target
= control target key end

     0   :  { %s26291_s0 = inlined_call_operand.hbm [shape: f32[16,16,32], index: 0, kind: input, shape index: {}]   ;;  %s26292_s1 = inlined_call_operand.hbm [shape: f32[16,16,16], index: 1, kind: input, shape index: {}]   ;;  %s26293_s2 = inlined_call_operand.vmem [shape: f32[2,6,32], index: 2, kind: input, shape index: {}]   ;;  %s26294_s3 = inlined_call_operand.vmem [shape: bf16[2,32,96], index: 3, kind: input, shape index: {}]   ;;  %s26295_s4 = inlined_call_operand.vmem [shape: f32[2,1,96], index: 4, kind: input, shape index: {}]   ;;  %s26296_s5 = inlined_call_operand.vmem [shape: bf16[2,4,8,32], index: 5, kind: input, shape index: {}]   ;;  %s26297_s6 = inlined_call_operand.vmem [shape: bf16[2,32,128], index: 6, kind: input, shape index: {}]   ;;  %s26298_s7 = inlined_call_operand.vmem [shape: f32[2,1,128], index: 7, kind: input, shape index: {}]   ;;  %s26299_s8 = inlined_call_operand.vmem [shape: bf16[2,128,32], index: 8, kind: input, shape index: {}]   ;;  %s26300_s9 = inlined_call_operand.vmem [shape: f32[2,32], index: 9, kind: input, shape index: {}]   ;;  %s26301_s10 = inlined_call_operand.hbm [shape: f32[16,16,32], index: 10, kind: output, shape index: {}]  }
   0x1   :  { %26414 = sst [smem:[#allocation67_spill]] %s26291_s0 }
   0x2   :  { %15 = vsyncpa [#allocation3], 0 }
   0x3   :  { %17 = vsyncpa [#allocation3 + $0x1], 0 }
   0x4   :  { %18 = vsyncpa [#allocation6], 0 }
   0x5   :  { %20 = vsyncpa [#allocation6 + $0x1], 0 }
   0x6   :  { %21 = vsyncpa [#allocation4], 0 }
   0x7   :  { %23 = vsyncpa [#allocation4 + $0x1], 0  ;;  %s20695_s13 = smov 0   ;;  %s20697_s14 = smov 0  }
   0x8   :  { %s20699_s15 = smov 0   ;;  %s20701_s16 = smov 0  }
   0x9 LB: > { %26415 = sst [smem:[#allocation11_spill]] %s20616_s15  ;;  %s20716_s17 = sadd.s32 4294967295, %s20620_s16   ;;  %s20620_s16 = sphi %s20701_s16, %s26713_s16   ;;  %s20616_s15 = sphi %s20699_s15, %s26715_s15   ;;  %s20612_s14 = sphi %s20697_s14, %s26717_s14   ;;  %s20608_s13 = sphi %s20695_s13, %s26716_s13  }
   0xa   : > { %s17087_s18 = sadd.s32 4294967294, %s20620_s16   ;;  %s20720_s19 = sadd.s32 1, %s20620_s16  }
   0xb   : > { %26416 = sst [smem:[#allocation12_spill]] %s20720_s19  ;;  %s36_s20 = sadd.s32 1, %s20616_s15 }
   0xc   : > { %s33_s21 = ssub.s32 %s20620_s16, %s20720_s19  ;;  %p43_p0 = scmp.ne.s32.totalorder %s20616_s15, %s20612_s14 }
   0xd   : > { %p34_p1 = scmp.eq.s32.totalorder %s33_s21, 0  ;;  %p44_p2 = scmp.eq.s32.totalorder %s20620_s16, 0 }
   0xe   : > { %p49_p3 = scmp.ne.s32.totalorder %s20612_s14, %s20608_s13  ;;  %p50_p4 = scmp.eq.s32.totalorder %s20716_s17, 0 }
   0xf   : > { %s20732_s22 = scalar_select %p34_p1, %s20616_s15, %s36_s20  }
  0x10   : > { %p20734_p5 = por %p44_p2, %p43_p0  ;;  %p20738_p6 = por %p50_p4, %p49_p3 }
  0x11   : > { %26417 = sst [smem:[#allocation13_spill]] %s20732_s22  ;;  %p267_p7 = scmp.eq.s32.totalorder %s20716_s17, 1 }
  0x12   : > { %s26419_s24 = scalar_select %p20738_p6, 1, 0 }
  0x13   : > { %p273_p8 = scmp.eq.s32.totalorder %s17087_s18, 1  ;;  %p19555_p10 = scmp.lt.s32.totalorder %s20620_s16, 2 }
  0x14   : > { %p20745_p11 = por %p267_p7, %p43_p0  ;;  %s20754_s27 = sand.u32 1, %s20616_s15  }
  0x15   : > { %p20749_p12 = por %p273_p8, %p49_p3  ;;  %s26304_s28 = sshll.u32 %s20620_s16, 11 }
  0x16   : > { %s26420_s25 = scalar_select %p20745_p11, 1, 0 }
  0x17   : > { %s26421_s26 = scalar_select %p20749_p12, 1, 0 }
  0x18   : > { %s26303_s29 = sshll.u32 %s20754_s27, 7  ;;  %s26423_s0 = sld [smem:[#allocation67_spill]] }
  0x19   : > { %26422 = sst [smem:[#allocation14_spill]] %s26421_s26  ;;  %s321_s18 = scalar_lea.vmem [#allocation2], %s26303_s29 }
  0x1a   : > { %s329_s20 = sshll.u32 %s321_s18, 4  ;;  %p20769_p13 = pnand %p19555_p10, %p20734_p5  ;;  %s20773_s20 = int_to_ptr.vmem [resolvable:$true] %s329_s20 }
  0x1c   : > { %p20498_p1 = pneg %p20769_p13 }
  0x1e   : > { %s20763_s12 = scalar_lea.hbm %s26423_s0, %s26304_s28  ;;  %s20501_s23 = scalar_lea.hbm %s26423_s0, 4096 }
  0x1f   : > { %s20496_s15 = scalar_lea.hbm %s20763_s12, 2048  ;;  %p20502_p4 = scmp.lt.s32.totalorder %s20763_s12, %s26423_s0 }
  0x20   : > { %p20497_p0 = scmp.ne.s32.totalorder %s20763_s12, %s20496_s15  ;;  %p20503_p5 = scmp.lt.s32.totalorder %s20501_s23, %s20496_s15 }
  0x22   : > { %p20499_p2 = pnand %p20498_p1, %p20497_p0  ;;  %p20504_p7 = por %p20503_p5, %p20502_p4 }
  0x24   : > { %p20500_p3 = pneg %p20499_p2 }
  0x26   : > { %p20505_p8 = pnand %p20504_p7, %p20500_p3 }
  0x28   : > { %20508 = shalt.err (!%p20505_p8)
}
  0x29   : > { %s20509_s28 = scalar_lea.vmem %s20773_s20, 2048  ;;  %s20622_s30 = smov [#allocation2]  }
  0x2a   : > { %p20510_p10 = scmp.ne.s32.totalorder %s20773_s20, %s20509_s28  ;;  %s20514_s11 = sshll.u32 %s20622_s30, 4  ;;  %s20515_s11 = int_to_ptr.vmem [resolvable:$false] %s20514_s11 }
  0x2b   : > { %s20516_s22 = scalar_lea.vmem %s20515_s11, 4096  ;;  %p20517_p9 = scmp.lt.s32.totalorder %s20773_s20, %s20515_s11 }
  0x2c   : > { %p20512_p0 = pnand %p20510_p10, %p20498_p1  ;;  %p20518_p12 = scmp.lt.s32.totalorder %s20516_s22, %s20509_s28 }
  0x2e   : > { %p20513_p2 = pneg %p20512_p0  ;;  %p20519_p11 = por %p20518_p12, %p20517_p9 }
  0x30   : > { %p20520_p4 = pnand %p20519_p11, %p20513_p2 }
  0x32   : > { %20523 = shalt.err (!%p20520_p4)
}
  0x33   : > { %s26309_s15 = smov 128   ;;  %s20624_s29 = smov 8  }
  0x34   : > { %s26425_s22 = scalar_lea.sflag [#allocation3], %s20754_s27  ;;  %p17098_p9 = scmp.ge.s32.totalorder %s20620_s16, 1 }
  0x35   : > { %19547 = dma.hbm_to_vmem [thread:$0]  (!%p20769_p13), %s20763_s12, 2048, %s20773_s20, %s26425_s22, %s26309_s15, %s26309_s15, %s20624_s29  }
  0x36   : > { %p359_p11 = scmp.lt.s32.totalorder %s20620_s16, 3  ;;  %s26427_s23 = sshll.u32 %s20620_s16, 11 }
  0x37   : > { %s20816_s11 = scalar_lea.hbm %s26292_s1, %s26427_s23  ;;  %s26428_s0 = sshll.u32 %s20754_s27, 7 }
  0x38   : > { %p20807_p12 = pnand %p17098_p9, %p359_p11  ;;  %s343_s19 = scalar_lea.vmem [#allocation5], %s26428_s0 }
  0x39   : > { %s351_s26 = sshll.u32 %s343_s19, 4  ;;  %s340_s12 = scalar_lea.sflag [#allocation6], %s20754_s27  ;;  %s20820_s26 = int_to_ptr.vmem [resolvable:$true] %s351_s26 }
  0x3a   : > { %s20524_s20 = scalar_lea.hbm %s20816_s11, 2048  ;;  %s20529_s23 = scalar_lea.hbm %s26292_s1, 4096 }
  0x3b   : > { %p20525_p3 = scmp.ne.s32.totalorder %s20816_s11, %s20524_s20  ;;  %p20530_p8 = scmp.lt.s32.totalorder %s20816_s11, %s26292_s1 }
  0x3c   : > { %p20531_p10 = scmp.lt.s32.totalorder %s20529_s23, %s20524_s20 }
  0x3d   : > { %p20527_p5 = pnand %p20525_p3, %p20498_p1 }
  0x3e   : > { %p20532_p0 = por %p20531_p10, %p20530_p8 }
  0x3f   : > { %p20528_p7 = pneg %p20527_p5 }
  0x41   : > { %p20533_p2 = pnand %p20532_p0, %p20528_p7 }
  0x43   : > { %20536 = shalt.err (!%p20533_p2)
}
  0x44   : > { %s20537_s0 = scalar_lea.vmem %s20820_s26, 2048  ;;  %s20625_s19 = smov [#allocation5]  }
  0x45   : > { %p20538_p4 = scmp.ne.s32.totalorder %s20820_s26, %s20537_s0  ;;  %s20542_s27 = sshll.u32 %s20625_s19, 4  ;;  %s20543_s27 = int_to_ptr.vmem [resolvable:$false] %s20542_s27 }
  0x46   : > { %s20544_s15 = scalar_lea.vmem %s20543_s27, 4096  ;;  %p20545_p3 = scmp.lt.s32.totalorder %s20820_s26, %s20543_s27 }
  0x47   : > { %p20540_p9 = pnand %p20538_p4, %p20498_p1  ;;  %p20546_p5 = scmp.lt.s32.totalorder %s20544_s15, %s20537_s0 }
  0x49   : > { %p20541_p11 = pneg %p20540_p9  ;;  %p20547_p6 = por %p20546_p5, %p20545_p3 }
  0x4b   : > { %p20548_p8 = pnand %p20547_p6, %p20541_p11 }
  0x4d   : > { %20551 = shalt.err (!%p20548_p8)
}
  0x4e   : > { %s26429_s20 = smov 128   ;;  %363 = sbr.rel (%p20807_p12) target bundleno = 9342 (0x247e), region = 60 }
  0x4f   : > { %19550 = dma.hbm_to_vmem [thread:$0]  (!%p20769_p13), %s20816_s11, 2048, %s20820_s26, %s340_s12, %s26429_s20, %s26429_s20, %s20624_s29  }
  0x53   : > { %s20851_s22 = sand.u32 1, %s20612_s14   ;;  %p26430_p6 = scmp.ne.s32.totalorder %s26419_s24, 0 }
  0x54   : > { %s20854_s23 = sshll.u32 %s20851_s22, 7  ;;  %s366_s18 = scalar_lea.sflag [#allocation3], %s20851_s22 }
  0x55   : > { %s20858_s21 = scalar_lea.vmem [#allocation2], %s20854_s23 }
  0x56   : > { %20595 = dma.done.wait (%p26430_p6), %s366_s18, 2048  }
  0x57   : > { %20597 = vsyncadd (%p26430_p6), %s366_s18, 4294965248  ;;  %s375_s26 = scalar_lea.sflag [#allocation6], %s20851_s22  ;;  %s20866_s29 = scalar_lea.vmem [#allocation5], %s20854_s23 }
  0x58   : > { %20599 = dma.done.wait (%p26430_p6), %s375_s26, 2048  }
  0x59   : > { %20601 = vsyncadd (%p26430_p6), %s375_s26, 4294965248  ;;  %vm457_vm0 = vcmask 261120   ;;  %v424_v0 = vld [vmem:[%s20858_s21] sm:$0xff]  ;;  %v426_v1 = vld [vmem:[%s20858_s21 + $0x10] sm:$0xff]  ;;  %vm865_vm1 = vcmask 64512   ;;  %s20626_s15 = smov 96  }
  0x5a   : > { %v425_v2 = vld [vmem:[%s20858_s21 + $0x8] sm:$0xff]  ;;  %v458_v3 = vsel %vm457_vm0, %v424_v0, 0.0  ;;  %v464_v4 = vsel %vm457_vm0, %v426_v1, 0.0  ;;  %v427_v5 = vld [vmem:[%s20858_s21 + $0x18] sm:$0xff]  ;;  %v20879_v6 = vld [vmem:[%s20858_s21 + $0x20] sm:$0xff]  ;;  %s20627_s20 = smov 64  }
  0x5b   : > { %v20882_v7 = vld [vmem:[%s20858_s21 + $0x28] sm:$0xff]  ;;  %459 = vadd.xlane.f32.xlu0 %v458_v3  ;;  %465 = vadd.xlane.f32.xlu1 %v464_v4  ;;  %v20885_v8 = vld [vmem:[%s20858_s21 + $0x30] sm:$0xff]  ;;  %v20888_v9 = vld [vmem:[%s20858_s21 + $0x38] sm:$0xff]  ;;  %v461_v11 = vsel %vm457_vm0, %v425_v2, 0.0  ;;  %v467_v12 = vsel %vm457_vm0, %v427_v5, 0.0  ;;  %v470_v16 = vsel %vm457_vm0, %v20879_v6, 0.0 }
  0x5c   : > { %v20891_v10 = vld [vmem:[%s20858_s21 + $0x40] sm:$0xff]  ;;  %v20896_v13 = vld [vmem:[%s20858_s21 + $0x48] sm:$0xff]  ;;  %v20899_v14 = vld [vmem:[%s20858_s21 + $0x50] sm:$0xff]  ;;  %v473_v17 = vsel %vm457_vm0, %v20882_v7, 0.0  ;;  %v476_v18 = vsel %vm457_vm0, %v20885_v8, 0.0  ;;  %v479_v19 = vsel %vm457_vm0, %v20888_v9, 0.0 }
  0x5d   : > { %v20902_v15 = vld [vmem:[%s20858_s21 + $0x58] sm:$0xff]  ;;  %v482_v20 = vsel %vm457_vm0, %v20891_v10, 0.0  ;;  %v485_v21 = vsel %vm457_vm0, %v20896_v13, 0.0  ;;  %v488_v22 = vsel %vm457_vm0, %v20899_v14, 0.0  ;;  %v20921_v24 = vld [vmem:[%s20858_s21 + $0x60] sm:$0xff]  ;;  %v20924_v25 = vld [vmem:[%s20858_s21 + $0x68] sm:$0xff] }
  0x5e   : > { %v491_v23 = vsel %vm457_vm0, %v20902_v15, 0.0  ;;  %v494_v26 = vsel %vm457_vm0, %v20921_v24, 0.0  ;;  %v497_v27 = vsel %vm457_vm0, %v20924_v25, 0.0  ;;  %v20931_v28 = vld [vmem:[%s20858_s21 + $0x70] sm:$0xff]  ;;  %v20934_v29 = vld [vmem:[%s20858_s21 + $0x78] sm:$0xff]  ;;  %s20628_s18 = smov 88  }
  0x5f   : > { %462 = vadd.xlane.f32.xlu0 %v461_v11  ;;  %468 = vadd.xlane.f32.xlu1 %v467_v12  ;;  %v500_v30 = vsel %vm457_vm0, %v20931_v28, 0.0  ;;  %v503_v31 = vsel %vm457_vm0, %v20934_v29, 0.0  ;;  %s20629_s26 = smov 120   ;;  %vm1572_vm2 = vcmask 130048   ;;  %s20630_s24 = smov 56   ;;  %vm4088_vm3 = vcmask 1043456  }
  0x60   : > { %s26368_s28 = smov 80   ;;  %s26366_s11 = smov 112  }
  0x61   : > { %s26364_s12 = smov 48   ;;  %s26362_s30 = smov 72  }
  0x62   : > { %s26360_s0 = smov 104   ;;  %s26358_s19 = smov 40  }
  0x63   : > { %471 = vadd.xlane.f32.xlu0 %v470_v16  ;;  %474 = vadd.xlane.f32.xlu1 %v473_v17  ;;  %p26709_p1 = scmp.ne.s32.totalorder %s26420_s25, 0 }
  0x67   : > { %477 = vadd.xlane.f32.xlu0 %v476_v18  ;;  %480 = vadd.xlane.f32.xlu1 %v479_v19 }
  0x6b   : > { %483 = vadd.xlane.f32.xlu0 %v482_v20  ;;  %486 = vadd.xlane.f32.xlu1 %v485_v21 }
  0x6f   : > { %489 = vadd.xlane.f32.xlu0 %v488_v22  ;;  %492 = vadd.xlane.f32.xlu1 %v491_v23 }
  0x73   : > { %495 = vadd.xlane.f32.xlu0 %v494_v26  ;;  %498 = vadd.xlane.f32.xlu1 %v497_v27 }
  0x77   : > { %501 = vadd.xlane.f32.xlu0 %v500_v30  ;;  %504 = vadd.xlane.f32.xlu1 %v503_v31 }
  0xe4   : > { %v460_v32 = vpop.xlane.xlu0 %459  ;;  %v466_v33 = vpop.xlane.xlu1 %465 }
  0xe5   : > { %v507_v34 = vmul.f32 0.03125, %v460_v32  ;;  %v509_v35 = vmul.f32 0.03125, %v466_v33 }
  0xe7   : > { %v20940_v36 = vsub.f32 %v424_v0, %v507_v34  ;;  %v20942_v37 = vsub.f32 %v426_v1, %v509_v35 }
  0xe8   : > { %v463_v38 = vpop.xlane.xlu0 %462  ;;  %v469_v39 = vpop.xlane.xlu1 %468 }
  0xe9   : > { %v508_v40 = vmul.f32 0.03125, %v463_v38  ;;  %v510_v41 = vmul.f32 0.03125, %v469_v39  ;;  %v539_v42 = vmul.f32 %v20940_v36, %v20940_v36  ;;  %v541_v43 = vmul.f32 %v20942_v37, %v20942_v37 }
  0xeb   : > { %v20948_v44 = vsub.f32 %v425_v2, %v508_v40  ;;  %v20950_v45 = vsub.f32 %v427_v5, %v510_v41  ;;  %v555_v46 = vsel %vm457_vm0, %v539_v42, 0.0  ;;  %v561_v49 = vsel %vm457_vm0, %v541_v43, 0.0 }
  0xec   : > { %556 = vadd.xlane.f32.xlu0 %v555_v46  ;;  %v472_v47 = vpop.xlane.xlu0 %471  ;;  %v475_v48 = vpop.xlane.xlu1 %474 }
  0xed   : > { %v511_v50 = vmul.f32 0.03125, %v472_v47  ;;  %v512_v51 = vmul.f32 0.03125, %v475_v48  ;;  %v540_v52 = vmul.f32 %v20948_v44, %v20948_v44  ;;  %v542_v53 = vmul.f32 %v20950_v45, %v20950_v45 }
  0xef   : > { %v20959_v54 = vsub.f32 %v20879_v6, %v511_v50  ;;  %v20962_v55 = vsub.f32 %v20882_v7, %v512_v51  ;;  %v558_v56 = vsel %vm457_vm0, %v540_v52, 0.0  ;;  %v564_v59 = vsel %vm457_vm0, %v542_v53, 0.0  ;;  %v19605_v53 = vld [vmem:[%s26294_s3] sm:$0xff]  }
  0xf0   : > { %562 = vadd.xlane.f32.xlu0 %v561_v49  ;;  %559 = vadd.xlane.f32.xlu1 %v558_v56  ;;  %v478_v57 = vpop.xlane.xlu0 %477  ;;  %v481_v58 = vpop.xlane.xlu1 %480 }
  0xf1   : > { %v513_v60 = vmul.f32 0.03125, %v478_v57  ;;  %v514_v61 = vmul.f32 0.03125, %v481_v58  ;;  %v543_v62 = vmul.f32 %v20959_v54, %v20959_v54  ;;  %v544_v63 = vmul.f32 %v20962_v55, %v20962_v55 }
  0xf3   : > { %v20971_v0 = vsub.f32 %v20885_v8, %v513_v60  ;;  %v20974_v1 = vsub.f32 %v20888_v9, %v514_v61  ;;  %v567_v2 = vsel %vm457_vm0, %v543_v62, 0.0  ;;  %v570_v5 = vsel %vm457_vm0, %v544_v63, 0.0 }
  0xf4   : > { %565 = vadd.xlane.f32.xlu1 %v564_v59  ;;  %568 = vadd.xlane.f32.xlu0 %v567_v2  ;;  %v484_v3 = vpop.xlane.xlu0 %483  ;;  %v487_v4 = vpop.xlane.xlu1 %486  ;;  %v667_v63 = vlaneseq }
  0xf5   : > { %v515_v6 = vmul.f32 0.03125, %v484_v3  ;;  %v516_v7 = vmul.f32 0.03125, %v487_v4  ;;  %v545_v11 = vmul.f32 %v20971_v0, %v20971_v0  ;;  %v546_v8 = vmul.f32 %v20974_v1, %v20974_v1 }
  0xf7   : > { %v20983_v12 = vsub.f32 %v20891_v10, %v515_v6  ;;  %v20986_v9 = vsub.f32 %v20896_v13, %v516_v7  ;;  %v573_v16 = vsel %vm457_vm0, %v545_v11, 0.0  ;;  %v576_v19 = vsel %vm457_vm0, %v546_v8, 0.0 }
  0xf8   : > { %571 = vadd.xlane.f32.xlu1 %v570_v5  ;;  %574 = vadd.xlane.f32.xlu0 %v573_v16  ;;  %v490_v17 = vpop.xlane.xlu0 %489  ;;  %v493_v18 = vpop.xlane.xlu1 %492  ;;  %v21038_v11 = vshrl.u32 %v667_v63, 7 }
  0xf9   : > { %v517_v20 = vmul.f32 0.03125, %v490_v17  ;;  %v518_v21 = vmul.f32 0.03125, %v493_v18  ;;  %v547_v22 = vmul.f32 %v20983_v12, %v20983_v12  ;;  %v548_v10 = vmul.f32 %v20986_v9, %v20986_v9 }
  0xfa   : > { %26431 = vst [vmem:[#allocation15_spill] sm:$0xff] %v21038_v11 }
  0xfb   : > { %v20995_v23 = vsub.f32 %v20899_v14, %v517_v20  ;;  %v20998_v13 = vsub.f32 %v20902_v15, %v518_v21  ;;  %v579_v26 = vsel %vm457_vm0, %v547_v22, 0.0  ;;  %v582_v31 = vsel %vm457_vm0, %v548_v10, 0.0 }
  0xfc   : > { %577 = vadd.xlane.f32.xlu1 %v576_v19  ;;  %580 = vadd.xlane.f32.xlu0 %v579_v26  ;;  %v496_v27 = vpop.xlane.xlu0 %495  ;;  %v499_v30 = vpop.xlane.xlu1 %498  ;;  %v26312_v21 = vsub.s32 0, %v21038_v11  ;;  %v456_v26 = vld [vmem:[%s26293_s2] sm:$0x3f] }
  0xfd   : > { %v519_v32 = vmul.f32 0.03125, %v496_v27  ;;  %v520_v33 = vmul.f32 0.03125, %v499_v30  ;;  %v549_v34 = vmul.f32 %v20995_v23, %v20995_v23  ;;  %v550_v14 = vmul.f32 %v20998_v13, %v20998_v13 }
  0xff   : > { %v21007_v35 = vsub.f32 %v20921_v24, %v519_v32  ;;  %v21010_v15 = vsub.f32 %v20924_v25, %v520_v33  ;;  %v585_v38 = vsel %vm457_vm0, %v549_v34, 0.0  ;;  %v588_v41 = vsel %vm457_vm0, %v550_v14, 0.0 }
 0x100   : > { %583 = vadd.xlane.f32.xlu1 %v582_v31  ;;  %586 = vadd.xlane.f32.xlu0 %v585_v38  ;;  %v502_v39 = vpop.xlane.xlu0 %501  ;;  %v505_v40 = vpop.xlane.xlu1 %504  ;;  %v21046_v34 = vrot.slane %v456_v26, %v26312_v21  ;;  %v26311_v14 = vsub.s32 1, %v21038_v11 }
 0x101   : > { %v521_v42 = vmul.f32 0.03125, %v502_v39  ;;  %v522_v43 = vmul.f32 0.03125, %v505_v40  ;;  %v551_v46 = vmul.f32 %v21007_v35, %v21007_v35  ;;  %v552_v24 = vmul.f32 %v21010_v15, %v21010_v15 }
 0x103   : > { %v21019_v47 = vsub.f32 %v20931_v28, %v521_v42  ;;  %v21022_v25 = vsub.f32 %v20934_v29, %v522_v43  ;;  %v591_v48 = vsel %vm457_vm0, %v551_v46, 0.0  ;;  %v594_v49 = vsel %vm457_vm0, %v552_v24, 0.0  ;;  %v19604_v29 = vld [vmem:[%s26294_s3 + $0x8] sm:$0xff]  }
 0x104   : > { %589 = vadd.xlane.f32.xlu1 %v588_v41  ;;  %592 = vadd.xlane.f32.xlu0 %v591_v48 }
 0x105   : > { %v553_v50 = vmul.f32 %v21019_v47, %v21019_v47  ;;  %v554_v51 = vmul.f32 %v21022_v25, %v21022_v25  ;;  %18346 = vmatprep.subr.bf16.mxu0 %v19604_v29 }
 0x106   : > { %18347 = vmatpush3.bf16.msra.mxu0 %v19604_v29 }
 0x107   : > { %v597_v52 = vsel %vm457_vm0, %v553_v50, 0.0  ;;  %v600_v28 = vsel %vm457_vm0, %v554_v51, 0.0  ;;  %18348 = vmatprep.subr.bf16.mxu0 %v19605_v53 }
 0x108   : > { %595 = vadd.xlane.f32.xlu1 %v594_v49  ;;  %598 = vadd.xlane.f32.xlu0 %v597_v52  ;;  %v21053_v49 = vrot.slane %v456_v26, %v26311_v14 }
 0x10a   : > { %18349 = vmatpush3.bf16.msra.mxu0 %v19605_v53 }
 0x10c   : > { %601 = vadd.xlane.f32.xlu1 %v600_v28 }
 0x175   : > { %v557_v56 = vpop.xlane.xlu0 %556 }
 0x176   : > { %v603_v57 = vmul.f32 0.03125, %v557_v56 }
 0x178   : > { %v619_v58 = vadd.f32 1e-05, %v603_v57 }
 0x179   : > { %v560_v59 = vpop.xlane.xlu1 %559  ;;  %v563_v60 = vpop.xlane.xlu0 %562 }
 0x17a   : > { %19628 = vrsqrt.f32 %v619_v58  ;;  %v604_v61 = vmul.f32 0.03125, %v560_v59  ;;  %v605_v62 = vmul.f32 0.03125, %v563_v60 }
 0x17c   : > { %v620_v2 = vadd.f32 1e-05, %v604_v61  ;;  %v621_v3 = vadd.f32 1e-05, %v605_v62 }
 0x17d   : > { %v566_v4 = vpop.xlane.xlu1 %565  ;;  %v569_v5 = vpop.xlane.xlu0 %568 }
 0x17e   : > { %19630 = vrsqrt.f32 %v620_v2  ;;  %v606_v6 = vmul.f32 0.03125, %v566_v4  ;;  %v607_v7 = vmul.f32 0.03125, %v569_v5 }
 0x17f   : > { %19632 = vrsqrt.f32 %v621_v3 }
 0x180   : > { %v622_v8 = vadd.f32 1e-05, %v606_v6  ;;  %v623_v16 = vadd.f32 1e-05, %v607_v7 }
 0x181   : > { %v572_v17 = vpop.xlane.xlu1 %571  ;;  %v575_v18 = vpop.xlane.xlu0 %574 }
 0x182   : > { %19634 = vrsqrt.f32 %v622_v8  ;;  %v608_v19 = vmul.f32 0.03125, %v572_v17  ;;  %v609_v20 = vmul.f32 0.03125, %v575_v18 }
 0x183   : > { %19636 = vrsqrt.f32 %v623_v16 }
 0x184   : > { %v624_v22 = vadd.f32 1e-05, %v608_v19  ;;  %v625_v10 = vadd.f32 1e-05, %v609_v20 }
 0x185   : > { %v578_v27 = vpop.xlane.xlu1 %577  ;;  %v581_v30 = vpop.xlane.xlu0 %580 }
 0x186   : > { %19638 = vrsqrt.f32 %v624_v22  ;;  %v610_v31 = vmul.f32 0.03125, %v578_v27  ;;  %v611_v32 = vmul.f32 0.03125, %v581_v30 }
 0x187   : > { %v19629_v33 = vpop.eup %19628  ;;  %19640 = vrsqrt.f32 %v625_v10 }
 0x188   : > { %v626_v38 = vadd.f32 1e-05, %v610_v31  ;;  %v627_v39 = vadd.f32 1e-05, %v611_v32  ;;  %v651_v40 = vmul.f32 %v19629_v33, %v20940_v36 }
 0x189   : > { %v584_v41 = vpop.xlane.xlu1 %583  ;;  %v587_v42 = vpop.xlane.xlu0 %586 }
 0x18a   : > { %19642 = vrsqrt.f32 %v626_v38  ;;  %v612_v43 = vmul.f32 0.03125, %v584_v41  ;;  %v613_v46 = vmul.f32 0.03125, %v587_v42  ;;  %v671_v48 = vmul.f32 %v21046_v34, %v651_v40 }
 0x18b   : > { %v19631_v24 = vpop.eup %19630  ;;  %19644 = vrsqrt.f32 %v627_v39 }
 0x18c   : > { %v19633_v50 = vpop.eup %19632  ;;  %v628_v51 = vadd.f32 1e-05, %v612_v43  ;;  %v629_v52 = vadd.f32 1e-05, %v613_v46  ;;  %v652_v28 = vmul.f32 %v19631_v24, %v20948_v44  ;;  %v691_v60 = vadd.f32 %v21053_v49, %v671_v48 }
 0x18d   : > { %v590_v29 = vpop.xlane.xlu1 %589  ;;  %v593_v36 = vpop.xlane.xlu0 %592  ;;  %v653_v53 = vmul.f32 %v19633_v50, %v20942_v37 }
 0x18e   : > { %19646 = vrsqrt.f32 %v628_v51  ;;  %v614_v56 = vmul.f32 0.03125, %v590_v29  ;;  %v615_v57 = vmul.f32 0.03125, %v593_v36  ;;  %v672_v58 = vmul.f32 %v21046_v34, %v652_v28 }
 0x18f   : > { %v19635_v59 = vpop.eup %19634  ;;  %19648 = vrsqrt.f32 %v629_v52  ;;  %v673_v37 = vmul.f32 %v21046_v34, %v653_v53 }
 0x190   : > { %v19637_v61 = vpop.eup %19636  ;;  %v630_v62 = vadd.f32 1e-05, %v614_v56  ;;  %v631_v63 = vadd.f32 1e-05, %v615_v57  ;;  %v692_v2 = vadd.f32 %v21053_v49, %v672_v58  ;;  %v654_v44 = vmul.f32 %v19635_v59, %v20950_v45 }
 0x191   : > { %v596_v3 = vpop.xlane.xlu1 %595  ;;  %v599_v4 = vpop.xlane.xlu0 %598  ;;  %v655_v5 = vmul.f32 %v19637_v61, %v20959_v54  ;;  %v693_v54 = vadd.f32 %v21053_v49, %v673_v37 }
 0x192   : > { %19650 = vrsqrt.f32 %v630_v62  ;;  %v616_v6 = vmul.f32 0.03125, %v596_v3  ;;  %v617_v7 = vmul.f32 0.03125, %v599_v4  ;;  %v707_v8 = vpack.c.bf16 %v692_v2, %v691_v60 }
 0x193   : > { %v19639_v16 = vpop.eup %19638  ;;  %19652 = vrsqrt.f32 %v631_v63  ;;  %v674_v17 = vmul.f32 %v21046_v34, %v654_v44  ;;  %v675_v18 = vmul.f32 %v21046_v34, %v655_v5 }
 0x194   : > { %v19641_v19 = vpop.eup %19640  ;;  %v632_v20 = vadd.f32 1e-05, %v616_v6  ;;  %v633_v22 = vadd.f32 1e-05, %v617_v7  ;;  %18350 = vmatprep.mubr.msk.bf16.mxu0 %vm457_vm0, %v707_v8  ;;  %v656_v45 = vmul.f32 %v19639_v16, %v20962_v55 }
 0x195   : > { %v602_v10 = vpop.xlane.xlu1 %601  ;;  %v694_v26 = vadd.f32 %v21053_v49, %v674_v17  ;;  %v657_v27 = vmul.f32 %v19641_v19, %v20971_v0  ;;  %v695_v38 = vadd.f32 %v21053_v49, %v675_v18 }
 0x196   : > { %19654 = vrsqrt.f32 %v632_v20  ;;  %v618_v30 = vmul.f32 0.03125, %v602_v10  ;;  %v676_v31 = vmul.f32 %v21046_v34, %v656_v45 }
 0x197   : > { %v19643_v32 = vpop.eup %19642  ;;  %19656 = vrsqrt.f32 %v633_v22  ;;  %v708_v33 = vpack.c.bf16 %v694_v26, %v693_v54  ;;  %v677_v42 = vmul.f32 %v21046_v34, %v657_v27 }
 0x198   : > { %v19645_v39 = vpop.eup %19644  ;;  %v634_v40 = vadd.f32 1e-05, %v618_v30  ;;  %v696_v55 = vadd.f32 %v21053_v49, %v676_v31  ;;  %v658_v41 = vmul.f32 %v19643_v32, %v20974_v1 }
 0x199   : > { %18351 = vmatmul.mubr.msk.bf16.vlgmr.msra.gmra.mxu0 %vm457_vm0, %v708_v33  ;;  %v659_v0 = vmul.f32 %v19645_v39, %v20983_v12  ;;  %v697_v50 = vadd.f32 %v21053_v49, %v677_v42 }
 0x19a   : > { %19658 = vrsqrt.f32 %v634_v40  ;;  %v709_v43 = vpack.c.bf16 %v696_v55, %v695_v38  ;;  %v678_v46 = vmul.f32 %v21046_v34, %v658_v41 }
 0x19b   : > { %v19647_v24 = vpop.eup %19646  ;;  %v679_v52 = vmul.f32 %v21046_v34, %v659_v0 }
 0x19c   : > { %v19649_v48 = vpop.eup %19648  ;;  %18354 = vmatprep.mubr.msk.bf16.mxu0 %vm457_vm0, %v709_v43  ;;  %v698_v51 = vadd.f32 %v21053_v49, %v678_v46  ;;  %v660_v1 = vmul.f32 %v19647_v24, %v20986_v9 }
 0x19d   : > { %v661_v28 = vmul.f32 %v19649_v48, %v20995_v23  ;;  %v699_v56 = vadd.f32 %v21053_v49, %v679_v52 }
 0x19e   : > { %v710_v29 = vpack.c.bf16 %v698_v51, %v697_v50  ;;  %v680_v12 = vmul.f32 %v21046_v34, %v660_v1 }
 0x19f   : > { %v19651_v36 = vpop.eup %19650  ;;  %v681_v59 = vmul.f32 %v21046_v34, %v661_v28 }
 0x1a0   : > { %v19653_v53 = vpop.eup %19652  ;;  %v700_v57 = vadd.f32 %v21053_v49, %v680_v12  ;;  %v662_v58 = vmul.f32 %v19651_v36, %v20998_v13 }
 0x1a1   : > { %18355 = vmatmul.mubr.msk.bf16.gmra.mxu0 %vm457_vm0, %v710_v29  ;;  %v663_v9 = vmul.f32 %v19653_v53, %v21007_v35  ;;  %v701_v63 = vadd.f32 %v21053_v49, %v681_v59 }
 0x1a2   : > { %v711_v60 = vpack.c.bf16 %v700_v57, %v699_v56  ;;  %v682_v23 = vmul.f32 %v21046_v34, %v662_v58 }
 0x1a3   : > { %v19655_v61 = vpop.eup %19654  ;;  %v683_v13 = vmul.f32 %v21046_v34, %v663_v9 }
 0x1a4   : > { %v19657_v62 = vpop.eup %19656  ;;  %18358 = vmatprep.mubr.msk.bf16.mxu0 %vm457_vm0, %v711_v60  ;;  %v702_v2 = vadd.f32 %v21053_v49, %v682_v23  ;;  %v664_v44 = vmul.f32 %v19655_v61, %v21010_v15 }
 0x1a5   : > { %v665_v3 = vmul.f32 %v19657_v62, %v21019_v47  ;;  %v703_v5 = vadd.f32 %v21053_v49, %v683_v13 }
 0x1a6   : > { %v712_v4 = vpack.c.bf16 %v702_v2, %v701_v63  ;;  %v684_v35 = vmul.f32 %v21046_v34, %v664_v44 }
 0x1a7   : > { %v19659_v37 = vpop.eup %19658  ;;  %v685_v8 = vmul.f32 %v21046_v34, %v665_v3 }
 0x1a8   : > { %v704_v6 = vadd.f32 %v21053_v49, %v684_v35  ;;  %v666_v7 = vmul.f32 %v19659_v37, %v21022_v25  ;;  %v17102_v25 = vld [vmem:[%s26295_s4] ss:$0 sm:$0xff] }
 0x1a9   : > { %18359 = vmatmul.mubr.msk.bf16.gmra.mxu0 %vm457_vm0, %v712_v4  ;;  %v705_v47 = vadd.f32 %v21053_v49, %v685_v8 }
 0x1aa   : > { %v713_v16 = vpack.c.bf16 %v704_v6, %v703_v5  ;;  %v686_v15 = vmul.f32 %v21046_v34, %v666_v7 }
 0x1ac   : > { %18362 = vmatprep.mubr.msk.bf16.mxu0 %vm457_vm0, %v713_v16  ;;  %v706_v17 = vadd.f32 %v21053_v49, %v686_v15  ;;  %v21301_v16 = vld [vmem:[%s20866_s29 + $0x18] sm:$0xff] }
 0x1ad   : > { %26441 = vst [vmem:[#allocation25_spill] sm:$0xff] %v21301_v16 }
 0x1ae   : > { %v714_v18 = vpack.c.bf16 %v706_v17, %v705_v47  ;;  %v21304_v47 = vld [vmem:[%s20866_s29 + $0x10] sm:$0xff] }
 0x1af   : > { %26442 = vst [vmem:[#allocation26_spill] sm:$0xff] %v21304_v47 }
 0x1b1   : > { %18363 = vmatmul.mubr.msk.bf16.gmra.mxu0 %vm457_vm0, %v714_v18 }
 0x259   : > { %v18352_v19 = vpop.f32.mrf.mxu0 }
 0x25a   : > { %v21112_v20 = vadd.f32 %v18352_v19, %v17102_v25 }
 0x25b   : > { %v796_v22 = vpop.f32.mrf.mxu0 }
 0x25c   : > { %26432 = vst [vmem:[#allocation16_spill] sm:$0xff] %v21112_v20  ;;  %v21114_v45 = vadd.f32 %v17102_v25, %v796_v22  ;;  %951 = vrot.lane.b32.xlu1 %v21112_v20, %s20626_s15  ;;  %18377 = vmatprep.mubr.msk.f32.mxu1 %vm865_vm1, %v21112_v20 }
 0x25d   : > { %v18353_v34 = vpop.f32.mrf.mxu0 }
 0x25e   : > { %26433 = vst [vmem:[#allocation17_spill] sm:$0xff] %v21114_v45  ;;  %v21120_v49 = vadd.f32 %v18353_v34, %v17102_v25  ;;  %18370 = vmatprep.mubr.msk.f32.mxu0 %vm865_vm1, %v21114_v45 }
 0x25f   : > { %v799_v10 = vpop.f32.mrf.mxu0 }
 0x260   : > { %953 = vrot.lane.b32.xlu0 %v21120_v49, %s20626_s15  ;;  %v21126_v26 = vadd.f32 %v17102_v25, %v799_v10  ;;  %v21318_v10 = vld [vmem:[%s20866_s29] sm:$0xff] }
 0x261   : > { %v18356_v54 = vpop.f32.mrf.mxu0  ;;  %26444 = vst [vmem:[#allocation28_spill] sm:$0xff] %v21318_v10 }
 0x262   : > { %v21148_v46 = vadd.f32 %v18356_v54, %v17102_v25 }
 0x263   : > { %v812_v27 = vpop.f32.mrf.mxu0 }
 0x264   : > { %863 = vrot.lane.b32.xlu0 %v21126_v26, %s20626_s15  ;;  %v21136_v39 = vadd.f32 %v17102_v25, %v812_v27  ;;  %26438 = vst [vmem:[#allocation22_spill] sm:$0xff] %v21148_v46 }
 0x265   : > { %v18357_v30 = vpop.f32.mrf.mxu0 }
 0x266   : > { %26435 = vst [vmem:[#allocation19_spill] sm:$0xff] %v21136_v39  ;;  %v21140_v41 = vadd.f32 %v18357_v30, %v17102_v25 }
 0x267   : > { %v815_v31 = vpop.f32.mrf.mxu0 }
 0x268   : > { %v21130_v32 = vadd.f32 %v17102_v25, %v815_v31  ;;  %861 = vrot.lane.b32.xlu0 %v21114_v45, %s20626_s15  ;;  %26436 = vst [vmem:[#allocation20_spill] sm:$0xff] %v21140_v41 }
 0x269   : > { %v18360_v33 = vpop.f32.mrf.mxu0 }
 0x26a   : > { %26434 = vst [vmem:[#allocation18_spill] sm:$0xff] %v21130_v32  ;;  %1042 = vrot.lane.b32.xlu1 %v21130_v32, %s20626_s15  ;;  %v21164_v52 = vadd.f32 %v18360_v33, %v17102_v25 }
 0x26b   : > { %v828_v38 = vpop.f32.mrf.mxu0 }
 0x26c   : > { %v21150_v24 = vadd.f32 %v17102_v25, %v828_v38  ;;  %v21331_v38 = vld [vmem:[%s20866_s29 + $0x28] sm:$0xff] }
 0x26d   : > { %v18361_v40 = vpop.f32.mrf.mxu0  ;;  %26445 = vst [vmem:[#allocation29_spill] sm:$0xff] %v21331_v38 }
 0x26e   : > { %1040 = vrot.lane.b32.xlu1 %v21136_v39, %s20626_s15  ;;  %26439 = vst [vmem:[#allocation23_spill] sm:$0xff] %v21150_v24  ;;  %v21156_v51 = vadd.f32 %v18361_v40, %v17102_v25 }
 0x26f   : > { %v831_v55 = vpop.f32.mrf.mxu0 }
 0x270   : > { %v21142_v42 = vadd.f32 %v17102_v25, %v831_v55  ;;  %26440 = vst [vmem:[#allocation24_spill] sm:$0xff] %v21156_v51  ;;  %v21334_v55 = vld [vmem:[%s20866_s29 + $0x20] sm:$0xff] }
 0x271   : > { %v18364_v0 = vpop.f32.mrf.mxu0  ;;  %26446 = vst [vmem:[#allocation30_spill] sm:$0xff] %v21334_v55 }
 0x272   : > { %26437 = vst [vmem:[#allocation21_spill] sm:$0xff] %v21142_v42  ;;  %1131 = vrot.lane.b32.xlu1 %v21140_v41, %s20626_s15  ;;  %1220 = vrot.lane.b32.xlu0 %v21142_v42, %s20626_s15  ;;  %v21178_v12 = vadd.f32 %v18364_v0, %v17102_v25 }
 0x273   : > { %v844_v43 = vpop.f32.mrf.mxu0 }
 0x274   : > { %v21166_v28 = vadd.f32 %v17102_v25, %v844_v43 }
 0x275   : > { %v18365_v48 = vpop.f32.mrf.mxu0 }
 0x276   : > { %1129 = vrot.lane.b32.xlu1 %v21148_v46, %s20626_s15  ;;  %1218 = vrot.lane.b32.xlu0 %v21150_v24, %s20626_s15  ;;  %v21172_v29 = vadd.f32 %v18365_v48, %v17102_v25 }
 0x277   : > { %v847_v50 = vpop.f32.mrf.mxu0 }
 0x278   : > { %v21158_v1 = vadd.f32 %v17102_v25, %v847_v50  ;;  %v21310_v25 = vld [vmem:[%s20866_s29 + $0x8] sm:$0xff] }
 0x279   : > { %26443 = vst [vmem:[#allocation27_spill] sm:$0xff] %v21310_v25 }
 0x27a   : > { %1309 = vrot.lane.b32.xlu1 %v21156_v51, %s20626_s15  ;;  %1398 = vrot.lane.b32.xlu0 %v21158_v1, %s20626_s15 }
 0x27e   : > { %1307 = vrot.lane.b32.xlu1 %v21164_v52, %s20626_s15  ;;  %1396 = vrot.lane.b32.xlu0 %v21166_v28, %s20626_s15 }
 0x282   : > { %1487 = vrot.lane.b32.xlu1 %v21172_v29, %s20626_s15  ;;  %1751 = vrot.lane.b32.xlu0 %v21126_v26, %s20627_s20 }
 0x286   : > { %1485 = vrot.lane.b32.xlu1 %v21178_v12, %s20626_s15  ;;  %1925 = vrot.lane.b32.xlu0 %v21130_v32, %s20627_s20 }
 0x28a   : > { %1749 = vrot.lane.b32.xlu1 %v21114_v45, %s20627_s20  ;;  %1923 = vrot.lane.b32.xlu0 %v21136_v39, %s20627_s20 }
 0x28e   : > { %1838 = vrot.lane.b32.xlu1 %v21120_v49, %s20627_s20  ;;  %2099 = vrot.lane.b32.xlu0 %v21142_v42, %s20627_s20 }
 0x292   : > { %1836 = vrot.lane.b32.xlu1 %v21112_v20, %s20627_s20  ;;  %2097 = vrot.lane.b32.xlu0 %v21150_v24, %s20627_s20 }
 0x296   : > { %2012 = vrot.lane.b32.xlu1 %v21140_v41, %s20627_s20  ;;  %2271 = vrot.lane.b32.xlu0 %v21166_v28, %s20627_s20 }
 0x29a   : > { %2010 = vrot.lane.b32.xlu1 %v21148_v46, %s20627_s20  ;;  %2460 = vrot.lane.b32.xlu0 %v21126_v26, %s20628_s18 }
 0x29e   : > { %2186 = vrot.lane.b32.xlu1 %v21156_v51, %s20627_s20  ;;  %2458 = vrot.lane.b32.xlu0 %v21114_v45, %s20628_s18 }
 0x2a2   : > { %2184 = vrot.lane.b32.xlu1 %v21164_v52, %s20627_s20  ;;  %2454 = vrot.lane.b32.xlu0 %v21114_v45, %s20629_s26 }
 0x2a6   : > { %2360 = vrot.lane.b32.xlu1 %v21172_v29, %s20627_s20  ;;  %2545 = vrot.lane.b32.xlu0 %v21112_v20, %s20629_s26 }
 0x2aa   : > { %2358 = vrot.lane.b32.xlu1 %v21178_v12, %s20627_s20  ;;  %2547 = vrot.lane.b32.xlu0 %v21120_v49, %s20629_s26 }
 0x2ae   : > { %2551 = vrot.lane.b32.xlu1 %v21120_v49, %s20628_s18  ;;  %2273 = vrot.lane.b32.xlu0 %v21158_v1, %s20627_s20 }
 0x2b2   : > { %2549 = vrot.lane.b32.xlu1 %v21112_v20, %s20628_s18 }
 0x2b6   : > { %2456 = vrot.lane.b32.xlu1 %v21126_v26, %s20629_s26 }
 0x2ba   : > { %2642 = vrot.lane.b32.xlu1 %v21130_v32, %s20628_s18 }
 0x2be   : > { %2733 = vrot.lane.b32.xlu1 %v21140_v41, %s20628_s18 }
 0x2ce   : > { %v952_v53 = vpop.permute.xlu1 %951 }
 0x2d2   : > { %v954_v36 = vpop.permute.xlu0 %953 }
 0x2d3   : > { %18373 = vmatprep.subr.msk.mxu1 %vm865_vm1, %v954_v36 }
 0x2d4   : > { %18374 = vmatpush3.xpose.msk.msra.mxu1 %vm865_vm1, %v954_v36 }
 0x2d5   : > { %18375 = vmatprep.subr.msk.mxu1 %vm865_vm1, %v952_v53 }
 0x2d6   : > { %v864_v56 = vpop.permute.xlu0 %863 }
 0x2d7   : > { %18366 = vmatprep.subr.msk.mxu0 %vm865_vm1, %v864_v56 }
 0x2d8   : > { %18367 = vmatpush3.xpose.msk.msra.mxu0 %vm865_vm1, %v864_v56  ;;  %18376 = vmatpush3.xpose.msk.msra.mxu1 %vm865_vm1, %v952_v53  ;;  %v21349_v56 = vld [vmem:[%s20866_s29 + $0x38] sm:$0xff] }
 0x2d9   : > { %26447 = vst [vmem:[#allocation31_spill] sm:$0xff] %v21349_v56 }
 0x2da   : > { %v862_v57 = vpop.permute.xlu0 %861 }
 0x2db   : > { %18368 = vmatprep.subr.msk.mxu0 %vm865_vm1, %v862_v57  ;;  %18378 = vmatmul.mubr.msk.f32.vlgmr.msra.gmra.mxu1 %vm865_vm1, %v21120_v49 }
 0x2dc   : > { %v1043_v58 = vpop.permute.xlu1 %1042  ;;  %18369 = vmatpush3.xpose.msk.msra.mxu0 %vm865_vm1, %v862_v57  ;;  %18384 = vmatprep.mubr.msk.f32.mxu1 %vm865_vm1, %v21136_v39 }
 0x2dd   : > { %18380 = vmatprep.subr.msk.mxu1 %vm865_vm1, %v1043_v58 }
 0x2de   : > { %18381 = vmatpush3.xpose.msk.msra.mxu1 %vm865_vm1, %v1043_v58  ;;  %v21352_v58 = vld [vmem:[%s20866_s29 + $0x48] sm:$0xff] }
 0x2df   : > { %18371 = vmatmul.mubr.msk.f32.vlgmr.msra.gmra.mxu0 %vm865_vm1, %v21126_v26  ;;  %26448 = vst [vmem:[#allocation32_spill] sm:$0xff] %v21352_v58 }
 0x2e0   : > { %v1041_v59 = vpop.permute.xlu1 %1040  ;;  %18398 = vmatprep.mubr.msk.f32.mxu0 %vm865_vm1, %v21150_v24 }
 0x2e1   : > { %18382 = vmatprep.subr.msk.mxu1 %vm865_vm1, %v1041_v59 }
 0x2e2   : > { %18383 = vmatpush3.xpose.msk.msra.mxu1 %vm865_vm1, %v1041_v59  ;;  %v21355_v59 = vld [vmem:[%s20866_s29 + $0x30] sm:$0xff] }
 0x2e3   : > { %26449 = vst [vmem:[#allocation33_spill] sm:$0xff] %v21355_v59 }
 0x2e4   : > { %v1132_v9 = vpop.permute.xlu1 %1131  ;;  %v1221_v60 = vpop.permute.xlu0 %1220 }
 0x2e5   : > { %18385 = vmatmul.mubr.msk.f32.vlgmr.msra.gmra.mxu1 %vm865_vm1, %v21130_v32  ;;  %18387 = vmatprep.subr.msk.mxu1 %vm865_vm1, %v1132_v9 }
 0x2e6   : > { %18394 = vmatprep.subr.msk.mxu0 %vm865_vm1, %v1221_v60  ;;  %18388 = vmatpush3.xpose.msk.msra.mxu1 %vm865_vm1, %v1132_v9 }
 0x2e7   : > { %18391 = vmatprep.mubr.msk.f32.mxu1 %vm865_vm1, %v21148_v46  ;;  %18395 = vmatpush3.xpose.msk.msra.mxu0 %vm865_vm1, %v1221_v60 }
 0x2e8   : > { %v1130_v23 = vpop.permute.xlu1 %1129  ;;  %v1219_v61 = vpop.permute.xlu0 %1218 }
 0x2e9   : > { %18389 = vmatprep.subr.msk.mxu1 %vm865_vm1, %v1130_v23  ;;  %18396 = vmatprep.subr.msk.mxu0 %vm865_vm1, %v1219_v61 }
 0x2ea   : > { %18390 = vmatpush3.xpose.msk.msra.mxu1 %vm865_vm1, %v1130_v23 }
 0x2eb   : > { %18397 = vmatpush3.xpose.msk.msra.mxu0 %vm865_vm1, %v1219_v61  ;;  %v21361_v61 = vld [vmem:[%s20866_s29 + $0x40] sm:$0xff] }
 0x2ec   : > { %v1310_v62 = vpop.permute.xlu1 %1309  ;;  %v1399_v63 = vpop.permute.xlu0 %1398  ;;  %26450 = vst [vmem:[#allocation34_spill] sm:$0xff] %v21361_v61 }
 0x2ed   : > { %18392 = vmatmul.mubr.msk.f32.vlgmr.msra.gmra.mxu1 %vm865_vm1, %v21140_v41  ;;  %18401 = vmatprep.subr.msk.mxu1 %vm865_vm1, %v1310_v62 }
 0x2ee   : > { %18399 = vmatmul.mubr.msk.f32.vlgmr.msra.gmra.mxu0 %vm865_vm1, %v21142_v42  ;;  %18408 = vmatprep.subr.msk.mxu0 %vm865_vm1, %v1399_v63 }
 0x2ef   : > { %18402 = vmatpush3.xpose.msk.msra.mxu1 %vm865_vm1, %v1310_v62  ;;  %18405 = vmatprep.mubr.msk.f32.mxu1 %vm865_vm1, %v21164_v52 }
 0x2f0   : > { %18409 = vmatpush3.xpose.msk.msra.mxu0 %vm865_vm1, %v1399_v63  ;;  %18412 = vmatprep.mubr.msk.f32.mxu0 %vm865_vm1, %v21166_v28  ;;  %v1308_v2 = vpop.permute.xlu1 %1307  ;;  %v1397_v44 = vpop.permute.xlu0 %1396 }
 0x2f1   : > { %18403 = vmatprep.subr.msk.mxu1 %vm865_vm1, %v1308_v2  ;;  %18410 = vmatprep.subr.msk.mxu0 %vm865_vm1, %v1397_v44 }
 0x2f3   : > { %18404 = vmatpush3.xpose.msk.msra.mxu1 %vm865_vm1, %v1308_v2 }
 0x2f4   : > { %18411 = vmatpush3.xpose.msk.msra.mxu0 %vm865_vm1, %v1397_v44  ;;  %v1488_v13 = vpop.permute.xlu1 %1487  ;;  %v1752_v3 = vpop.permute.xlu0 %1751 }
 0x2f5   : > { %18415 = vmatprep.subr.msk.mxu1 %vm865_vm1, %v1488_v13  ;;  %18422 = vmatprep.subr.mxu0 %v1752_v3 }
 0x2f6   : > { %18406 = vmatmul.mubr.msk.f32.vlgmr.msra.gmra.mxu1 %vm865_vm1, %v21156_v51 }
 0x2f7   : > { %18413 = vmatmul.mubr.msk.f32.vlgmr.msra.gmra.mxu0 %vm865_vm1, %v21158_v1  ;;  %18416 = vmatpush3.xpose.msk.msra.mxu1 %vm865_vm1, %v1488_v13 }
 0x2f8   : > { %18419 = vmatprep.mubr.msk.f32.mxu1 %vm865_vm1, %v21178_v12  ;;  %18423 = vmatpush3.msra.mxu0 %v1752_v3  ;;  %v1486_v4 = vpop.permute.xlu1 %1485 }
 0x2f9   : > { %18417 = vmatprep.subr.msk.mxu1 %vm865_vm1, %v1486_v4 }
 0x2fb   : > { %18418 = vmatpush3.xpose.msk.msra.mxu1 %vm865_vm1, %v1486_v4  ;;  %v21377_v4 = vld [vmem:[%s20866_s29 + $0x58] sm:$0xff] }
 0x2fc   : > { %v1750_v35 = vpop.permute.xlu1 %1749  ;;  %26451 = vst [vmem:[#allocation35_spill] sm:$0xff] %v21377_v4 }
 0x2fd   : > { %18424 = vmatprep.subr.mxu0 %v1750_v35 }
 0x2fe   : > { %18420 = vmatmul.mubr.msk.f32.vlgmr.msra.gmra.mxu1 %vm865_vm1, %v21172_v29  ;;  %18425 = vmatpush3.msra.mxu0 %v1750_v35 }
 0x300   : > { %v21292_v37 = vpop.permute.xlu1 %1838 }
 0x301   : > { %18429 = vmatprep.subr.mxu0 %v21292_v37 }
 0x304   : > { %v21295_v5 = vpop.permute.xlu1 %1836 }
 0x308   : > { %v2013_v6 = vpop.permute.xlu1 %2012 }
 0x309   : > { %18443 = vmatprep.subr.mxu1 %v2013_v6 }
 0x30a   : > { %18444 = vmatpush3.msra.mxu1 %v2013_v6 }
 0x30c   : > { %v2011_v7 = vpop.permute.xlu1 %2010 }
 0x30d   : > { %18445 = vmatprep.subr.mxu1 %v2011_v7 }
 0x30e   : > { %18446 = vmatpush3.msra.mxu1 %v2011_v7  ;;  %v21382_v7 = vld [vmem:[%s20866_s29 + $0x68] sm:$0xff] }
 0x30f   : > { %26452 = vst [vmem:[#allocation36_spill] sm:$0xff] %v21382_v7 }
 0x310   : > { %v21297_v8 = vpop.permute.xlu1 %2186 }
 0x311   : > { %18457 = vmatprep.subr.mxu1 %v21297_v8 }
 0x39b   : > { %v18379_v15 = vpop.f32.mrf.mxu1 }
 0x39c   : > { %v21307_v17 = vadd.f32 %v18379_v15, %v21301_v16  ;;  %v21385_v15 = vld [vmem:[%s20866_s29 + $0x50] sm:$0xff] }
 0x39d   : > { %v1029_v18 = vpop.f32.mrf.mxu1  ;;  %26453 = vst [vmem:[#allocation37_spill] sm:$0xff] %v21385_v15 }
 0x39e   : > { %v21313_v19 = vadd.f32 %v1029_v18, %v21304_v47  ;;  %v1582_v22 = vsel %vm1572_vm2, %v21307_v17, -inf }
 0x39f   : > { %1583 = vmax.xlane.f32.xlu0 %v1582_v22  ;;  %v18372_v34 = vpop.f32.mrf.mxu0 }
 0x3a0   : > { %v21321_v54 = vadd.f32 %v18372_v34, %v21310_v25  ;;  %v1579_v31 = vsel %vm1572_vm2, %v21313_v19, -inf }
 0x3a1   : > { %v940_v27 = vpop.f32.mrf.mxu0 }
 0x3a2   : > { %v21324_v30 = vadd.f32 %v940_v27, %v21318_v10  ;;  %v1576_v33 = vsel %vm1572_vm2, %v21321_v54, -inf }
 0x3a3   : > { %1580 = vmax.xlane.f32.xlu0 %v1579_v31  ;;  %1577 = vmax.xlane.f32.xlu1 %v1576_v33  ;;  %v21393_v31 = vld [vmem:[%s20866_s29 + $0x60] sm:$0xff] }
 0x3a4   : > { %v1573_v43 = vsel %vm1572_vm2, %v21324_v30, -inf  ;;  %26454 = vst [vmem:[#allocation38_spill] sm:$0xff] %v21393_v31 }
 0x3a5   : > { %v18386_v40 = vpop.f32.mrf.mxu1 }
 0x3a6   : > { %v21337_v0 = vadd.f32 %v18386_v40, %v21331_v38 }
 0x3a7   : > { %v1118_v48 = vpop.f32.mrf.mxu1  ;;  %1574 = vmax.xlane.f32.xlu0 %v1573_v43 }
 0x3a8   : > { %v21342_v50 = vadd.f32 %v1118_v48, %v21334_v55  ;;  %v1588_v36 = vsel %vm1572_vm2, %v21337_v0, -inf }
 0x3a9   : > { %1589 = vmax.xlane.f32.xlu1 %v1588_v36 }
 0x3aa   : > { %v1585_v53 = vsel %vm1572_vm2, %v21342_v50, -inf }
 0x3ab   : > { %1586 = vmax.xlane.f32.xlu0 %v1585_v53 }
 0x3ad   : > { %v18393_v57 = vpop.f32.mrf.mxu1 }
 0x3ae   : > { %v21358_v9 = vadd.f32 %v18393_v57, %v21349_v56  ;;  %v18400_v60 = vpop.f32.mrf.mxu0  ;;  %v21409_v57 = vld [vmem:[%s20866_s29 + $0x78] sm:$0xff] }
 0x3af   : > { %v1207_v23 = vpop.f32.mrf.mxu1  ;;  %v21364_v62 = vadd.f32 %v18400_v60, %v21352_v58  ;;  %26455 = vst [vmem:[#allocation39_spill] sm:$0xff] %v21409_v57 }
 0x3b0   : > { %v21367_v63 = vadd.f32 %v1207_v23, %v21355_v59  ;;  %v1296_v2 = vpop.f32.mrf.mxu0  ;;  %v1594_v44 = vsel %vm1572_vm2, %v21358_v9, -inf }
 0x3b1   : > { %1595 = vmax.xlane.f32.xlu1 %v1594_v44  ;;  %v21372_v13 = vadd.f32 %v1296_v2, %v21361_v61  ;;  %v1600_v35 = vsel %vm1572_vm2, %v21364_v62, -inf  ;;  %v21414_v2 = vld [vmem:[%s20866_s29 + $0x70] sm:$0xff] }
 0x3b2   : > { %v1591_v3 = vsel %vm1572_vm2, %v21367_v63, -inf  ;;  %26456 = vst [vmem:[#allocation40_spill] sm:$0xff] %v21414_v2 }
 0x3b3   : > { %1592 = vmax.xlane.f32.xlu0 %v1591_v3  ;;  %v1597_v18 = vsel %vm1572_vm2, %v21372_v13, -inf }
 0x3b5   : > { %1601 = vmax.xlane.f32.xlu1 %v1600_v35 }
 0x3b6   : > { %v18407_v6 = vpop.f32.mrf.mxu1 }
 0x3b7   : > { %v21390_v22 = vadd.f32 %v18407_v6, %v21377_v4  ;;  %v18414_v34 = vpop.f32.mrf.mxu0  ;;  %1598 = vmax.xlane.f32.xlu0 %v1597_v18 }
 0x3b8   : > { %v1385_v27 = vpop.f32.mrf.mxu1  ;;  %v21396_v33 = vadd.f32 %v18414_v34, %v21382_v7 }
 0x3b9   : > { %v21399_v40 = vadd.f32 %v1385_v27, %v21385_v15  ;;  %v1474_v43 = vpop.f32.mrf.mxu0  ;;  %v1606_v48 = vsel %vm1572_vm2, %v21390_v22, -inf  ;;  %v21440_v27 = vpop.permute.xlu0 %1925 }
 0x3ba   : > { %1607 = vmax.xlane.f32.xlu1 %v1606_v48  ;;  %v21404_v36 = vadd.f32 %v1474_v43, %v21393_v31  ;;  %v1612_v60 = vsel %vm1572_vm2, %v21396_v33, -inf }
 0x3bb   : > { %v1603_v53 = vsel %vm1572_vm2, %v21399_v40, -inf }
 0x3bc   : > { %1604 = vmax.xlane.f32.xlu0 %v1603_v53  ;;  %v1609_v3 = vsel %vm1572_vm2, %v21404_v36, -inf }
 0x3bd   : > { %v21442_v43 = vpop.permute.xlu0 %1923 }
 0x3be   : > { %v18421_v23 = vpop.f32.mrf.mxu1  ;;  %1613 = vmax.xlane.f32.xlu1 %v1612_v60  ;;  %v21448_v60 = vpop.permute.xlu1 %2184 }
 0x3bf   : > { %v21417_v44 = vadd.f32 %v18421_v23, %v21409_v57 }
 0x3c0   : > { %v1563_v35 = vpop.f32.mrf.mxu1  ;;  %1610 = vmax.xlane.f32.xlu0 %v1609_v3 }
 0x3c1   : > { %v21422_v6 = vadd.f32 %v1563_v35, %v21414_v2  ;;  %v1618_v18 = vsel %vm1572_vm2, %v21417_v44, -inf  ;;  %v21444_v48 = vpop.permute.xlu0 %2099 }
 0x3c2   : > { %1619 = vmax.xlane.f32.xlu1 %v1618_v18  ;;  %v21452_v3 = vpop.permute.xlu1 %2360 }
 0x3c3   : > { %v1615_v34 = vsel %vm1572_vm2, %v21422_v6, -inf }
 0x3c4   : > { %1616 = vmax.xlane.f32.xlu0 %v1615_v34 }
 0x3c5   : > { %v21446_v53 = vpop.permute.xlu0 %2097 }
 0x3c6   : > { %v21456_v18 = vpop.permute.xlu1 %2358 }
 0x3c9   : > { %v21450_v23 = vpop.permute.xlu0 %2271 }
 0x3ca   : > { %v21460_v14 = vpop.permute.xlu1 %2551 }
 0x3cd   : > { %v21454_v35 = vpop.permute.xlu0 %2460 }
 0x3ce   : > { %v21464_v11 = vpop.permute.xlu1 %2549 }
 0x3d1   : > { %v21458_v34 = vpop.permute.xlu0 %2458 }
 0x3d2   : > { %v21468_v57 = vpop.permute.xlu1 %2456 }
 0x3d3   : > { %2731 = vrot.lane.b32.xlu1 %v21148_v46, %s20628_s18  ;;  %26457 = vst [vmem:[#allocation41_spill] sm:$0xff] %v21468_v57 }
 0x3d5   : > { %v21462_v21 = vpop.permute.xlu0 %2454 }
 0x3d6   : > { %v21472_v7 = vpop.permute.xlu1 %2642 }
 0x3d7   : > { %2638 = vrot.lane.b32.xlu1 %v21130_v32, %s20629_s26  ;;  %26459 = vst [vmem:[#allocation43_spill] sm:$0xff] %v21472_v7 }
 0x3d9   : > { %v21466_v2 = vpop.permute.xlu0 %2545 }
 0x3da   : > { %2640 = vrot.lane.b32.xlu0 %v21136_v39, %s20628_s18  ;;  %v21476_v4 = vpop.permute.xlu1 %2733 }
 0x3db   : > { %2824 = vrot.lane.b32.xlu1 %v21142_v42, %s20628_s18  ;;  %26460 = vst [vmem:[#allocation44_spill] sm:$0xff] %v21476_v4 }
 0x3dd   : > { %v21470_v31 = vpop.permute.xlu0 %2547 }
 0x3de   : > { %2636 = vrot.lane.b32.xlu0 %v21136_v39, %s20629_s26  ;;  %26458 = vst [vmem:[#allocation42_spill] sm:$0xff] %v21470_v31 }
 0x3e1   : > { %v21474_v15 = vpop.permute.xlu0 %2273 }
 0x3e2   : > { %2727 = vrot.lane.b32.xlu0 %v21148_v46, %s20629_s26 }
 0x428   : > { %v1584_v61 = vpop.xlane.xlu0 %1583 }
 0x429   : > { %v1624_v58 = vsub.f32 %v21307_v17, %v1584_v61 }
 0x42b   : > { %v1643_v59 = vmul.f32 1.442695, %v1624_v58 }
 0x42c   : > { %v1578_v56 = vpop.xlane.xlu1 %1577  ;;  %v1581_v55 = vpop.xlane.xlu0 %1580 }
 0x42d   : > { %19660 = vpow2.f32 %v1643_v59  ;;  %v1622_v38 = vsub.f32 %v21321_v54, %v1578_v56  ;;  %v1623_v47 = vsub.f32 %v21313_v19, %v1581_v55 }
 0x42f   : > { %v1639_v16 = vmul.f32 1.442695, %v1622_v38  ;;  %v1641_v10 = vmul.f32 1.442695, %v1623_v47 }
 0x430   : > { %v1575_v25 = vpop.xlane.xlu0 %1574 }
 0x431   : > { %19662 = vpow2.f32 %v1639_v16  ;;  %v1621_v31 = vsub.f32 %v21324_v30, %v1575_v25 }
 0x432   : > { %19664 = vpow2.f32 %v1641_v10  ;;  %v1590_v57 = vpop.xlane.xlu1 %1589 }
 0x433   : > { %v1637_v4 = vmul.f32 1.442695, %v1621_v31  ;;  %v1626_v7 = vsub.f32 %v21337_v0, %v1590_v57 }
 0x434   : > { %v1587_v17 = vpop.xlane.xlu0 %1586 }
 0x435   : > { %19666 = vpow2.f32 %v1637_v4  ;;  %v1647_v58 = vmul.f32 1.442695, %v1626_v7  ;;  %v1625_v59 = vsub.f32 %v21342_v50, %v1587_v17 }
 0x437   : > { %19668 = vpow2.f32 %v1647_v58  ;;  %v1645_v54 = vmul.f32 1.442695, %v1625_v59 }
 0x439   : > { %19670 = vpow2.f32 %v1645_v54 }
 0x43a   : > { %v21484_v19 = vpop.eup %19660  ;;  %v1596_v47 = vpop.xlane.xlu1 %1595 }
 0x43b   : > { %v1628_v16 = vsub.f32 %v21358_v9, %v1596_v47  ;;  %v1678_v25 = vsel %vm1572_vm2, %v21484_v19, 0.0 }
 0x43c   : > { %1679 = vadd.xlane.f32.xlu1 %v1678_v25  ;;  %v1593_v10 = vpop.xlane.xlu0 %1592 }
 0x43d   : > { %v1651_v30 = vmul.f32 1.442695, %v1628_v16  ;;  %v1627_v38 = vsub.f32 %v21367_v63, %v1593_v10 }
 0x43e   : > { %v21490_v55 = vpop.eup %19662  ;;  %v1602_v0 = vpop.xlane.xlu1 %1601 }
 0x43f   : > { %v21492_v50 = vpop.eup %19664  ;;  %19672 = vpow2.f32 %v1651_v30  ;;  %v1649_v56 = vmul.f32 1.442695, %v1627_v38  ;;  %v1630_v61 = vsub.f32 %v21364_v62, %v1602_v0  ;;  %v1672_v9 = vsel %vm1572_vm2, %v21490_v55, 0.0 }
 0x440   : > { %1673 = vadd.xlane.f32.xlu1 %v1672_v9  ;;  %v1675_v4 = vsel %vm1572_vm2, %v21492_v50, 0.0  ;;  %v1599_v7 = vpop.xlane.xlu0 %1598 }
 0x441   : > { %19674 = vpow2.f32 %v1649_v56  ;;  %v1655_v31 = vmul.f32 1.442695, %v1630_v61  ;;  %1676 = vadd.xlane.f32.xlu0 %v1675_v4  ;;  %v1629_v63 = vsub.f32 %v21372_v13, %v1599_v7 }
 0x442   : > { %v21500_v57 = vpop.eup %19666 }
 0x443   : > { %19676 = vpow2.f32 %v1655_v31  ;;  %v1653_v17 = vmul.f32 1.442695, %v1629_v63  ;;  %v1608_v58 = vpop.xlane.xlu1 %1607  ;;  %v1669_v62 = vsel %vm1572_vm2, %v21500_v57, 0.0 }
 0x444   : > { %v21504_v59 = vpop.eup %19668  ;;  %v1632_v54 = vsub.f32 %v21390_v22, %v1608_v58 }
 0x445   : > { %19678 = vpow2.f32 %v1653_v17  ;;  %1670 = vadd.xlane.f32.xlu0 %v1669_v62  ;;  %v1605_v47 = vpop.xlane.xlu0 %1604  ;;  %v1684_v16 = vsel %vm1572_vm2, %v21504_v59, 0.0 }
 0x446   : > { %v21509_v25 = vpop.eup %19670  ;;  %v1659_v13 = vmul.f32 1.442695, %v1632_v54  ;;  %v1631_v10 = vsub.f32 %v21399_v40, %v1605_v47  ;;  %1685 = vadd.xlane.f32.xlu1 %v1684_v16 }
 0x447   : > { %v1614_v30 = vpop.xlane.xlu1 %1613  ;;  %v1681_v38 = vsel %vm1572_vm2, %v21509_v25, 0.0 }
 0x448   : > { %19680 = vpow2.f32 %v1659_v13  ;;  %v1657_v0 = vmul.f32 1.442695, %v1631_v10  ;;  %v1634_v22 = vsub.f32 %v21396_v33, %v1614_v30 }
 0x449   : > { %1682 = vadd.xlane.f32.xlu0 %v1681_v38  ;;  %v1611_v56 = vpop.xlane.xlu0 %1610 }
 0x44a   : > { %19682 = vpow2.f32 %v1657_v0  ;;  %v1663_v61 = vmul.f32 1.442695, %v1634_v22  ;;  %v1633_v9 = vsub.f32 %v21404_v36, %v1611_v56 }
 0x44b   : > { %v1620_v4 = vpop.xlane.xlu1 %1619 }
 0x44c   : > { %v21516_v7 = vpop.eup %19672  ;;  %19684 = vpow2.f32 %v1663_v61  ;;  %v1661_v40 = vmul.f32 1.442695, %v1633_v9  ;;  %v1636_v31 = vsub.f32 %v21417_v44, %v1620_v4 }
 0x44d   : > { %v1617_v63 = vpop.xlane.xlu0 %1616  ;;  %v1690_v17 = vsel %vm1572_vm2, %v21516_v7, 0.0 }
 0x44e   : > { %v21521_v58 = vpop.eup %19674  ;;  %19686 = vpow2.f32 %v1661_v40  ;;  %v1667_v33 = vmul.f32 1.442695, %v1636_v31  ;;  %v1635_v62 = vsub.f32 %v21422_v6, %v1617_v63  ;;  %1691 = vadd.xlane.f32.xlu1 %v1690_v17 }
 0x44f   : > { %v1687_v36 = vsel %vm1572_vm2, %v21521_v58, 0.0  ;;  %v21612_v63 = vpop.permute.xlu1 %2731 }
 0x450   : > { %v21526_v54 = vpop.eup %19676  ;;  %19688 = vpow2.f32 %v1667_v33  ;;  %v1665_v47 = vmul.f32 1.442695, %v1635_v62  ;;  %1688 = vadd.xlane.f32.xlu0 %v1687_v36 }
 0x451   : > { %v1696_v44 = vsel %vm1572_vm2, %v21526_v54, 0.0  ;;  %v21614_v17 = vpop.permute.xlu0 %2640 }
 0x452   : > { %v21530_v16 = vpop.eup %19678  ;;  %19690 = vpow2.f32 %v1665_v47  ;;  %1697 = vadd.xlane.f32.xlu1 %v1696_v44 }
 0x453   : > { %v1693_v13 = vsel %vm1572_vm2, %v21530_v16, 0.0  ;;  %v21616_v33 = vpop.permute.xlu1 %2638 }
 0x454   : > { %1694 = vadd.xlane.f32.xlu0 %v1693_v13 }
 0x455   : > { %v21534_v6 = vpop.eup %19680  ;;  %v21618_v62 = vpop.permute.xlu0 %2636 }
 0x456   : > { %v1702_v10 = vsel %vm1572_vm2, %v21534_v6, 0.0 }
 0x457   : > { %v21538_v30 = vpop.eup %19682  ;;  %1703 = vadd.xlane.f32.xlu1 %v1702_v10  ;;  %v21620_v36 = vpop.permute.xlu1 %2824 }
 0x458   : > { %v1699_v38 = vsel %vm1572_vm2, %v21538_v30, 0.0 }
 0x459   : > { %v21542_v0 = vpop.eup %19684  ;;  %1700 = vadd.xlane.f32.xlu0 %v1699_v38  ;;  %v21622_v44 = vpop.permute.xlu0 %2727 }
 0x45a   : > { %v1708_v22 = vsel %vm1572_vm2, %v21542_v0, 0.0 }
 0x45b   : > { %v21546_v56 = vpop.eup %19686  ;;  %1709 = vadd.xlane.f32.xlu1 %v1708_v22 }
 0x45c   : > { %v1705_v61 = vsel %vm1572_vm2, %v21546_v56, 0.0 }
 0x45d   : > { %v21550_v9 = vpop.eup %19688  ;;  %1706 = vadd.xlane.f32.xlu0 %v1705_v61 }
 0x45e   : > { %v1714_v4 = vsel %vm1572_vm2, %v21550_v9, 0.0 }
 0x45f   : > { %v21554_v40 = vpop.eup %19690  ;;  %1715 = vadd.xlane.f32.xlu1 %v1714_v4 }
 0x460   : > { %v1711_v31 = vsel %vm1572_vm2, %v21554_v40, 0.0 }
 0x461   : > { %1712 = vadd.xlane.f32.xlu0 %v1711_v31 }
 0x470   : > { %2915 = vrot.lane.b32.xlu1 %v21156_v51, %s20628_s18 }
 0x474   : > { %2913 = vrot.lane.b32.xlu1 %v21164_v52, %s20628_s18 }
 0x477   : > { %2729 = vrot.lane.b32.xlu0 %v21140_v41, %s20629_s26 }
 0x478   : > { %2820 = vrot.lane.b32.xlu1 %v21142_v42, %s20629_s26 }
 0x47b   : > { %2822 = vrot.lane.b32.xlu0 %v21150_v24, %s20628_s18 }
 0x47c   : > { %3006 = vrot.lane.b32.xlu1 %v21158_v1, %s20628_s18 }
 0x47f   : > { %2818 = vrot.lane.b32.xlu0 %v21150_v24, %s20629_s26 }
 0x480   : > { %3097 = vrot.lane.b32.xlu1 %v21172_v29, %s20628_s18 }
 0x483   : > { %2909 = vrot.lane.b32.xlu0 %v21164_v52, %s20629_s26 }
 0x484   : > { %3095 = vrot.lane.b32.xlu1 %v21178_v12, %s20628_s18 }
 0x487   : > { %2911 = vrot.lane.b32.xlu0 %v21156_v51, %s20629_s26 }
 0x488   : > { %3002 = vrot.lane.b32.xlu1 %v21158_v1, %s20629_s26 }
 0x48b   : > { %3004 = vrot.lane.b32.xlu0 %v21166_v28, %s20628_s18 }
 0x48c   : > { %3093 = vrot.lane.b32.xlu1 %v21172_v29, %s20629_s26 }
 0x48f   : > { %3000 = vrot.lane.b32.xlu0 %v21166_v28, %s20629_s26 }
 0x490   : > { %3360 = vrot.lane.b32.xlu1 %v21126_v26, %s20630_s24 }
 0x493   : > { %3091 = vrot.lane.b32.xlu0 %v21178_v12, %s20629_s26 }
 0x494   : > { %3358 = vrot.lane.b32.xlu1 %v21114_v45, %s20630_s24 }
 0x497   : > { %3447 = vrot.lane.b32.xlu0 %v21120_v49, %s20630_s24 }
 0x498   : > { %3445 = vrot.lane.b32.xlu1 %v21112_v20, %s20630_s24 }
 0x49b   : > { %3532 = vrot.lane.b32.xlu0 %v21136_v39, %s20630_s24 }
 0x49c   : > { %3534 = vrot.lane.b32.xlu1 %v21130_v32, %s20630_s24 }
 0x49f   : > { %3708 = vrot.lane.b32.xlu0 %v21142_v42, %s20630_s24 }
 0x4a0   : > { %3621 = vrot.lane.b32.xlu1 %v21140_v41, %s20630_s24 }
 0x4a3   : > { %3706 = vrot.lane.b32.xlu0 %v21150_v24, %s20630_s24 }
 0x4a4   : > { %3619 = vrot.lane.b32.xlu1 %v21148_v46, %s20630_s24 }
 0x4a8   : > { %3795 = vrot.lane.b32.xlu1 %v21156_v51, %s20630_s24 }
 0x4c5   : > { %v1680_v47 = vpop.xlane.xlu1 %1679 }
 0x4c9   : > { %v1674_v13 = vpop.xlane.xlu1 %1673 }
 0x4ca   : > { %v1677_v10 = vpop.xlane.xlu0 %1676  ;;  %19692 = vrcp.f32 %v1674_v13 }
 0x4cb   : > { %19694 = vrcp.f32 %v1677_v10 }
 0x4ce   : > { %v1671_v38 = vpop.xlane.xlu0 %1670 }
 0x4cf   : > { %19696 = vrcp.f32 %v1671_v38  ;;  %v1686_v61 = vpop.xlane.xlu1 %1685 }
 0x4d0   : > { %19698 = vrcp.f32 %v1680_v47 }
 0x4d2   : > { %v1683_v22 = vpop.xlane.xlu0 %1682 }
 0x4d3   : > { %19700 = vrcp.f32 %v1683_v22 }
 0x4d4   : > { %19702 = vrcp.f32 %v1686_v61 }
 0x4d7   : > { %v1692_v4 = vpop.xlane.xlu1 %1691  ;;  %v19693_v24 = vpop.eup %19692 }
 0x4d8   : > { %19704 = vrcp.f32 %v1692_v4  ;;  %v19695_v39 = vpop.eup %19694  ;;  %v1734_v10 = vmul.f32 %v19693_v24, %v21490_v55 }
 0x4d9   : > { %v1689_v31 = vpop.xlane.xlu0 %1688  ;;  %v1735_v38 = vmul.f32 %v19695_v39, %v21492_v50 }
 0x4da   : > { %19706 = vrcp.f32 %v1689_v31 }
 0x4db   : > { %v1698_v51 = vpop.xlane.xlu1 %1697 }
 0x4dc   : > { %v19697_v42 = vpop.eup %19696  ;;  %19708 = vrcp.f32 %v1698_v51 }
 0x4dd   : > { %v1695_v45 = vpop.xlane.xlu0 %1694  ;;  %v1733_v13 = vmul.f32 %v19697_v42, %v21500_v57  ;;  %v19699_v47 = vpop.eup %19698 }
 0x4de   : > { %19710 = vrcp.f32 %v1695_v45  ;;  %v1736_v45 = vmul.f32 %v19699_v47, %v21484_v19 }
 0x4df   : > { %18426 = vmatprep.mubr.msk.f32.mxu0 %vm1572_vm2, %v1733_v13 }
 0x4e0   : > { %v19701_v22 = vpop.eup %19700  ;;  %v1704_v61 = vpop.xlane.xlu1 %1703  ;;  %18427 = vmatmul.mubr.msk.f32.vlgmr.msra.gmra.mxu0 %vm1572_vm2, %v1734_v10 }
 0x4e1   : > { %18430 = vmatpush3.msra.mxu0 %v21292_v37  ;;  %18433 = vmatprep.mubr.msk.f32.mxu0 %vm1572_vm2, %v1735_v38  ;;  %19712 = vrcp.f32 %v1704_v61  ;;  %v19703_v24 = vpop.eup %19702  ;;  %v1737_v39 = vmul.f32 %v19701_v22, %v21509_v25 }
 0x4e2   : > { %18431 = vmatprep.subr.mxu0 %v21295_v5  ;;  %v1701_v42 = vpop.xlane.xlu0 %1700  ;;  %v1738_v55 = vmul.f32 %v19703_v24, %v21504_v59 }
 0x4e3   : > { %18432 = vmatpush3.msra.mxu0 %v21295_v5  ;;  %19714 = vrcp.f32 %v1701_v42 }
 0x4e4   : > { %18436 = vmatprep.subr.mxu0 %v21440_v27  ;;  %v1710_v51 = vpop.xlane.xlu1 %1709  ;;  %18434 = vmatmul.mubr.msk.f32.vlgmr.msra.gmra.mxu0 %vm1572_vm2, %v1736_v45 }
 0x4e5   : > { %18437 = vmatpush3.msra.mxu0 %v21440_v27  ;;  %18440 = vmatprep.mubr.msk.f32.mxu0 %vm1572_vm2, %v1737_v39  ;;  %v19705_v37 = vpop.eup %19704  ;;  %19716 = vrcp.f32 %v1710_v51 }
 0x4e6   : > { %18438 = vmatprep.subr.mxu0 %v21442_v43  ;;  %v1707_v19 = vpop.xlane.xlu0 %1706  ;;  %v1740_v57 = vmul.f32 %v19705_v37, %v21516_v7 }
 0x4e7   : > { %v19707_v5 = vpop.eup %19706  ;;  %18439 = vmatpush3.msra.mxu0 %v21442_v43  ;;  %19718 = vrcp.f32 %v1707_v19 }
 0x4e8   : > { %18450 = vmatprep.subr.mxu0 %v21444_v48  ;;  %v1716_v50 = vpop.xlane.xlu1 %1715  ;;  %18441 = vmatmul.mubr.msk.f32.vlgmr.msra.gmra.mxu0 %vm1572_vm2, %v1738_v55  ;;  %v1739_v27 = vmul.f32 %v19707_v5, %v21521_v58 }
 0x4e9   : > { %18451 = vmatpush3.msra.mxu0 %v21444_v48  ;;  %v19709_v25 = vpop.eup %19708  ;;  %19720 = vrcp.f32 %v1716_v50 }
 0x4ea   : > { %18452 = vmatprep.subr.mxu0 %v21446_v53  ;;  %v1713_v59 = vpop.xlane.xlu0 %1712  ;;  %18447 = vmatprep.mubr.msk.f32.mxu1 %vm1572_vm2, %v1739_v27  ;;  %v1742_v7 = vmul.f32 %v19709_v25, %v21526_v54 }
 0x4eb   : > { %v19711_v43 = vpop.eup %19710  ;;  %18453 = vmatpush3.msra.mxu0 %v21446_v53  ;;  %19722 = vrcp.f32 %v1713_v59  ;;  %18448 = vmatmul.mubr.msk.f32.vlgmr.msra.gmra.mxu1 %vm1572_vm2, %v1740_v57 }
 0x4ec   : > { %18464 = vmatprep.subr.mxu0 %v21474_v15  ;;  %v21652_v58 = vpop.permute.xlu1 %2915  ;;  %18458 = vmatpush3.msra.mxu1 %v21297_v8  ;;  %v1741_v48 = vmul.f32 %v19711_v43, %v21530_v16 }
 0x4ed   : > { %18459 = vmatprep.subr.mxu1 %v21448_v60 }
 0x4ee   : > { %18460 = vmatpush3.msra.mxu1 %v21448_v60  ;;  %v21659_v4 = vpop.permute.xlu0 %2729  ;;  %18454 = vmatprep.mubr.msk.f32.mxu0 %vm1572_vm2, %v1741_v48  ;;  %v19713_v53 = vpop.eup %19712 }
 0x4ef   : > { %18471 = vmatprep.subr.mxu1 %v21452_v3  ;;  %18455 = vmatmul.mubr.msk.f32.vlgmr.msra.gmra.mxu0 %vm1572_vm2, %v1742_v7  ;;  %v1744_v54 = vmul.f32 %v19713_v53, %v21534_v6 }
 0x4f0   : > { %v19715_v31 = vpop.eup %19714  ;;  %v21664_v13 = vpop.permute.xlu1 %2913  ;;  %18465 = vmatpush3.msra.mxu0 %v21474_v15 }
 0x4f1   : > { %18466 = vmatprep.subr.mxu0 %v21450_v23  ;;  %v1743_v8 = vmul.f32 %v19715_v31, %v21538_v30  ;;  %v26465_v31 = vld [vmem:[#allocation27_spill] sm:$0xff] }
 0x4f2   : > { %18467 = vmatpush3.msra.mxu0 %v21450_v23  ;;  %v2823_v60 = vpop.permute.xlu0 %2822  ;;  %v19717_v16 = vpop.eup %19716 }
 0x4f3   : > { %18461 = vmatprep.mubr.msk.f32.mxu1 %vm1572_vm2, %v1743_v8  ;;  %18478 = vmatprep.subr.msk.mxu0 %vm865_vm1, %v21454_v35  ;;  %v1746_v30 = vmul.f32 %v19717_v16, %v21542_v0 }
 0x4f4   : > { %v19719_v10 = vpop.eup %19718  ;;  %v2821_v47 = vpop.permute.xlu1 %2820  ;;  %18462 = vmatmul.mubr.msk.f32.vlgmr.msra.gmra.mxu1 %vm1572_vm2, %v1744_v54  ;;  %v26466_v54 = vld [vmem:[#allocation28_spill] sm:$0xff] }
 0x4f5   : > { %18472 = vmatpush3.msra.mxu1 %v21452_v3  ;;  %v1745_v15 = vmul.f32 %v19719_v10, %v21546_v56 }
 0x4f6   : > { %18473 = vmatprep.subr.mxu1 %v21456_v18  ;;  %v2819_v23 = vpop.permute.xlu0 %2818  ;;  %v19721_v6 = vpop.eup %19720 }
 0x4f7   : > { %18474 = vmatpush3.msra.mxu1 %v21456_v18  ;;  %18468 = vmatprep.mubr.msk.f32.mxu0 %vm1572_vm2, %v1745_v15  ;;  %v1748_v18 = vmul.f32 %v19721_v6, %v21550_v9  ;;  %v26467_v15 = vld [vmem:[#allocation25_spill] sm:$0xff] }
 0x4f8   : > { %v19723_v38 = vpop.eup %19722  ;;  %18485 = vmatprep.subr.msk.mxu1 %vm865_vm1, %v21460_v14  ;;  %v3007_v22 = vpop.permute.xlu1 %3006  ;;  %18469 = vmatmul.mubr.msk.f32.vlgmr.msra.gmra.mxu0 %vm1572_vm2, %v1746_v30 }
 0x4f9   : > { %18479 = vmatpush3.xpose.msk.msra.mxu0 %vm865_vm1, %v21454_v35  ;;  %18482 = vmatprep.mubr.msk.f32.mxu0 %vm865_vm1, %v21462_v21  ;;  %v1747_v3 = vmul.f32 %v19723_v38, %v21554_v40  ;;  %v26461_v21 = vld [vmem:[#allocation43_spill] sm:$0xff]  ;;  %v26462_v35 = vld [vmem:[#allocation41_spill] sm:$0xff] }
 0x4fa   : > { %18480 = vmatprep.subr.msk.mxu0 %vm865_vm1, %v21458_v34  ;;  %v2910_v0 = vpop.permute.xlu0 %2909 }
 0x4fb   : > { %18475 = vmatprep.mubr.msk.f32.mxu1 %vm1572_vm2, %v1747_v3 }
 0x4fc   : > { %v3098_v56 = vpop.permute.xlu1 %3097  ;;  %18476 = vmatmul.mubr.msk.f32.vlgmr.msra.gmra.mxu1 %vm1572_vm2, %v1748_v18  ;;  %v26469_v18 = vld [vmem:[#allocation29_spill] sm:$0xff] }
 0x4fd   : > { %18481 = vmatpush3.xpose.msk.msra.mxu0 %vm865_vm1, %v21458_v34  ;;  %18486 = vmatpush3.xpose.msk.msra.mxu1 %vm865_vm1, %v21460_v14  ;;  %v26463_v14 = vld [vmem:[#allocation44_spill] sm:$0xff] }
 0x4fe   : > { %18487 = vmatprep.subr.msk.mxu1 %vm865_vm1, %v21464_v11  ;;  %18489 = vmatprep.mubr.msk.f32.mxu1 %vm865_vm1, %v21466_v2  ;;  %v2912_v40 = vpop.permute.xlu0 %2911  ;;  %v26464_v2 = vld [vmem:[#allocation42_spill] sm:$0xff] }
 0x4ff   : > { %18492 = vmatprep.subr.msk.mxu0 %vm865_vm1, %v26461_v21 }
 0x500   : > { %18483 = vmatmul.mubr.msk.f32.vlgmr.msra.gmra.mxu0 %vm865_vm1, %v26462_v35  ;;  %v3096_v9 = vpop.permute.xlu1 %3095 }
 0x501   : > { %18488 = vmatpush3.xpose.msk.msra.mxu1 %vm865_vm1, %v21464_v11  ;;  %18493 = vmatpush3.xpose.msk.msra.mxu0 %vm865_vm1, %v26461_v21 }
 0x502   : > { %18496 = vmatprep.mubr.msk.f32.mxu0 %vm865_vm1, %v21618_v62  ;;  %18494 = vmatprep.subr.msk.mxu0 %vm865_vm1, %v21614_v17  ;;  %v3005_v11 = vpop.permute.xlu0 %3004 }
 0x503   : > { %18499 = vmatprep.subr.msk.mxu1 %vm865_vm1, %v26463_v14 }
 0x504   : > { %18490 = vmatmul.mubr.msk.f32.vlgmr.msra.gmra.mxu1 %vm865_vm1, %v26464_v2  ;;  %v3003_v34 = vpop.permute.xlu1 %3002  ;;  %v26471_v2 = vld [vmem:[#allocation31_spill] sm:$0xff] }
 0x505   : > { %18495 = vmatpush3.xpose.msk.msra.mxu0 %vm865_vm1, %v21614_v17  ;;  %18500 = vmatpush3.xpose.msk.msra.mxu1 %vm865_vm1, %v26463_v14 }
 0x506   : > { %18503 = vmatprep.mubr.msk.f32.mxu1 %vm865_vm1, %v21622_v44  ;;  %18501 = vmatprep.subr.msk.mxu1 %vm865_vm1, %v21612_v63  ;;  %v3001_v44 = vpop.permute.xlu0 %3000 }
 0x507   : > { %18506 = vmatprep.subr.msk.mxu0 %vm865_vm1, %v21620_v36 }
 0x508   : > { %18497 = vmatmul.mubr.msk.f32.vlgmr.msra.gmra.mxu0 %vm865_vm1, %v21616_v33  ;;  %v3094_v62 = vpop.permute.xlu1 %3093 }
 0x509   : > { %18502 = vmatpush3.xpose.msk.msra.mxu1 %vm865_vm1, %v21612_v63  ;;  %18507 = vmatpush3.xpose.msk.msra.mxu0 %vm865_vm1, %v21620_v36 }
 0x50a   : > { %18510 = vmatprep.mubr.msk.f32.mxu0 %vm865_vm1, %v2819_v23  ;;  %18508 = vmatprep.subr.msk.mxu0 %vm865_vm1, %v2823_v60  ;;  %v3092_v33 = vpop.permute.xlu0 %3091 }
 0x50b   : > { %18513 = vmatprep.subr.msk.mxu1 %vm865_vm1, %v21652_v58 }
 0x50c   : > { %18504 = vmatmul.mubr.msk.f32.vlgmr.msra.gmra.mxu1 %vm865_vm1, %v21659_v4  ;;  %v3361_v17 = vpop.permute.xlu1 %3360 }
 0x50d   : > { %18509 = vmatpush3.xpose.msk.msra.mxu0 %vm865_vm1, %v2823_v60  ;;  %18514 = vmatpush3.xpose.msk.msra.mxu1 %vm865_vm1, %v21652_v58 }
 0x50e   : > { %18517 = vmatprep.mubr.msk.f32.mxu1 %vm865_vm1, %v2910_v0  ;;  %18515 = vmatprep.subr.msk.mxu1 %vm865_vm1, %v21664_v13  ;;  %v3448_v61 = vpop.permute.xlu0 %3447 }
 0x50f   : > { %18520 = vmatprep.subr.msk.mxu0 %vm865_vm1, %v3007_v22 }
 0x510   : > { %18511 = vmatmul.mubr.msk.f32.vlgmr.msra.gmra.mxu0 %vm865_vm1, %v2821_v47  ;;  %v3359_v63 = vpop.permute.xlu1 %3358 }
 0x511   : > { %18516 = vmatpush3.xpose.msk.msra.mxu1 %vm865_vm1, %v21664_v13  ;;  %18521 = vmatpush3.xpose.msk.msra.mxu0 %vm865_vm1, %v3007_v22  ;;  %v26468_v22 = vld [vmem:[#allocation26_spill] sm:$0xff] }
 0x512   : > { %18524 = vmatprep.mubr.msk.f32.mxu0 %vm865_vm1, %v3001_v44  ;;  %18522 = vmatprep.subr.msk.mxu0 %vm865_vm1, %v3005_v11 }
 0x513   : > { %18527 = vmatprep.subr.msk.mxu1 %vm865_vm1, %v3098_v56 }
 0x514   : > { %18518 = vmatmul.mubr.msk.f32.vlgmr.msra.gmra.mxu1 %vm865_vm1, %v2912_v40  ;;  %v3446_v36 = vpop.permute.xlu1 %3445  ;;  %v26470_v40 = vld [vmem:[#allocation30_spill] sm:$0xff] }
 0x515   : > { %18523 = vmatpush3.xpose.msk.msra.mxu0 %vm865_vm1, %v3005_v11  ;;  %18528 = vmatpush3.xpose.msk.msra.mxu1 %vm865_vm1, %v3098_v56 }
 0x516   : > { %18531 = vmatprep.mubr.msk.f32.mxu1 %vm865_vm1, %v3092_v33  ;;  %18529 = vmatprep.subr.msk.mxu1 %vm865_vm1, %v3096_v9 }
 0x517   : > { %18534 = vmatprep.subr.mxu0 %v3361_v17 }
 0x518   : > { %18525 = vmatmul.mubr.msk.f32.vlgmr.msra.gmra.mxu0 %vm865_vm1, %v3003_v34  ;;  %v21760_v42 = vpop.permute.xlu1 %3534 }
 0x519   : > { %18530 = vmatpush3.xpose.msk.msra.mxu1 %vm865_vm1, %v3096_v9  ;;  %18535 = vmatpush3.msra.mxu0 %v3361_v17 }
 0x51a   : > { %18536 = vmatprep.subr.mxu0 %v3359_v63  ;;  %18541 = vmatprep.subr.mxu1 %v3448_v61 }
 0x51b   : > { %18537 = vmatpush3.msra.mxu0 %v3359_v63  ;;  %v26472_v63 = vld [vmem:[#allocation33_spill] sm:$0xff] }
 0x51c   : > { %18532 = vmatmul.mubr.msk.f32.vlgmr.msra.gmra.mxu1 %vm865_vm1, %v3094_v62  ;;  %18548 = vmatprep.subr.mxu0 %v21760_v42  ;;  %v21765_v45 = vpop.permute.xlu1 %3621 }
 0x51d   : > { %18542 = vmatpush3.msra.mxu1 %v3448_v61 }
 0x51e   : > { %18543 = vmatprep.subr.mxu1 %v3446_v36 }
 0x51f   : > { %18544 = vmatpush3.msra.mxu1 %v3446_v36  ;;  %v26473_v36 = vld [vmem:[#allocation32_spill] sm:$0xff] }
 0x520   : > { %18555 = vmatprep.subr.mxu1 %v21765_v45 }
 0x5a0   : > { %v21768_v24 = vpop.f32.mrf.mxu0 }
 0x5a2   : > { %v21770_v39 = vpop.f32.mrf.mxu0 }
 0x5a4   : > { %v21774_v37 = vpop.f32.mrf.mxu0 }
 0x5a6   : > { %v21776_v19 = vpop.f32.mrf.mxu0 }
 0x5a8   : > { %v21778_v55 = vpop.f32.mrf.mxu0 }
 0x5aa   : > { %v21780_v5 = vpop.f32.mrf.mxu0 }
 0x5ab   : > { %v21784_v27 = vpop.f32.mrf.mxu1 }
 0x5ad   : > { %v21788_v25 = vpop.f32.mrf.mxu1 }
 0x5af   : > { %v21786_v57 = vpop.f32.mrf.mxu0 }
 0x5b1   : > { %v21790_v59 = vpop.f32.mrf.mxu0 }
 0x5b4   : > { %v21792_v43 = vpop.f32.mrf.mxu1 }
 0x5b6   : > { %v21796_v48 = vpop.f32.mrf.mxu1 }
 0x5b8   : > { %v21794_v58 = vpop.f32.mrf.mxu0 }
 0x5ba   : > { %v21798_v7 = vpop.f32.mrf.mxu0 }
 0x5bc   : > { %v21800_v4 = vpop.f32.mrf.mxu1 }
 0x5be   : > { %v21805_v8 = vpop.f32.mrf.mxu1 }
 0x5c0   : > { %v18484_v53 = vpop.f32.mrf.mxu0 }
 0x5c1   : > { %v21803_v13 = vadd.f32 %v18484_v53, %v26465_v31 }
 0x5c2   : > { %v2536_v60 = vpop.f32.mrf.mxu0 }
 0x5c3   : > { %v21808_v16 = vadd.f32 %v2536_v60, %v26466_v54  ;;  %v3185_v10 = vsel %vm1572_vm2, %v21803_v13, -inf }
 0x5c4   : > { %3186 = vmax.xlane.f32.xlu1 %v3185_v10  ;;  %v18491_v47 = vpop.f32.mrf.mxu1  ;;  %v26474_v10 = vld [vmem:[#allocation34_spill] sm:$0xff] }
 0x5c5   : > { %v21813_v23 = vadd.f32 %v18491_v47, %v26467_v15  ;;  %v3182_v30 = vsel %vm1572_vm2, %v21808_v16, -inf  ;;  %v26475_v15 = vld [vmem:[#allocation35_spill] sm:$0xff] }
 0x5c6   : > { %3183 = vmax.xlane.f32.xlu0 %v3182_v30  ;;  %v2627_v6 = vpop.f32.mrf.mxu1 }
 0x5c7   : > { %v21818_v3 = vadd.f32 %v2627_v6, %v26468_v22  ;;  %v3191_v56 = vsel %vm1572_vm2, %v21813_v23, -inf }
 0x5c8   : > { %v18498_v38 = vpop.f32.mrf.mxu0 }
 0x5c9   : > { %v21821_v0 = vadd.f32 %v18498_v38, %v26469_v18  ;;  %v3188_v11 = vsel %vm1572_vm2, %v21818_v3, -inf }
 0x5ca   : > { %v2718_v21 = vpop.f32.mrf.mxu0  ;;  %3192 = vmax.xlane.f32.xlu0 %v3191_v56  ;;  %v26476_v56 = vld [vmem:[#allocation37_spill] sm:$0xff] }
 0x5cb   : > { %v3197_v35 = vsel %vm1572_vm2, %v21821_v0, -inf  ;;  %v21828_v14 = vadd.f32 %v2718_v21, %v26470_v40 }
 0x5cc   : > { %3198 = vmax.xlane.f32.xlu1 %v3197_v35  ;;  %v18505_v9 = vpop.f32.mrf.mxu1  ;;  %v26477_v35 = vld [vmem:[#allocation36_spill] sm:$0xff] }
 0x5cd   : > { %v21831_v34 = vadd.f32 %v18505_v9, %v26471_v2  ;;  %v3194_v53 = vsel %vm1572_vm2, %v21828_v14, -inf }
 0x5ce   : > { %3189 = vmax.xlane.f32.xlu0 %v3188_v11  ;;  %v2809_v62 = vpop.f32.mrf.mxu1 }
 0x5cf   : > { %v3203_v17 = vsel %vm1572_vm2, %v21831_v34, -inf  ;;  %v21838_v33 = vadd.f32 %v2809_v62, %v26472_v63  ;;  %v26479_v63 = vld [vmem:[#allocation39_spill] sm:$0xff] }
 0x5d0   : > { %3204 = vmax.xlane.f32.xlu1 %v3203_v17  ;;  %v18512_v44 = vpop.f32.mrf.mxu0  ;;  %v26478_v17 = vld [vmem:[#allocation38_spill] sm:$0xff] }
 0x5d1   : > { %v21841_v61 = vadd.f32 %v18512_v44, %v26473_v36  ;;  %v3200_v6 = vsel %vm1572_vm2, %v21838_v33, -inf }
 0x5d2   : > { %3195 = vmax.xlane.f32.xlu0 %v3194_v53  ;;  %v2900_v31 = vpop.f32.mrf.mxu0 }
 0x5d3   : > { %v3209_v60 = vsel %vm1572_vm2, %v21841_v61, -inf  ;;  %v21848_v47 = vadd.f32 %v2900_v31, %v26474_v10 }
 0x5d4   : > { %3210 = vmax.xlane.f32.xlu1 %v3209_v60  ;;  %v18519_v54 = vpop.f32.mrf.mxu1 }
 0x5d5   : > { %v21851_v30 = vadd.f32 %v18519_v54, %v26475_v15  ;;  %v3206_v40 = vsel %vm1572_vm2, %v21848_v47, -inf  ;;  %v26480_v54 = vld [vmem:[#allocation40_spill] sm:$0xff] }
 0x5d6   : > { %3201 = vmax.xlane.f32.xlu0 %v3200_v6  ;;  %v2991_v38 = vpop.f32.mrf.mxu1 }
 0x5d7   : > { %v3215_v22 = vsel %vm1572_vm2, %v21851_v30, -inf  ;;  %v21858_v21 = vadd.f32 %v2991_v38, %v26476_v56  ;;  %v21890_v38 = vpop.permute.xlu0 %3532 }
 0x5d8   : > { %3216 = vmax.xlane.f32.xlu1 %v3215_v22  ;;  %v18526_v18 = vpop.f32.mrf.mxu0  ;;  %v21892_v22 = vpop.permute.xlu1 %3619 }
 0x5d9   : > { %v21861_v9 = vadd.f32 %v18526_v18, %v26477_v35  ;;  %v3212_v53 = vsel %vm1572_vm2, %v21858_v21, -inf }
 0x5da   : > { %3207 = vmax.xlane.f32.xlu0 %v3206_v40  ;;  %v3082_v2 = vpop.f32.mrf.mxu0 }
 0x5db   : > { %v3221_v11 = vsel %vm1572_vm2, %v21861_v9, -inf  ;;  %v21868_v44 = vadd.f32 %v3082_v2, %v26478_v17  ;;  %v21894_v18 = vpop.permute.xlu0 %3708 }
 0x5dc   : > { %3222 = vmax.xlane.f32.xlu1 %v3221_v11  ;;  %v18533_v62 = vpop.f32.mrf.mxu1  ;;  %v21896_v56 = vpop.permute.xlu1 %3795 }
 0x5dd   : > { %v21871_v36 = vadd.f32 %v18533_v62, %v26479_v63  ;;  %v3218_v15 = vsel %vm1572_vm2, %v21868_v44, -inf }
 0x5de   : > { %3213 = vmax.xlane.f32.xlu0 %v3212_v53  ;;  %v3173_v31 = vpop.f32.mrf.mxu1 }
 0x5df   : > { %v3227_v60 = vsel %vm1572_vm2, %v21871_v36, -inf  ;;  %v21878_v10 = vadd.f32 %v3173_v31, %v26480_v54  ;;  %v21898_v35 = vpop.permute.xlu0 %3706 }
 0x5e0   : > { %3228 = vmax.xlane.f32.xlu1 %v3227_v60 }
 0x5e1   : > { %v3224_v6 = vsel %vm1572_vm2, %v21878_v10, -inf }
 0x5e2   : > { %3219 = vmax.xlane.f32.xlu0 %v3218_v15 }
 0x5e6   : > { %3225 = vmax.xlane.f32.xlu0 %v3224_v6 }
 0x5f1   : > { %3793 = vrot.lane.b32.xlu1 %v21164_v52, %s20630_s24 }
 0x5f5   : > { %3969 = vrot.lane.b32.xlu1 %v21172_v29, %s20630_s24 }
 0x5fc   : > { %3882 = vrot.lane.b32.xlu0 %v21158_v1, %s20630_s24 }
 0x64d   : > { %v3187_v40 = vpop.xlane.xlu1 %3186 }
 0x64e   : > { %v3231_v2 = vsub.f32 %v21803_v13, %v3187_v40 }
 0x64f   : > { %v3184_v11 = vpop.xlane.xlu0 %3183 }
 0x650   : > { %v3248_v62 = vmul.f32 1.442695, %v3231_v2  ;;  %v3230_v17 = vsub.f32 %v21808_v16, %v3184_v11 }
 0x652   : > { %19724 = vpow2.f32 %v3248_v62  ;;  %v3246_v63 = vmul.f32 1.442695, %v3230_v17 }
 0x653   : > { %v3193_v53 = vpop.xlane.xlu0 %3192 }
 0x654   : > { %19726 = vpow2.f32 %v3246_v63  ;;  %v3233_v31 = vsub.f32 %v21813_v23, %v3193_v53 }
 0x655   : > { %v3199_v60 = vpop.xlane.xlu1 %3198 }
 0x656   : > { %v3252_v54 = vmul.f32 1.442695, %v3233_v31  ;;  %v3235_v15 = vsub.f32 %v21821_v0, %v3199_v60 }
 0x657   : > { %v3190_v6 = vpop.xlane.xlu0 %3189 }
 0x658   : > { %19728 = vpow2.f32 %v3252_v54  ;;  %v3256_v50 = vmul.f32 1.442695, %v3235_v15  ;;  %v3232_v51 = vsub.f32 %v21818_v3, %v3190_v6 }
 0x659   : > { %v3205_v13 = vpop.xlane.xlu1 %3204 }
 0x65a   : > { %19730 = vpow2.f32 %v3256_v50  ;;  %v3250_v40 = vmul.f32 1.442695, %v3232_v51  ;;  %v3237_v16 = vsub.f32 %v21831_v34, %v3205_v13 }
 0x65b   : > { %v3196_v2 = vpop.xlane.xlu0 %3195 }
 0x65c   : > { %19732 = vpow2.f32 %v3250_v40  ;;  %v3260_v11 = vmul.f32 1.442695, %v3237_v16  ;;  %v3234_v62 = vsub.f32 %v21828_v14, %v3196_v2 }
 0x65d   : > { %v3211_v23 = vpop.xlane.xlu1 %3210 }
 0x65e   : > { %19734 = vpow2.f32 %v3260_v11  ;;  %v3254_v17 = vmul.f32 1.442695, %v3234_v62  ;;  %v3239_v0 = vsub.f32 %v21841_v61, %v3211_v23 }
 0x65f   : > { %v21908_v63 = vpop.eup %19724  ;;  %v3202_v53 = vpop.xlane.xlu0 %3201 }
 0x660   : > { %19736 = vpow2.f32 %v3254_v17  ;;  %v3264_v3 = vmul.f32 1.442695, %v3239_v0  ;;  %v3236_v50 = vsub.f32 %v21838_v33, %v3202_v53  ;;  %v3281_v51 = vsel %vm1572_vm2, %v21908_v63, 0.0 }
 0x661   : > { %v21913_v34 = vpop.eup %19726  ;;  %v3217_v31 = vpop.xlane.xlu1 %3216  ;;  %3282 = vadd.xlane.f32.xlu1 %v3281_v51 }
 0x662   : > { %19738 = vpow2.f32 %v3264_v3  ;;  %v3258_v14 = vmul.f32 1.442695, %v3236_v50  ;;  %v3241_v60 = vsub.f32 %v21851_v30, %v3217_v31  ;;  %v3278_v61 = vsel %vm1572_vm2, %v21913_v34, 0.0 }
 0x663   : > { %3279 = vadd.xlane.f32.xlu0 %v3278_v61  ;;  %v3208_v54 = vpop.xlane.xlu0 %3207 }
 0x664   : > { %19740 = vpow2.f32 %v3258_v14  ;;  %v3268_v15 = vmul.f32 1.442695, %v3241_v60  ;;  %v3238_v33 = vsub.f32 %v21848_v47, %v3208_v54 }
 0x665   : > { %v21919_v6 = vpop.eup %19728  ;;  %v3223_v13 = vpop.xlane.xlu1 %3222 }
 0x666   : > { %19742 = vpow2.f32 %v3268_v15  ;;  %v3262_v40 = vmul.f32 1.442695, %v3238_v33  ;;  %v3243_v16 = vsub.f32 %v21861_v9, %v3223_v13  ;;  %v3287_v2 = vsel %vm1572_vm2, %v21919_v6, 0.0 }
 0x667   : > { %v21924_v30 = vpop.eup %19730  ;;  %3288 = vadd.xlane.f32.xlu1 %v3287_v2  ;;  %v3214_v11 = vpop.xlane.xlu0 %3213 }
 0x668   : > { %19744 = vpow2.f32 %v3262_v40  ;;  %v3272_v62 = vmul.f32 1.442695, %v3243_v16  ;;  %v3240_v23 = vsub.f32 %v21858_v21, %v3214_v11  ;;  %v3293_v0 = vsel %vm1572_vm2, %v21924_v30, 0.0 }
 0x669   : > { %v21927_v17 = vpop.eup %19732  ;;  %v3229_v47 = vpop.xlane.xlu1 %3228 }
 0x66a   : > { %19746 = vpow2.f32 %v3272_v62  ;;  %v3266_v53 = vmul.f32 1.442695, %v3240_v23  ;;  %v3245_v9 = vsub.f32 %v21871_v36, %v3229_v47  ;;  %v3284_v3 = vsel %vm1572_vm2, %v21927_v17, 0.0 }
 0x66b   : > { %v21934_v50 = vpop.eup %19734  ;;  %3294 = vadd.xlane.f32.xlu1 %v3293_v0  ;;  %3285 = vadd.xlane.f32.xlu0 %v3284_v3  ;;  %v3220_v51 = vpop.xlane.xlu0 %3219 }
 0x66c   : > { %19748 = vpow2.f32 %v3266_v53  ;;  %v3242_v21 = vsub.f32 %v21868_v44, %v3220_v51  ;;  %v3276_v14 = vmul.f32 1.442695, %v3245_v9  ;;  %v3299_v61 = vsel %vm1572_vm2, %v21934_v50, 0.0 }
 0x66d   : > { %v21937_v31 = vpop.eup %19736 }
 0x66e   : > { %v3270_v60 = vmul.f32 1.442695, %v3242_v21  ;;  %v3290_v36 = vsel %vm1572_vm2, %v21937_v31, 0.0 }
 0x66f   : > { %v21943_v54 = vpop.eup %19738  ;;  %3300 = vadd.xlane.f32.xlu1 %v3299_v61  ;;  %3291 = vadd.xlane.f32.xlu0 %v3290_v36  ;;  %v3226_v15 = vpop.xlane.xlu0 %3225  ;;  %v26481_v61 = vld [vmem:[#allocation17_spill] sm:$0xff] }
 0x670   : > { %19750 = vpow2.f32 %v3270_v60  ;;  %v3244_v33 = vsub.f32 %v21878_v10, %v3226_v15  ;;  %v3305_v40 = vsel %vm1572_vm2, %v21943_v54, 0.0  ;;  %v26482_v36 = vld [vmem:[#allocation21_spill] sm:$0xff]  ;;  %v26483_v15 = vld [vmem:[#allocation24_spill] sm:$0xff] }
 0x671   : > { %v21946_v13 = vpop.eup %19740  ;;  %19752 = vpow2.f32 %v3276_v14 }
 0x672   : > { %v3274_v44 = vmul.f32 1.442695, %v3244_v33  ;;  %v3296_v16 = vsel %vm1572_vm2, %v21946_v13, 0.0  ;;  %v26484_v33 = vld [vmem:[#allocation19_spill] sm:$0xff] }
 0x673   : > { %v21952_v2 = vpop.eup %19742  ;;  %3306 = vadd.xlane.f32.xlu1 %v3305_v40  ;;  %3297 = vadd.xlane.f32.xlu0 %v3296_v16  ;;  %v22056_v40 = vpop.permute.xlu1 %3793 }
 0x674   : > { %19754 = vpow2.f32 %v3274_v44  ;;  %v3311_v10 = vsel %vm1572_vm2, %v21952_v2, 0.0  ;;  %v26485_v44 = vld [vmem:[#allocation23_spill] sm:$0xff] }
 0x675   : > { %v21954_v11 = vpop.eup %19744 }
 0x676   : > { %v3302_v62 = vsel %vm1572_vm2, %v21954_v11, 0.0 }
 0x677   : > { %v21960_v23 = vpop.eup %19746  ;;  %3312 = vadd.xlane.f32.xlu1 %v3311_v10  ;;  %3303 = vadd.xlane.f32.xlu0 %v3302_v62  ;;  %v22066_v16 = vpop.permute.xlu1 %3969 }
 0x678   : > { %v3317_v0 = vsel %vm1572_vm2, %v21960_v23, 0.0  ;;  %v22068_v10 = vpop.permute.xlu0 %3882 }
 0x679   : > { %v21962_v47 = vpop.eup %19748 }
 0x67a   : > { %v3308_v53 = vsel %vm1572_vm2, %v21962_v47, 0.0 }
 0x67b   : > { %3318 = vadd.xlane.f32.xlu1 %v3317_v0  ;;  %3309 = vadd.xlane.f32.xlu0 %v3308_v53 }
 0x67d   : > { %v21968_v9 = vpop.eup %19750 }
 0x67e   : > { %v3314_v3 = vsel %vm1572_vm2, %v21968_v9, 0.0  ;;  %v21972_v51 = vpop.eup %19752 }
 0x67f   : > { %3315 = vadd.xlane.f32.xlu0 %v3314_v3  ;;  %v3323_v21 = vsel %vm1572_vm2, %v21972_v51, 0.0 }
 0x681   : > { %v21976_v14 = vpop.eup %19754 }
 0x682   : > { %v3320_v60 = vsel %vm1572_vm2, %v21976_v14, 0.0 }
 0x683   : > { %3324 = vadd.xlane.f32.xlu0 %v3323_v21 }
 0x687   : > { %3321 = vadd.xlane.f32.xlu0 %v3320_v60 }
 0x68c   : > { %3967 = vrot.lane.b32.xlu1 %v21178_v12, %s20630_s24 }
 0x690   : > { %4410 = vrot.lane.b32.xlu1 %v21120_v49, %s26368_s28 }
 0x694   : > { %4408 = vrot.lane.b32.xlu1 %v21112_v20, %s26368_s28 }
 0x698   : > { %4315 = vrot.lane.b32.xlu1 %v21126_v26, %s26366_s11 }
 0x69c   : > { %4501 = vrot.lane.b32.xlu1 %v21130_v32, %s26368_s28 }
 0x69d   : > { %3880 = vrot.lane.b32.xlu0 %v21166_v28, %s20630_s24 }
 0x6a0   : > { %4592 = vrot.lane.b32.xlu1 %v21140_v41, %s26368_s28 }
 0x6a1   : > { %4319 = vrot.lane.b32.xlu0 %v21126_v26, %s26368_s28 }
 0x6a4   : > { %4590 = vrot.lane.b32.xlu1 %v21148_v46, %s26368_s28 }
 0x6a5   : > { %4317 = vrot.lane.b32.xlu0 %v26481_v61, %s26368_s28 }
 0x6a8   : > { %4497 = vrot.lane.b32.xlu1 %v21130_v32, %s26366_s11 }
 0x6a9   : > { %4313 = vrot.lane.b32.xlu0 %v26481_v61, %s26366_s11 }
 0x6ac   : > { %4683 = vrot.lane.b32.xlu1 %v26482_v36, %s26368_s28 }
 0x6ad   : > { %4404 = vrot.lane.b32.xlu0 %v21112_v20, %s26366_s11 }
 0x6b0   : > { %4774 = vrot.lane.b32.xlu1 %v26483_v15, %s26368_s28 }
 0x6b1   : > { %4406 = vrot.lane.b32.xlu0 %v21120_v49, %s26366_s11 }
 0x6b4   : > { %4772 = vrot.lane.b32.xlu1 %v21164_v52, %s26368_s28 }
 0x6b5   : > { %4499 = vrot.lane.b32.xlu0 %v26484_v33, %s26368_s28 }
 0x6b8   : > { %4679 = vrot.lane.b32.xlu1 %v26482_v36, %s26366_s11 }
 0x6b9   : > { %4495 = vrot.lane.b32.xlu0 %v26484_v33, %s26366_s11 }
 0x6bc   : > { %4865 = vrot.lane.b32.xlu1 %v21158_v1, %s26368_s28 }
 0x6bd   : > { %4586 = vrot.lane.b32.xlu0 %v21148_v46, %s26366_s11 }
 0x6c0   : > { %4956 = vrot.lane.b32.xlu1 %v21172_v29, %s26368_s28 }
 0x6c1   : > { %4588 = vrot.lane.b32.xlu0 %v21140_v41, %s26366_s11 }
 0x6c4   : > { %4954 = vrot.lane.b32.xlu1 %v21178_v12, %s26368_s28 }
 0x6c5   : > { %4681 = vrot.lane.b32.xlu0 %v26485_v44, %s26368_s28 }
 0x6c8   : > { %4861 = vrot.lane.b32.xlu1 %v21158_v1, %s26366_s11 }
 0x6c9   : > { %4677 = vrot.lane.b32.xlu0 %v26485_v44, %s26366_s11 }
 0x6cc   : > { %4952 = vrot.lane.b32.xlu1 %v21172_v29, %s26366_s11 }
 0x6cd   : > { %4768 = vrot.lane.b32.xlu0 %v21164_v52, %s26366_s11 }
 0x6d0   : > { %5219 = vrot.lane.b32.xlu1 %v21126_v26, %s26364_s12 }
 0x6d1   : > { %4770 = vrot.lane.b32.xlu0 %v26483_v15, %s26366_s11 }
 0x6d4   : > { %5217 = vrot.lane.b32.xlu1 %v26481_v61, %s26364_s12 }
 0x6d5   : > { %4863 = vrot.lane.b32.xlu0 %v21166_v28, %s26368_s28  ;;  %s26651_s28 = smov 104  }
 0x6d8   : > { %5304 = vrot.lane.b32.xlu1 %v21112_v20, %s26364_s12 }
 0x6d9   : > { %4859 = vrot.lane.b32.xlu0 %v21166_v28, %s26366_s11 }
 0x6dc   : > { %5393 = vrot.lane.b32.xlu1 %v21130_v32, %s26364_s12 }
 0x6dd   : > { %4950 = vrot.lane.b32.xlu0 %v21178_v12, %s26366_s11 }
 0x6e0   : > { %5480 = vrot.lane.b32.xlu1 %v21140_v41, %s26364_s12 }
 0x6e1   : > { %5306 = vrot.lane.b32.xlu0 %v21120_v49, %s26364_s12 }
 0x6e4   : > { %5478 = vrot.lane.b32.xlu1 %v21148_v46, %s26364_s12 }
 0x6e5   : > { %5391 = vrot.lane.b32.xlu0 %v26484_v33, %s26364_s12 }
 0x6e8   : > { %5654 = vrot.lane.b32.xlu1 %v26483_v15, %s26364_s12 }
 0x6e9   : > { %5567 = vrot.lane.b32.xlu0 %v26482_v36, %s26364_s12 }
 0x6ea   : > { %v3283_v62 = vpop.xlane.xlu1 %3282 }
 0x6eb   : > { %19756 = vrcp.f32 %v3283_v62 }
 0x6ec   : > { %v3280_v0 = vpop.xlane.xlu0 %3279 }
 0x6ed   : > { %19758 = vrcp.f32 %v3280_v0 }
 0x6f0   : > { %v3289_v53 = vpop.xlane.xlu1 %3288 }
 0x6f1   : > { %19760 = vrcp.f32 %v3289_v53 }
 0x6f4   : > { %v3295_v3 = vpop.xlane.xlu1 %3294  ;;  %v3286_v21 = vpop.xlane.xlu0 %3285 }
 0x6f5   : > { %19762 = vrcp.f32 %v3286_v21 }
 0x6f6   : > { %19764 = vrcp.f32 %v3295_v3 }
 0x6f8   : > { %v3301_v60 = vpop.xlane.xlu1 %3300  ;;  %v3292_v46 = vpop.xlane.xlu0 %3291 }
 0x6f9   : > { %v19757_v41 = vpop.eup %19756  ;;  %19766 = vrcp.f32 %v3292_v46 }
 0x6fa   : > { %v19759_v33 = vpop.eup %19758  ;;  %v3343_v36 = vmul.f32 %v19757_v41, %v21908_v63  ;;  %19768 = vrcp.f32 %v3301_v60 }
 0x6fb   : > { %v3342_v15 = vmul.f32 %v19759_v33, %v21913_v34 }
 0x6fc   : > { %v3307_v32 = vpop.xlane.xlu1 %3306  ;;  %v3298_v20 = vpop.xlane.xlu0 %3297 }
 0x6fd   : > { %18538 = vmatprep.mubr.msk.f32.mxu0 %vm1572_vm2, %v3342_v15  ;;  %19770 = vrcp.f32 %v3298_v20 }
 0x6fe   : > { %18539 = vmatmul.mubr.msk.f32.vlgmr.msra.gmra.mxu0 %vm1572_vm2, %v3343_v36  ;;  %19772 = vrcp.f32 %v3307_v32  ;;  %v19761_v46 = vpop.eup %19760 }
 0x6ff   : > { %18549 = vmatpush3.msra.mxu0 %v21760_v42  ;;  %v3345_v36 = vmul.f32 %v19761_v46, %v21919_v6 }
 0x700   : > { %18550 = vmatprep.subr.mxu0 %v21890_v38  ;;  %v3313_v62 = vpop.xlane.xlu1 %3312  ;;  %v3304_v0 = vpop.xlane.xlu0 %3303 }
 0x701   : > { %18551 = vmatpush3.msra.mxu0 %v21890_v38  ;;  %19774 = vrcp.f32 %v3304_v0 }
 0x702   : > { %18562 = vmatprep.subr.mxu0 %v21894_v18  ;;  %v19763_v41 = vpop.eup %19762  ;;  %19776 = vrcp.f32 %v3313_v62 }
 0x703   : > { %v3344_v20 = vmul.f32 %v19763_v41, %v21927_v17  ;;  %v19765_v42 = vpop.eup %19764 }
 0x704   : > { %v3319_v63 = vpop.xlane.xlu1 %3318  ;;  %v3310_v34 = vpop.xlane.xlu0 %3309  ;;  %v3347_v17 = vmul.f32 %v19765_v42, %v21924_v30 }
 0x705   : > { %19778 = vrcp.f32 %v3310_v34  ;;  %18545 = vmatprep.mubr.msk.f32.mxu1 %vm1572_vm2, %v3344_v20  ;;  %v2453_v20 = vld [vmem:[%s26296_s5] sm:$0xf] }
 0x706   : > { %v19767_v15 = vpop.eup %19766  ;;  %18546 = vmatmul.mubr.msk.f32.vlgmr.msra.gmra.mxu1 %vm1572_vm2, %v3345_v36  ;;  %19780 = vrcp.f32 %v3319_v63 }
 0x707   : > { %18556 = vmatpush3.msra.mxu1 %v21765_v45  ;;  %v3346_v33 = vmul.f32 %v19767_v15, %v21937_v31  ;;  %v19769_v6 = vpop.eup %19768 }
 0x708   : > { %v3968_v32 = vpop.permute.xlu1 %3967  ;;  %v3316_v38 = vpop.xlane.xlu0 %3315  ;;  %18557 = vmatprep.subr.mxu1 %v21892_v22  ;;  %v3349_v30 = vmul.f32 %v19769_v6, %v21934_v50 }
 0x709   : > { %19782 = vrcp.f32 %v3316_v38  ;;  %18558 = vmatpush3.msra.mxu1 %v21892_v22  ;;  %18552 = vmatprep.mubr.msk.f32.mxu0 %vm1572_vm2, %v3346_v33  ;;  %v4214_v33 = vsel %vm4088_vm3, %v2453_v20, 0 }
 0x70a   : > { %v19771_v53 = vpop.eup %19770  ;;  %18569 = vmatprep.subr.mxu1 %v21896_v56  ;;  %18553 = vmatmul.mubr.msk.f32.vlgmr.msra.gmra.mxu0 %vm1572_vm2, %v3347_v17  ;;  %v26486_v17 = vpack.c.bf16 %v21768_v24, %v21770_v39 }
 0x70b   : > { %18563 = vmatpush3.msra.mxu0 %v21894_v18  ;;  %v3348_v3 = vmul.f32 %v19771_v53, %v21946_v13  ;;  %v19773_v21 = vpop.eup %19772  ;;  %v26487_v53 = vpack.c.bf16 %v21778_v55, %v21780_v5  ;;  %v2449_v55 = vpack.c.bf16 %v21786_v57, %v21790_v59 }
 0x70c   : > { %v22095_v45 = vpop.permute.xlu1 %4410  ;;  %v3325_v31 = vpop.xlane.xlu0 %3324  ;;  %18564 = vmatprep.subr.mxu0 %v21898_v35 }
 0x70d   : > { %18565 = vmatpush3.msra.mxu0 %v21898_v35  ;;  %18559 = vmatprep.mubr.msk.f32.mxu1 %vm1572_vm2, %v3348_v3  ;;  %19784 = vrcp.f32 %v3325_v31  ;;  %v3351_v35 = vmul.f32 %v19773_v21, %v21943_v54  ;;  %v17209_v54 = vld [vmem:[%s26296_s5 + $0x4] sm:$0xf]  ;;  %v2450_v3 = vpack.c.bf16 %v21792_v43, %v21796_v48  ;;  %v2452_v21 = vpack.c.bf16 %v21800_v4, %v21805_v8 }
 0x70e   : > { %v19775_v22 = vpop.eup %19774  ;;  %18576 = vmatprep.subr.mxu0 %v22068_v10  ;;  %18560 = vmatmul.mubr.msk.f32.vlgmr.msra.gmra.mxu1 %vm1572_vm2, %v3349_v30 }
 0x70f   : > { %18570 = vmatpush3.msra.mxu1 %v21896_v56  ;;  %v3350_v60 = vmul.f32 %v19775_v22, %v21954_v11  ;;  %v19777_v50 = vpop.eup %19776 }
 0x710   : > { %v22105_v18 = vpop.permute.xlu1 %4408  ;;  %v3322_v13 = vpop.xlane.xlu0 %3321  ;;  %18571 = vmatprep.subr.mxu1 %v22056_v40  ;;  %v3353_v46 = vmul.f32 %v19777_v50, %v21952_v2  ;;  %v4090_v2 = vsel %vm4088_vm3, %v17209_v54, 0 }
 0x711   : > { %19786 = vrcp.f32 %v3322_v13  ;;  %18572 = vmatpush3.msra.mxu1 %v22056_v40  ;;  %18566 = vmatprep.mubr.msk.f32.mxu0 %vm1572_vm2, %v3350_v60 }
 0x712   : > { %v19779_v62 = vpop.eup %19778  ;;  %18583 = vmatprep.subr.mxu1 %v22066_v16  ;;  %18567 = vmatmul.mubr.msk.f32.vlgmr.msra.gmra.mxu0 %vm1572_vm2, %v3351_v35 }
 0x713   : > { %18577 = vmatpush3.msra.mxu0 %v22068_v10  ;;  %v3352_v0 = vmul.f32 %v19779_v62, %v21962_v47  ;;  %v19781_v40 = vpop.eup %19780 }
 0x714   : > { %v22115_v56 = vpop.permute.xlu1 %4315  ;;  %v3881_v11 = vpop.permute.xlu0 %3880  ;;  %v3355_v34 = vmul.f32 %v19781_v40, %v21960_v23 }
 0x715   : > { %18578 = vmatprep.subr.mxu0 %v3881_v11  ;;  %18573 = vmatprep.mubr.msk.f32.mxu1 %vm1572_vm2, %v3352_v0 }
 0x716   : > { %v19783_v41 = vpop.eup %19782  ;;  %18579 = vmatpush3.msra.mxu0 %v3881_v11  ;;  %18574 = vmatmul.mubr.msk.f32.vlgmr.msra.gmra.mxu1 %vm1572_vm2, %v3353_v46 }
 0x717   : > { %v3354_v10 = vmul.f32 %v19783_v41, %v21968_v9  ;;  %19530 = vmatprep.subr.msk.bf16.mxu0 %vm4088_vm3, %v17209_v54  ;;  %18584 = vmatpush3.msra.mxu1 %v22066_v16 }
 0x718   : > { %v22127_v47 = vpop.permute.xlu1 %4501  ;;  %v22129_v63 = vpop.permute.xlu0 %4319  ;;  %18585 = vmatprep.subr.mxu1 %v3968_v32 }
 0x719   : > { %18580 = vmatprep.mubr.msk.f32.mxu0 %vm1572_vm2, %v3354_v10  ;;  %18586 = vmatpush3.msra.mxu1 %v3968_v32 }
 0x71a   : > { %18581 = vmatmul.mubr.msk.f32.vlgmr.msra.gmra.mxu0 %vm1572_vm2, %v3355_v34  ;;  %19531 = vmatprep.subr.msk.bf16.mxu1 %vm4088_vm3, %v2453_v20  ;;  %v19785_v16 = vpop.eup %19784 }
 0x71b   : > { %18591 = vmatpush3.bf16.msra.mxu0 %v4090_v2  ;;  %v3357_v32 = vmul.f32 %v19785_v16, %v21972_v51 }
 0x71c   : > { %18626 = vmatprep.subr.msk.mxu0 %vm865_vm1, %v22129_v63  ;;  %v4593_v9 = vpop.permute.xlu1 %4592  ;;  %v22141_v23 = vpop.permute.xlu0 %4317 }
 0x71e   : > { %v19787_v36 = vpop.eup %19786 }
 0x71f   : > { %v3356_v42 = vmul.f32 %v19787_v36, %v21976_v14  ;;  %v2446_v14 = vpack.c.bf16 %v21774_v37, %v21776_v19  ;;  %v2448_v37 = vpack.c.bf16 %v21784_v27, %v21788_v25  ;;  %v2451_v25 = vpack.c.bf16 %v21794_v58, %v21798_v7 }
 0x720   : > { %v4591_v15 = vpop.permute.xlu1 %4590  ;;  %v22144_v38 = vpop.permute.xlu0 %4313 }
 0x721   : > { %18587 = vmatprep.mubr.msk.f32.mxu1 %vm1572_vm2, %v3356_v42 }
 0x722   : > { %18588 = vmatmul.mubr.msk.f32.vlgmr.msra.gmra.mxu1 %vm1572_vm2, %v3357_v32 }
 0x723   : > { %18609 = vmatpush3.bf16.msra.mxu1 %v4214_v33  ;;  %18610 = vmatprep.mubr.msk.bf16.mxu1 %vm865_vm1, %v26486_v17 }
 0x724   : > { %18633 = vmatprep.subr.msk.mxu1 %vm865_vm1, %v22095_v45  ;;  %v22158_v6 = vpop.permute.xlu1 %4497  ;;  %v4405_v51 = vpop.permute.xlu0 %4404 }
 0x726   : > { %18611 = vmatmul.mubr.msk.bf16.vlgmr.msra.gmra.mxu1 %vm865_vm1, %v2446_v14 }
 0x727   : > { %18634 = vmatpush3.xpose.msk.msra.mxu1 %vm865_vm1, %v22095_v45  ;;  %18614 = vmatprep.mubr.msk.bf16.mxu1 %vm865_vm1, %v26487_v53 }
 0x728   : > { %18635 = vmatprep.subr.msk.mxu1 %vm865_vm1, %v22105_v18  ;;  %v22169_v24 = vpop.permute.xlu1 %4683  ;;  %v4407_v39 = vpop.permute.xlu0 %4406 }
 0x72b   : > { %18636 = vmatpush3.xpose.msk.msra.mxu1 %vm865_vm1, %v22105_v18 }
 0x72c   : > { %18647 = vmatprep.subr.msk.mxu1 %vm865_vm1, %v4593_v9  ;;  %v4775_v19 = vpop.permute.xlu1 %4774  ;;  %v22176_v45 = vpop.permute.xlu0 %4499 }
 0x72e   : > { %18615 = vmatmul.mubr.msk.bf16.gmra.mxu1 %vm865_vm1, %v2448_v37 }
 0x72f   : > { %18618 = vmatprep.mubr.msk.bf16.mxu1 %vm865_vm1, %v2449_v55 }
 0x730   : > { %v4773_v5 = vpop.permute.xlu1 %4772  ;;  %v22182_v31 = vpop.permute.xlu0 %4495 }
 0x734   : > { %v22186_v30 = vpop.permute.xlu1 %4679  ;;  %v4587_v27 = vpop.permute.xlu0 %4586 }
 0x736   : > { %18619 = vmatmul.mubr.msk.bf16.gmra.mxu1 %vm865_vm1, %v2450_v3 }
 0x737   : > { %18622 = vmatprep.mubr.msk.bf16.mxu1 %vm865_vm1, %v2451_v25 }
 0x738   : > { %v22192_v57 = vpop.permute.xlu1 %4865  ;;  %v4589_v59 = vpop.permute.xlu0 %4588 }
 0x73c   : > { %v4957_v22 = vpop.permute.xlu1 %4956  ;;  %v22196_v18 = vpop.permute.xlu0 %4681 }
 0x73e   : > { %18623 = vmatmul.mubr.msk.bf16.gmra.mxu1 %vm865_vm1, %v2452_v21 }
 0x73f   : > { %18637 = vmatprep.mubr.msk.f32.mxu1 %vm865_vm1, %v4405_v51 }
 0x740   : > { %v4955_v43 = vpop.permute.xlu1 %4954  ;;  %v22200_v48 = vpop.permute.xlu0 %4677 }
 0x744   : > { %v22202_v58 = vpop.permute.xlu1 %4861  ;;  %v4769_v7 = vpop.permute.xlu0 %4768 }
 0x746   : > { %18638 = vmatmul.mubr.msk.f32.vlgmr.msra.gmra.mxu1 %vm865_vm1, %v4407_v39 }
 0x747   : > { %18648 = vmatpush3.xpose.msk.msra.mxu1 %vm865_vm1, %v4593_v9  ;;  %18651 = vmatprep.mubr.msk.f32.mxu1 %vm865_vm1, %v4587_v27 }
 0x748   : > { %18649 = vmatprep.subr.msk.mxu1 %vm865_vm1, %v4591_v15  ;;  %v4953_v4 = vpop.permute.xlu1 %4952  ;;  %v4771_v8 = vpop.permute.xlu0 %4770 }
 0x74b   : > { %18650 = vmatpush3.xpose.msk.msra.mxu1 %vm865_vm1, %v4591_v15 }
 0x74c   : > { %18661 = vmatprep.subr.msk.mxu1 %vm865_vm1, %v4775_v19  ;;  %v22210_v13 = vpop.permute.xlu1 %5219  ;;  %v22212_v60 = vpop.permute.xlu0 %4863 }
 0x74e   : > { %18652 = vmatmul.mubr.msk.f32.vlgmr.msra.gmra.mxu1 %vm865_vm1, %v4589_v59 }
 0x74f   : > { %18662 = vmatpush3.xpose.msk.msra.mxu1 %vm865_vm1, %v4775_v19  ;;  %18665 = vmatprep.mubr.msk.f32.mxu1 %vm865_vm1, %v4769_v7 }
 0x750   : > { %18663 = vmatprep.subr.msk.mxu1 %vm865_vm1, %v4773_v5  ;;  %v22218_v35 = vpop.permute.xlu1 %5217  ;;  %v22220_v50 = vpop.permute.xlu0 %4859 }
 0x753   : > { %18664 = vmatpush3.xpose.msk.msra.mxu1 %vm865_vm1, %v4773_v5 }
 0x754   : > { %18675 = vmatprep.subr.msk.mxu1 %vm865_vm1, %v4957_v22  ;;  %v4951_v62 = vpop.permute.xlu0 %4950  ;;  %v5305_v11 = vpop.permute.xlu1 %5304 }
 0x756   : > { %18666 = vmatmul.mubr.msk.f32.vlgmr.msra.gmra.mxu1 %vm865_vm1, %v4771_v8  ;;  %v22328_v8 = vld [vmem:[%s20866_s29 + $0x10] sm:$0xff] }
 0x757   : > { %18676 = vmatpush3.xpose.msk.msra.mxu1 %vm865_vm1, %v4957_v22  ;;  %18679 = vmatprep.mubr.msk.f32.mxu1 %vm865_vm1, %v4951_v62 }
 0x758   : > { %18677 = vmatprep.subr.msk.mxu1 %vm865_vm1, %v4955_v43  ;;  %v22228_v0 = vpop.permute.xlu1 %5393  ;;  %v5307_v54 = vpop.permute.xlu0 %5306 }
 0x75b   : > { %18678 = vmatpush3.xpose.msk.msra.mxu1 %vm865_vm1, %v4955_v43 }
 0x75c   : > { %18689 = vmatprep.subr.mxu1 %v5307_v54  ;;  %v22232_v40 = vpop.permute.xlu1 %5480 }
 0x75e   : > { %18680 = vmatmul.mubr.msk.f32.vlgmr.msra.gmra.mxu1 %vm865_vm1, %v4953_v4 }
 0x75f   : > { %18690 = vmatpush3.msra.mxu1 %v5307_v54 }
 0x760   : > { %18691 = vmatprep.subr.mxu1 %v5305_v11 }
 0x761   : > { %18692 = vmatpush3.msra.mxu1 %v5305_v11 }
 0x762   : > { %18703 = vmatprep.subr.mxu1 %v22232_v40 }
 0x7be   : > { %v18540_v46 = vpop.f32.mrf.mxu0 }
 0x7c0   : > { %v3436_v41 = vpop.f32.mrf.mxu0 }
 0x7c1   : > { %v4054_v10 = vpack.c.bf16 %v18540_v46, %v3436_v41  ;;  %v22341_v46 = vld [vmem:[%s20866_s29 + $0x30] sm:$0xff] }
 0x7c3   : > { %18592 = vmatprep.mubr.msk.bf16.mxu0 %vm865_vm1, %v4054_v10 }
 0x7c6   : > { %v18547_v34 = vpop.f32.mrf.mxu1 }
 0x7c8   : > { %v3523_v2 = vpop.f32.mrf.mxu1 }
 0x7c9   : > { %v4055_v20 = vpack.c.bf16 %v18547_v34, %v3523_v2  ;;  %v22347_v2 = vld [vmem:[%s20866_s29 + $0x58] sm:$0xff] }
 0x7ca   : > { %v18554_v9 = vpop.f32.mrf.mxu0 }
 0x7cb   : > { %18593 = vmatmul.mubr.msk.bf16.vlgmr.msra.gmra.mxu0 %vm865_vm1, %v4055_v20 }
 0x7cc   : > { %18627 = vmatpush3.xpose.msk.msra.mxu0 %vm865_vm1, %v22129_v63  ;;  %v3610_v16 = vpop.f32.mrf.mxu0 }
 0x7cd   : > { %v4056_v36 = vpack.c.bf16 %v18554_v9, %v3610_v16  ;;  %18628 = vmatprep.subr.msk.mxu0 %vm865_vm1, %v22141_v23  ;;  %v22351_v16 = vld [vmem:[%s20866_s29 + $0x50] sm:$0xff] }
 0x7ce   : > { %v18561_v42 = vpop.f32.mrf.mxu1 }
 0x7cf   : > { %18596 = vmatprep.mubr.msk.bf16.mxu0 %vm865_vm1, %v4056_v36 }
 0x7d0   : > { %18629 = vmatpush3.xpose.msk.msra.mxu0 %vm865_vm1, %v22141_v23  ;;  %v3697_v15 = vpop.f32.mrf.mxu1 }
 0x7d1   : > { %v4057_v32 = vpack.c.bf16 %v18561_v42, %v3697_v15  ;;  %18640 = vmatprep.subr.msk.mxu0 %vm865_vm1, %v22127_v47 }
 0x7d2   : > { %v18568_v33 = vpop.f32.mrf.mxu0 }
 0x7d3   : > { %18597 = vmatmul.mubr.msk.bf16.gmra.mxu0 %vm865_vm1, %v4057_v32 }
 0x7d4   : > { %v3784_v63 = vpop.f32.mrf.mxu0 }
 0x7d5   : > { %v4058_v17 = vpack.c.bf16 %v18568_v33, %v3784_v63  ;;  %v22357_v33 = vld [vmem:[%s20866_s29 + $0x78] sm:$0xff] }
 0x7d6   : > { %v18575_v14 = vpop.f32.mrf.mxu1 }
 0x7d7   : > { %18600 = vmatprep.mubr.msk.bf16.mxu0 %vm865_vm1, %v4058_v17 }
 0x7d8   : > { %v3871_v51 = vpop.f32.mrf.mxu1 }
 0x7d9   : > { %v4059_v53 = vpack.c.bf16 %v18575_v14, %v3871_v51  ;;  %v22361_v14 = vld [vmem:[%s20866_s29 + $0x70] sm:$0xff] }
 0x7da   : > { %v18582_v39 = vpop.f32.mrf.mxu0 }
 0x7db   : > { %18601 = vmatmul.mubr.msk.bf16.gmra.mxu0 %vm865_vm1, %v4059_v53 }
 0x7dc   : > { %v3958_v37 = vpop.f32.mrf.mxu0 }
 0x7dd   : > { %v4060_v23 = vpack.c.bf16 %v18582_v39, %v3958_v37  ;;  %v22369_v37 = vpop.permute.xlu0 %5391 }
 0x7df   : > { %18604 = vmatprep.mubr.msk.bf16.mxu0 %vm865_vm1, %v4060_v23 }
 0x7e2   : > { %v18589_v19 = vpop.f32.mrf.mxu1 }
 0x7e4   : > { %v4045_v55 = vpop.f32.mrf.mxu1 }
 0x7e5   : > { %v4061_v5 = vpack.c.bf16 %v18589_v19, %v4045_v55  ;;  %v22375_v55 = vpop.permute.xlu0 %5567 }
 0x7e6   : > { %v22250_v3 = vpop.f32.mrf.mxu1 }
 0x7e7   : > { %18605 = vmatmul.mubr.msk.bf16.gmra.mxu0 %vm865_vm1, %v4061_v5 }
 0x7e8   : > { %v22253_v27 = vpop.f32.mrf.mxu1  ;;  %18630 = vmatprep.mubr.msk.f32.mxu0 %vm865_vm1, %v22144_v38 }
 0x7e9   : > { %26488 = vst [vmem:[#allocation43_spill] sm:$0xff] %v22253_v27 }
 0x7ea   : > { %v22257_v25 = vpop.f32.mrf.mxu1 }
 0x7ec   : > { %v22259_v59 = vpop.f32.mrf.mxu1 }
 0x7ed   : > { %26489 = vst [vmem:[#allocation41_spill] sm:$0xff] %v22259_v59 }
 0x7ee   : > { %v22261_v21 = vpop.f32.mrf.mxu1 }
 0x7ef   : > { %18631 = vmatmul.mubr.msk.f32.vlgmr.msra.gmra.mxu0 %vm865_vm1, %v22115_v56 }
 0x7f0   : > { %18641 = vmatpush3.xpose.msk.msra.mxu0 %vm865_vm1, %v22127_v47  ;;  %v22267_v22 = vpop.f32.mrf.mxu1  ;;  %18644 = vmatprep.mubr.msk.f32.mxu0 %vm865_vm1, %v22182_v31 }
 0x7f1   : > { %26490 = vst [vmem:[#allocation44_spill] sm:$0xff] %v22267_v22  ;;  %18642 = vmatprep.subr.msk.mxu0 %vm865_vm1, %v22176_v45  ;;  %v22457_v22 = vld [vmem:[%s20866_s29 + $0x20] sm:$0xff] }
 0x7f2   : > { %v22273_v38 = vpop.f32.mrf.mxu1 }
 0x7f3   : > { %26491 = vst [vmem:[#allocation42_spill] sm:$0xff] %v22273_v38 }
 0x7f4   : > { %18643 = vmatpush3.xpose.msk.msra.mxu0 %vm865_vm1, %v22176_v45  ;;  %v22277_v43 = vpop.f32.mrf.mxu1 }
 0x7f5   : > { %26492 = vst [vmem:[#allocation27_spill] sm:$0xff] %v22277_v43  ;;  %18654 = vmatprep.subr.msk.mxu0 %vm865_vm1, %v22169_v24 }
 0x7f6   : > { %v22281_v56 = vpop.f32.mrf.mxu1 }
 0x7f7   : > { %26493 = vst [vmem:[#allocation28_spill] sm:$0xff] %v22281_v56  ;;  %18645 = vmatmul.mubr.msk.f32.vlgmr.msra.gmra.mxu0 %vm865_vm1, %v22158_v6 }
 0x7f8   : > { %18655 = vmatpush3.xpose.msk.msra.mxu0 %vm865_vm1, %v22169_v24  ;;  %18658 = vmatprep.mubr.msk.f32.mxu0 %vm865_vm1, %v22200_v48  ;;  %v22289_v47 = vpop.f32.mrf.mxu1 }
 0x7f9   : > { %26494 = vst [vmem:[#allocation25_spill] sm:$0xff] %v22289_v47  ;;  %18656 = vmatprep.subr.msk.mxu0 %vm865_vm1, %v22196_v18 }
 0x7fa   : > { %v22293_v45 = vpop.f32.mrf.mxu1 }
 0x7fb   : > { %26495 = vst [vmem:[#allocation26_spill] sm:$0xff] %v22293_v45 }
 0x7fc   : > { %18657 = vmatpush3.xpose.msk.msra.mxu0 %vm865_vm1, %v22196_v18  ;;  %v22297_v31 = vpop.f32.mrf.mxu1 }
 0x7fd   : > { %26496 = vst [vmem:[#allocation29_spill] sm:$0xff] %v22297_v31  ;;  %18668 = vmatprep.subr.msk.mxu0 %vm865_vm1, %v22192_v57 }
 0x7fe   : > { %v22301_v6 = vpop.f32.mrf.mxu1 }
 0x7ff   : > { %26497 = vst [vmem:[#allocation30_spill] sm:$0xff] %v22301_v6  ;;  %18659 = vmatmul.mubr.msk.f32.vlgmr.msra.gmra.mxu0 %vm865_vm1, %v22186_v30 }
 0x800   : > { %18669 = vmatpush3.xpose.msk.msra.mxu0 %vm865_vm1, %v22192_v57  ;;  %18672 = vmatprep.mubr.msk.f32.mxu0 %vm865_vm1, %v22220_v50  ;;  %v22309_v24 = vpop.f32.mrf.mxu1  ;;  %v22321_v57 = vld [vmem:[%s20866_s29 + $0x18] sm:$0xff] }
 0x801   : > { %26498 = vst [vmem:[#allocation31_spill] sm:$0xff] %v22309_v24  ;;  %18670 = vmatprep.subr.msk.mxu0 %vm865_vm1, %v22212_v60 }
 0x802   : > { %v22313_v18 = vpop.f32.mrf.mxu1 }
 0x803   : > { %26499 = vst [vmem:[#allocation33_spill] sm:$0xff] %v22313_v18  ;;  %v22481_v18 = vld [vmem:[%s20866_s29 + $0x40] sm:$0xff] }
 0x804   : > { %18671 = vmatpush3.xpose.msk.msra.mxu0 %vm865_vm1, %v22212_v60  ;;  %v22317_v48 = vpop.f32.mrf.mxu1  ;;  %26514 = vst [vmem:[#allocation49_spill] sm:$0xff] %v22481_v18 }
 0x805   : > { %26500 = vst [vmem:[#allocation32_spill] sm:$0xff] %v22317_v48  ;;  %18682 = vmatprep.subr.mxu0 %v22210_v13 }
 0x806   : > { %v18639_v30 = vpop.f32.mrf.mxu1 }
 0x807   : > { %v4492_v7 = vadd.f32 %v22321_v57, %v18639_v30  ;;  %18673 = vmatmul.mubr.msk.f32.vlgmr.msra.gmra.mxu0 %vm865_vm1, %v22202_v58  ;;  %v22379_v30 = vpop.permute.xlu1 %5478 }
 0x808   : > { %18683 = vmatpush3.msra.mxu0 %v22210_v13  ;;  %v4486_v4 = vpop.f32.mrf.mxu1  ;;  %v22337_v13 = vld [vmem:[%s20866_s29 + $0x38] sm:$0xff] }
 0x809   : > { %v4487_v60 = vadd.f32 %v22328_v8, %v4486_v4  ;;  %18684 = vmatprep.subr.mxu0 %v22218_v35  ;;  %v5050_v50 = vsel %vm1572_vm2, %v4492_v7, -inf }
 0x80a   : > { %18685 = vmatpush3.msra.mxu0 %v22218_v35  ;;  %5051 = vmax.xlane.f32.xlu0 %v5050_v50 }
 0x80b   : > { %18696 = vmatprep.subr.mxu0 %v22228_v0  ;;  %v5047_v58 = vsel %vm1572_vm2, %v4487_v60, -inf }
 0x80e   : > { %v18653_v62 = vpop.f32.mrf.mxu1  ;;  %5048 = vmax.xlane.f32.xlu0 %v5047_v58 }
 0x80f   : > { %v4674_v11 = vadd.f32 %v22337_v13, %v18653_v62 }
 0x810   : > { %v4668_v54 = vpop.f32.mrf.mxu1 }
 0x811   : > { %v4669_v41 = vadd.f32 %v22341_v46, %v4668_v54  ;;  %v5062_v35 = vsel %vm1572_vm2, %v4674_v11, -inf }
 0x812   : > { %5063 = vmax.xlane.f32.xlu1 %v5062_v35 }
 0x813   : > { %v5059_v10 = vsel %vm1572_vm2, %v4669_v41, -inf }
 0x814   : > { %5060 = vmax.xlane.f32.xlu0 %v5059_v10  ;;  %v22387_v10 = vpop.permute.xlu1 %5654 }
 0x816   : > { %v18667_v34 = vpop.f32.mrf.mxu1 }
 0x817   : > { %v4856_v20 = vadd.f32 %v22347_v2, %v18667_v34 }
 0x818   : > { %v4850_v9 = vpop.f32.mrf.mxu1 }
 0x819   : > { %v4851_v36 = vadd.f32 %v22351_v16, %v4850_v9  ;;  %v5074_v42 = vsel %vm1572_vm2, %v4856_v20, -inf }
 0x81a   : > { %5075 = vmax.xlane.f32.xlu1 %v5074_v42 }
 0x81b   : > { %v5071_v15 = vsel %vm1572_vm2, %v4851_v36, -inf }
 0x81c   : > { %5072 = vmax.xlane.f32.xlu0 %v5071_v15 }
 0x81e   : > { %v18681_v32 = vpop.f32.mrf.mxu1 }
 0x81f   : > { %v5038_v63 = vadd.f32 %v22357_v33, %v18681_v32 }
 0x820   : > { %v5032_v17 = vpop.f32.mrf.mxu1 }
 0x821   : > { %v22364_v51 = vadd.f32 %v22361_v14, %v5032_v17  ;;  %v5086_v53 = vsel %vm1572_vm2, %v5038_v63, -inf }
 0x822   : > { %5087 = vmax.xlane.f32.xlu1 %v5086_v53 }
 0x823   : > { %v5083_v39 = vsel %vm1572_vm2, %v22364_v51, -inf }
 0x824   : > { %5084 = vmax.xlane.f32.xlu0 %v5083_v39 }
 0x88b   : > { %v22371_v23 = vpop.f32.mrf.mxu0 }
 0x88d   : > { %v22373_v19 = vpop.f32.mrf.mxu0 }
 0x88e   : > { %26501 = vst [vmem:[#allocation34_spill] sm:$0xff] %v22373_v19 }
 0x88f   : > { %v22377_v5 = vpop.f32.mrf.mxu0 }
 0x891   : > { %v22381_v4 = vpop.f32.mrf.mxu0 }
 0x892   : > { %26502 = vst [vmem:[#allocation35_spill] sm:$0xff] %v22381_v4  ;;  %v22469_v4 = vld [vmem:[%s20866_s29 + $0x48] sm:$0xff] }
 0x893   : > { %v5052_v50 = vpop.xlane.xlu0 %5051  ;;  %v22383_v58 = vpop.f32.mrf.mxu0  ;;  %26513 = vst [vmem:[#allocation48_spill] sm:$0xff] %v22469_v4 }
 0x894   : > { %v5092_v62 = vsub.f32 %v4492_v7, %v5052_v50 }
 0x895   : > { %v22385_v35 = vpop.f32.mrf.mxu0 }
 0x896   : > { %v5111_v54 = vmul.f32 1.442695, %v5092_v62  ;;  %26503 = vst [vmem:[#allocation37_spill] sm:$0xff] %v22385_v35 }
 0x897   : > { %v5049_v34 = vpop.xlane.xlu0 %5048  ;;  %v22389_v9 = vpop.f32.mrf.mxu0 }
 0x898   : > { %19788 = vpow2.f32 %v5111_v54  ;;  %v5091_v42 = vsub.f32 %v4487_v60, %v5049_v34 }
 0x899   : > { %v22391_v32 = vpop.f32.mrf.mxu0 }
 0x89a   : > { %v5109_v15 = vmul.f32 1.442695, %v5091_v42  ;;  %26504 = vst [vmem:[#allocation36_spill] sm:$0xff] %v22391_v32 }
 0x89b   : > { %v5064_v17 = vpop.xlane.xlu1 %5063  ;;  %v22393_v39 = vpop.f32.mrf.mxu0 }
 0x89c   : > { %19790 = vpow2.f32 %v5109_v15  ;;  %v5096_v53 = vsub.f32 %v4674_v11, %v5064_v17  ;;  %26505 = vst [vmem:[#allocation38_spill] sm:$0xff] %v22393_v39 }
 0x89d   : > { %v5061_v48 = vpop.xlane.xlu0 %5060  ;;  %v22395_v62 = vpop.f32.mrf.mxu0 }
 0x89e   : > { %v5119_v7 = vmul.f32 1.442695, %v5096_v53  ;;  %v5095_v50 = vsub.f32 %v4669_v41, %v5061_v48  ;;  %26506 = vst [vmem:[#allocation39_spill] sm:$0xff] %v22395_v62 }
 0x89f   : > { %v22397_v47 = vpop.f32.mrf.mxu0 }
 0x8a0   : > { %19792 = vpow2.f32 %v5119_v7  ;;  %v5117_v31 = vmul.f32 1.442695, %v5095_v50  ;;  %26507 = vst [vmem:[#allocation40_spill] sm:$0xff] %v22397_v47 }
 0x8a1   : > { %v22401_v42 = vpop.f32.mrf.mxu0 }
 0x8a2   : > { %19794 = vpow2.f32 %v5117_v31  ;;  %26508 = vst [vmem:[#allocation17_spill] sm:$0xff] %v22401_v42 }
 0x8a3   : > { %v5076_v54 = vpop.xlane.xlu1 %5075 }
 0x8a4   : > { %v5100_v60 = vsub.f32 %v4856_v20, %v5076_v54 }
 0x8a5   : > { %v22399_v34 = vpop.eup %19788  ;;  %v5073_v15 = vpop.xlane.xlu0 %5072 }
 0x8a6   : > { %v5127_v11 = vmul.f32 1.442695, %v5100_v60  ;;  %v5099_v17 = vsub.f32 %v4851_v36, %v5073_v15  ;;  %v5146_v53 = vsel %vm1572_vm2, %v22399_v34, 0.0 }
 0x8a7   : > { %v22405_v48 = vpop.f32.mrf.mxu0  ;;  %5147 = vadd.xlane.f32.xlu1 %v5146_v53 }
 0x8a8   : > { %26509 = vst [vmem:[#allocation23_spill] sm:$0xff] %v22405_v48  ;;  %19796 = vpow2.f32 %v5127_v11  ;;  %v5125_v41 = vmul.f32 1.442695, %v5099_v17 }
 0x8a9   : > { %v22407_v7 = vpop.eup %19790  ;;  %v22409_v31 = vpop.f32.mrf.mxu0 }
 0x8aa   : > { %26510 = vst [vmem:[#allocation45_spill] sm:$0xff] %v22409_v31  ;;  %19798 = vpow2.f32 %v5125_v41  ;;  %v5143_v20 = vsel %vm1572_vm2, %v22407_v7, 0.0 }
 0x8ab   : > { %v5088_v50 = vpop.xlane.xlu1 %5087  ;;  %v22413_v54 = vpop.f32.mrf.mxu0  ;;  %5144 = vadd.xlane.f32.xlu0 %v5143_v20  ;;  %v22425_v20 = vld [vmem:[%s20866_s29 + $0x8] sm:$0xff] }
 0x8ac   : > { %26511 = vst [vmem:[#allocation46_spill] sm:$0xff] %v22413_v54  ;;  %v5104_v36 = vsub.f32 %v5038_v63, %v5088_v50  ;;  %v22489_v54 = vld [vmem:[%s20866_s29 + $0x68] sm:$0xff] }
 0x8ad   : > { %v22415_v60 = vpop.eup %19792  ;;  %v5085_v15 = vpop.xlane.xlu0 %5084  ;;  %26515 = vst [vmem:[#allocation50_spill] sm:$0xff] %v22489_v54 }
 0x8ae   : > { %v22417_v11 = vpop.f32.mrf.mxu0  ;;  %v5135_v17 = vmul.f32 1.442695, %v5104_v36  ;;  %v5103_v53 = vsub.f32 %v22364_v51, %v5085_v15  ;;  %v5158_v41 = vsel %vm1572_vm2, %v22415_v60, 0.0  ;;  %v22433_v36 = vld [vmem:[%s20866_s29] sm:$0xff] }
 0x8af   : > { %26512 = vst [vmem:[#allocation47_spill] sm:$0xff] %v22417_v11  ;;  %v22422_v42 = vpop.eup %19794  ;;  %5159 = vadd.xlane.f32.xlu1 %v5158_v41  ;;  %v22449_v11 = vld [vmem:[%s20866_s29 + $0x28] sm:$0xff] }
 0x8b0   : > { %v18632_v62 = vpop.f32.mrf.mxu0  ;;  %19800 = vpow2.f32 %v5135_v17  ;;  %v5133_v43 = vmul.f32 1.442695, %v5103_v53  ;;  %v5155_v50 = vsel %vm1572_vm2, %v22422_v42, 0.0 }
 0x8b1   : > { %v22428_v63 = vadd.f32 %v22425_v20, %v18632_v62  ;;  %5156 = vadd.xlane.f32.xlu0 %v5155_v50 }
 0x8b2   : > { %v4395_v51 = vpop.f32.mrf.mxu0  ;;  %19802 = vpow2.f32 %v5133_v43 }
 0x8b3   : > { %v22436_v15 = vadd.f32 %v22433_v36, %v4395_v51  ;;  %v5044_v17 = vsel %vm1572_vm2, %v22428_v63, -inf }
 0x8b4   : > { %5045 = vmax.xlane.f32.xlu1 %v5044_v17 }
 0x8b5   : > { %v5041_v62 = vsel %vm1572_vm2, %v22436_v15, -inf  ;;  %v22442_v53 = vpop.eup %19796 }
 0x8b6   : > { %5042 = vmax.xlane.f32.xlu0 %v5041_v62  ;;  %v5170_v41 = vsel %vm1572_vm2, %v22442_v53, 0.0 }
 0x8b7   : > { %v22446_v50 = vpop.eup %19798  ;;  %v18646_v51 = vpop.f32.mrf.mxu0 }
 0x8b8   : > { %5171 = vadd.xlane.f32.xlu1 %v5170_v41  ;;  %v22452_v32 = vadd.f32 %v22449_v11, %v18646_v51  ;;  %v5167_v43 = vsel %vm1572_vm2, %v22446_v50, 0.0 }
 0x8b9   : > { %v4577_v17 = vpop.f32.mrf.mxu0 }
 0x8ba   : > { %5168 = vadd.xlane.f32.xlu0 %v5167_v43  ;;  %v22460_v62 = vadd.f32 %v22457_v22, %v4577_v17  ;;  %v5056_v35 = vsel %vm1572_vm2, %v22452_v32, -inf }
 0x8bc   : > { %5057 = vmax.xlane.f32.xlu1 %v5056_v35  ;;  %v5053_v41 = vsel %vm1572_vm2, %v22460_v62, -inf }
 0x8bd   : > { %v22466_v51 = vpop.eup %19800 }
 0x8be   : > { %5054 = vmax.xlane.f32.xlu0 %v5053_v41  ;;  %v5182_v17 = vsel %vm1572_vm2, %v22466_v51, 0.0 }
 0x8bf   : > { %v18660_v59 = vpop.f32.mrf.mxu0  ;;  %v22476_v27 = vpop.eup %19802 }
 0x8c0   : > { %v22472_v43 = vadd.f32 %v22469_v4, %v18660_v59  ;;  %v5179_v59 = vsel %vm1572_vm2, %v22476_v27, 0.0 }
 0x8c1   : > { %v4759_v35 = vpop.f32.mrf.mxu0 }
 0x8c2   : > { %5183 = vadd.xlane.f32.xlu0 %v5182_v17  ;;  %v5068_v19 = vsel %vm1572_vm2, %v22472_v43, -inf  ;;  %v22484_v41 = vadd.f32 %v22481_v18, %v4759_v35 }
 0x8c3   : > { %5069 = vmax.xlane.f32.xlu1 %v5068_v19  ;;  %v22497_v19 = vld [vmem:[%s20866_s29 + $0x60] sm:$0xff] }
 0x8c4   : > { %v5065_v17 = vsel %vm1572_vm2, %v22484_v41, -inf  ;;  %26516 = vst [vmem:[#allocation51_spill] sm:$0xff] %v22497_v19 }
 0x8c6   : > { %5180 = vadd.xlane.f32.xlu0 %v5179_v59 }
 0x8c7   : > { %v18674_v4 = vpop.f32.mrf.mxu0 }
 0x8c8   : > { %v22492_v24 = vadd.f32 %v22489_v54, %v18674_v4 }
 0x8c9   : > { %v4941_v31 = vpop.f32.mrf.mxu0 }
 0x8ca   : > { %5066 = vmax.xlane.f32.xlu0 %v5065_v17  ;;  %v22500_v35 = vadd.f32 %v22497_v19, %v4941_v31  ;;  %v5080_v18 = vsel %vm1572_vm2, %v22492_v24, -inf }
 0x8cb   : > { %5081 = vmax.xlane.f32.xlu1 %v5080_v18 }
 0x8cc   : > { %v5077_v59 = vsel %vm1572_vm2, %v22500_v35, -inf }
 0x8ce   : > { %5078 = vmax.xlane.f32.xlu0 %v5077_v59 }
 0x8dc   : > { %5652 = vrot.lane.b32.xlu1 %v21164_v52, %s26364_s12 }
 0x8e4   : > { %5565 = vrot.lane.b32.xlu0 %v26485_v44, %s26364_s12 }
 0x930   : > { %v5148_v4 = vpop.xlane.xlu1 %5147 }
 0x931   : > { %19804 = vrcp.f32 %v5148_v4 }
 0x934   : > { %v5145_v17 = vpop.xlane.xlu0 %5144 }
 0x935   : > { %19806 = vrcp.f32 %v5145_v17 }
 0x938   : > { %v5160_v31 = vpop.xlane.xlu1 %5159 }
 0x939   : > { %19808 = vrcp.f32 %v5160_v31 }
 0x93a   : > { %v5157_v19 = vpop.xlane.xlu0 %5156 }
 0x93b   : > { %19810 = vrcp.f32 %v5157_v19 }
 0x93d   : > { %v5046_v54 = vpop.xlane.xlu1 %5045 }
 0x93e   : > { %v5090_v18 = vsub.f32 %v22428_v63, %v5046_v54  ;;  %v19805_v47 = vpop.eup %19804 }
 0x93f   : > { %v5043_v6 = vpop.xlane.xlu0 %5042  ;;  %v5204_v19 = vmul.f32 %v19805_v47, %v22399_v34 }
 0x940   : > { %v5107_v48 = vmul.f32 1.442695, %v5090_v18  ;;  %v5089_v59 = vsub.f32 %v22436_v15, %v5043_v6 }
 0x941   : > { %v5172_v45 = vpop.xlane.xlu1 %5171 }
 0x942   : > { %19812 = vpow2.f32 %v5107_v48  ;;  %v5105_v56 = vmul.f32 1.442695, %v5089_v59  ;;  %v19807_v39 = vpop.eup %19806 }
 0x943   : > { %v5169_v38 = vpop.xlane.xlu0 %5168  ;;  %v5203_v4 = vmul.f32 %v19807_v39, %v22407_v7 }
 0x944   : > { %19814 = vpow2.f32 %v5105_v56 }
 0x945   : > { %19816 = vrcp.f32 %v5169_v38  ;;  %v5058_v17 = vpop.xlane.xlu1 %5057  ;;  %18693 = vmatprep.mubr.msk.f32.mxu1 %vm1572_vm2, %v5203_v4 }
 0x946   : > { %v5094_v31 = vsub.f32 %v22452_v32, %v5058_v17  ;;  %18694 = vmatmul.mubr.msk.f32.vlgmr.msra.gmra.mxu1 %vm1572_vm2, %v5204_v19  ;;  %v19809_v54 = vpop.eup %19808  ;;  %19818 = vrcp.f32 %v5172_v45 }
 0x947   : > { %v5055_v6 = vpop.xlane.xlu0 %5054  ;;  %18704 = vmatpush3.msra.mxu1 %v22232_v40  ;;  %v5208_v39 = vmul.f32 %v19809_v54, %v22415_v60 }
 0x948   : > { %v5115_v63 = vmul.f32 1.442695, %v5094_v31  ;;  %v5093_v48 = vsub.f32 %v22460_v62, %v5055_v6  ;;  %v19811_v56 = vpop.eup %19810  ;;  %18705 = vmatprep.subr.mxu1 %v22379_v30 }
 0x949   : > { %18706 = vmatpush3.msra.mxu1 %v22379_v30  ;;  %v5207_v47 = vmul.f32 %v19811_v56, %v22422_v42 }
 0x94a   : > { %19820 = vpow2.f32 %v5115_v63  ;;  %v5113_v38 = vmul.f32 1.442695, %v5093_v48  ;;  %18717 = vmatprep.subr.mxu1 %v22387_v10 }
 0x94b   : > { %v22523_v32 = vpop.xlane.xlu0 %5183  ;;  %18707 = vmatprep.mubr.msk.f32.mxu1 %vm1572_vm2, %v5207_v47 }
 0x94c   : > { %19822 = vpow2.f32 %v5113_v38  ;;  %18708 = vmatmul.mubr.msk.f32.vlgmr.msra.gmra.mxu1 %vm1572_vm2, %v5208_v39  ;;  %v5070_v42 = vpop.xlane.xlu1 %5069 }
 0x94d   : > { %18718 = vmatpush3.msra.mxu1 %v22387_v10 }
 0x94f   : > { %v22529_v40 = vpop.eup %19812  ;;  %v5181_v45 = vpop.xlane.xlu0 %5180 }
 0x950   : > { %19824 = vrcp.f32 %v5181_v45  ;;  %v5140_v30 = vsel %vm1572_vm2, %v22529_v40, 0.0 }
 0x951   : > { %v22533_v34 = vpop.eup %19814  ;;  %5141 = vadd.xlane.f32.xlu1 %v5140_v30 }
 0x952   : > { %v19817_v7 = vpop.eup %19816  ;;  %v5137_v60 = vsel %vm1572_vm2, %v22533_v34, 0.0 }
 0x953   : > { %5138 = vadd.xlane.f32.xlu0 %v5137_v60  ;;  %v5211_v15 = vmul.f32 %v19817_v7, %v22446_v50  ;;  %v19819_v10 = vpop.eup %19818  ;;  %v5067_v54 = vpop.xlane.xlu0 %5066 }
 0x954   : > { %v5082_v62 = vpop.xlane.xlu1 %5081  ;;  %v5212_v19 = vmul.f32 %v19819_v10, %v22442_v53  ;;  %v5098_v53 = vsub.f32 %v22472_v43, %v5070_v42  ;;  %v5097_v63 = vsub.f32 %v22484_v41, %v5067_v54  ;;  %v26519_v10 = vld [vmem:[#allocation19_spill] sm:$0xff] }
 0x955   : > { %18721 = vmatprep.mubr.msk.f32.mxu1 %vm1572_vm2, %v5211_v15  ;;  %v5102_v38 = vsub.f32 %v22492_v24, %v5082_v62  ;;  %v26517_v15 = vld [vmem:[#allocation16_spill] sm:$0xff]  ;;  %v26518_v62 = vld [vmem:[#allocation18_spill] sm:$0xff] }
 0x956   : > { %v5123_v56 = vmul.f32 1.442695, %v5098_v53  ;;  %v5121_v47 = vmul.f32 1.442695, %v5097_v63 }
 0x957   : > { %v22539_v18 = vpop.eup %19820  ;;  %v5079_v48 = vpop.xlane.xlu0 %5078  ;;  %v5131_v39 = vmul.f32 1.442695, %v5102_v38 }
 0x958   : > { %v5152_v59 = vsel %vm1572_vm2, %v22539_v18, 0.0  ;;  %v5653_v17 = vpop.permute.xlu1 %5652  ;;  %19826 = vpow2.f32 %v5123_v56 }
 0x959   : > { %v22543_v4 = vpop.eup %19822  ;;  %5153 = vadd.xlane.f32.xlu1 %v5152_v59  ;;  %18719 = vmatprep.subr.mxu1 %v5653_v17  ;;  %19828 = vpow2.f32 %v5121_v47  ;;  %v26520_v59 = vld [vmem:[#allocation20_spill] sm:$0xff] }
 0x95a   : > { %v5149_v31 = vsel %vm1572_vm2, %v22543_v4, 0.0  ;;  %18720 = vmatpush3.msra.mxu1 %v5653_v17  ;;  %19830 = vpow2.f32 %v5131_v39  ;;  %v26521_v17 = vld [vmem:[#allocation22_spill] sm:$0xff] }
 0x95b   : > { %5150 = vadd.xlane.f32.xlu0 %v5149_v31  ;;  %18722 = vmatmul.mubr.msk.f32.vlgmr.msra.gmra.mxu1 %vm1572_vm2, %v5212_v19  ;;  %v26522_v19 = vld [vmem:[#allocation21_spill] sm:$0xff]  ;;  %v26523_v31 = vld [vmem:[#allocation24_spill] sm:$0xff] }
 0x95d   : > { %v19825_v50 = vpop.eup %19824 }
 0x95e   : > { %v5215_v6 = vmul.f32 %v19825_v50, %v22476_v27  ;;  %v5101_v27 = vsub.f32 %v22500_v35, %v5079_v48  ;;  %v5566_v50 = vpop.permute.xlu0 %5565 }
 0x960   : > { %18735 = vmatprep.mubr.msk.f32.mxu1 %vm1572_vm2, %v5215_v6  ;;  %v5129_v45 = vmul.f32 1.442695, %v5101_v27 }
 0x962   : > { %19832 = vpow2.f32 %v5129_v45 }
 0x965   : > { %v22559_v30 = vpop.eup %19826 }
 0x966   : > { %v22561_v7 = vpop.eup %19828  ;;  %v5164_v43 = vsel %vm1572_vm2, %v22559_v30, 0.0 }
 0x967   : > { %v22565_v41 = vpop.eup %19830  ;;  %v5161_v24 = vsel %vm1572_vm2, %v22561_v7, 0.0 }
 0x968   : > { %v5176_v42 = vsel %vm1572_vm2, %v22565_v41, 0.0 }
 0x96a   : > { %5828 = vrot.lane.b32.xlu1 %v21172_v29, %s26364_s12 }
 0x96f   : > { %v22569_v35 = vpop.eup %19832 }
 0x970   : > { %v5173_v60 = vsel %vm1572_vm2, %v22569_v35, 0.0 }
 0x971   : > { %5741 = vrot.lane.b32.xlu0 %v21158_v1, %s26364_s12 }
 0x98e   : > { %5165 = vadd.xlane.f32.xlu1 %v5164_v43 }
 0x990   : > { %5162 = vadd.xlane.f32.xlu0 %v5161_v24 }
 0x992   : > { %5177 = vadd.xlane.f32.xlu1 %v5176_v42 }
 0x994   : > { %5174 = vadd.xlane.f32.xlu0 %v5173_v60 }
 0x9a3   : > { %5826 = vrot.lane.b32.xlu1 %v21178_v12, %s26364_s12 }
 0x9a7   : > { %6067 = vrot.lane.b32.xlu1 %v26481_v61, %s26362_s30 }
 0x9aa   : > { %5739 = vrot.lane.b32.xlu0 %v21166_v28, %s26364_s12 }
 0x9ab   : > { %6160 = vrot.lane.b32.xlu1 %v21120_v49, %s26362_s30 }
 0x9ae   : > { %6069 = vrot.lane.b32.xlu0 %v21126_v26, %s26362_s30 }
 0x9af   : > { %6158 = vrot.lane.b32.xlu1 %v26517_v15, %s26362_s30 }
 0x9b2   : > { %6063 = vrot.lane.b32.xlu0 %v26481_v61, %s26360_s0 }
 0x9b3   : > { %6251 = vrot.lane.b32.xlu1 %v26518_v62, %s26362_s30 }
 0x9b6   : > { %6065 = vrot.lane.b32.xlu0 %v21126_v26, %s26360_s0 }
 0x9b7   : > { %6249 = vrot.lane.b32.xlu1 %v26519_v10, %s26362_s30 }
 0x9ba   : > { %6154 = vrot.lane.b32.xlu0 %v26517_v15, %s26360_s0 }
 0x9bb   : > { %6342 = vrot.lane.b32.xlu1 %v26520_v59, %s26362_s30 }
 0x9be   : > { %6156 = vrot.lane.b32.xlu0 %v21120_v49, %s26360_s0 }
 0x9bf   : > { %6340 = vrot.lane.b32.xlu1 %v26521_v17, %s26362_s30 }
 0x9c2   : > { %6245 = vrot.lane.b32.xlu0 %v26519_v10, %s26360_s0 }
 0x9c3   : > { %6433 = vrot.lane.b32.xlu1 %v26522_v19, %s26362_s30 }
 0x9c6   : > { %6247 = vrot.lane.b32.xlu0 %v26518_v62, %s26360_s0 }
 0x9c7   : > { %6524 = vrot.lane.b32.xlu1 %v26523_v31, %s26362_s30 }
 0x9ca   : > { %6336 = vrot.lane.b32.xlu0 %v26521_v17, %s26360_s0 }
 0x9cb   : > { %6522 = vrot.lane.b32.xlu1 %v21164_v52, %s26362_s30 }
 0x9ce   : > { %6338 = vrot.lane.b32.xlu0 %v26520_v59, %s26360_s0 }
 0x9cf   : > { %6429 = vrot.lane.b32.xlu1 %v26522_v19, %s26360_s0 }
 0x9d2   : > { %6431 = vrot.lane.b32.xlu0 %v26485_v44, %s26362_s30 }
 0x9d3   : > { %6615 = vrot.lane.b32.xlu1 %v21158_v1, %s26362_s30 }
 0x9d6   : > { %6427 = vrot.lane.b32.xlu0 %v26485_v44, %s26360_s0 }
 0x9d7   : > { %6706 = vrot.lane.b32.xlu1 %v21172_v29, %s26362_s30 }
 0x9da   : > { %v5142_v6 = vpop.xlane.xlu1 %5141  ;;  %6518 = vrot.lane.b32.xlu0 %v21164_v52, %s26360_s0 }
 0x9db   : > { %6704 = vrot.lane.b32.xlu1 %v21178_v12, %s26362_s30  ;;  %19834 = vrcp.f32 %v5142_v6 }
 0x9dc   : > { %v5139_v54 = vpop.xlane.xlu0 %5138 }
 0x9dd   : > { %19836 = vrcp.f32 %v5139_v54 }
 0x9de   : > { %6520 = vrot.lane.b32.xlu0 %v26523_v31, %s26360_s0 }
 0x9df   : > { %6611 = vrot.lane.b32.xlu1 %v21158_v1, %s26360_s0 }
 0x9e2   : > { %v5154_v53 = vpop.xlane.xlu1 %5153  ;;  %6613 = vrot.lane.b32.xlu0 %v21166_v28, %s26362_s30 }
 0x9e3   : > { %6702 = vrot.lane.b32.xlu1 %v21172_v29, %s26360_s0  ;;  %19838 = vrcp.f32 %v5154_v53 }
 0x9e4   : > { %v5151_v63 = vpop.xlane.xlu0 %5150 }
 0x9e5   : > { %19840 = vrcp.f32 %v5151_v63 }
 0x9e6   : > { %v5829_v48 = vpop.permute.xlu1 %5828  ;;  %6609 = vrot.lane.b32.xlu0 %v21166_v28, %s26360_s0  ;;  %19842 = vrcp.f32 %v22523_v32 }
 0x9e7   : > { %18731 = vmatprep.subr.mxu1 %v5829_v48 }
 0x9e8   : > { %18732 = vmatpush3.msra.mxu1 %v5829_v48  ;;  %v19835_v56 = vpop.eup %19834 }
 0x9e9   : > { %v5202_v27 = vmul.f32 %v19835_v56, %v22529_v40 }
 0x9ea   : > { %v19837_v38 = vpop.eup %19836  ;;  %6700 = vrot.lane.b32.xlu0 %v21178_v12, %s26360_s0 }
 0x9eb   : > { %v5201_v47 = vmul.f32 %v19837_v38, %v22533_v34 }
 0x9ed   : > { %18686 = vmatprep.mubr.msk.f32.mxu0 %vm1572_vm2, %v5201_v47 }
 0x9ee   : > { %18687 = vmatmul.mubr.msk.f32.vlgmr.msra.gmra.mxu0 %vm1572_vm2, %v5202_v27  ;;  %v17274_v27 = vld [vmem:[%s26296_s5 + $0x8] sm:$0xf] }
 0x9ef   : > { %18697 = vmatpush3.msra.mxu0 %v22228_v0  ;;  %v5742_v0 = vpop.permute.xlu0 %5741 }
 0x9f0   : > { %18698 = vmatprep.subr.mxu0 %v22369_v37  ;;  %v19839_v39 = vpop.eup %19838 }
 0x9f1   : > { %18699 = vmatpush3.msra.mxu0 %v22369_v37  ;;  %v5206_v34 = vmul.f32 %v19839_v39, %v22539_v18 }
 0x9f2   : > { %v19841_v45 = vpop.eup %19840  ;;  %18710 = vmatprep.subr.mxu0 %v22375_v55 }
 0x9f3   : > { %v5205_v43 = vmul.f32 %v19841_v45, %v22543_v4  ;;  %v19843_v4 = vpop.eup %19842  ;;  %v5948_v45 = vsel %vm4088_vm3, %v17274_v27, 0 }
 0x9f4   : > { %v5216_v60 = vmul.f32 %v19843_v4, %v22466_v51 }
 0x9f5   : > { %18700 = vmatprep.mubr.msk.f32.mxu0 %vm1572_vm2, %v5205_v43 }
 0x9f6   : > { %18701 = vmatmul.mubr.msk.f32.vlgmr.msra.gmra.mxu0 %vm1572_vm2, %v5206_v34 }
 0x9f7   : > { %18711 = vmatpush3.msra.mxu0 %v22375_v55 }
 0x9f8   : > { %18712 = vmatprep.subr.mxu0 %v5566_v50 }
 0x9f9   : > { %18713 = vmatpush3.msra.mxu0 %v5566_v50 }
 0x9fa   : > { %18724 = vmatprep.subr.mxu0 %v5742_v0 }
 0xa17   : > { %v5166_v37 = vpop.xlane.xlu1 %5165 }
 0xa18   : > { %19844 = vrcp.f32 %v5166_v37 }
 0xa19   : > { %v5163_v40 = vpop.xlane.xlu0 %5162 }
 0xa1a   : > { %19846 = vrcp.f32 %v5163_v40 }
 0xa1b   : > { %v5178_v24 = vpop.xlane.xlu1 %5177 }
 0xa1c   : > { %19848 = vrcp.f32 %v5178_v24 }
 0xa1d   : > { %v5175_v18 = vpop.xlane.xlu0 %5174 }
 0xa1e   : > { %19850 = vrcp.f32 %v5175_v18 }
 0xa1f   : > { %v5827_v42 = vpop.permute.xlu1 %5826 }
 0xa20   : > { %18733 = vmatprep.subr.mxu1 %v5827_v42 }
 0xa21   : > { %18734 = vmatpush3.msra.mxu1 %v5827_v42  ;;  %v5740_v55 = vpop.permute.xlu0 %5739 }
 0xa22   : > { %18736 = vmatmul.mubr.msk.f32.vlgmr.msra.gmra.mxu1 %vm1572_vm2, %v5216_v60 }
 0xa23   : > { %v6068_v50 = vpop.permute.xlu1 %6067 }
 0xa25   : > { %v6070_v6 = vpop.permute.xlu0 %6069  ;;  %v19845_v32 = vpop.eup %19844 }
 0xa26   : > { %18756 = vmatprep.subr.msk.mxu1 %vm865_vm1, %v6070_v6  ;;  %v5210_v51 = vmul.f32 %v19845_v32, %v22559_v30 }
 0xa27   : > { %v19847_v54 = vpop.eup %19846  ;;  %v6161_v53 = vpop.permute.xlu1 %6160  ;;  %18757 = vmatpush3.xpose.msk.msra.mxu1 %vm865_vm1, %v6070_v6 }
 0xa28   : > { %18758 = vmatprep.subr.msk.mxu1 %vm865_vm1, %v6068_v50  ;;  %v5209_v63 = vmul.f32 %v19847_v54, %v22561_v7 }
 0xa29   : > { %v6064_v48 = vpop.permute.xlu0 %6063  ;;  %v19849_v56 = vpop.eup %19848 }
 0xa2a   : > { %18714 = vmatprep.mubr.msk.f32.mxu0 %vm1572_vm2, %v5209_v63  ;;  %18760 = vmatprep.mubr.msk.f32.mxu1 %vm865_vm1, %v6064_v48  ;;  %v5214_v39 = vmul.f32 %v19849_v56, %v22565_v41 }
 0xa2b   : > { %v19851_v38 = vpop.eup %19850  ;;  %v6159_v47 = vpop.permute.xlu1 %6158  ;;  %18715 = vmatmul.mubr.msk.f32.vlgmr.msra.gmra.mxu0 %vm1572_vm2, %v5210_v51  ;;  %18759 = vmatpush3.xpose.msk.msra.mxu1 %vm865_vm1, %v6068_v50 }
 0xa2c   : > { %18725 = vmatpush3.msra.mxu0 %v5742_v0  ;;  %18763 = vmatprep.subr.msk.mxu1 %vm865_vm1, %v6161_v53  ;;  %v5213_v30 = vmul.f32 %v19851_v38, %v22569_v35 }
 0xa2d   : > { %18726 = vmatprep.subr.mxu0 %v5740_v55  ;;  %v6066_v7 = vpop.permute.xlu0 %6065 }
 0xa2e   : > { %18727 = vmatpush3.msra.mxu0 %v5740_v55  ;;  %18728 = vmatprep.mubr.msk.f32.mxu0 %vm1572_vm2, %v5213_v30 }
 0xa2f   : > { %18761 = vmatmul.mubr.msk.f32.vlgmr.msra.gmra.mxu1 %vm865_vm1, %v6066_v7  ;;  %v6252_v43 = vpop.permute.xlu1 %6251  ;;  %18729 = vmatmul.mubr.msk.f32.vlgmr.msra.gmra.mxu0 %vm1572_vm2, %v5214_v39  ;;  %v18695_v7 = vpop.f32.mrf.mxu1 }
 0xa30   : > { %18764 = vmatpush3.xpose.msk.msra.mxu1 %vm865_vm1, %v6161_v53  ;;  %19532 = vmatprep.subr.msk.bf16.mxu0 %vm4088_vm3, %v17274_v27 }
 0xa31   : > { %18765 = vmatprep.subr.msk.mxu1 %vm865_vm1, %v6159_v47  ;;  %v6155_v35 = vpop.permute.xlu0 %6154  ;;  %18739 = vmatpush3.bf16.msra.mxu0 %v5948_v45  ;;  %v5382_v45 = vpop.f32.mrf.mxu1 }
 0xa32   : > { %18767 = vmatprep.mubr.msk.f32.mxu1 %vm865_vm1, %v6155_v35 }
 0xa33   : > { %v6250_v41 = vpop.permute.xlu1 %6249 }
 0xa34   : > { %18766 = vmatpush3.xpose.msk.msra.mxu1 %vm865_vm1, %v6159_v47 }
 0xa35   : > { %18770 = vmatprep.subr.msk.mxu1 %vm865_vm1, %v6252_v43  ;;  %v6157_v34 = vpop.permute.xlu0 %6156 }
 0xa37   : > { %18768 = vmatmul.mubr.msk.f32.vlgmr.msra.gmra.mxu1 %vm865_vm1, %v6157_v34  ;;  %v6343_v0 = vpop.permute.xlu1 %6342  ;;  %v18709_v34 = vpop.f32.mrf.mxu1 }
 0xa38   : > { %18771 = vmatpush3.xpose.msk.msra.mxu1 %vm865_vm1, %v6252_v43 }
 0xa39   : > { %18772 = vmatprep.subr.msk.mxu1 %vm865_vm1, %v6250_v41  ;;  %v6246_v37 = vpop.permute.xlu0 %6245 }
 0xa3a   : > { %18774 = vmatprep.mubr.msk.f32.mxu1 %vm865_vm1, %v6246_v37  ;;  %v5556_v37 = vpop.f32.mrf.mxu1 }
 0xa3b   : > { %v6341_v40 = vpop.permute.xlu1 %6340 }
 0xa3c   : > { %18773 = vmatpush3.xpose.msk.msra.mxu1 %vm865_vm1, %v6250_v41  ;;  %v5914_v41 = vpack.c.bf16 %v18695_v7, %v5382_v45 }
 0xa3d   : > { %18777 = vmatprep.subr.msk.mxu1 %vm865_vm1, %v6343_v0  ;;  %v6248_v24 = vpop.permute.xlu0 %6247 }
 0xa3f   : > { %18775 = vmatmul.mubr.msk.f32.vlgmr.msra.gmra.mxu1 %vm865_vm1, %v6248_v24  ;;  %v6434_v4 = vpop.permute.xlu1 %6433 }
 0xa40   : > { %18778 = vmatpush3.xpose.msk.msra.mxu1 %vm865_vm1, %v6343_v0  ;;  %18784 = vmatprep.subr.msk.mxu0 %vm865_vm1, %v6434_v4 }
 0xa41   : > { %18779 = vmatprep.subr.msk.mxu1 %vm865_vm1, %v6341_v40  ;;  %v6337_v18 = vpop.permute.xlu0 %6336 }
 0xa42   : > { %18781 = vmatprep.mubr.msk.f32.mxu1 %vm865_vm1, %v6337_v18  ;;  %v5916_v18 = vpack.c.bf16 %v18709_v34, %v5556_v37 }
 0xa43   : > { %v6525_v42 = vpop.permute.xlu1 %6524 }
 0xa44   : > { %18780 = vmatpush3.xpose.msk.msra.mxu1 %vm865_vm1, %v6341_v40 }
 0xa45   : > { %18791 = vmatprep.subr.msk.mxu1 %vm865_vm1, %v6525_v42  ;;  %v6339_v60 = vpop.permute.xlu0 %6338 }
 0xa47   : > { %18782 = vmatmul.mubr.msk.f32.vlgmr.msra.gmra.mxu1 %vm865_vm1, %v6339_v60  ;;  %v6523_v55 = vpop.permute.xlu1 %6522 }
 0xa48   : > { %18792 = vmatpush3.xpose.msk.msra.mxu1 %vm865_vm1, %v6525_v42  ;;  %v18723_v42 = vpop.f32.mrf.mxu1 }
 0xa49   : > { %18793 = vmatprep.subr.msk.mxu1 %vm865_vm1, %v6523_v55  ;;  %v6432_v50 = vpop.permute.xlu0 %6431 }
 0xa4a   : > { %v5730_v60 = vpop.f32.mrf.mxu1 }
 0xa4b   : > { %v22700_v6 = vpop.permute.xlu1 %6429 }
 0xa4c   : > { %18794 = vmatpush3.xpose.msk.msra.mxu1 %vm865_vm1, %v6523_v55 }
 0xa4d   : > { %v22703_v32 = vpop.permute.xlu0 %6427 }
 0xa4f   : > { %v22705_v54 = vpop.permute.xlu1 %6615 }
 0xa51   : > { %v6519_v53 = vpop.permute.xlu0 %6518 }
 0xa52   : > { %18795 = vmatprep.mubr.msk.f32.mxu1 %vm865_vm1, %v6519_v53 }
 0xa53   : > { %v6707_v63 = vpop.permute.xlu1 %6706 }
 0xa54   : > { %18805 = vmatprep.subr.msk.mxu1 %vm865_vm1, %v6707_v63 }
 0xa55   : > { %v6521_v48 = vpop.permute.xlu0 %6520 }
 0xa56   : > { %18796 = vmatmul.mubr.msk.f32.vlgmr.msra.gmra.mxu1 %vm865_vm1, %v6521_v48 }
 0xa57   : > { %18806 = vmatpush3.xpose.msk.msra.mxu1 %vm865_vm1, %v6707_v63  ;;  %v6705_v51 = vpop.permute.xlu1 %6704 }
 0xa58   : > { %18807 = vmatprep.subr.msk.mxu1 %vm865_vm1, %v6705_v51 }
 0xa59   : > { %v22712_v56 = vpop.permute.xlu0 %6613 }
 0xa5b   : > { %18808 = vmatpush3.xpose.msk.msra.mxu1 %vm865_vm1, %v6705_v51  ;;  %v22715_v38 = vpop.permute.xlu1 %6611  ;;  %v5918_v51 = vpack.c.bf16 %v18723_v42, %v5730_v60 }
 0xa5d   : > { %v22717_v47 = vpop.permute.xlu0 %6609 }
 0xa5f   : > { %v6703_v30 = vpop.permute.xlu1 %6702 }
 0xa61   : > { %v6701_v27 = vpop.permute.xlu0 %6700 }
 0xa62   : > { %18809 = vmatprep.mubr.msk.f32.mxu1 %vm865_vm1, %v6701_v27 }
 0xa63   : > { %18810 = vmatmul.mubr.msk.f32.vlgmr.msra.gmra.mxu1 %vm865_vm1, %v6703_v30 }
 0xaae   : > { %v18688_v39 = vpop.f32.mrf.mxu0 }
 0xab0   : > { %v5295_v43 = vpop.f32.mrf.mxu0 }
 0xab1   : > { %v5913_v35 = vpack.c.bf16 %v18688_v39, %v5295_v43 }
 0xab3   : > { %18740 = vmatprep.mubr.msk.bf16.mxu0 %vm865_vm1, %v5913_v35 }
 0xab4   : > { %18741 = vmatmul.mubr.msk.bf16.vlgmr.msra.gmra.mxu0 %vm865_vm1, %v5914_v41 }
 0xab5   : > { %18785 = vmatpush3.xpose.msk.msra.mxu0 %vm865_vm1, %v6434_v4 }
 0xab6   : > { %18786 = vmatprep.subr.msk.mxu0 %vm865_vm1, %v6432_v50  ;;  %v18702_v0 = vpop.f32.mrf.mxu0 }
 0xab8   : > { %v5469_v40 = vpop.f32.mrf.mxu0 }
 0xab9   : > { %v5915_v24 = vpack.c.bf16 %v18702_v0, %v5469_v40  ;;  %18787 = vmatpush3.xpose.msk.msra.mxu0 %vm865_vm1, %v6432_v50 }
 0xaba   : > { %18798 = vmatprep.subr.msk.mxu0 %vm865_vm1, %v22705_v54 }
 0xabb   : > { %18744 = vmatprep.mubr.msk.bf16.mxu0 %vm865_vm1, %v5915_v24 }
 0xabc   : > { %18745 = vmatmul.mubr.msk.bf16.gmra.mxu0 %vm865_vm1, %v5916_v18 }
 0xae2   : > { %v18737_v55 = vpop.f32.mrf.mxu1 }
 0xae4   : > { %v5904_v53 = vpop.f32.mrf.mxu1 }
 0xae5   : > { %v5920_v41 = vpack.c.bf16 %v18737_v55, %v5904_v53 }
 0xaeb   : > { %v18716_v4 = vpop.f32.mrf.mxu0 }
 0xaed   : > { %v5643_v63 = vpop.f32.mrf.mxu0 }
 0xaee   : > { %v5917_v48 = vpack.c.bf16 %v18716_v4, %v5643_v63 }
 0xaef   : > { %v18762_v27 = vpop.f32.mrf.mxu1  ;;  %v18730_v30 = vpop.f32.mrf.mxu0 }
 0xaf0   : > { %v22731_v50 = vadd.f32 %v22425_v20, %v18762_v27  ;;  %18748 = vmatprep.mubr.msk.bf16.mxu0 %vm865_vm1, %v5917_v48 }
 0xaf1   : > { %v6145_v7 = vpop.f32.mrf.mxu1  ;;  %v5817_v39 = vpop.f32.mrf.mxu0  ;;  %18749 = vmatmul.mubr.msk.bf16.gmra.mxu0 %vm865_vm1, %v5918_v51 }
 0xaf2   : > { %v22736_v45 = vadd.f32 %v22433_v36, %v6145_v7  ;;  %v5919_v43 = vpack.c.bf16 %v18730_v30, %v5817_v39  ;;  %v6794_v35 = vsel %vm1572_vm2, %v22731_v50, -inf  ;;  %v4259_v30 = vadd.f32 %v22250_v3, %v22371_v23 }
 0xaf3   : > { %6795 = vmax.xlane.f32.xlu1 %v6794_v35 }
 0xaf4   : > { %18752 = vmatprep.mubr.msk.bf16.mxu0 %vm865_vm1, %v5919_v43  ;;  %v6791_v20 = vsel %vm1572_vm2, %v22736_v45, -inf }
 0xaf5   : > { %6792 = vmax.xlane.f32.xlu0 %v6791_v20 }
 0xaf7   : > { %v18769_v34 = vpop.f32.mrf.mxu1 }
 0xaf8   : > { %v22744_v0 = vadd.f32 %v22321_v57, %v18769_v34 }
 0xaf9   : > { %v6236_v37 = vpop.f32.mrf.mxu1  ;;  %18753 = vmatmul.mubr.msk.bf16.gmra.mxu0 %vm865_vm1, %v5920_v41  ;;  %v4275_v41 = vadd.f32 %v22261_v21, %v22383_v58 }
 0xafa   : > { %v22748_v36 = vadd.f32 %v22328_v8, %v6236_v37  ;;  %v6800_v40 = vsel %vm1572_vm2, %v22744_v0, -inf  ;;  %18788 = vmatprep.mubr.msk.f32.mxu0 %vm865_vm1, %v22703_v32 }
 0xafb   : > { %6801 = vmax.xlane.f32.xlu0 %v6800_v40 }
 0xafc   : > { %v6797_v24 = vsel %vm1572_vm2, %v22748_v36, -inf }
 0xaff   : > { %6798 = vmax.xlane.f32.xlu0 %v6797_v24  ;;  %v18776_v18 = vpop.f32.mrf.mxu1 }
 0xb00   : > { %v22757_v57 = vadd.f32 %v22449_v11, %v18776_v18  ;;  %v26524_v18 = vld [vmem:[#allocation42_spill] sm:$0xff] }
 0xb01   : > { %v6327_v42 = vpop.f32.mrf.mxu1  ;;  %18789 = vmatmul.mubr.msk.f32.vlgmr.msra.gmra.mxu0 %vm865_vm1, %v22700_v6 }
 0xb02   : > { %v22762_v8 = vadd.f32 %v22457_v22, %v6327_v42  ;;  %18799 = vmatpush3.xpose.msk.msra.mxu0 %vm865_vm1, %v22705_v54  ;;  %v6806_v32 = vsel %vm1572_vm2, %v22757_v57, -inf  ;;  %18802 = vmatprep.mubr.msk.f32.mxu0 %vm865_vm1, %v22717_v47 }
 0xb03   : > { %6807 = vmax.xlane.f32.xlu1 %v6806_v32  ;;  %18800 = vmatprep.subr.msk.mxu0 %vm865_vm1, %v22712_v56 }
 0xb04   : > { %v6803_v11 = vsel %vm1572_vm2, %v22762_v8, -inf }
 0xb05   : > { %6804 = vmax.xlane.f32.xlu0 %v6803_v11 }
 0xb06   : > { %18801 = vmatpush3.xpose.msk.msra.mxu0 %vm865_vm1, %v22712_v56 }
 0xb07   : > { %v18783_v22 = vpop.f32.mrf.mxu1 }
 0xb08   : > { %v22777_v6 = vadd.f32 %v22337_v13, %v18783_v22 }
 0xb09   : > { %v6418_v54 = vpop.f32.mrf.mxu1  ;;  %18803 = vmatmul.mubr.msk.f32.vlgmr.msra.gmra.mxu0 %vm865_vm1, %v22715_v38 }
 0xb0a   : > { %v22782_v47 = vadd.f32 %v22341_v46, %v6418_v54  ;;  %v6812_v60 = vsel %vm1572_vm2, %v22777_v6, -inf }
 0xb0b   : > { %6813 = vmax.xlane.f32.xlu1 %v6812_v60 }
 0xb0c   : > { %v6809_v55 = vsel %vm1572_vm2, %v22782_v47, -inf }
 0xb0d   : > { %6810 = vmax.xlane.f32.xlu0 %v6809_v55 }
 0xb16   : > { %v18797_v56 = vpop.f32.mrf.mxu1 }
 0xb17   : > { %v22789_v4 = vadd.f32 %v22347_v2, %v18797_v56 }
 0xb18   : > { %v6600_v13 = vpop.f32.mrf.mxu1 }
 0xb19   : > { %v22792_v53 = vadd.f32 %v22351_v16, %v6600_v13  ;;  %v6824_v46 = vsel %vm1572_vm2, %v22789_v4, -inf }
 0xb1a   : > { %6825 = vmax.xlane.f32.xlu1 %v6824_v46 }
 0xb1b   : > { %v6821_v38 = vsel %vm1572_vm2, %v22792_v53, -inf }
 0xb1c   : > { %6822 = vmax.xlane.f32.xlu0 %v6821_v38 }
 0xb23   : > { %v18811_v63 = vpop.f32.mrf.mxu1 }
 0xb24   : > { %v22799_v48 = vadd.f32 %v22357_v33, %v18811_v63 }
 0xb25   : > { %v6782_v51 = vpop.f32.mrf.mxu1 }
 0xb26   : > { %v22802_v2 = vadd.f32 %v22361_v14, %v6782_v51  ;;  %v6836_v16 = vsel %vm1572_vm2, %v22799_v48, -inf  ;;  %v4262_v14 = vadd.f32 %v22257_v25, %v22377_v5  ;;  %v4278_v25 = vadd.f32 %v26524_v18, %v22389_v9 }
 0xb27   : > { %6837 = vmax.xlane.f32.xlu1 %v6836_v16 }
 0xb28   : > { %v6833_v27 = vsel %vm1572_vm2, %v22802_v2, -inf }
 0xb29   : > { %6834 = vmax.xlane.f32.xlu0 %v6833_v27 }
 0xb74   : > { %v18742_v7 = vpop.f32.mrf.mxu0 }
 0xb75   : > { %v22810_v39 = vadd.f32 %v18742_v7, %v4259_v30 }
 0xb76   : > { %v22812_v33 = vpop.f32.mrf.mxu0 }
 0xb78   : > { %v18743_v43 = vpop.f32.mrf.mxu0 }
 0xb79   : > { %v22816_v35 = vadd.f32 %v18743_v43, %v4262_v14 }
 0xb7a   : > { %v22818_v20 = vpop.f32.mrf.mxu0 }
 0xb7c   : > { %v6796_v34 = vpop.xlane.xlu1 %6795  ;;  %v18746_v37 = vpop.f32.mrf.mxu0 }
 0xb7d   : > { %v6840_v3 = vsub.f32 %v22731_v50, %v6796_v34  ;;  %v22823_v23 = vadd.f32 %v18746_v37, %v4275_v41 }
 0xb7e   : > { %v6793_v40 = vpop.xlane.xlu0 %6792  ;;  %v22825_v24 = vpop.f32.mrf.mxu0 }
 0xb7f   : > { %v6857_v5 = vmul.f32 1.442695, %v6840_v3  ;;  %v6839_v42 = vsub.f32 %v22736_v45, %v6793_v40 }
 0xb80   : > { %v18747_v32 = vpop.f32.mrf.mxu0 }
 0xb81   : > { %19852 = vpow2.f32 %v6857_v5  ;;  %v6855_v11 = vmul.f32 1.442695, %v6839_v42  ;;  %v22830_v22 = vadd.f32 %v18747_v32, %v4278_v25 }
 0xb83   : > { %19854 = vpow2.f32 %v6855_v11 }
 0xb84   : > { %v6802_v21 = vpop.xlane.xlu0 %6801 }
 0xb85   : > { %v6842_v58 = vsub.f32 %v22744_v0, %v6802_v21 }
 0xb87   : > { %v6861_v50 = vmul.f32 1.442695, %v6842_v58 }
 0xb88   : > { %v6799_v54 = vpop.xlane.xlu0 %6798 }
 0xb89   : > { %19856 = vpow2.f32 %v6861_v50  ;;  %v6841_v60 = vsub.f32 %v22748_v36, %v6799_v54  ;;  %v26525_v54 = vld [vmem:[#allocation38_spill] sm:$0xff] }
 0xb8b   : > { %v6859_v55 = vmul.f32 1.442695, %v6841_v60  ;;  %v26526_v60 = vld [vmem:[#allocation28_spill] sm:$0xff] }
 0xb8c   : > { %v6808_v56 = vpop.xlane.xlu1 %6807 }
 0xb8d   : > { %19858 = vpow2.f32 %v6859_v55  ;;  %v6844_v9 = vsub.f32 %v22757_v57, %v6808_v56  ;;  %v4291_v55 = vadd.f32 %v26526_v60, %v26525_v54 }
 0xb8e   : > { %v22835_v45 = vpop.eup %19852  ;;  %v6805_v13 = vpop.xlane.xlu0 %6804 }
 0xb8f   : > { %v6865_v46 = vmul.f32 1.442695, %v6844_v9  ;;  %v6843_v38 = vsub.f32 %v22762_v8, %v6805_v13  ;;  %v6890_v63 = vsel %vm1572_vm2, %v22835_v45, 0.0  ;;  %v26527_v13 = vld [vmem:[#allocation40_spill] sm:$0xff] }
 0xb90   : > { %v22840_v0 = vpop.eup %19854  ;;  %6891 = vadd.xlane.f32.xlu1 %v6890_v63 }
 0xb91   : > { %19860 = vpow2.f32 %v6865_v46  ;;  %v6863_v51 = vmul.f32 1.442695, %v6843_v38  ;;  %v6887_v36 = vsel %vm1572_vm2, %v22840_v0, 0.0  ;;  %v26528_v46 = vld [vmem:[#allocation26_spill] sm:$0xff] }
 0xb92   : > { %6888 = vadd.xlane.f32.xlu0 %v6887_v36  ;;  %v4294_v38 = vadd.f32 %v26528_v46, %v26527_v13 }
 0xb93   : > { %19862 = vpow2.f32 %v6863_v51 }
 0xb94   : > { %v6814_v57 = vpop.xlane.xlu1 %6813 }
 0xb95   : > { %v6846_v16 = vsub.f32 %v22777_v6, %v6814_v57 }
 0xb96   : > { %v22845_v27 = vpop.eup %19856  ;;  %v6811_v30 = vpop.xlane.xlu0 %6810 }
 0xb97   : > { %v6869_v8 = vmul.f32 1.442695, %v6846_v16  ;;  %v6845_v7 = vsub.f32 %v22782_v47, %v6811_v30  ;;  %v6896_v14 = vsel %vm1572_vm2, %v22845_v27, 0.0 }
 0xb98   : > { %6897 = vadd.xlane.f32.xlu1 %v6896_v14 }
 0xb99   : > { %19864 = vpow2.f32 %v6869_v8  ;;  %v6867_v43 = vmul.f32 1.442695, %v6845_v7  ;;  %v26529_v8 = vld [vmem:[#allocation23_spill] sm:$0xff]  ;;  %v26530_v7 = vld [vmem:[#allocation30_spill] sm:$0xff] }
 0xb9a   : > { %v22850_v41 = vpop.eup %19858  ;;  %v4307_v14 = vadd.f32 %v26530_v7, %v26529_v8 }
 0xb9b   : > { %19866 = vpow2.f32 %v6867_v43  ;;  %v6893_v34 = vsel %vm1572_vm2, %v22850_v41, 0.0 }
 0xb9c   : > { %6894 = vadd.xlane.f32.xlu0 %v6893_v34 }
 0xb9e   : > { %v22854_v6 = vpop.eup %19860 }
 0xb9f   : > { %v6902_v37 = vsel %vm1572_vm2, %v22854_v6, 0.0 }
 0xba0   : > { %v22858_v3 = vpop.eup %19862  ;;  %6903 = vadd.xlane.f32.xlu1 %v6902_v37  ;;  %v26531_v37 = vld [vmem:[#allocation45_spill] sm:$0xff] }
 0xba1   : > { %v6899_v47 = vsel %vm1572_vm2, %v22858_v3, 0.0 }
 0xba2   : > { %6900 = vadd.xlane.f32.xlu0 %v6899_v47  ;;  %v26532_v47 = vld [vmem:[#allocation31_spill] sm:$0xff] }
 0xba3   : > { %v6826_v40 = vpop.xlane.xlu1 %6825 }
 0xba4   : > { %v6850_v18 = vsub.f32 %v22789_v4, %v6826_v40  ;;  %v22872_v4 = vpop.f32.mrf.mxu0  ;;  %v4299_v40 = vadd.f32 %v26532_v47, %v26531_v37  ;;  %v26538_v37 = vld [vmem:[#allocation51_spill] sm:$0xff] }
 0xba5   : > { %v6823_v25 = vpop.xlane.xlu0 %6822 }
 0xba6   : > { %v22863_v5 = vpop.eup %19864  ;;  %v6877_v42 = vmul.f32 1.442695, %v6850_v18  ;;  %v6849_v32 = vsub.f32 %v22792_v53, %v6823_v25 }
 0xba7   : > { %v6908_v11 = vsel %vm1572_vm2, %v22863_v5, 0.0 }
 0xba8   : > { %v22868_v21 = vpop.eup %19866  ;;  %19868 = vpow2.f32 %v6877_v42  ;;  %v6875_v58 = vmul.f32 1.442695, %v6849_v32  ;;  %6909 = vadd.xlane.f32.xlu1 %v6908_v11  ;;  %v26533_v42 = vld [vmem:[#allocation46_spill] sm:$0xff]  ;;  %v26534_v32 = vld [vmem:[#allocation33_spill] sm:$0xff] }
 0xba9   : > { %v6905_v50 = vsel %vm1572_vm2, %v22868_v21, 0.0  ;;  %v4310_v11 = vadd.f32 %v26534_v32, %v26533_v42 }
 0xbaa   : > { %19870 = vpow2.f32 %v6875_v58  ;;  %6906 = vadd.xlane.f32.xlu0 %v6905_v50 }
 0xbb1   : > { %v18750_v56 = vpop.f32.mrf.mxu0 }
 0xbb2   : > { %v22876_v53 = vadd.f32 %v18750_v56, %v4291_v55  ;;  %v26535_v56 = vld [vmem:[#allocation48_spill] sm:$0xff]  ;;  %v6835_v42 = vpop.xlane.xlu0 %6834 }
 0xbb3   : > { %v22878_v9 = vpop.f32.mrf.mxu0  ;;  %v6853_v32 = vsub.f32 %v22802_v2, %v6835_v42 }
 0xbb5   : > { %v22882_v63 = vpop.eup %19868  ;;  %v18751_v51 = vpop.f32.mrf.mxu0 }
 0xbb6   : > { %v22884_v36 = vadd.f32 %v18751_v51, %v4294_v38  ;;  %v6920_v57 = vsel %vm1572_vm2, %v22882_v63, 0.0  ;;  %v26536_v38 = vld [vmem:[#allocation49_spill] sm:$0xff] }
 0xbb7   : > { %v22888_v16 = vpop.eup %19870  ;;  %v22890_v30 = vpop.f32.mrf.mxu0  ;;  %6921 = vadd.xlane.f32.xlu1 %v6920_v57 }
 0xbb8   : > { %v6917_v43 = vsel %vm1572_vm2, %v22888_v16, 0.0 }
 0xbb9   : > { %v18754_v34 = vpop.f32.mrf.mxu0  ;;  %6918 = vadd.xlane.f32.xlu0 %v6917_v43 }
 0xbba   : > { %v22898_v18 = vadd.f32 %v18754_v34, %v4307_v14  ;;  %v26537_v14 = vld [vmem:[#allocation50_spill] sm:$0xff] }
 0xbbb   : > { %v6032_v25 = vpop.f32.mrf.mxu0 }
 0xbbc   : > { %v22902_v58 = vadd.f32 %v6032_v25, %v4299_v40 }
 0xbbd   : > { %v18755_v50 = vpop.f32.mrf.mxu0 }
 0xbbe   : > { %v22904_v54 = vadd.f32 %v18755_v50, %v4310_v11  ;;  %v6838_v11 = vpop.xlane.xlu1 %6837  ;;  %v6883_v50 = vmul.f32 1.442695, %v6853_v32 }
 0xbbf   : > { %v22906_v60 = vpop.f32.mrf.mxu0 }
 0xbc0   : > { %19872 = vpow2.f32 %v6883_v50 }
 0xbc1   : > { %v18790_v55 = vpop.f32.mrf.mxu0 }
 0xbc2   : > { %v22909_v13 = vadd.f32 %v26535_v56, %v18790_v55 }
 0xbc3   : > { %v6509_v46 = vpop.f32.mrf.mxu0 }
 0xbc4   : > { %v22912_v51 = vadd.f32 %v26536_v38, %v6509_v46  ;;  %v6818_v57 = vsel %vm1572_vm2, %v22909_v13, -inf }
 0xbc5   : > { %6819 = vmax.xlane.f32.xlu1 %v6818_v57 }
 0xbc6   : > { %v6815_v8 = vsel %vm1572_vm2, %v22912_v51, -inf }
 0xbc7   : > { %6816 = vmax.xlane.f32.xlu0 %v6815_v8 }
 0xbc9   : > { %v18804_v7 = vpop.f32.mrf.mxu0 }
 0xbca   : > { %v22919_v43 = vadd.f32 %v26537_v14, %v18804_v7 }
 0xbcb   : > { %v6691_v34 = vpop.f32.mrf.mxu0 }
 0xbcc   : > { %v22922_v47 = vadd.f32 %v26538_v37, %v6691_v34  ;;  %v6830_v40 = vsel %vm1572_vm2, %v22919_v43, -inf }
 0xbcd   : > { %6831 = vmax.xlane.f32.xlu1 %v6830_v40 }
 0xbce   : > { %v6827_v25 = vsel %vm1572_vm2, %v22922_v47, -inf }
 0xbcf   : > { %6828 = vmax.xlane.f32.xlu0 %v6827_v25 }
 0xbde   : > { %6967 = vrot.lane.b32.xlu1 %v26481_v61, %s26358_s19  ;;  %v6854_v61 = vsub.f32 %v22799_v48, %v6838_v11 }
 0xbe2   : > { %7054 = vrot.lane.b32.xlu1 %v26517_v15, %s26358_s19  ;;  %v22946_v15 = vpop.eup %19872 }
 0xbe5   : > { %6969 = vrot.lane.b32.xlu0 %v21126_v26, %s26358_s19  ;;  %v6885_v26 = vmul.f32 1.442695, %v6854_v61 }
 0xbe6   : > { %7143 = vrot.lane.b32.xlu1 %v26518_v62, %s26358_s19  ;;  %v6929_v62 = vsel %vm1572_vm2, %v22946_v15, 0.0 }
 0xbe7   : > { %19874 = vpow2.f32 %v6885_v26 }
 0xbea   : > { %7230 = vrot.lane.b32.xlu1 %v26520_v59, %s26358_s19 }
 0xbee   : > { %7228 = vrot.lane.b32.xlu1 %v26521_v17, %s26358_s19 }
 0xbf2   : > { %7404 = vrot.lane.b32.xlu1 %v26523_v31, %s26358_s19 }
 0xbf4   : > { %v22950_v59 = vpop.eup %19874 }
 0xbf5   : > { %v6932_v17 = vsel %vm1572_vm2, %v22950_v59, 0.0 }
 0xbf6   : > { %7402 = vrot.lane.b32.xlu1 %v21164_v52, %s26358_s19 }
 0xc04   : > { %6930 = vadd.xlane.f32.xlu0 %v6929_v62 }
 0xc08   : > { %6933 = vadd.xlane.f32.xlu0 %v6932_v17 }
 0xc19   : > { %v6892_v46 = vpop.xlane.xlu1 %6891 }
 0xc1b   : > { %v6889_v48 = vpop.xlane.xlu0 %6888 }
 0xc1c   : > { %19876 = vrcp.f32 %v6889_v48 }
 0xc1e   : > { %7056 = vrot.lane.b32.xlu0 %v21120_v49, %s26358_s19 }
 0xc22   : > { %7141 = vrot.lane.b32.xlu0 %v26519_v10, %s26358_s19  ;;  %v6898_v10 = vpop.xlane.xlu1 %6897 }
 0xc25   : > { %v6895_v52 = vpop.xlane.xlu0 %6894 }
 0xc26   : > { %7317 = vrot.lane.b32.xlu0 %v26522_v19, %s26358_s19 }
 0xc29   : > { %v19877_v31 = vpop.eup %19876  ;;  %v6904_v38 = vpop.xlane.xlu1 %6903 }
 0xc2a   : > { %7315 = vrot.lane.b32.xlu0 %v26485_v44, %s26358_s19  ;;  %v6951_v2 = vmul.f32 %v19877_v31, %v22840_v0 }
 0xc2b   : > { %v6901_v55 = vpop.xlane.xlu0 %6900 }
 0xc2c   : > { %19878 = vrcp.f32 %v6901_v55  ;;  %18816 = vmatprep.mubr.msk.f32.mxu0 %vm1572_vm2, %v6951_v2 }
 0xc2d   : > { %19880 = vrcp.f32 %v6892_v46 }
 0xc2e   : > { %19882 = vrcp.f32 %v6895_v52 }
 0xc31   : > { %v6910_v19 = vpop.xlane.xlu1 %6909 }
 0xc33   : > { %v6907_v57 = vpop.xlane.xlu0 %6906 }
 0xc39   : > { %v19879_v56 = vpop.eup %19878 }
 0xc3a   : > { %v6955_v49 = vmul.f32 %v19879_v56, %v22858_v3  ;;  %v19881_v32 = vpop.eup %19880 }
 0xc3b   : > { %v19883_v61 = vpop.eup %19882 }
 0xc3c   : > { %18830 = vmatprep.mubr.msk.f32.mxu1 %vm1572_vm2, %v6955_v49 }
 0xc40   : > { %v6922_v8 = vpop.xlane.xlu1 %6921 }
 0xc42   : > { %v6919_v7 = vpop.xlane.xlu0 %6918 }
 0xc4e   : > { %v6820_v14 = vpop.xlane.xlu1 %6819 }
 0xc4f   : > { %v6848_v44 = vsub.f32 %v22909_v13, %v6820_v14  ;;  %v6952_v13 = vmul.f32 %v19881_v32, %v22835_v45 }
 0xc50   : > { %v6817_v0 = vpop.xlane.xlu0 %6816 }
 0xc51   : > { %v6873_v34 = vmul.f32 1.442695, %v6848_v44  ;;  %v6847_v37 = vsub.f32 %v22912_v51, %v6817_v0  ;;  %v6953_v51 = vmul.f32 %v19883_v61, %v22850_v41 }
 0xc53   : > { %19884 = vpow2.f32 %v6873_v34  ;;  %v6871_v40 = vmul.f32 1.442695, %v6847_v37 }
 0xc55   : > { %19886 = vpow2.f32 %v6871_v40 }
 0xc56   : > { %v6832_v3 = vpop.xlane.xlu1 %6831 }
 0xc57   : > { %v6852_v41 = vsub.f32 %v22919_v43, %v6832_v3 }
 0xc58   : > { %v6829_v25 = vpop.xlane.xlu0 %6828 }
 0xc59   : > { %v6881_v52 = vmul.f32 1.442695, %v6852_v41  ;;  %v6851_v31 = vsub.f32 %v22922_v47, %v6829_v25 }
 0xc5a   : > { %v6968_v42 = vpop.permute.xlu1 %6967 }
 0xc5b   : > { %19888 = vpow2.f32 %v6881_v52  ;;  %v6879_v2 = vmul.f32 1.442695, %v6851_v31 }
 0xc5c   : > { %v6970_v11 = vpop.permute.xlu0 %6969  ;;  %19890 = vrcp.f32 %v6898_v10 }
 0xc5d   : > { %18812 = vmatprep.subr.mxu0 %v6970_v11  ;;  %19892 = vrcp.f32 %v6907_v57 }
 0xc5e   : > { %v7055_v50 = vpop.permute.xlu1 %7054  ;;  %18813 = vmatpush3.msra.mxu0 %v6970_v11  ;;  %19894 = vrcp.f32 %v6904_v38 }
 0xc5f   : > { %18814 = vmatprep.subr.mxu0 %v6968_v42  ;;  %19896 = vpow2.f32 %v6879_v2 }
 0xc60   : > { %v22969_v26 = vpop.eup %19884  ;;  %18815 = vmatpush3.msra.mxu0 %v6968_v42  ;;  %19898 = vrcp.f32 %v6910_v19 }
 0xc61   : > { %18817 = vmatmul.mubr.msk.f32.vlgmr.msra.gmra.mxu0 %vm1572_vm2, %v6952_v13  ;;  %v6914_v62 = vsel %vm1572_vm2, %v22969_v26, 0.0  ;;  %19900 = vrcp.f32 %v6919_v7 }
 0xc62   : > { %v22975_v17 = vpop.eup %19886  ;;  %v7144_v48 = vpop.permute.xlu1 %7143  ;;  %18823 = vmatprep.mubr.msk.f32.mxu0 %vm1572_vm2, %v6953_v51  ;;  %6915 = vadd.xlane.f32.xlu1 %v6914_v62  ;;  %19902 = vrcp.f32 %v6922_v8  ;;  %v17331_v51 = vld [vmem:[%s26296_s5 + $0xc] sm:$0xf] }
 0xc63   : > { %18826 = vmatprep.subr.mxu1 %v7144_v48  ;;  %v6911_v45 = vsel %vm1572_vm2, %v22975_v17, 0.0 }
 0xc64   : > { %18827 = vmatpush3.msra.mxu1 %v7144_v48  ;;  %6912 = vadd.xlane.f32.xlu0 %v6911_v45 }
 0xc73   : > { %7578 = vrot.lane.b32.xlu1 %v21172_v29, %s26358_s19  ;;  %v7231_v29 = vpop.permute.xlu1 %7230 }
 0xc77   : > { %v7229_v43 = vpop.permute.xlu1 %7228 }
 0xc7a   : > { %7491 = vrot.lane.b32.xlu0 %v21158_v1, %s26358_s19  ;;  %v22990_v1 = vpop.eup %19888 }
 0xc7b   : > { %v6926_v47 = vsel %vm1572_vm2, %v22990_v1, 0.0  ;;  %v7405_v14 = vpop.permute.xlu1 %7404 }
 0xc7e   : > { %7489 = vrot.lane.b32.xlu0 %v21166_v28, %s26358_s19  ;;  %v19891_v28 = vpop.eup %19890 }
 0xc7f   : > { %v19893_v49 = vpop.eup %19892  ;;  %v6954_v38 = vmul.f32 %v19891_v28, %v22845_v27  ;;  %v7403_v3 = vpop.permute.xlu1 %7402 }
 0xc80   : > { %v19895_v10 = vpop.eup %19894  ;;  %v6957_v8 = vmul.f32 %v19893_v49, %v22868_v21 }
 0xc81   : > { %v22995_v19 = vpop.eup %19896  ;;  %v6956_v44 = vmul.f32 %v19895_v10, %v22854_v6 }
 0xc82   : > { %v19899_v7 = vpop.eup %19898  ;;  %v6923_v27 = vsel %vm1572_vm2, %v22995_v19, 0.0 }
 0xc83   : > { %v19901_v0 = vpop.eup %19900  ;;  %v6958_v21 = vmul.f32 %v19899_v7, %v22863_v5 }
 0xc84   : > { %v19903_v37 = vpop.eup %19902  ;;  %v6961_v6 = vmul.f32 %v19901_v0, %v22888_v16 }
 0xc85   : > { %v6962_v42 = vmul.f32 %v19903_v37, %v22882_v63 }
 0xc8d   : > { %v6931_v55 = vpop.xlane.xlu0 %6930 }
 0xc8e   : > { %19904 = vrcp.f32 %v6931_v55 }
 0xc91   : > { %v22988_v56 = vpop.xlane.xlu0 %6933 }
 0xc95   : > { %v7057_v46 = vpop.permute.xlu0 %7056 }
 0xc96   : > { %18819 = vmatprep.subr.mxu0 %v7057_v46 }
 0xc97   : > { %18820 = vmatpush3.msra.mxu0 %v7057_v46  ;;  %6927 = vadd.xlane.f32.xlu1 %v6926_v47 }
 0xc98   : > { %18821 = vmatprep.subr.mxu0 %v7055_v50 }
 0xc99   : > { %18822 = vmatpush3.msra.mxu0 %v7055_v50  ;;  %v7142_v57 = vpop.permute.xlu0 %7141 }
 0xc9a   : > { %18824 = vmatmul.mubr.msk.f32.vlgmr.msra.gmra.mxu0 %vm1572_vm2, %v6954_v38  ;;  %18828 = vmatprep.subr.mxu1 %v7142_v57 }
 0xc9b   : > { %18833 = vmatprep.subr.mxu0 %v7231_v29  ;;  %18829 = vmatpush3.msra.mxu1 %v7142_v57  ;;  %v19905_v40 = vpop.eup %19904 }
 0xc9c   : > { %18834 = vmatpush3.msra.mxu0 %v7231_v29  ;;  %18837 = vmatprep.mubr.msk.f32.mxu0 %vm1572_vm2, %v6957_v8  ;;  %v6965_v5 = vmul.f32 %v19905_v40, %v22946_v15 }
 0xc9d   : > { %6924 = vadd.xlane.f32.xlu1 %v6923_v27  ;;  %18831 = vmatmul.mubr.msk.f32.vlgmr.msra.gmra.mxu1 %vm1572_vm2, %v6956_v44  ;;  %v7318_v34 = vpop.permute.xlu0 %7317 }
 0xc9e   : > { %18835 = vmatprep.subr.mxu0 %v7229_v43  ;;  %18840 = vmatprep.subr.mxu1 %v7318_v34 }
 0xc9f   : > { %18836 = vmatpush3.msra.mxu0 %v7229_v43  ;;  %18841 = vmatpush3.msra.mxu1 %v7318_v34 }
 0xca0   : > { %18838 = vmatmul.mubr.msk.f32.vlgmr.msra.gmra.mxu0 %vm1572_vm2, %v6958_v21  ;;  %18847 = vmatprep.subr.mxu0 %v7405_v14 }
 0xca1   : > { %18848 = vmatpush3.msra.mxu0 %v7405_v14  ;;  %18851 = vmatprep.mubr.msk.f32.mxu0 %vm1572_vm2, %v6961_v6  ;;  %v7316_v25 = vpop.permute.xlu0 %7315 }
 0xca2   : > { %18849 = vmatprep.subr.mxu0 %v7403_v3  ;;  %18842 = vmatprep.subr.mxu1 %v7316_v25 }
 0xca3   : > { %18850 = vmatpush3.msra.mxu0 %v7403_v3  ;;  %18843 = vmatpush3.msra.mxu1 %v7316_v25  ;;  %v26539_v3 = vld [vmem:[#allocation34_spill] sm:$0xff]  ;;  %v26540_v25 = vld [vmem:[#allocation43_spill] sm:$0xff] }
 0xca4   : > { %18852 = vmatmul.mubr.msk.f32.vlgmr.msra.gmra.mxu0 %vm1572_vm2, %v6962_v42  ;;  %v4251_v42 = vadd.f32 %v26540_v25, %v26539_v3  ;;  %v20451_v25 = vld [vmem:[%s20858_s21 + $0x38] sm:$0xff] }
 0xca5   : > { %18865 = vmatprep.mubr.msk.f32.mxu0 %vm1572_vm2, %v6965_v5 }
 0xcae   : > { %7576 = vrot.lane.b32.xlu1 %v21178_v12, %s26358_s19 }
 0xceb   : > { %v6916_v16 = vpop.xlane.xlu1 %6915 }
 0xcec   : > { %19906 = vrcp.f32 %v6916_v16  ;;  %v26541_v16 = vld [vmem:[#allocation15_spill] sm:$0xff] }
 0xced   : > { %v6913_v32 = vpop.xlane.xlu0 %6912 }
 0xcee   : > { %19908 = vrcp.f32 %v6913_v32  ;;  %v26373_v32 = vsub.s32 4, %v26541_v16 }
 0xcef   : > { %v7579_v11 = vpop.permute.xlu1 %7578  ;;  %19910 = vrcp.f32 %v22988_v56  ;;  %v7698_v56 = vsel %vm4088_vm3, %v17331_v51, 0 }
 0xcf0   : > { %18861 = vmatprep.subr.mxu0 %v7579_v11 }
 0xcf1   : > { %18862 = vmatpush3.msra.mxu0 %v7579_v11  ;;  %v7492_v61 = vpop.permute.xlu0 %7491  ;;  %v6047_v11 = vadd.f32 %v22812_v33, %v4251_v42 }
 0xcf2   : > { %18854 = vmatprep.subr.mxu1 %v7492_v61 }
 0xcf5   : > { %v7490_v12 = vpop.permute.xlu0 %7489 }
 0xcf9   : > { %v19907_v63 = vpop.eup %19906 }
 0xcfa   : > { %v6960_v13 = vmul.f32 %v19907_v63, %v22969_v26 }
 0xcfb   : > { %v19909_v50 = vpop.eup %19908 }
 0xcfc   : > { %v6959_v15 = vmul.f32 %v19909_v50, %v22975_v17  ;;  %v19911_v26 = vpop.eup %19910  ;;  %v26542_v50 = vld [vmem:[#allocation35_spill] sm:$0xff] }
 0xcfd   : > { %v6966_v45 = vmul.f32 %v19911_v26, %v22950_v59 }
 0xcfe   : > { %18844 = vmatprep.mubr.msk.f32.mxu1 %vm1572_vm2, %v6959_v15  ;;  %v26543_v15 = vld [vmem:[#allocation41_spill] sm:$0xff] }
 0xcff   : > { %18845 = vmatmul.mubr.msk.f32.vlgmr.msra.gmra.mxu1 %vm1572_vm2, %v6960_v13  ;;  %v4254_v13 = vadd.f32 %v26543_v15, %v26542_v50 }
 0xd00   : > { %18855 = vmatpush3.msra.mxu1 %v7492_v61 }
 0xd01   : > { %18856 = vmatprep.subr.mxu1 %v7490_v12  ;;  %v6048_v26 = vadd.f32 %v22818_v20, %v4254_v13  ;;  %v20447_v20 = vld [vmem:[%s20858_s21 + $0x18] sm:$0xff] }
 0xd02   : > { %18857 = vmatpush3.msra.mxu1 %v7490_v12 }
 0xd03   : > { %19533 = vmatprep.subr.msk.bf16.mxu1 %vm4088_vm3, %v17331_v51  ;;  %v20444_v51 = vld [vmem:[%s20858_s21 + $0x10] sm:$0xff] }
 0xd20   : > { %v6928_v62 = vpop.xlane.xlu1 %6927 }
 0xd21   : > { %19912 = vrcp.f32 %v6928_v62  ;;  %v18818_v41 = vpop.f32.mrf.mxu0 }
 0xd23   : > { %v7045_v2 = vpop.f32.mrf.mxu0 }
 0xd24   : > { %v7663_v28 = vpack.c.bf16 %v18818_v41, %v7045_v2  ;;  %v26545_v2 = vld [vmem:[#allocation44_spill] sm:$0xff] }
 0xd26   : > { %v6925_v17 = vpop.xlane.xlu1 %6924 }
 0xd27   : > { %19914 = vrcp.f32 %v6925_v17  ;;  %v23049_v17 = vld [vmem:[%s26293_s2] sm:$0x3f] }
 0xd28   : > { %v23054_v33 = vrot.slane %v23049_v17, %v26373_v32 }
 0xd2a   : > { %v7577_v48 = vpop.permute.xlu1 %7576 }
 0xd2b   : > { %18863 = vmatprep.subr.mxu0 %v7577_v48 }
 0xd2c   : > { %18864 = vmatpush3.msra.mxu0 %v7577_v48  ;;  %v20446_v48 = vld [vmem:[%s20858_s21] sm:$0xff] }
 0xd2d   : > { %18866 = vmatmul.mubr.msk.f32.vlgmr.msra.gmra.mxu0 %vm1572_vm2, %v6966_v45 }
 0xd2e   : > { %v19913_v52 = vpop.eup %19912 }
 0xd2f   : > { %v6964_v29 = vmul.f32 %v19913_v52, %v22990_v1 }
 0xd34   : > { %v19915_v31 = vpop.eup %19914 }
 0xd35   : > { %v6963_v55 = vmul.f32 %v19915_v31, %v22995_v19  ;;  %v26544_v31 = vld [vmem:[#allocation37_spill] sm:$0xff] }
 0xd37   : > { %18858 = vmatprep.mubr.msk.f32.mxu1 %vm1572_vm2, %v6963_v55  ;;  %v4267_v55 = vadd.f32 %v26545_v2, %v26544_v31  ;;  %v26550_v31 = vld [vmem:[#allocation17_spill] sm:$0xff] }
 0xd38   : > { %18859 = vmatmul.mubr.msk.f32.vlgmr.msra.gmra.mxu1 %vm1572_vm2, %v6964_v29  ;;  %v26551_v2 = vld [vmem:[#allocation29_spill] sm:$0xff] }
 0xd39   : > { %18870 = vmatprep.mubr.msk.bf16.mxu1 %vm865_vm1, %v7663_v28  ;;  %18869 = vmatpush3.bf16.msra.mxu1 %v7698_v56 }
 0xd5a   : > { %v18825_v59 = vpop.f32.mrf.mxu0 }
 0xd5c   : > { %v7132_v43 = vpop.f32.mrf.mxu0 }
 0xd5d   : > { %v7664_v46 = vpack.c.bf16 %v18825_v59, %v7132_v43  ;;  %v18832_v47 = vpop.f32.mrf.mxu1  ;;  %v6051_v43 = vadd.f32 %v22825_v24, %v4267_v55  ;;  %v4286_v55 = vadd.f32 %v26551_v2, %v26550_v31  ;;  %v20459_v2 = vld [vmem:[%s20858_s21 + $0x78] sm:$0xff] }
 0xd5f   : > { %v7219_v49 = vpop.f32.mrf.mxu1  ;;  %18871 = vmatmul.mubr.msk.bf16.vlgmr.msra.gmra.mxu1 %vm865_vm1, %v7664_v46 }
 0xd60   : > { %v7665_v10 = vpack.c.bf16 %v18832_v47, %v7219_v49  ;;  %v18839_v38 = vpop.f32.mrf.mxu0  ;;  %v20448_v47 = vld [vmem:[%s20858_s21 + $0x8] sm:$0xff] }
 0xd62   : > { %v7306_v1 = vpop.f32.mrf.mxu0  ;;  %18874 = vmatprep.mubr.msk.bf16.mxu1 %vm865_vm1, %v7665_v10  ;;  %v26546_v10 = vld [vmem:[#allocation36_spill] sm:$0xff] }
 0xd63   : > { %v7666_v19 = vpack.c.bf16 %v18839_v38, %v7306_v1  ;;  %v26547_v38 = vld [vmem:[#allocation27_spill] sm:$0xff] }
 0xd64   : > { %v18853_v57 = vpop.f32.mrf.mxu0  ;;  %v4270_v1 = vadd.f32 %v26547_v38, %v26546_v10 }
 0xd66   : > { %v7480_v7 = vpop.f32.mrf.mxu0  ;;  %v6052_v24 = vadd.f32 %v22872_v4, %v4270_v1  ;;  %v20455_v1 = vld [vmem:[%s20858_s21 + $0x58] sm:$0xff] }
 0xd67   : > { %18875 = vmatmul.mubr.msk.bf16.gmra.mxu1 %vm865_vm1, %v7666_v19  ;;  %v7668_v0 = vpack.c.bf16 %v18853_v57, %v7480_v7 }
 0xdbf   : > { %v18846_v8 = vpop.f32.mrf.mxu1 }
 0xdc1   : > { %v7393_v14 = vpop.f32.mrf.mxu1 }
 0xdc2   : > { %v7667_v44 = vpack.c.bf16 %v18846_v8, %v7393_v14 }
 0xdc4   : > { %18878 = vmatprep.mubr.msk.bf16.mxu1 %vm865_vm1, %v7667_v44 }
 0xdc5   : > { %18879 = vmatmul.mubr.msk.bf16.gmra.mxu1 %vm865_vm1, %v7668_v0 }
 0xded   : > { %v18867_v27 = vpop.f32.mrf.mxu0 }
 0xdef   : > { %v7654_v21 = vpop.f32.mrf.mxu0 }
 0xdf0   : > { %v7670_v40 = vpack.c.bf16 %v18867_v27, %v7654_v21  ;;  %v20449_v27 = vld [vmem:[%s20858_s21 + $0x20] sm:$0xff] }
 0xdf8   : > { %v18860_v34 = vpop.f32.mrf.mxu1 }
 0xdfa   : > { %v7567_v37 = vpop.f32.mrf.mxu1 }
 0xdfb   : > { %v7669_v6 = vpack.c.bf16 %v18860_v34, %v7567_v37 }
 0xdfd   : > { %18882 = vmatprep.mubr.msk.bf16.mxu1 %vm865_vm1, %v7669_v6 }
 0xdfe   : > { %18883 = vmatmul.mubr.msk.bf16.gmra.mxu1 %vm865_vm1, %v7670_v40 }
 0xe1f   : > { %v18872_v5 = vpop.f32.mrf.mxu1 }
 0xe20   : > { %v7799_v61 = vadd.f32 %v18872_v5, %v22810_v39  ;;  %v20452_v5 = vld [vmem:[%s20858_s21 + $0x28] sm:$0xff] }
 0xe21   : > { %v7734_v63 = vpop.f32.mrf.mxu1 }
 0xe22   : > { %v7797_v12 = vadd.f32 %v7734_v63, %v6047_v11  ;;  %v7815_v62 = vadd.f32 %v20444_v51, %v7799_v61 }
 0xe23   : > { %v18873_v39 = vpop.f32.mrf.mxu1 }
 0xe24   : > { %v7813_v45 = vadd.f32 %v20446_v48, %v7797_v12  ;;  %v7800_v41 = vadd.f32 %v18873_v39, %v22816_v35  ;;  %v23065_v28 = vadd.f32 %v23054_v33, %v7815_v62  ;;  %v26548_v62 = vld [vmem:[#allocation39_spill] sm:$0xff]  ;;  %v26549_v39 = vld [vmem:[#allocation25_spill] sm:$0xff] }
 0xe25   : > { %v7737_v52 = vpop.f32.mrf.mxu1 }
 0xe26   : > { %v23062_v29 = vadd.f32 %v23054_v33, %v7813_v45  ;;  %v7798_v56 = vadd.f32 %v7737_v52, %v6048_v26  ;;  %v7816_v46 = vadd.f32 %v20447_v20, %v7800_v41  ;;  %v7855_v44 = vsel %vm457_vm0, %v23065_v28, 0.0  ;;  %v20453_v20 = vld [vmem:[%s20858_s21 + $0x50] sm:$0xff] }
 0xe27   : > { %v18876_v59 = vpop.f32.mrf.mxu1  ;;  %v4283_v26 = vadd.f32 %v26549_v39, %v26548_v62  ;;  %v20458_v62 = vld [vmem:[%s20858_s21 + $0x60] sm:$0xff] }
 0xe28   : > { %v7814_v49 = vadd.f32 %v20448_v47, %v7798_v56  ;;  %v7849_v35 = vsel %vm457_vm0, %v23062_v29, 0.0  ;;  %v7803_v7 = vadd.f32 %v18876_v59, %v22823_v23  ;;  %v23082_v0 = vadd.f32 %v23054_v33, %v7816_v46  ;;  %v20450_v23 = vld [vmem:[%s20858_s21 + $0x30] sm:$0xff]  ;;  %v20454_v47 = vld [vmem:[%s20858_s21 + $0x40] sm:$0xff] }
 0xe29   : > { %7850 = vadd.xlane.f32.xlu0 %v7849_v35  ;;  %v7750_v19 = vpop.f32.mrf.mxu1  ;;  %v6055_v45 = vadd.f32 %v22878_v9, %v4283_v26 }
 0xe2a   : > { %v23075_v57 = vadd.f32 %v23054_v33, %v7814_v49  ;;  %v7801_v8 = vadd.f32 %v7750_v19, %v6051_v43  ;;  %v7819_v40 = vadd.f32 %v20450_v23, %v7803_v7  ;;  %v7858_v61 = vsel %vm457_vm0, %v23082_v0, 0.0 }
 0xe2b   : > { %v18877_v14 = vpop.f32.mrf.mxu1  ;;  %v6056_v43 = vadd.f32 %v22890_v30, %v4286_v55 }
 0xe2c   : > { %v7817_v34 = vadd.f32 %v20449_v27, %v7801_v8  ;;  %v7804_v21 = vadd.f32 %v18877_v14, %v22830_v22  ;;  %v7852_v37 = vsel %vm457_vm0, %v23075_v57, 0.0  ;;  %v23100_v63 = vadd.f32 %v23054_v33, %v7819_v40  ;;  %v20456_v8 = vld [vmem:[%s20858_s21 + $0x48] sm:$0xff]  ;;  %v26552_v40 = vld [vmem:[#allocation47_spill] sm:$0xff] }
 0xe2d   : > { %7856 = vadd.xlane.f32.xlu0 %v7855_v44  ;;  %7853 = vadd.xlane.f32.xlu1 %v7852_v37  ;;  %v7753_v4 = vpop.f32.mrf.mxu1 }
 0xe2e   : > { %v7802_v6 = vadd.f32 %v7753_v4, %v6052_v24  ;;  %v23090_v3 = vadd.f32 %v23054_v33, %v7817_v34  ;;  %v7820_v42 = vadd.f32 %v20451_v25, %v7804_v21  ;;  %v7867_v12 = vsel %vm457_vm0, %v23100_v63, 0.0  ;;  %v26553_v25 = vld [vmem:[#allocation32_spill] sm:$0xff] }
 0xe30   : > { %v7818_v11 = vadd.f32 %v20452_v5, %v7802_v6  ;;  %v23103_v50 = vadd.f32 %v23054_v33, %v7820_v42  ;;  %v7861_v15 = vsel %vm457_vm0, %v23090_v3, 0.0  ;;  %v4302_v42 = vadd.f32 %v26553_v25, %v26552_v40 }
 0xe31   : > { %7859 = vadd.xlane.f32.xlu0 %v7858_v61 }
 0xe32   : > { %v23097_v22 = vadd.f32 %v23054_v33, %v7818_v11  ;;  %v7870_v51 = vsel %vm457_vm0, %v23103_v50, 0.0 }
 0xe34   : > { %v7864_v13 = vsel %vm457_vm0, %v23097_v22, 0.0 }
 0xe35   : > { %7862 = vadd.xlane.f32.xlu0 %v7861_v15  ;;  %7865 = vadd.xlane.f32.xlu1 %v7864_v13  ;;  %v6060_v15 = vadd.f32 %v22906_v60, %v4302_v42 }
 0xe39   : > { %7868 = vadd.xlane.f32.xlu0 %v7867_v12  ;;  %7871 = vadd.xlane.f32.xlu1 %v7870_v51  ;;  %v20457_v12 = vld [vmem:[%s20858_s21 + $0x70] sm:$0xff] }
 0xe85   : > { %v18880_v48 = vpop.f32.mrf.mxu1 }
 0xe86   : > { %v7807_v41 = vadd.f32 %v18880_v48, %v22876_v53 }
 0xe87   : > { %v7766_v52 = vpop.f32.mrf.mxu1 }
 0xe88   : > { %v7805_v56 = vadd.f32 %v7766_v52, %v6055_v45  ;;  %v7823_v46 = vadd.f32 %v20453_v20, %v7807_v41 }
 0xe89   : > { %v18881_v59 = vpop.f32.mrf.mxu1 }
 0xe8a   : > { %v7821_v49 = vadd.f32 %v20454_v47, %v7805_v56  ;;  %v7808_v35 = vadd.f32 %v18881_v59, %v22884_v36  ;;  %v23127_v38 = vadd.f32 %v23054_v33, %v7823_v46  ;;  %v20460_v56 = vld [vmem:[%s20858_s21 + $0x68] sm:$0xff]  ;;  %s26687_s21 = smov 40  }
 0xe8b   : > { %v7769_v10 = vpop.f32.mrf.mxu1 }
 0xe8c   : > { %v23124_v9 = vadd.f32 %v23054_v33, %v7821_v49  ;;  %v7806_v53 = vadd.f32 %v7769_v10, %v6056_v43  ;;  %v7824_v19 = vadd.f32 %v20455_v1, %v7808_v35  ;;  %v7879_v14 = vsel %vm457_vm0, %v23127_v38, 0.0 }
 0xe8e   : > { %v7822_v24 = vadd.f32 %v20456_v8, %v7806_v53  ;;  %v7873_v30 = vsel %vm457_vm0, %v23124_v9, 0.0  ;;  %v23137_v36 = vadd.f32 %v23054_v33, %v7824_v19 }
 0xe8f   : > { %7874 = vadd.xlane.f32.xlu0 %v7873_v30 }
 0xe90   : > { %v23134_v7 = vadd.f32 %v23054_v33, %v7822_v24  ;;  %v7882_v27 = vsel %vm457_vm0, %v23137_v36, 0.0 }
 0xe92   : > { %v7876_v44 = vsel %vm457_vm0, %v23134_v7, 0.0 }
 0xe93   : > { %7880 = vadd.xlane.f32.xlu0 %v7879_v14  ;;  %7877 = vadd.xlane.f32.xlu1 %v7876_v44 }
 0xe97   : > { %7883 = vadd.xlane.f32.xlu1 %v7882_v27 }
 0xeb2   : > { %v7851_v34 = vpop.xlane.xlu0 %7850 }
 0xeb3   : > { %v7897_v11 = vmul.f32 0.03125, %v7851_v34 }
 0xeb6   : > { %v7857_v21 = vpop.xlane.xlu0 %7856  ;;  %v7854_v13 = vpop.xlane.xlu1 %7853 }
 0xeb7   : > { %v7899_v41 = vmul.f32 0.03125, %v7857_v21  ;;  %v7898_v52 = vmul.f32 0.03125, %v7854_v13 }
 0xeb9   : > { %v23170_v20 = vsub.f32 %v23065_v28, %v7899_v41  ;;  %v23173_v46 = vsub.f32 %v23075_v57, %v7898_v52 }
 0xeba   : > { %v7860_v6 = vpop.xlane.xlu0 %7859 }
 0xebb   : > { %v7900_v47 = vmul.f32 0.03125, %v7860_v6  ;;  %v7931_v14 = vmul.f32 %v23170_v20, %v23170_v20 }
 0xebd   : > { %v23185_v24 = vsub.f32 %v23082_v0, %v7900_v47 }
 0xebe   : > { %v18884_v37 = vpop.f32.mrf.mxu1  ;;  %v7863_v31 = vpop.xlane.xlu0 %7862 }
 0xebf   : > { %v7811_v4 = vadd.f32 %v18884_v37, %v22898_v18  ;;  %v7866_v49 = vpop.xlane.xlu1 %7865  ;;  %v7901_v10 = vmul.f32 0.03125, %v7863_v31 }
 0xec0   : > { %v7782_v23 = vpop.f32.mrf.mxu1  ;;  %v7902_v27 = vmul.f32 0.03125, %v7866_v49 }
 0xec1   : > { %v7809_v5 = vadd.f32 %v7782_v23, %v22902_v58  ;;  %v7827_v51 = vadd.f32 %v20457_v12, %v7811_v4  ;;  %v23157_v58 = vsub.f32 %v23062_v29, %v7897_v11  ;;  %v23193_v44 = vsub.f32 %v23090_v3, %v7901_v10 }
 0xec2   : > { %v18885_v61 = vpop.f32.mrf.mxu1  ;;  %v7869_v8 = vpop.xlane.xlu0 %7868  ;;  %v7951_v4 = vsel %vm457_vm0, %v7931_v14, 0.0  ;;  %v7932_v23 = vmul.f32 %v23185_v24, %v23185_v24  ;;  %v23202_v40 = vsub.f32 %v23097_v22, %v7902_v27 }
 0xec3   : > { %v7825_v39 = vadd.f32 %v20458_v62, %v7809_v5  ;;  %v7812_v18 = vadd.f32 %v18885_v61, %v22904_v54  ;;  %v23160_v60 = vadd.f32 %v23054_v33, %v7827_v51  ;;  %v7929_v35 = vmul.f32 %v23157_v58, %v23157_v58  ;;  %v7872_v37 = vpop.xlane.xlu1 %7871 }
 0xec4   : > { %v7785_v26 = vpop.f32.mrf.mxu1  ;;  %v7903_v34 = vmul.f32 0.03125, %v7869_v8  ;;  %v7904_v42 = vmul.f32 0.03125, %v7872_v37  ;;  %v7933_v5 = vmul.f32 %v23193_v44, %v23193_v44  ;;  %v7954_v11 = vsel %vm457_vm0, %v7932_v23, 0.0 }
 0xec5   : > { %v23154_v48 = vadd.f32 %v23054_v33, %v7825_v39  ;;  %v7810_v45 = vadd.f32 %v7785_v26, %v6060_v15  ;;  %v7828_v55 = vadd.f32 %v20459_v2, %v7812_v18  ;;  %v7891_v1 = vsel %vm457_vm0, %v23160_v60, 0.0  ;;  %v19606_v26 = vld [vmem:[%s26297_s6 + $0x8] sm:$0xff]  }
 0xec6   : > { %v7945_v30 = vsel %vm457_vm0, %v7929_v35, 0.0  ;;  %v23205_v25 = vsub.f32 %v23100_v63, %v7903_v34  ;;  %v23211_v61 = vsub.f32 %v23103_v50, %v7904_v42  ;;  %v7957_v15 = vsel %vm457_vm0, %v7933_v5, 0.0  ;;  %18886 = vmatprep.subr.bf16.mxu0 %v19606_v26 }
 0xec7   : > { %v7826_v59 = vadd.f32 %v20460_v56, %v7810_v45  ;;  %v7885_v54 = vsel %vm457_vm0, %v23154_v48, 0.0  ;;  %v23178_v53 = vadd.f32 %v23054_v33, %v7828_v55  ;;  %v7934_v12 = vmul.f32 %v23202_v40, %v23202_v40  ;;  %18887 = vmatpush3.bf16.msra.mxu0 %v19606_v26  ;;  %v19607_v45 = vld [vmem:[%s26297_s6] sm:$0xff]  }
 0xec8   : > { %7886 = vadd.xlane.f32.xlu0 %v7885_v54  ;;  %v7935_v13 = vmul.f32 %v23205_v25, %v23205_v25  ;;  %v7936_v39 = vmul.f32 %v23211_v61, %v23211_v61  ;;  %18888 = vmatprep.subr.bf16.mxu0 %v19607_v45 }
 0xec9   : > { %v23167_v43 = vadd.f32 %v23054_v33, %v7826_v59  ;;  %v7930_v33 = vmul.f32 %v23173_v46, %v23173_v46  ;;  %v7894_v21 = vsel %vm457_vm0, %v23178_v53, 0.0  ;;  %v7960_v62 = vsel %vm457_vm0, %v7934_v12, 0.0 }
 0xeca   : > { %v7963_v51 = vsel %vm457_vm0, %v7935_v13, 0.0  ;;  %v7966_v18 = vsel %vm457_vm0, %v7936_v39, 0.0 }
 0xecb   : > { %v7888_v19 = vsel %vm457_vm0, %v23167_v43, 0.0  ;;  %v7948_v6 = vsel %vm457_vm0, %v7930_v33, 0.0  ;;  %18889 = vmatpush3.bf16.msra.mxu0 %v19607_v45 }
 0xecc   : > { %7892 = vadd.xlane.f32.xlu0 %v7891_v1  ;;  %7889 = vadd.xlane.f32.xlu1 %v7888_v19 }
 0xed0   : > { %7946 = vadd.xlane.f32.xlu0 %v7945_v30  ;;  %7895 = vadd.xlane.f32.xlu1 %v7894_v21 }
 0xed4   : > { %7952 = vadd.xlane.f32.xlu0 %v7951_v4  ;;  %7949 = vadd.xlane.f32.xlu1 %v7948_v6 }
 0xed8   : > { %7958 = vadd.xlane.f32.xlu0 %v7957_v15  ;;  %7955 = vadd.xlane.f32.xlu1 %v7954_v11 }
 0xedc   : > { %7964 = vadd.xlane.f32.xlu0 %v7963_v51  ;;  %7961 = vadd.xlane.f32.xlu1 %v7960_v62 }
 0xee0   : > { %7967 = vadd.xlane.f32.xlu1 %v7966_v18 }
 0xf18   : > { %v7875_v41 = vpop.xlane.xlu0 %7874 }
 0xf19   : > { %v7905_v52 = vmul.f32 0.03125, %v7875_v41 }
 0xf1b   : > { %v23230_v31 = vsub.f32 %v23124_v9, %v7905_v52 }
 0xf1c   : > { %v7881_v2 = vpop.xlane.xlu0 %7880  ;;  %v7878_v55 = vpop.xlane.xlu1 %7877 }
 0xf1d   : > { %v7907_v56 = vmul.f32 0.03125, %v7881_v2  ;;  %v7906_v59 = vmul.f32 0.03125, %v7878_v55  ;;  %v7937_v54 = vmul.f32 %v23230_v31, %v23230_v31 }
 0xf1f   : > { %v23235_v47 = vsub.f32 %v23127_v38, %v7907_v56  ;;  %v23238_v49 = vsub.f32 %v23134_v7, %v7906_v59  ;;  %v7969_v35 = vsel %vm457_vm0, %v7937_v54, 0.0 }
 0xf20   : > { %v7884_v10 = vpop.xlane.xlu1 %7883  ;;  %7970 = vadd.xlane.f32.xlu0 %v7969_v35 }
 0xf21   : > { %v7908_v1 = vmul.f32 0.03125, %v7884_v10  ;;  %v7939_v19 = vmul.f32 %v23235_v47, %v23235_v47  ;;  %v7938_v8 = vmul.f32 %v23238_v49, %v23238_v49 }
 0xf23   : > { %v23246_v30 = vsub.f32 %v23137_v36, %v7908_v1  ;;  %v7975_v14 = vsel %vm457_vm0, %v7939_v19, 0.0  ;;  %v7972_v33 = vsel %vm457_vm0, %v7938_v8, 0.0 }
 0xf24   : > { %7976 = vadd.xlane.f32.xlu0 %v7975_v14  ;;  %7973 = vadd.xlane.f32.xlu1 %v7972_v33 }
 0xf25   : > { %v7940_v27 = vmul.f32 %v23246_v30, %v23246_v30 }
 0xf27   : > { %v7978_v34 = vsel %vm457_vm0, %v7940_v27, 0.0 }
 0xf28   : > { %7979 = vadd.xlane.f32.xlu1 %v7978_v34 }
 0xf51   : > { %v7887_v21 = vpop.xlane.xlu0 %7886 }
 0xf52   : > { %v7909_v37 = vmul.f32 0.03125, %v7887_v21 }
 0xf54   : > { %v23254_v4 = vsub.f32 %v23154_v48, %v7909_v37 }
 0xf55   : > { %v7893_v6 = vpop.xlane.xlu0 %7892  ;;  %v7890_v23 = vpop.xlane.xlu1 %7889 }
 0xf56   : > { %v7911_v42 = vmul.f32 0.03125, %v7893_v6  ;;  %v7910_v5 = vmul.f32 0.03125, %v7890_v23  ;;  %v7941_v11 = vmul.f32 %v23254_v4, %v23254_v4 }
 0xf58   : > { %v23259_v15 = vsub.f32 %v23160_v60, %v7911_v42  ;;  %v23262_v13 = vsub.f32 %v23167_v43, %v7910_v5  ;;  %v7981_v12 = vsel %vm457_vm0, %v7941_v11, 0.0  ;;  %v26372_v11 = vsub.s32 2, %v26541_v16 }
 0xf59   : > { %7982 = vadd.xlane.f32.xlu0 %v7981_v12  ;;  %v7947_v51 = vpop.xlane.xlu0 %7946  ;;  %v7896_v62 = vpop.xlane.xlu1 %7895 }
 0xf5a   : > { %v7993_v39 = vmul.f32 0.03125, %v7947_v51  ;;  %v7912_v18 = vmul.f32 0.03125, %v7896_v62  ;;  %v7943_v26 = vmul.f32 %v23259_v15, %v23259_v15  ;;  %v7942_v45 = vmul.f32 %v23262_v13, %v23262_v13 }
 0xf5c   : > { %v8009_v41 = vadd.f32 1e-05, %v7993_v39  ;;  %v23270_v52 = vsub.f32 %v23178_v53, %v7912_v18  ;;  %v7987_v2 = vsel %vm457_vm0, %v7943_v26, 0.0  ;;  %v7984_v55 = vsel %vm457_vm0, %v7942_v45, 0.0 }
 0xf5d   : > { %7988 = vadd.xlane.f32.xlu0 %v7987_v2  ;;  %v7953_v56 = vpop.xlane.xlu0 %7952  ;;  %7985 = vadd.xlane.f32.xlu1 %v7984_v55  ;;  %v7950_v59 = vpop.xlane.xlu1 %7949  ;;  %v23281_v26 = vrot.slane %v23049_v17, %v26372_v11  ;;  %v26371_v2 = vsub.s32 3, %v26541_v16 }
 0xf5e   : > { %19916 = vrsqrt.f32 %v8009_v41  ;;  %v7995_v54 = vmul.f32 0.03125, %v7953_v56  ;;  %v7994_v35 = vmul.f32 0.03125, %v7950_v59  ;;  %v7944_v10 = vmul.f32 %v23270_v52, %v23270_v52 }
 0xf60   : > { %v8011_v1 = vadd.f32 1e-05, %v7995_v54  ;;  %v8010_v19 = vadd.f32 1e-05, %v7994_v35  ;;  %v7990_v8 = vsel %vm457_vm0, %v7944_v10, 0.0  ;;  %v23289_v54 = vrot.slane %v23049_v17, %v26371_v2 }
 0xf61   : > { %v7959_v14 = vpop.xlane.xlu0 %7958  ;;  %7991 = vadd.xlane.f32.xlu1 %v7990_v8  ;;  %v7956_v33 = vpop.xlane.xlu1 %7955 }
 0xf62   : > { %19918 = vrsqrt.f32 %v8011_v1  ;;  %v7997_v27 = vmul.f32 0.03125, %v7959_v14  ;;  %v7996_v34 = vmul.f32 0.03125, %v7956_v33 }
 0xf63   : > { %19920 = vrsqrt.f32 %v8010_v19 }
 0xf64   : > { %v8013_v21 = vadd.f32 1e-05, %v7997_v27  ;;  %v8012_v37 = vadd.f32 1e-05, %v7996_v34 }
 0xf65   : > { %v7965_v6 = vpop.xlane.xlu0 %7964  ;;  %v7962_v23 = vpop.xlane.xlu1 %7961 }
 0xf66   : > { %19922 = vrsqrt.f32 %v8013_v21  ;;  %v7999_v42 = vmul.f32 0.03125, %v7965_v6  ;;  %v7998_v5 = vmul.f32 0.03125, %v7962_v23 }
 0xf67   : > { %19924 = vrsqrt.f32 %v8012_v37 }
 0xf68   : > { %v8015_v12 = vadd.f32 1e-05, %v7999_v42  ;;  %v8014_v51 = vadd.f32 1e-05, %v7998_v5 }
 0xf69   : > { %v7968_v62 = vpop.xlane.xlu1 %7967 }
 0xf6a   : > { %19926 = vrsqrt.f32 %v8015_v12  ;;  %v8000_v39 = vmul.f32 0.03125, %v7968_v62 }
 0xf6b   : > { %v19917_v18 = vpop.eup %19916  ;;  %19928 = vrsqrt.f32 %v8014_v51 }
 0xf6c   : > { %v8016_v45 = vadd.f32 1e-05, %v8000_v39  ;;  %v8041_v41 = vmul.f32 %v19917_v18, %v23157_v58 }
 0xf6e   : > { %19930 = vrsqrt.f32 %v8016_v45  ;;  %v8061_v59 = vmul.f32 %v23281_v26, %v8041_v41 }
 0xf6f   : > { %v19919_v55 = vpop.eup %19918 }
 0xf70   : > { %v19921_v56 = vpop.eup %19920  ;;  %v8043_v35 = vmul.f32 %v19919_v55, %v23170_v20  ;;  %v8081_v8 = vadd.f32 %v23289_v54, %v8061_v59 }
 0xf71   : > { %v8042_v10 = vmul.f32 %v19921_v56, %v23173_v46 }
 0xf72   : > { %v8063_v14 = vmul.f32 %v23281_v26, %v8043_v35 }
 0xf73   : > { %v19923_v1 = vpop.eup %19922  ;;  %v8062_v19 = vmul.f32 %v23281_v26, %v8042_v10 }
 0xf74   : > { %v19925_v58 = vpop.eup %19924  ;;  %v8045_v34 = vmul.f32 %v19923_v1, %v23193_v44  ;;  %v8083_v6 = vadd.f32 %v23289_v54, %v8063_v14 }
 0xf75   : > { %v8044_v33 = vmul.f32 %v19925_v58, %v23185_v24  ;;  %v8082_v27 = vadd.f32 %v23289_v54, %v8062_v19 }
 0xf76   : > { %v8065_v24 = vmul.f32 %v23281_v26, %v8045_v34 }
 0xf77   : > { %v19927_v17 = vpop.eup %19926  ;;  %v8064_v21 = vmul.f32 %v23281_v26, %v8044_v33  ;;  %v8097_v20 = vpack.c.bf16 %v8082_v27, %v8081_v8 }
 0xf78   : > { %v19929_v37 = vpop.eup %19928  ;;  %v8047_v46 = vmul.f32 %v19927_v17, %v23205_v25  ;;  %v8085_v25 = vadd.f32 %v23289_v54, %v8065_v24 }
 0xf79   : > { %18890 = vmatprep.mubr.msk.bf16.mxu0 %vm457_vm0, %v8097_v20  ;;  %v8084_v23 = vadd.f32 %v23289_v54, %v8064_v21  ;;  %v8046_v42 = vmul.f32 %v19929_v37, %v23202_v40 }
 0xf7a   : > { %v8067_v62 = vmul.f32 %v23281_v26, %v8047_v46 }
 0xf7b   : > { %v19931_v5 = vpop.eup %19930  ;;  %v8098_v12 = vpack.c.bf16 %v8084_v23, %v8083_v6  ;;  %v8066_v44 = vmul.f32 %v23281_v26, %v8046_v42 }
 0xf7c   : > { %v8048_v51 = vmul.f32 %v19931_v5, %v23211_v61  ;;  %v8087_v40 = vadd.f32 %v23289_v54, %v8067_v62 }
 0xf7d   : > { %18891 = vmatmul.mubr.msk.bf16.vlgmr.msra.gmra.mxu0 %vm457_vm0, %v8098_v12  ;;  %v8086_v39 = vadd.f32 %v23289_v54, %v8066_v44 }
 0xf7e   : > { %v8068_v18 = vmul.f32 %v23281_v26, %v8048_v51 }
 0xf7f   : > { %v8099_v45 = vpack.c.bf16 %v8086_v39, %v8085_v25  ;;  %v19609_v25 = vld [vmem:[%s26299_s8 + $0x30] sm:$0xff]   ;;  %v19610_v39 = vld [vmem:[%s26299_s8 + $0x28] sm:$0xff]  }
 0xf80   : > { %v8088_v41 = vadd.f32 %v23289_v54, %v8068_v18  ;;  %v19611_v18 = vld [vmem:[%s26299_s8 + $0x20] sm:$0xff]  }
 0xf81   : > { %18894 = vmatprep.mubr.msk.bf16.mxu0 %vm457_vm0, %v8099_v45  ;;  %v19612_v45 = vld [vmem:[%s26299_s8 + $0x18] sm:$0xff]  }
 0xf82   : > { %v8100_v55 = vpack.c.bf16 %v8088_v41, %v8087_v40  ;;  %v19613_v40 = vld [vmem:[%s26299_s8 + $0x10] sm:$0xff]  }
 0xf85   : > { %18895 = vmatmul.mubr.msk.bf16.gmra.mxu0 %vm457_vm0, %v8100_v55 }
 0xfa9   : > { %v7971_v61 = vpop.xlane.xlu0 %7970 }
 0xfaa   : > { %v8001_v56 = vmul.f32 0.03125, %v7971_v61  ;;  %v19614_v61 = vld [vmem:[%s26299_s8 + $0x8] sm:$0xff]  }
 0xfac   : > { %v8017_v59 = vadd.f32 1e-05, %v8001_v56 }
 0xfad   : > { %v7977_v35 = vpop.xlane.xlu0 %7976  ;;  %v7974_v10 = vpop.xlane.xlu1 %7973 }
 0xfae   : > { %19932 = vrsqrt.f32 %v8017_v59  ;;  %v8003_v1 = vmul.f32 0.03125, %v7977_v35  ;;  %v8002_v19 = vmul.f32 0.03125, %v7974_v10 }
 0xfb0   : > { %v8019_v58 = vadd.f32 1e-05, %v8003_v1  ;;  %v8018_v8 = vadd.f32 1e-05, %v8002_v19  ;;  %v19615_v19 = vld [vmem:[%s26299_s8] sm:$0xff]  }
 0xfb1   : > { %v7980_v14 = vpop.xlane.xlu1 %7979 }
 0xfb2   : > { %19934 = vrsqrt.f32 %v8019_v58  ;;  %v8004_v33 = vmul.f32 0.03125, %v7980_v14 }
 0xfb3   : > { %19936 = vrsqrt.f32 %v8018_v8 }
 0xfb4   : > { %v8020_v27 = vadd.f32 1e-05, %v8004_v33 }
 0xfb6   : > { %19938 = vrsqrt.f32 %v8020_v27 }
 0xfbb   : > { %v19933_v34 = vpop.eup %19932 }
 0xfbc   : > { %v8049_v17 = vmul.f32 %v19933_v34, %v23230_v31 }
 0xfbe   : > { %v8069_v6 = vmul.f32 %v23281_v26, %v8049_v17 }
 0xfbf   : > { %v19935_v21 = vpop.eup %19934 }
 0xfc0   : > { %v19937_v20 = vpop.eup %19936  ;;  %v8051_v37 = vmul.f32 %v19935_v21, %v23235_v47  ;;  %v8089_v12 = vadd.f32 %v23289_v54, %v8069_v6 }
 0xfc1   : > { %v8050_v46 = vmul.f32 %v19937_v20, %v23238_v49 }
 0xfc2   : > { %v8071_v5 = vmul.f32 %v23281_v26, %v8051_v37 }
 0xfc3   : > { %v19939_v23 = vpop.eup %19938  ;;  %v8070_v42 = vmul.f32 %v23281_v26, %v8050_v46 }
 0xfc4   : > { %v8052_v24 = vmul.f32 %v19939_v23, %v23246_v30  ;;  %v8091_v47 = vadd.f32 %v23289_v54, %v8071_v5  ;;  %v19608_v30 = vld [vmem:[%s26299_s8 + $0x38] sm:$0xff]  }
 0xfc5   : > { %v8090_v44 = vadd.f32 %v23289_v54, %v8070_v42  ;;  %18906 = vmatprep.subr.bf16.mxu1 %v19608_v30 }
 0xfc6   : > { %v8072_v31 = vmul.f32 %v23281_v26, %v8052_v24  ;;  %18907 = vmatpush3.bf16.msra.mxu1 %v19608_v30 }
 0xfc7   : > { %v8101_v51 = vpack.c.bf16 %v8090_v44, %v8089_v12  ;;  %18908 = vmatprep.subr.bf16.mxu1 %v19609_v25 }
 0xfc8   : > { %v8092_v49 = vadd.f32 %v23289_v54, %v8072_v31 }
 0xfc9   : > { %18898 = vmatprep.mubr.msk.bf16.mxu0 %vm457_vm0, %v8101_v51 }
 0xfca   : > { %v8102_v62 = vpack.c.bf16 %v8092_v49, %v8091_v47  ;;  %18909 = vmatpush3.bf16.msra.mxu1 %v19609_v25 }
 0xfcb   : > { %18910 = vmatprep.subr.bf16.mxu1 %v19610_v39 }
 0xfcc   : > { %18899 = vmatmul.mubr.msk.bf16.gmra.mxu0 %vm457_vm0, %v8102_v62 }
 0xfce   : > { %18911 = vmatpush3.bf16.msra.mxu1 %v19610_v39 }
 0xfcf   : > { %18912 = vmatprep.subr.bf16.mxu1 %v19611_v18 }
 0xfd2   : > { %18913 = vmatpush3.bf16.msra.mxu1 %v19611_v18 }
 0xfd3   : > { %18914 = vmatprep.subr.bf16.mxu1 %v19612_v45 }
 0xfd6   : > { %18915 = vmatpush3.bf16.msra.mxu1 %v19612_v45 }
 0xfd7   : > { %18916 = vmatprep.subr.bf16.mxu1 %v19613_v40 }
 0xfda   : > { %18917 = vmatpush3.bf16.msra.mxu1 %v19613_v40 }
 0xfdb   : > { %18918 = vmatprep.subr.bf16.mxu1 %v19614_v61 }
 0xfde   : > { %18919 = vmatpush3.bf16.msra.mxu1 %v19614_v61 }
 0xfdf   : > { %18920 = vmatprep.subr.bf16.mxu1 %v19615_v19 }
 0xfe2   : > { %v7983_v41 = vpop.xlane.xlu0 %7982  ;;  %18921 = vmatpush3.bf16.msra.mxu1 %v19615_v19 }
 0xfe3   : > { %v8005_v55 = vmul.f32 0.03125, %v7983_v41 }
 0xfe5   : > { %v8021_v56 = vadd.f32 1e-05, %v8005_v55 }
 0xfe6   : > { %v7989_v59 = vpop.xlane.xlu0 %7988  ;;  %v7986_v35 = vpop.xlane.xlu1 %7985 }
 0xfe7   : > { %19940 = vrsqrt.f32 %v8021_v56  ;;  %v8007_v10 = vmul.f32 0.03125, %v7989_v59  ;;  %v8006_v1 = vmul.f32 0.03125, %v7986_v35 }
 0xfe9   : > { %v8023_v58 = vadd.f32 1e-05, %v8007_v10  ;;  %v8022_v8 = vadd.f32 1e-05, %v8006_v1 }
 0xfea   : > { %v7992_v14 = vpop.xlane.xlu1 %7991 }
 0xfeb   : > { %19942 = vrsqrt.f32 %v8023_v58  ;;  %v8008_v33 = vmul.f32 0.03125, %v7992_v14 }
 0xfec   : > { %19944 = vrsqrt.f32 %v8022_v8 }
 0xfed   : > { %v8024_v27 = vadd.f32 1e-05, %v8008_v33 }
 0xfef   : > { %19946 = vrsqrt.f32 %v8024_v27 }
 0xff4   : > { %v19941_v34 = vpop.eup %19940 }
 0xff5   : > { %v8053_v17 = vmul.f32 %v19941_v34, %v23254_v4 }
 0xff7   : > { %v8073_v6 = vmul.f32 %v23281_v26, %v8053_v17 }
 0xff8   : > { %v19943_v21 = vpop.eup %19942 }
 0xff9   : > { %v19945_v20 = vpop.eup %19944  ;;  %v8055_v37 = vmul.f32 %v19943_v21, %v23259_v15  ;;  %v8093_v12 = vadd.f32 %v23289_v54, %v8073_v6 }
 0xffa   : > { %v8054_v46 = vmul.f32 %v19945_v20, %v23262_v13 }
 0xffb   : > { %v8075_v5 = vmul.f32 %v23281_v26, %v8055_v37 }
 0xffc   : > { %v19947_v23 = vpop.eup %19946  ;;  %v8074_v42 = vmul.f32 %v23281_v26, %v8054_v46 }
 0xffd   : > { %v8056_v24 = vmul.f32 %v19947_v23, %v23270_v52  ;;  %v8095_v15 = vadd.f32 %v23289_v54, %v8075_v5  ;;  %v23372_v52 = vld [vmem:[%s26298_s7] ss:$0 sm:$0xff] }
 0xffe   : > { %v8094_v44 = vadd.f32 %v23289_v54, %v8074_v42 }
 0xfff   : > { %v8076_v4 = vmul.f32 %v23281_v26, %v8056_v24 }
0x1000   : > { %v8103_v31 = vpack.c.bf16 %v8094_v44, %v8093_v12 }
0x1001   : > { %v8096_v13 = vadd.f32 %v23289_v54, %v8076_v4 }
0x1002   : > { %18902 = vmatprep.mubr.msk.bf16.mxu0 %vm457_vm0, %v8103_v31 }
0x1003   : > { %v8104_v51 = vpack.c.bf16 %v8096_v13, %v8095_v15 }
0x1005   : > { %18903 = vmatmul.mubr.msk.bf16.gmra.mxu0 %vm457_vm0, %v8104_v51 }
0x103d   : > { %v18892_v47 = vpop.f32.mrf.mxu0 }
0x103e   : > { %v23375_v49 = vadd.f32 %v18892_v47, %v23372_v52 }
0x103f   : > { %v8186_v26 = vpop.f32.mrf.mxu0 }
0x1040   : > { %v17353_v62 = vmul.f32 -1.702, %v23375_v49  ;;  %v23379_v30 = vadd.f32 %v23372_v52, %v8186_v26 }
0x1041   : > { %v18893_v54 = vpop.f32.mrf.mxu0 }
0x1042   : > { %v8285_v25 = vmul.f32 1.442695, %v17353_v62  ;;  %v17351_v39 = vmul.f32 -1.702, %v23379_v30  ;;  %v8198_v18 = vadd.f32 %v18893_v54, %v23372_v52 }
0x1043   : > { %v8189_v45 = vpop.f32.mrf.mxu0 }
0x1044   : > { %v8281_v40 = vmul.f32 1.442695, %v17351_v39  ;;  %v17354_v41 = vmul.f32 -1.702, %v8198_v18  ;;  %v8190_v55 = vadd.f32 %v23372_v52, %v8189_v45  ;;  %19948 = vpow2.f32 %v8285_v25 }
0x1045   : > { %v18896_v61 = vpop.f32.mrf.mxu0 }
0x1046   : > { %19950 = vpow2.f32 %v8281_v40  ;;  %v8287_v56 = vmul.f32 1.442695, %v17354_v41  ;;  %v17352_v59 = vmul.f32 -1.702, %v8190_v55  ;;  %v23385_v35 = vadd.f32 %v18896_v61, %v23372_v52 }
0x1047   : > { %v8202_v10 = vpop.f32.mrf.mxu0 }
0x1048   : > { %19952 = vpow2.f32 %v8287_v56  ;;  %v8283_v1 = vmul.f32 1.442695, %v17352_v59  ;;  %v17357_v19 = vmul.f32 -1.702, %v23385_v35  ;;  %v8203_v58 = vadd.f32 %v23372_v52, %v8202_v10 }
0x1049   : > { %v18897_v8 = vpop.f32.mrf.mxu0 }
0x104a   : > { %19954 = vpow2.f32 %v8283_v1  ;;  %v8293_v14 = vmul.f32 1.442695, %v17357_v19  ;;  %v17355_v33 = vmul.f32 -1.702, %v8203_v58  ;;  %v8214_v27 = vadd.f32 %v18897_v8, %v23372_v52 }
0x104b   : > { %v8205_v34 = vpop.f32.mrf.mxu0 }
0x104c   : > { %v8289_v17 = vmul.f32 1.442695, %v17355_v33  ;;  %v17358_v21 = vmul.f32 -1.702, %v8214_v27  ;;  %v8206_v20 = vadd.f32 %v23372_v52, %v8205_v34  ;;  %19956 = vpow2.f32 %v8293_v14 }
0x104e   : > { %19958 = vpow2.f32 %v8289_v17  ;;  %v8295_v37 = vmul.f32 1.442695, %v17358_v21  ;;  %v17356_v46 = vmul.f32 -1.702, %v8206_v20 }
0x1050   : > { %19960 = vpow2.f32 %v8295_v37  ;;  %v8291_v6 = vmul.f32 1.442695, %v17356_v46 }
0x1051   : > { %v19949_v23 = vpop.eup %19948 }
0x1052   : > { %19962 = vpow2.f32 %v8291_v6  ;;  %v8315_v12 = vadd.f32 1.0, %v19949_v23 }
0x1053   : > { %v19951_v42 = vpop.eup %19950 }
0x1054   : > { %v8313_v24 = vadd.f32 1.0, %v19951_v42 }
0x1055   : > { %v19953_v5 = vpop.eup %19952 }
0x1056   : > { %v8316_v44 = vadd.f32 1.0, %v19953_v5  ;;  %19964 = vrcp.f32 %v8313_v24 }
0x1057   : > { %v19955_v4 = vpop.eup %19954 }
0x1058   : > { %19966 = vrcp.f32 %v8316_v44  ;;  %v8314_v31 = vadd.f32 1.0, %v19955_v4 }
0x1059   : > { %19968 = vrcp.f32 %v8315_v12  ;;  %v19957_v15 = vpop.eup %19956 }
0x105a   : > { %19970 = vrcp.f32 %v8314_v31  ;;  %v8319_v26 = vadd.f32 1.0, %v19957_v15 }
0x105b   : > { %v19959_v13 = vpop.eup %19958 }
0x105c   : > { %v8317_v51 = vadd.f32 1.0, %v19959_v13 }
0x105d   : > { %v19961_v47 = vpop.eup %19960 }
0x105e   : > { %v8320_v62 = vadd.f32 1.0, %v19961_v47  ;;  %19972 = vrcp.f32 %v8317_v51 }
0x105f   : > { %v19963_v54 = vpop.eup %19962 }
0x1060   : > { %19974 = vrcp.f32 %v8320_v62  ;;  %v8318_v25 = vadd.f32 1.0, %v19963_v54 }
0x1061   : > { %19976 = vrcp.f32 %v8319_v26 }
0x1062   : > { %19978 = vrcp.f32 %v8318_v25 }
0x1063   : > { %v19965_v39 = vpop.eup %19964 }
0x1064   : > { %v8361_v56 = vmul.f32 %v19965_v39, %v23379_v30 }
0x1065   : > { %v19967_v45 = vpop.eup %19966 }
0x1066   : > { %v19969_v40 = vpop.eup %19968  ;;  %v8364_v61 = vmul.f32 %v19967_v45, %v8198_v18 }
0x1067   : > { %v19971_v41 = vpop.eup %19970  ;;  %v8363_v10 = vmul.f32 %v19969_v40, %v23375_v49 }
0x1068   : > { %v8362_v59 = vmul.f32 %v19971_v41, %v8190_v55 }
0x1069   : > { %v8378_v19 = vpack.c.bf16 %v8364_v61, %v8363_v10 }
0x106a   : > { %v8377_v1 = vpack.c.bf16 %v8362_v59, %v8361_v56 }
0x106b   : > { %v19973_v8 = vpop.eup %19972 }
0x106c   : > { %18922 = vmatprep.mubr.bf16.mxu1 %v8377_v1  ;;  %v8365_v21 = vmul.f32 %v19973_v8, %v8203_v58 }
0x106d   : > { %v19975_v14 = vpop.eup %19974  ;;  %18923 = vmatmul.mubr.bf16.vlgmr.msra.gmra.mxu1 %v8378_v19 }
0x106e   : > { %v19977_v33 = vpop.eup %19976  ;;  %v8368_v17 = vmul.f32 %v19975_v14, %v8214_v27 }
0x106f   : > { %v19979_v34 = vpop.eup %19978  ;;  %v8367_v46 = vmul.f32 %v19977_v33, %v23385_v35 }
0x1070   : > { %v8366_v37 = vmul.f32 %v19979_v34, %v8206_v20 }
0x1071   : > { %v8380_v18 = vpack.c.bf16 %v8368_v17, %v8367_v46 }
0x1072   : > { %v8379_v6 = vpack.c.bf16 %v8366_v37, %v8365_v21 }
0x1074   : > { %18926 = vmatprep.mubr.bf16.mxu1 %v8379_v6 }
0x1075   : > { %18927 = vmatmul.mubr.bf16.gmra.mxu1 %v8380_v18 }
0x108c   : > { %v18900_v30 = vpop.f32.mrf.mxu0 }
0x108d   : > { %v8227_v49 = vadd.f32 %v18900_v30, %v23372_v52 }
0x108e   : > { %v8218_v55 = vpop.f32.mrf.mxu0 }
0x108f   : > { %v17361_v23 = vmul.f32 -1.702, %v8227_v49  ;;  %v8219_v42 = vadd.f32 %v23372_v52, %v8218_v55 }
0x1090   : > { %v18901_v24 = vpop.f32.mrf.mxu0 }
0x1091   : > { %v8301_v5 = vmul.f32 1.442695, %v17361_v23  ;;  %v17359_v12 = vmul.f32 -1.702, %v8219_v42  ;;  %v8230_v27 = vadd.f32 %v18901_v24, %v23372_v52 }
0x1092   : > { %v8221_v58 = vpop.f32.mrf.mxu0 }
0x1093   : > { %v8297_v20 = vmul.f32 1.442695, %v17359_v12  ;;  %v17362_v44 = vmul.f32 -1.702, %v8230_v27  ;;  %v8222_v35 = vadd.f32 %v23372_v52, %v8221_v58  ;;  %19980 = vpow2.f32 %v8301_v5 }
0x1095   : > { %19982 = vpow2.f32 %v8297_v20  ;;  %v8303_v4 = vmul.f32 1.442695, %v17362_v44  ;;  %v17360_v31 = vmul.f32 -1.702, %v8222_v35 }
0x1097   : > { %19984 = vpow2.f32 %v8303_v4  ;;  %v8299_v15 = vmul.f32 1.442695, %v17360_v31 }
0x1099   : > { %19986 = vpow2.f32 %v8299_v15 }
0x10a0   : > { %v19981_v13 = vpop.eup %19980 }
0x10a1   : > { %v8323_v62 = vadd.f32 1.0, %v19981_v13 }
0x10a2   : > { %v19983_v51 = vpop.eup %19982 }
0x10a3   : > { %v8321_v47 = vadd.f32 1.0, %v19983_v51 }
0x10a4   : > { %v19985_v26 = vpop.eup %19984 }
0x10a5   : > { %v8324_v54 = vadd.f32 1.0, %v19985_v26  ;;  %19988 = vrcp.f32 %v8321_v47 }
0x10a6   : > { %v19987_v25 = vpop.eup %19986 }
0x10a7   : > { %19990 = vrcp.f32 %v8324_v54  ;;  %v8322_v39 = vadd.f32 1.0, %v19987_v25 }
0x10a8   : > { %19992 = vrcp.f32 %v8323_v62 }
0x10a9   : > { %19994 = vrcp.f32 %v8322_v39 }
0x10b2   : > { %v19989_v45 = vpop.eup %19988 }
0x10b3   : > { %v8369_v59 = vmul.f32 %v19989_v45, %v8219_v42  ;;  %v26370_v45 = vsub.s32 5, %v26541_v16 }
0x10b4   : > { %v19991_v40 = vpop.eup %19990 }
0x10b5   : > { %v19993_v41 = vpop.eup %19992  ;;  %v8372_v56 = vmul.f32 %v19991_v40, %v8230_v27 }
0x10b6   : > { %v19995_v61 = vpop.eup %19994  ;;  %v8371_v1 = vmul.f32 %v19993_v41, %v8227_v49 }
0x10b7   : > { %v8370_v10 = vmul.f32 %v19995_v61, %v8222_v35 }
0x10b8   : > { %v8382_v8 = vpack.c.bf16 %v8372_v56, %v8371_v1  ;;  %v20461_v56 = vld [vmem:[%s26293_s2] sm:$0x3f] }
0x10b9   : > { %v8381_v19 = vpack.c.bf16 %v8370_v10, %v8369_v59  ;;  %v23409_v59 = vrot.slane %v20461_v56, %v26370_v45 }
0x10bb   : > { %18930 = vmatprep.mubr.bf16.mxu1 %v8381_v19 }
0x10bc   : > { %18931 = vmatmul.mubr.bf16.gmra.mxu1 %v8382_v8 }
0x10c5   : > { %v18904_v14 = vpop.f32.mrf.mxu0 }
0x10c6   : > { %v8243_v33 = vadd.f32 %v18904_v14, %v23372_v52 }
0x10c7   : > { %v8234_v34 = vpop.f32.mrf.mxu0 }
0x10c8   : > { %v17365_v17 = vmul.f32 -1.702, %v8243_v33  ;;  %v8235_v21 = vadd.f32 %v23372_v52, %v8234_v34 }
0x10c9   : > { %v18905_v37 = vpop.f32.mrf.mxu0 }
0x10ca   : > { %v8309_v46 = vmul.f32 1.442695, %v17365_v17  ;;  %v17363_v6 = vmul.f32 -1.702, %v8235_v21  ;;  %v8246_v18 = vadd.f32 %v18905_v37, %v23372_v52 }
0x10cb   : > { %v8237_v30 = vpop.f32.mrf.mxu0 }
0x10cc   : > { %v8305_v55 = vmul.f32 1.442695, %v17363_v6  ;;  %v17366_v23 = vmul.f32 -1.702, %v8246_v18  ;;  %v8238_v49 = vadd.f32 %v23372_v52, %v8237_v30  ;;  %19996 = vpow2.f32 %v8309_v46 }
0x10ce   : > { %19998 = vpow2.f32 %v8305_v55  ;;  %v8311_v42 = vmul.f32 1.442695, %v17366_v23  ;;  %v17364_v24 = vmul.f32 -1.702, %v8238_v49 }
0x10d0   : > { %20000 = vpow2.f32 %v8311_v42  ;;  %v8307_v5 = vmul.f32 1.442695, %v17364_v24 }
0x10d2   : > { %20002 = vpow2.f32 %v8307_v5 }
0x10d9   : > { %v19997_v12 = vpop.eup %19996 }
0x10da   : > { %v8327_v44 = vadd.f32 1.0, %v19997_v12 }
0x10db   : > { %v19999_v27 = vpop.eup %19998 }
0x10dc   : > { %v8325_v58 = vadd.f32 1.0, %v19999_v27 }
0x10dd   : > { %v20001_v20 = vpop.eup %20000 }
0x10de   : > { %v8328_v35 = vadd.f32 1.0, %v20001_v20  ;;  %20004 = vrcp.f32 %v8325_v58 }
0x10df   : > { %v20003_v4 = vpop.eup %20002 }
0x10e0   : > { %20006 = vrcp.f32 %v8328_v35  ;;  %v8326_v31 = vadd.f32 1.0, %v20003_v4 }
0x10e1   : > { %20008 = vrcp.f32 %v8327_v44 }
0x10e2   : > { %20010 = vrcp.f32 %v8326_v31 }
0x10eb   : > { %v20005_v52 = vpop.eup %20004 }
0x10ec   : > { %v8373_v26 = vmul.f32 %v20005_v52, %v8235_v21 }
0x10ed   : > { %v20007_v15 = vpop.eup %20006 }
0x10ee   : > { %v20009_v13 = vpop.eup %20008  ;;  %v8376_v47 = vmul.f32 %v20007_v15, %v8246_v18 }
0x10ef   : > { %v20011_v51 = vpop.eup %20010  ;;  %v8375_v54 = vmul.f32 %v20009_v13, %v8243_v33 }
0x10f0   : > { %v8374_v62 = vmul.f32 %v20011_v51, %v8238_v49 }
0x10f1   : > { %v8384_v39 = vpack.c.bf16 %v8376_v47, %v8375_v54 }
0x10f2   : > { %v8383_v25 = vpack.c.bf16 %v8374_v62, %v8373_v26 }
0x10f4   : > { %18934 = vmatprep.mubr.bf16.mxu1 %v8383_v25 }
0x10f5   : > { %18935 = vmatmul.mubr.bf16.gmra.mxu1 %v8384_v39 }
0x112d   : > { %v18924_v40 = vpop.f32.mrf.mxu1 }
0x112e   : > { %v8548_v61 = vadd.f32 %v18924_v40, %v23065_v28 }
0x112f   : > { %v8483_v41 = vpop.f32.mrf.mxu1 }
0x1130   : > { %v8546_v10 = vadd.f32 %v8483_v41, %v23062_v29  ;;  %v23417_v33 = vadd.f32 %v23409_v59, %v8548_v61 }
0x1131   : > { %v18925_v1 = vpop.f32.mrf.mxu1 }
0x1132   : > { %v23413_v19 = vadd.f32 %v23409_v59, %v8546_v10  ;;  %v8549_v8 = vadd.f32 %v18925_v1, %v23082_v0  ;;  %26555 = vst [vmem:[#allocation18_spill] sm:$0xff] %v23417_v33  ;;  %v8590_v6 = vsel %vm457_vm0, %v23417_v33, 0.0 }
0x1133   : > { %v8486_v14 = vpop.f32.mrf.mxu1 }
0x1134   : > { %26554 = vst [vmem:[#allocation16_spill] sm:$0xff] %v23413_v19  ;;  %v8547_v28 = vadd.f32 %v8486_v14, %v23075_v57  ;;  %v8584_v34 = vsel %vm457_vm0, %v23413_v19, 0.0  ;;  %v23426_v29 = vadd.f32 %v23409_v59, %v8549_v8 }
0x1135   : > { %8585 = vadd.xlane.f32.xlu0 %v8584_v34  ;;  %v18928_v17 = vpop.f32.mrf.mxu1 }
0x1136   : > { %v23423_v21 = vadd.f32 %v23409_v59, %v8547_v28  ;;  %26557 = vst [vmem:[#allocation20_spill] sm:$0xff] %v23426_v29  ;;  %v8552_v0 = vadd.f32 %v18928_v17, %v23100_v63  ;;  %v8593_v23 = vsel %vm457_vm0, %v23426_v29, 0.0 }
0x1137   : > { %v8499_v37 = vpop.f32.mrf.mxu1 }
0x1138   : > { %26556 = vst [vmem:[#allocation19_spill] sm:$0xff] %v23423_v21  ;;  %v8550_v46 = vadd.f32 %v8499_v37, %v23090_v3  ;;  %v8587_v57 = vsel %vm457_vm0, %v23423_v21, 0.0  ;;  %v23440_v63 = vadd.f32 %v23409_v59, %v8552_v0 }
0x1139   : > { %8591 = vadd.xlane.f32.xlu0 %v8590_v6  ;;  %8588 = vadd.xlane.f32.xlu1 %v8587_v57  ;;  %v18929_v18 = vpop.f32.mrf.mxu1 }
0x113a   : > { %v23435_v30 = vadd.f32 %v23409_v59, %v8550_v46  ;;  %26559 = vst [vmem:[#allocation21_spill] sm:$0xff] %v23440_v63  ;;  %v8553_v3 = vadd.f32 %v18929_v18, %v23103_v50  ;;  %v8602_v12 = vsel %vm457_vm0, %v23440_v63, 0.0 }
0x113b   : > { %v8502_v55 = vpop.f32.mrf.mxu1 }
0x113c   : > { %26558 = vst [vmem:[#allocation22_spill] sm:$0xff] %v23435_v30  ;;  %v8551_v49 = vadd.f32 %v8502_v55, %v23097_v22  ;;  %v8596_v42 = vsel %vm457_vm0, %v23435_v30, 0.0  ;;  %v23450_v5 = vadd.f32 %v23409_v59, %v8553_v3 }
0x113d   : > { %8594 = vadd.xlane.f32.xlu1 %v8593_v23  ;;  %8597 = vadd.xlane.f32.xlu0 %v8596_v42 }
0x113e   : > { %v23447_v24 = vadd.f32 %v23409_v59, %v8551_v49  ;;  %26561 = vst [vmem:[#allocation42_spill] sm:$0xff] %v23450_v5  ;;  %v8605_v22 = vsel %vm457_vm0, %v23450_v5, 0.0 }
0x1140   : > { %26560 = vst [vmem:[#allocation24_spill] sm:$0xff] %v23447_v24  ;;  %v8599_v27 = vsel %vm457_vm0, %v23447_v24, 0.0 }
0x1141   : > { %8603 = vadd.xlane.f32.xlu0 %v8602_v12  ;;  %8600 = vadd.xlane.f32.xlu1 %v8599_v27 }
0x1145   : > { %8606 = vadd.xlane.f32.xlu1 %v8605_v22 }
0x117c   : > { %v18932_v50 = vpop.f32.mrf.mxu1 }
0x117d   : > { %v8556_v20 = vadd.f32 %v18932_v50, %v23127_v38 }
0x117e   : > { %v8515_v58 = vpop.f32.mrf.mxu1 }
0x117f   : > { %v8554_v44 = vadd.f32 %v8515_v58, %v23124_v9  ;;  %v23464_v52 = vadd.f32 %v23409_v59, %v8556_v20 }
0x1180   : > { %v18933_v35 = vpop.f32.mrf.mxu1 }
0x1181   : > { %v23461_v4 = vadd.f32 %v23409_v59, %v8554_v44  ;;  %26563 = vst [vmem:[#allocation28_spill] sm:$0xff] %v23464_v52  ;;  %v8557_v15 = vadd.f32 %v18933_v35, %v23137_v36  ;;  %v8614_v47 = vsel %vm457_vm0, %v23464_v52, 0.0 }
0x1182   : > { %v8518_v31 = vpop.f32.mrf.mxu1 }
0x1183   : > { %26562 = vst [vmem:[#allocation38_spill] sm:$0xff] %v23461_v4  ;;  %v8555_v13 = vadd.f32 %v8518_v31, %v23134_v7  ;;  %v8608_v51 = vsel %vm457_vm0, %v23461_v4, 0.0  ;;  %v23474_v9 = vadd.f32 %v23409_v59, %v8557_v15 }
0x1184   : > { %8609 = vadd.xlane.f32.xlu0 %v8608_v51 }
0x1185   : > { %v23471_v38 = vadd.f32 %v23409_v59, %v8555_v13  ;;  %26565 = vst [vmem:[#allocation26_spill] sm:$0xff] %v23474_v9  ;;  %v8617_v7 = vsel %vm457_vm0, %v23474_v9, 0.0 }
0x1187   : > { %26564 = vst [vmem:[#allocation40_spill] sm:$0xff] %v23471_v38  ;;  %v8611_v26 = vsel %vm457_vm0, %v23471_v38, 0.0 }
0x1188   : > { %8615 = vadd.xlane.f32.xlu0 %v8614_v47  ;;  %8612 = vadd.xlane.f32.xlu1 %v8611_v26 }
0x118c   : > { %8618 = vadd.xlane.f32.xlu1 %v8617_v7 }
0x11b5   : > { %v18936_v36 = vpop.f32.mrf.mxu1 }
0x11b6   : > { %v8560_v54 = vadd.f32 %v18936_v36, %v23160_v60 }
0x11b7   : > { %v8531_v62 = vpop.f32.mrf.mxu1 }
0x11b8   : > { %v8558_v25 = vadd.f32 %v8531_v62, %v23154_v48  ;;  %v23488_v61 = vadd.f32 %v23409_v59, %v8560_v54 }
0x11b9   : > { %v18937_v39 = vpop.f32.mrf.mxu1 }
0x11ba   : > { %v23485_v40 = vadd.f32 %v23409_v59, %v8558_v25  ;;  %26567 = vst [vmem:[#allocation30_spill] sm:$0xff] %v23488_v61  ;;  %v8561_v56 = vadd.f32 %v18937_v39, %v23178_v53  ;;  %v8626_v28 = vsel %vm457_vm0, %v23488_v61, 0.0 }
0x11bb   : > { %v8534_v41 = vpop.f32.mrf.mxu1 }
0x11bc   : > { %26566 = vst [vmem:[#allocation23_spill] sm:$0xff] %v23485_v40  ;;  %v8559_v10 = vadd.f32 %v8534_v41, %v23167_v43  ;;  %v8620_v1 = vsel %vm457_vm0, %v23485_v40, 0.0  ;;  %v23498_v14 = vadd.f32 %v23409_v59, %v8561_v56 }
0x11bd   : > { %8621 = vadd.xlane.f32.xlu0 %v8620_v1 }
0x11be   : > { %v23495_v60 = vadd.f32 %v23409_v59, %v8559_v10  ;;  %v8586_v48 = vpop.xlane.xlu0 %8585  ;;  %26569 = vst [vmem:[#allocation31_spill] sm:$0xff] %v23498_v14  ;;  %v8629_v59 = vsel %vm457_vm0, %v23498_v14, 0.0 }
0x11bf   : > { %v8632_v8 = vmul.f32 0.03125, %v8586_v48  ;;  %v19616_v48 = vld [vmem:[%s26294_s3 + $0x18] sm:$0xff]  }
0x11c0   : > { %26568 = vst [vmem:[#allocation45_spill] sm:$0xff] %v23495_v60  ;;  %v8623_v53 = vsel %vm457_vm0, %v23495_v60, 0.0  ;;  %18938 = vmatprep.subr.bf16.mxu0 %v19616_v48 }
0x11c1   : > { %v23505_v43 = vsub.f32 %v23413_v19, %v8632_v8  ;;  %8627 = vadd.xlane.f32.xlu0 %v8626_v28  ;;  %8624 = vadd.xlane.f32.xlu1 %v8623_v53  ;;  %v19617_v8 = vld [vmem:[%s26294_s3 + $0x10] sm:$0xff]  }
0x11c2   : > { %v8592_v34 = vpop.xlane.xlu0 %8591  ;;  %v8589_v17 = vpop.xlane.xlu1 %8588  ;;  %18939 = vmatpush3.bf16.msra.mxu0 %v19616_v48 }
0x11c3   : > { %v8634_v37 = vmul.f32 0.03125, %v8592_v34  ;;  %v8633_v0 = vmul.f32 0.03125, %v8589_v17  ;;  %v8664_v46 = vmul.f32 %v23505_v43, %v23505_v43  ;;  %18940 = vmatprep.subr.bf16.mxu0 %v19617_v8 }
0x11c5   : > { %v23512_v6 = vsub.f32 %v23417_v33, %v8634_v37  ;;  %v23515_v57 = vsub.f32 %v23423_v21, %v8633_v0  ;;  %v8680_v18 = vsel %vm457_vm0, %v8664_v46, 0.0  ;;  %8630 = vadd.xlane.f32.xlu1 %v8629_v59 }
0x11c6   : > { %v8598_v55 = vpop.xlane.xlu0 %8597  ;;  %8681 = vadd.xlane.f32.xlu0 %v8680_v18  ;;  %v8595_v23 = vpop.xlane.xlu1 %8594  ;;  %18941 = vmatpush3.bf16.msra.mxu0 %v19617_v8 }
0x11c7   : > { %v8636_v3 = vmul.f32 0.03125, %v8598_v55  ;;  %v8635_v49 = vmul.f32 0.03125, %v8595_v23  ;;  %v8666_v42 = vmul.f32 %v23512_v6, %v23512_v6  ;;  %v8665_v12 = vmul.f32 %v23515_v57, %v23515_v57 }
0x11c9   : > { %v23523_v27 = vsub.f32 %v23435_v30, %v8636_v3  ;;  %v23526_v22 = vsub.f32 %v23426_v29, %v8635_v49  ;;  %v8686_v50 = vsel %vm457_vm0, %v8666_v42, 0.0  ;;  %v8683_v58 = vsel %vm457_vm0, %v8665_v12, 0.0 }
0x11ca   : > { %v8604_v20 = vpop.xlane.xlu0 %8603  ;;  %8687 = vadd.xlane.f32.xlu0 %v8686_v50  ;;  %8684 = vadd.xlane.f32.xlu1 %v8683_v58  ;;  %v8601_v44 = vpop.xlane.xlu1 %8600 }
0x11cb   : > { %v8638_v35 = vmul.f32 0.03125, %v8604_v20  ;;  %v8637_v31 = vmul.f32 0.03125, %v8601_v44  ;;  %v8668_v15 = vmul.f32 %v23523_v27, %v23523_v27  ;;  %v8667_v13 = vmul.f32 %v23526_v22, %v23526_v22 }
0x11cd   : > { %v23535_v51 = vsub.f32 %v23440_v63, %v8638_v35  ;;  %v23538_v47 = vsub.f32 %v23447_v24, %v8637_v31  ;;  %v8692_v26 = vsel %vm457_vm0, %v8668_v15, 0.0  ;;  %v8689_v7 = vsel %vm457_vm0, %v8667_v13, 0.0 }
0x11ce   : > { %8693 = vadd.xlane.f32.xlu0 %v8692_v26  ;;  %8690 = vadd.xlane.f32.xlu1 %v8689_v7  ;;  %v8607_v36 = vpop.xlane.xlu1 %8606 }
0x11cf   : > { %v8639_v62 = vmul.f32 0.03125, %v8607_v36  ;;  %v8670_v54 = vmul.f32 %v23535_v51, %v23535_v51  ;;  %v8669_v25 = vmul.f32 %v23538_v47, %v23538_v47 }
0x11d1   : > { %v23547_v39 = vsub.f32 %v23450_v5, %v8639_v62  ;;  %v8698_v41 = vsel %vm457_vm0, %v8670_v54, 0.0  ;;  %v8695_v56 = vsel %vm457_vm0, %v8669_v25, 0.0 }
0x11d2   : > { %8699 = vadd.xlane.f32.xlu0 %v8698_v41  ;;  %8696 = vadd.xlane.f32.xlu1 %v8695_v56 }
0x11d3   : > { %v8671_v10 = vmul.f32 %v23547_v39, %v23547_v39 }
0x11d5   : > { %v8701_v1 = vsel %vm457_vm0, %v8671_v10, 0.0 }
0x11d6   : > { %8702 = vadd.xlane.f32.xlu1 %v8701_v1 }
0x120d   : > { %v8610_v28 = vpop.xlane.xlu0 %8609 }
0x120e   : > { %v8640_v53 = vmul.f32 0.03125, %v8610_v28 }
0x1210   : > { %v23561_v34 = vsub.f32 %v23461_v4, %v8640_v53 }
0x1211   : > { %v8616_v17 = vpop.xlane.xlu0 %8615  ;;  %v8613_v37 = vpop.xlane.xlu1 %8612 }
0x1212   : > { %v8642_v0 = vmul.f32 0.03125, %v8616_v17  ;;  %v8641_v46 = vmul.f32 0.03125, %v8613_v37  ;;  %v8672_v59 = vmul.f32 %v23561_v34, %v23561_v34 }
0x1214   : > { %v23566_v18 = vsub.f32 %v23464_v52, %v8642_v0  ;;  %v23569_v55 = vsub.f32 %v23471_v38, %v8641_v46  ;;  %v8704_v23 = vsel %vm457_vm0, %v8672_v59, 0.0 }
0x1215   : > { %8705 = vadd.xlane.f32.xlu0 %v8704_v23  ;;  %v8619_v3 = vpop.xlane.xlu1 %8618 }
0x1216   : > { %v8643_v49 = vmul.f32 0.03125, %v8619_v3  ;;  %v8674_v42 = vmul.f32 %v23566_v18, %v23566_v18  ;;  %v8673_v12 = vmul.f32 %v23569_v55, %v23569_v55 }
0x1218   : > { %v23577_v50 = vsub.f32 %v23474_v9, %v8643_v49  ;;  %v8710_v58 = vsel %vm457_vm0, %v8674_v42, 0.0  ;;  %v8707_v20 = vsel %vm457_vm0, %v8673_v12, 0.0 }
0x1219   : > { %8711 = vadd.xlane.f32.xlu0 %v8710_v58  ;;  %8708 = vadd.xlane.f32.xlu1 %v8707_v20 }
0x121a   : > { %v8675_v44 = vmul.f32 %v23577_v50, %v23577_v50 }
0x121c   : > { %v8713_v35 = vsel %vm457_vm0, %v8675_v44, 0.0 }
0x121d   : > { %8714 = vadd.xlane.f32.xlu1 %v8713_v35 }
0x1246   : > { %v8622_v31 = vpop.xlane.xlu0 %8621 }
0x1247   : > { %v8644_v15 = vmul.f32 0.03125, %v8622_v31 }
0x1249   : > { %v23585_v13 = vsub.f32 %v23485_v40, %v8644_v15 }
0x124a   : > { %v8628_v26 = vpop.xlane.xlu0 %8627  ;;  %v8625_v7 = vpop.xlane.xlu1 %8624 }
0x124b   : > { %v8646_v36 = vmul.f32 0.03125, %v8628_v26  ;;  %v8645_v62 = vmul.f32 0.03125, %v8625_v7  ;;  %v8676_v54 = vmul.f32 %v23585_v13, %v23585_v13 }
0x124d   : > { %v23590_v25 = vsub.f32 %v23488_v61, %v8646_v36  ;;  %v23593_v41 = vsub.f32 %v23495_v60, %v8645_v62  ;;  %v8716_v56 = vsel %vm457_vm0, %v8676_v54, 0.0 }
0x124e   : > { %8717 = vadd.xlane.f32.xlu0 %v8716_v56  ;;  %v8631_v10 = vpop.xlane.xlu1 %8630 }
0x124f   : > { %v8682_v1 = vpop.xlane.xlu0 %8681  ;;  %v8647_v48 = vmul.f32 0.03125, %v8631_v10  ;;  %v8678_v8 = vmul.f32 %v23590_v25, %v23590_v25  ;;  %v8677_v28 = vmul.f32 %v23593_v41, %v23593_v41 }
0x1250   : > { %v8728_v53 = vmul.f32 0.03125, %v8682_v1 }
0x1251   : > { %v23601_v17 = vsub.f32 %v23498_v14, %v8647_v48  ;;  %v8722_v37 = vsel %vm457_vm0, %v8678_v8, 0.0  ;;  %v8719_v0 = vsel %vm457_vm0, %v8677_v28, 0.0  ;;  %v17375_v48 = vld [vmem:[%s26293_s2 + $0x8] sm:$0x3f] }
0x1252   : > { %v8744_v46 = vadd.f32 1e-05, %v8728_v53  ;;  %8723 = vadd.xlane.f32.xlu0 %v8722_v37  ;;  %8720 = vadd.xlane.f32.xlu1 %v8719_v0  ;;  %v26570_v37 = vsub.s32 0, %v26541_v16 }
0x1253   : > { %v8688_v59 = vpop.xlane.xlu0 %8687  ;;  %v8685_v23 = vpop.xlane.xlu1 %8684  ;;  %v8679_v3 = vmul.f32 %v23601_v17, %v23601_v17 }
0x1254   : > { %20012 = vrsqrt.f32 %v8744_v46  ;;  %v8730_v49 = vmul.f32 0.03125, %v8688_v59  ;;  %v8729_v42 = vmul.f32 0.03125, %v8685_v23  ;;  %v23613_v0 = vrot.slane %v17375_v48, %v26570_v37 }
0x1255   : > { %v8725_v12 = vsel %vm457_vm0, %v8679_v3, 0.0 }
0x1256   : > { %v8746_v58 = vadd.f32 1e-05, %v8730_v49  ;;  %v8745_v20 = vadd.f32 1e-05, %v8729_v42  ;;  %8726 = vadd.xlane.f32.xlu1 %v8725_v12  ;;  %v26571_v49 = vsub.s32 1, %v26541_v16  ;;  %v23999_v16 = vld [vmem:[%s20866_s29 + $0x68] sm:$0xff] }
0x1257   : > { %v8694_v44 = vpop.xlane.xlu0 %8693  ;;  %v8691_v35 = vpop.xlane.xlu1 %8690  ;;  %26583 = vst [vmem:[#allocation44_spill] sm:$0xff] %v23999_v16 }
0x1258   : > { %20014 = vrsqrt.f32 %v8746_v58  ;;  %v8732_v31 = vmul.f32 0.03125, %v8694_v44  ;;  %v8731_v15 = vmul.f32 0.03125, %v8691_v35  ;;  %v23618_v42 = vrot.slane %v17375_v48, %v26571_v49 }
0x1259   : > { %20016 = vrsqrt.f32 %v8745_v20 }
0x125a   : > { %v8748_v26 = vadd.f32 1e-05, %v8732_v31  ;;  %v8747_v7 = vadd.f32 1e-05, %v8731_v15 }
0x125b   : > { %v8700_v36 = vpop.xlane.xlu0 %8699  ;;  %v8697_v62 = vpop.xlane.xlu1 %8696 }
0x125c   : > { %20018 = vrsqrt.f32 %v8748_v26  ;;  %v8734_v54 = vmul.f32 0.03125, %v8700_v36  ;;  %v8733_v56 = vmul.f32 0.03125, %v8697_v62 }
0x125d   : > { %20020 = vrsqrt.f32 %v8747_v7 }
0x125e   : > { %v8750_v10 = vadd.f32 1e-05, %v8734_v54  ;;  %v8749_v1 = vadd.f32 1e-05, %v8733_v56 }
0x125f   : > { %v8703_v8 = vpop.xlane.xlu1 %8702 }
0x1260   : > { %20022 = vrsqrt.f32 %v8750_v10  ;;  %v8735_v28 = vmul.f32 0.03125, %v8703_v8 }
0x1261   : > { %v20013_v53 = vpop.eup %20012  ;;  %20024 = vrsqrt.f32 %v8749_v1 }
0x1262   : > { %v8751_v46 = vadd.f32 1e-05, %v8735_v28  ;;  %v8776_v59 = vmul.f32 %v20013_v53, %v23505_v43 }
0x1264   : > { %20026 = vrsqrt.f32 %v8751_v46  ;;  %v8796_v12 = vmul.f32 %v23613_v0, %v8776_v59 }
0x1265   : > { %v20015_v23 = vpop.eup %20014 }
0x1266   : > { %v20017_v3 = vpop.eup %20016  ;;  %v8778_v58 = vmul.f32 %v20015_v23, %v23512_v6  ;;  %v8816_v15 = vadd.f32 %v23618_v42, %v8796_v12 }
0x1267   : > { %v8777_v20 = vmul.f32 %v20017_v3, %v23515_v57 }
0x1268   : > { %v8798_v43 = vmul.f32 %v23613_v0, %v8778_v58 }
0x1269   : > { %v20019_v44 = vpop.eup %20018  ;;  %v8797_v35 = vmul.f32 %v23613_v0, %v8777_v20 }
0x126a   : > { %v20021_v31 = vpop.eup %20020  ;;  %v8780_v36 = vmul.f32 %v20019_v44, %v23523_v27  ;;  %v8818_v10 = vadd.f32 %v23618_v42, %v8798_v43 }
0x126b   : > { %v8779_v26 = vmul.f32 %v20021_v31, %v23526_v22  ;;  %v8817_v7 = vadd.f32 %v23618_v42, %v8797_v35 }
0x126c   : > { %v8800_v22 = vmul.f32 %v23613_v0, %v8780_v36 }
0x126d   : > { %v20023_v62 = vpop.eup %20022  ;;  %v8799_v54 = vmul.f32 %v23613_v0, %v8779_v26  ;;  %v8832_v6 = vpack.c.bf16 %v8817_v7, %v8816_v15 }
0x126e   : > { %v20025_v56 = vpop.eup %20024  ;;  %v8782_v57 = vmul.f32 %v20023_v62, %v23535_v51  ;;  %v8820_v51 = vadd.f32 %v23618_v42, %v8800_v22 }
0x126f   : > { %v8819_v1 = vadd.f32 %v23618_v42, %v8799_v54  ;;  %18942 = vmatprep.mubr.msk.bf16.mxu0 %vm457_vm0, %v8832_v6  ;;  %v8781_v48 = vmul.f32 %v20025_v56, %v23538_v47 }
0x1270   : > { %v8802_v37 = vmul.f32 %v23613_v0, %v8782_v57 }
0x1271   : > { %v20027_v8 = vpop.eup %20026  ;;  %v8833_v28 = vpack.c.bf16 %v8819_v1, %v8818_v10  ;;  %v8801_v27 = vmul.f32 %v23613_v0, %v8781_v48 }
0x1272   : > { %v8783_v53 = vmul.f32 %v20027_v8, %v23547_v39  ;;  %v8822_v47 = vadd.f32 %v23618_v42, %v8802_v37 }
0x1273   : > { %18943 = vmatmul.mubr.msk.bf16.vlgmr.msra.gmra.mxu0 %vm457_vm0, %v8833_v28  ;;  %v8821_v46 = vadd.f32 %v23618_v42, %v8801_v27 }
0x1274   : > { %v8803_v59 = vmul.f32 %v23613_v0, %v8783_v53 }
0x1275   : > { %v8834_v23 = vpack.c.bf16 %v8821_v46, %v8820_v51 }
0x1276   : > { %v8823_v3 = vadd.f32 %v23618_v42, %v8803_v59 }
0x1277   : > { %18946 = vmatprep.mubr.msk.bf16.mxu0 %vm457_vm0, %v8834_v23 }
0x1278   : > { %v8835_v49 = vpack.c.bf16 %v8823_v3, %v8822_v47 }
0x127b   : > { %18947 = vmatmul.mubr.msk.bf16.gmra.mxu0 %vm457_vm0, %v8835_v49 }
0x129e   : > { %v8706_v39 = vpop.xlane.xlu0 %8705 }
0x129f   : > { %v8736_v12 = vmul.f32 0.03125, %v8706_v39 }
0x12a1   : > { %v8752_v58 = vadd.f32 1e-05, %v8736_v12 }
0x12a2   : > { %v8712_v20 = vpop.xlane.xlu0 %8711  ;;  %v8709_v44 = vpop.xlane.xlu1 %8708 }
0x12a3   : > { %20028 = vrsqrt.f32 %v8752_v58  ;;  %v8738_v35 = vmul.f32 0.03125, %v8712_v20  ;;  %v8737_v31 = vmul.f32 0.03125, %v8709_v44 }
0x12a5   : > { %v8754_v15 = vadd.f32 1e-05, %v8738_v35  ;;  %v8753_v43 = vadd.f32 1e-05, %v8737_v31 }
0x12a6   : > { %v8715_v26 = vpop.xlane.xlu1 %8714 }
0x12a7   : > { %20030 = vrsqrt.f32 %v8754_v15  ;;  %v8739_v7 = vmul.f32 0.03125, %v8715_v26 }
0x12a8   : > { %20032 = vrsqrt.f32 %v8753_v43 }
0x12a9   : > { %v8755_v36 = vadd.f32 1e-05, %v8739_v7 }
0x12ab   : > { %20034 = vrsqrt.f32 %v8755_v36 }
0x12b0   : > { %v20029_v62 = vpop.eup %20028 }
0x12b1   : > { %v8784_v54 = vmul.f32 %v20029_v62, %v23561_v34 }
0x12b3   : > { %v8804_v1 = vmul.f32 %v23613_v0, %v8784_v54 }
0x12b4   : > { %v20031_v6 = vpop.eup %20030 }
0x12b5   : > { %v20033_v56 = vpop.eup %20032  ;;  %v8786_v57 = vmul.f32 %v20031_v6, %v23566_v18  ;;  %v8824_v27 = vadd.f32 %v23618_v42, %v8804_v1 }
0x12b6   : > { %v8785_v10 = vmul.f32 %v20033_v56, %v23569_v55 }
0x12b7   : > { %v8806_v28 = vmul.f32 %v23613_v0, %v8786_v57 }
0x12b8   : > { %v20035_v48 = vpop.eup %20034  ;;  %v8805_v22 = vmul.f32 %v23613_v0, %v8785_v10 }
0x12b9   : > { %v8787_v8 = vmul.f32 %v20035_v48, %v23577_v50  ;;  %v8826_v18 = vadd.f32 %v23618_v42, %v8806_v28 }
0x12ba   : > { %v8825_v53 = vadd.f32 %v23618_v42, %v8805_v22 }
0x12bb   : > { %v8807_v34 = vmul.f32 %v23613_v0, %v8787_v8 }
0x12bc   : > { %v8836_v37 = vpack.c.bf16 %v8825_v53, %v8824_v27 }
0x12bd   : > { %v8827_v55 = vadd.f32 %v23618_v42, %v8807_v34 }
0x12be   : > { %18950 = vmatprep.mubr.msk.bf16.mxu0 %vm457_vm0, %v8836_v37 }
0x12bf   : > { %v8837_v51 = vpack.c.bf16 %v8827_v55, %v8826_v18 }
0x12c1   : > { %18951 = vmatmul.mubr.msk.bf16.gmra.mxu0 %vm457_vm0, %v8837_v51 }
0x12d7   : > { %v8718_v46 = vpop.xlane.xlu0 %8717 }
0x12d8   : > { %v8740_v50 = vmul.f32 0.03125, %v8718_v46 }
0x12da   : > { %v8756_v59 = vadd.f32 1e-05, %v8740_v50 }
0x12db   : > { %v8724_v23 = vpop.xlane.xlu0 %8723  ;;  %v8721_v47 = vpop.xlane.xlu1 %8720 }
0x12dc   : > { %20036 = vrsqrt.f32 %v8756_v59  ;;  %v8742_v3 = vmul.f32 0.03125, %v8724_v23  ;;  %v8741_v49 = vmul.f32 0.03125, %v8721_v47 }
0x12de   : > { %v8758_v39 = vadd.f32 1e-05, %v8742_v3  ;;  %v8757_v12 = vadd.f32 1e-05, %v8741_v49 }
0x12df   : > { %v8727_v58 = vpop.xlane.xlu1 %8726 }
0x12e0   : > { %20038 = vrsqrt.f32 %v8758_v39  ;;  %v8743_v20 = vmul.f32 0.03125, %v8727_v58 }
0x12e1   : > { %20040 = vrsqrt.f32 %v8757_v12 }
0x12e2   : > { %v8759_v44 = vadd.f32 1e-05, %v8743_v20 }
0x12e4   : > { %20042 = vrsqrt.f32 %v8759_v44 }
0x12e9   : > { %v20037_v35 = vpop.eup %20036 }
0x12ea   : > { %v8788_v31 = vmul.f32 %v20037_v35, %v23585_v13 }
0x12ec   : > { %v8808_v36 = vmul.f32 %v23613_v0, %v8788_v31 }
0x12ed   : > { %v20039_v15 = vpop.eup %20038 }
0x12ee   : > { %v20041_v43 = vpop.eup %20040  ;;  %v8790_v26 = vmul.f32 %v20039_v15, %v23590_v25  ;;  %v8828_v57 = vadd.f32 %v23618_v42, %v8808_v36 }
0x12ef   : > { %v8789_v7 = vmul.f32 %v20041_v43, %v23593_v41 }
0x12f0   : > { %v8810_v56 = vmul.f32 %v23613_v0, %v8790_v26 }
0x12f1   : > { %v20043_v62 = vpop.eup %20042  ;;  %v8809_v54 = vmul.f32 %v23613_v0, %v8789_v7 }
0x12f2   : > { %v8791_v6 = vmul.f32 %v20043_v62, %v23601_v17  ;;  %v8830_v25 = vadd.f32 %v23618_v42, %v8810_v56  ;;  %v23678_v17 = vld [vmem:[%s26295_s4 + $0x1] ss:$0 sm:$0xff] }
0x12f3   : > { %v8829_v10 = vadd.f32 %v23618_v42, %v8809_v54 }
0x12f4   : > { %v8811_v13 = vmul.f32 %v23613_v0, %v8791_v6 }
0x12f5   : > { %v8838_v1 = vpack.c.bf16 %v8829_v10, %v8828_v57 }
0x12f6   : > { %v8831_v41 = vadd.f32 %v23618_v42, %v8811_v13 }
0x12f7   : > { %18954 = vmatprep.mubr.msk.bf16.mxu0 %vm457_vm0, %v8838_v1 }
0x12f8   : > { %v8839_v48 = vpack.c.bf16 %v8831_v41, %v8830_v25 }
0x12fa   : > { %18955 = vmatmul.mubr.msk.bf16.gmra.mxu0 %vm457_vm0, %v8839_v48 }
0x1333   : > { %v18944_v22 = vpop.f32.mrf.mxu0 }
0x1334   : > { %v23681_v8 = vadd.f32 %v18944_v22, %v23678_v17 }
0x1335   : > { %v8923_v0 = vpop.f32.mrf.mxu0 }
0x1336   : > { %v23684_v28 = vadd.f32 %v23678_v17, %v8923_v0  ;;  %18969 = vmatprep.mubr.msk.f32.mxu0 %vm865_vm1, %v23681_v8 }
0x1337   : > { %v18945_v42 = vpop.f32.mrf.mxu0 }
0x1338   : > { %v23689_v27 = vadd.f32 %v18945_v42, %v23678_v17  ;;  %18962 = vmatprep.mubr.msk.f32.mxu1 %vm865_vm1, %v23684_v28 }
0x1339   : > { %v8926_v53 = vpop.f32.mrf.mxu0 }
0x133a   : > { %v23694_v34 = vadd.f32 %v23678_v17, %v8926_v53  ;;  %9079 = vrot.lane.b32.xlu1 %v23689_v27, %s20626_s15 }
0x133b   : > { %v18948_v37 = vpop.f32.mrf.mxu0 }
0x133c   : > { %8990 = vrot.lane.b32.xlu0 %v23694_v34, %s20626_s15  ;;  %v23718_v23 = vadd.f32 %v18948_v37, %v23678_v17 }
0x133d   : > { %v8939_v18 = vpop.f32.mrf.mxu0 }
0x133e   : > { %8988 = vrot.lane.b32.xlu1 %v23684_v28, %s20626_s15  ;;  %v23713_v59 = vadd.f32 %v23678_v17, %v8939_v18 }
0x133f   : > { %v18949_v55 = vpop.f32.mrf.mxu0 }
0x1340   : > { %v23708_v50 = vadd.f32 %v18949_v55, %v23678_v17 }
0x1341   : > { %v8942_v51 = vpop.f32.mrf.mxu0 }
0x1342   : > { %v23703_v46 = vadd.f32 %v23678_v17, %v8942_v51  ;;  %9077 = vrot.lane.b32.xlu1 %v23681_v8, %s20626_s15 }
0x1344   : > { %9168 = vrot.lane.b32.xlu0 %v23703_v46, %s20626_s15 }
0x1346   : > { %9257 = vrot.lane.b32.xlu1 %v23708_v50, %s20626_s15 }
0x1348   : > { %9166 = vrot.lane.b32.xlu0 %v23713_v59, %s20626_s15 }
0x134a   : > { %9255 = vrot.lane.b32.xlu1 %v23718_v23, %s20626_s15 }
0x1381   : > { %v18952_v47 = vpop.f32.mrf.mxu0 }
0x1382   : > { %v23733_v20 = vadd.f32 %v18952_v47, %v23678_v17 }
0x1383   : > { %v8955_v3 = vpop.f32.mrf.mxu0 }
0x1384   : > { %v23738_v44 = vadd.f32 %v23678_v17, %v8955_v3 }
0x1385   : > { %v18953_v49 = vpop.f32.mrf.mxu0 }
0x1386   : > { %v23725_v39 = vadd.f32 %v18953_v49, %v23678_v17 }
0x1387   : > { %v8958_v12 = vpop.f32.mrf.mxu0 }
0x1388   : > { %26572 = vst [vmem:[#allocation46_spill] sm:$0xff] %v23725_v39  ;;  %v23728_v58 = vadd.f32 %v23678_v17, %v8958_v12  ;;  %9435 = vrot.lane.b32.xlu1 %v23725_v39, %s20626_s15 }
0x138a   : > { %9346 = vrot.lane.b32.xlu0 %v23728_v58, %s20626_s15 }
0x138c   : > { %9433 = vrot.lane.b32.xlu1 %v23733_v20, %s20626_s15 }
0x138e   : > { %9344 = vrot.lane.b32.xlu0 %v23738_v44, %s20626_s15 }
0x13ac   : > { %v9080_v35 = vpop.permute.xlu1 %9079 }
0x13ad   : > { %18965 = vmatprep.subr.msk.mxu0 %vm865_vm1, %v9080_v35 }
0x13ae   : > { %v8991_v31 = vpop.permute.xlu0 %8990  ;;  %18966 = vmatpush3.xpose.msk.msra.mxu0 %vm865_vm1, %v9080_v35  ;;  %v23863_v35 = vld [vmem:[%s20866_s29 + $0x8] sm:$0xff] }
0x13af   : > { %18958 = vmatprep.subr.msk.mxu1 %vm865_vm1, %v8991_v31 }
0x13b0   : > { %18959 = vmatpush3.xpose.msk.msra.mxu1 %vm865_vm1, %v8991_v31  ;;  %v8989_v15 = vpop.permute.xlu1 %8988 }
0x13b1   : > { %18960 = vmatprep.subr.msk.mxu1 %vm865_vm1, %v8989_v15 }
0x13b4   : > { %18961 = vmatpush3.xpose.msk.msra.mxu1 %vm865_vm1, %v8989_v15  ;;  %v9078_v43 = vpop.permute.xlu1 %9077 }
0x13b5   : > { %18967 = vmatprep.subr.msk.mxu0 %vm865_vm1, %v9078_v43 }
0x13b6   : > { %v9169_v26 = vpop.permute.xlu0 %9168  ;;  %18968 = vmatpush3.xpose.msk.msra.mxu0 %vm865_vm1, %v9078_v43  ;;  %v23867_v43 = vld [vmem:[%s20866_s29 + $0x18] sm:$0xff] }
0x13b7   : > { %18963 = vmatmul.mubr.msk.f32.vlgmr.msra.gmra.mxu1 %vm865_vm1, %v23694_v34  ;;  %18972 = vmatprep.subr.msk.mxu1 %vm865_vm1, %v9169_v26 }
0x13b8   : > { %18973 = vmatpush3.xpose.msk.msra.mxu1 %vm865_vm1, %v9169_v26  ;;  %18976 = vmatprep.mubr.msk.f32.mxu1 %vm865_vm1, %v23713_v59  ;;  %v9258_v7 = vpop.permute.xlu1 %9257 }
0x13b9   : > { %18970 = vmatmul.mubr.msk.f32.vlgmr.msra.gmra.mxu0 %vm865_vm1, %v23689_v27  ;;  %18979 = vmatprep.subr.msk.mxu0 %vm865_vm1, %v9258_v7 }
0x13ba   : > { %v9167_v36 = vpop.permute.xlu0 %9166  ;;  %18980 = vmatpush3.xpose.msk.msra.mxu0 %vm865_vm1, %v9258_v7  ;;  %18983 = vmatprep.mubr.msk.f32.mxu0 %vm865_vm1, %v23718_v23  ;;  %v18956_v62 = vpop.f32.mrf.mxu0 }
0x13bb   : > { %18974 = vmatprep.subr.msk.mxu1 %vm865_vm1, %v9167_v36  ;;  %v23785_v1 = vadd.f32 %v18956_v62, %v23678_v17  ;;  %v23872_v62 = vld [vmem:[%s20866_s29 + $0x10] sm:$0xff] }
0x13bc   : > { %18975 = vmatpush3.xpose.msk.msra.mxu1 %vm865_vm1, %v9167_v36  ;;  %v9256_v54 = vpop.permute.xlu1 %9255  ;;  %v8971_v6 = vpop.f32.mrf.mxu0 }
0x13bd   : > { %18981 = vmatprep.subr.msk.mxu0 %vm865_vm1, %v9256_v54  ;;  %v23790_v25 = vadd.f32 %v23678_v17, %v8971_v6 }
0x13be   : > { %18982 = vmatpush3.xpose.msk.msra.mxu0 %vm865_vm1, %v9256_v54  ;;  %v18957_v56 = vpop.f32.mrf.mxu0 }
0x13bf   : > { %18977 = vmatmul.mubr.msk.f32.vlgmr.msra.gmra.mxu1 %vm865_vm1, %v23703_v46  ;;  %v23771_v57 = vadd.f32 %v18957_v56, %v23678_v17 }
0x13c0   : > { %18990 = vmatprep.mubr.msk.f32.mxu1 %vm865_vm1, %v23738_v44  ;;  %v8974_v10 = vpop.f32.mrf.mxu0 }
0x13c1   : > { %18984 = vmatmul.mubr.msk.f32.vlgmr.msra.gmra.mxu0 %vm865_vm1, %v23708_v50  ;;  %v23778_v13 = vadd.f32 %v23678_v17, %v8974_v10  ;;  %9613 = vrot.lane.b32.xlu1 %v23771_v57, %s20626_s15  ;;  %v23877_v10 = vld [vmem:[%s20866_s29] sm:$0xff] }
0x13c2   : > { %18997 = vmatprep.mubr.msk.f32.mxu0 %vm865_vm1, %v23733_v20 }
0x13c3   : > { %9524 = vrot.lane.b32.xlu0 %v23778_v13, %s20626_s15 }
0x13c5   : > { %9611 = vrot.lane.b32.xlu1 %v23785_v1, %s20626_s15 }
0x13c7   : > { %9522 = vrot.lane.b32.xlu0 %v23790_v25, %s20626_s15  ;;  %s26602_s15 = smov 80  }
0x13c9   : > { %9874 = vrot.lane.b32.xlu1 %v23684_v28, %s20627_s20 }
0x13cb   : > { %9876 = vrot.lane.b32.xlu0 %v23694_v34, %s20627_s20 }
0x13cd   : > { %9963 = vrot.lane.b32.xlu1 %v23689_v27, %s20627_s20 }
0x13cf   : > { %10050 = vrot.lane.b32.xlu0 %v23703_v46, %s20627_s20 }
0x13d1   : > { %9961 = vrot.lane.b32.xlu1 %v23681_v8, %s20627_s20 }
0x13d3   : > { %10048 = vrot.lane.b32.xlu0 %v23713_v59, %s20627_s20 }
0x13d5   : > { %10137 = vrot.lane.b32.xlu1 %v23708_v50, %s20627_s20 }
0x13d7   : > { %10224 = vrot.lane.b32.xlu0 %v23728_v58, %s20627_s20 }
0x13d9   : > { %10135 = vrot.lane.b32.xlu1 %v23718_v23, %s20627_s20 }
0x13db   : > { %10222 = vrot.lane.b32.xlu0 %v23738_v44, %s20627_s20 }
0x13dd   : > { %10311 = vrot.lane.b32.xlu1 %v23725_v39, %s20627_s20 }
0x13df   : > { %10396 = vrot.lane.b32.xlu0 %v23790_v25, %s20627_s20 }
0x13e1   : > { %10309 = vrot.lane.b32.xlu1 %v23733_v20, %s20627_s20 }
0x13e3   : > { %10398 = vrot.lane.b32.xlu0 %v23778_v13, %s20627_s20 }
0x13e5   : > { %10485 = vrot.lane.b32.xlu1 %v23771_v57, %s20627_s20 }
0x13e9   : > { %10483 = vrot.lane.b32.xlu1 %v23785_v1, %s20627_s20  ;;  %s26603_s20 = smov 112  }
0x13fa   : > { %v9436_v41 = vpop.permute.xlu1 %9435 }
0x13fb   : > { %18993 = vmatprep.subr.msk.mxu0 %vm865_vm1, %v9436_v41 }
0x13fc   : > { %v9347_v48 = vpop.permute.xlu0 %9346  ;;  %18994 = vmatpush3.xpose.msk.msra.mxu0 %vm865_vm1, %v9436_v41 }
0x13fd   : > { %18986 = vmatprep.subr.msk.mxu1 %vm865_vm1, %v9347_v48 }
0x13fe   : > { %18987 = vmatpush3.xpose.msk.msra.mxu1 %vm865_vm1, %v9347_v48  ;;  %v9434_v17 = vpop.permute.xlu1 %9433 }
0x13ff   : > { %18995 = vmatprep.subr.msk.mxu0 %vm865_vm1, %v9434_v17 }
0x1400   : > { %v9345_v22 = vpop.permute.xlu0 %9344  ;;  %18996 = vmatpush3.xpose.msk.msra.mxu0 %vm865_vm1, %v9434_v17 }
0x1401   : > { %18988 = vmatprep.subr.msk.mxu1 %vm865_vm1, %v9345_v22 }
0x1402   : > { %18989 = vmatpush3.xpose.msk.msra.mxu1 %vm865_vm1, %v9345_v22 }
0x1403   : > { %18998 = vmatmul.mubr.msk.f32.vlgmr.msra.gmra.mxu0 %vm865_vm1, %v23725_v39 }
0x1404   : > { %19011 = vmatprep.mubr.msk.f32.mxu0 %vm865_vm1, %v23785_v1 }
0x1405   : > { %18991 = vmatmul.mubr.msk.f32.vlgmr.msra.gmra.mxu1 %vm865_vm1, %v23728_v58 }
0x1406   : > { %19004 = vmatprep.mubr.msk.f32.mxu1 %vm865_vm1, %v23790_v25 }
0x1433   : > { %v9614_v0 = vpop.permute.xlu1 %9613 }
0x1434   : > { %19007 = vmatprep.subr.msk.mxu0 %vm865_vm1, %v9614_v0 }
0x1435   : > { %v9525_v42 = vpop.permute.xlu0 %9524  ;;  %19008 = vmatpush3.xpose.msk.msra.mxu0 %vm865_vm1, %v9614_v0  ;;  %v23882_v0 = vld [vmem:[%s20866_s29 + $0x38] sm:$0xff] }
0x1436   : > { %19000 = vmatprep.subr.msk.mxu1 %vm865_vm1, %v9525_v42  ;;  %26573 = vst [vmem:[#allocation33_spill] sm:$0xff] %v23882_v0 }
0x1437   : > { %19001 = vmatpush3.xpose.msk.msra.mxu1 %vm865_vm1, %v9525_v42  ;;  %v9612_v53 = vpop.permute.xlu1 %9611 }
0x1438   : > { %19009 = vmatprep.subr.msk.mxu0 %vm865_vm1, %v9612_v53 }
0x1439   : > { %v9523_v37 = vpop.permute.xlu0 %9522  ;;  %19010 = vmatpush3.xpose.msk.msra.mxu0 %vm865_vm1, %v9612_v53 }
0x143a   : > { %19002 = vmatprep.subr.msk.mxu1 %vm865_vm1, %v9523_v37 }
0x143b   : > { %19003 = vmatpush3.xpose.msk.msra.mxu1 %vm865_vm1, %v9523_v37  ;;  %v9875_v18 = vpop.permute.xlu1 %9874  ;;  %v23886_v37 = vld [vmem:[%s20866_s29 + $0x28] sm:$0xff] }
0x143c   : > { %19012 = vmatmul.mubr.msk.f32.vlgmr.msra.gmra.mxu0 %vm865_vm1, %v23771_v57  ;;  %26574 = vst [vmem:[#allocation48_spill] sm:$0xff] %v23886_v37 }
0x143d   : > { %v9877_v55 = vpop.permute.xlu0 %9876 }
0x143e   : > { %19005 = vmatmul.mubr.msk.f32.vlgmr.msra.gmra.mxu1 %vm865_vm1, %v23778_v13  ;;  %19014 = vmatprep.subr.mxu1 %v9877_v55 }
0x143f   : > { %19015 = vmatpush3.msra.mxu1 %v9877_v55  ;;  %v23856_v51 = vpop.permute.xlu1 %9963  ;;  %v23890_v55 = vld [vmem:[%s20866_s29 + $0x30] sm:$0xff] }
0x1440   : > { %19016 = vmatprep.subr.mxu1 %v9875_v18  ;;  %26575 = vst [vmem:[#allocation49_spill] sm:$0xff] %v23890_v55 }
0x1441   : > { %v10051_v47 = vpop.permute.xlu0 %10050  ;;  %19017 = vmatpush3.msra.mxu1 %v9875_v18 }
0x1442   : > { %19021 = vmatprep.subr.mxu1 %v23856_v51  ;;  %19028 = vmatprep.subr.mxu0 %v10051_v47 }
0x1443   : > { %19029 = vmatpush3.msra.mxu0 %v10051_v47 }
0x1445   : > { %v10049_v3 = vpop.permute.xlu0 %10048 }
0x1446   : > { %19030 = vmatprep.subr.mxu0 %v10049_v3 }
0x1447   : > { %19031 = vmatpush3.msra.mxu0 %v10049_v3 }
0x1449   : > { %v23859_v49 = vpop.permute.xlu0 %10224 }
0x144a   : > { %19042 = vmatprep.subr.mxu0 %v23859_v49 }
0x1477   : > { %v18964_v12 = vpop.f32.mrf.mxu1 }
0x1478   : > { %v9072_v31 = vadd.f32 %v23863_v35, %v18964_v12 }
0x1479   : > { %v18971_v15 = vpop.f32.mrf.mxu0  ;;  %v9066_v56 = vpop.f32.mrf.mxu1 }
0x147a   : > { %v9161_v26 = vadd.f32 %v23867_v43, %v18971_v15  ;;  %v9701_v7 = vsel %vm1572_vm2, %v9072_v31, -inf  ;;  %v9067_v41 = vadd.f32 %v23877_v10, %v9066_v56 }
0x147b   : > { %9702 = vmax.xlane.f32.xlu1 %v9701_v7  ;;  %v9155_v36 = vpop.f32.mrf.mxu0  ;;  %v23896_v7 = vld [vmem:[%s20866_s29 + $0x20] sm:$0xff] }
0x147c   : > { %v9156_v54 = vadd.f32 %v23872_v62, %v9155_v36  ;;  %v9707_v6 = vsel %vm1572_vm2, %v9161_v26, -inf  ;;  %v9698_v3 = vsel %vm1572_vm2, %v9067_v41, -inf  ;;  %26576 = vst [vmem:[#allocation50_spill] sm:$0xff] %v23896_v7 }
0x147d   : > { %9708 = vmax.xlane.f32.xlu0 %v9707_v6 }
0x147e   : > { %v9704_v48 = vsel %vm1572_vm2, %v9156_v54, -inf }
0x147f   : > { %v18978_v17 = vpop.f32.mrf.mxu1 }
0x1480   : > { %v9250_v18 = vadd.f32 %v23886_v37, %v18978_v17  ;;  %v23902_v17 = vpop.permute.xlu1 %9961 }
0x1481   : > { %9705 = vmax.xlane.f32.xlu0 %v9704_v48  ;;  %v18985_v22 = vpop.f32.mrf.mxu0  ;;  %v9244_v15 = vpop.f32.mrf.mxu1 }
0x1482   : > { %v9339_v42 = vadd.f32 %v23882_v0, %v18985_v22  ;;  %v9245_v36 = vadd.f32 %v23896_v7, %v9244_v15  ;;  %v9713_v6 = vsel %vm1572_vm2, %v9250_v18, -inf  ;;  %v23912_v15 = vpop.permute.xlu0 %10222 }
0x1483   : > { %v9333_v53 = vpop.f32.mrf.mxu0 }
0x1484   : > { %v9334_v47 = vadd.f32 %v23890_v55, %v9333_v53  ;;  %v9719_v12 = vsel %vm1572_vm2, %v9339_v42, -inf  ;;  %v9710_v48 = vsel %vm1572_vm2, %v9245_v36, -inf  ;;  %v23904_v22 = vpop.permute.xlu1 %10137 }
0x1485   : > { %9699 = vmax.xlane.f32.xlu0 %v9698_v3  ;;  %9720 = vmax.xlane.f32.xlu1 %v9719_v12 }
0x1486   : > { %v9716_v56 = vsel %vm1572_vm2, %v9334_v47, -inf  ;;  %v23916_v2 = vpop.permute.xlu0 %10396 }
0x1488   : > { %v23906_v53 = vpop.permute.xlu1 %10135 }
0x1489   : > { %9714 = vmax.xlane.f32.xlu1 %v9713_v6  ;;  %9717 = vmax.xlane.f32.xlu0 %v9716_v56 }
0x148a   : > { %v23920_v56 = vpop.permute.xlu0 %10398 }
0x148c   : > { %v23908_v3 = vpop.permute.xlu1 %10311 }
0x148d   : > { %9711 = vmax.xlane.f32.xlu0 %v9710_v48 }
0x1490   : > { %v23910_v12 = vpop.permute.xlu1 %10309 }
0x1494   : > { %v23914_v45 = vpop.permute.xlu1 %10485 }
0x1498   : > { %v23918_v6 = vpop.permute.xlu1 %10483 }
0x1504   : > { %v9703_v48 = vpop.xlane.xlu1 %9702 }
0x1505   : > { %v9747_v11 = vsub.f32 %v9072_v31, %v9703_v48 }
0x1506   : > { %v9709_v32 = vpop.xlane.xlu0 %9708 }
0x1507   : > { %v9749_v60 = vsub.f32 %v9161_v26, %v9709_v32  ;;  %v9764_v14 = vmul.f32 1.442695, %v9747_v11 }
0x1509   : > { %v9768_v40 = vmul.f32 1.442695, %v9749_v60 }
0x150a   : > { %v9706_v61 = vpop.xlane.xlu0 %9705 }
0x150b   : > { %20044 = vpow2.f32 %v9768_v40  ;;  %v9748_v38 = vsub.f32 %v9156_v54, %v9706_v61 }
0x150c   : > { %20046 = vpow2.f32 %v9764_v14 }
0x150d   : > { %v9766_v9 = vmul.f32 1.442695, %v9748_v38 }
0x150e   : > { %v9700_v4 = vpop.xlane.xlu0 %9699  ;;  %v9721_v52 = vpop.xlane.xlu1 %9720 }
0x150f   : > { %20048 = vpow2.f32 %v9766_v9  ;;  %v9746_v24 = vsub.f32 %v9067_v41, %v9700_v4  ;;  %v9753_v5 = vsub.f32 %v9339_v42, %v9721_v52  ;;  %v18999_v9 = vpop.f32.mrf.mxu0  ;;  %v23949_v42 = vld [vmem:[%s20866_s29 + $0x58] sm:$0xff] }
0x1510   : > { %26577 = vst [vmem:[#allocation51_spill] sm:$0xff] %v23949_v42 }
0x1511   : > { %v9762_v63 = vmul.f32 1.442695, %v9746_v24  ;;  %v9776_v30 = vmul.f32 1.442695, %v9753_v5 }
0x1512   : > { %v9718_v21 = vpop.xlane.xlu0 %9717  ;;  %v9715_v29 = vpop.xlane.xlu1 %9714 }
0x1513   : > { %20050 = vpow2.f32 %v9762_v63  ;;  %v9752_v31 = vsub.f32 %v9334_v47, %v9718_v21  ;;  %v9751_v48 = vsub.f32 %v9250_v18, %v9715_v29  ;;  %v23952_v18 = vadd.f32 %v23949_v42, %v18999_v9  ;;  %v18992_v47 = vpop.f32.mrf.mxu1 }
0x1514   : > { %20052 = vpow2.f32 %v9776_v30 }
0x1515   : > { %v9774_v32 = vmul.f32 1.442695, %v9752_v31  ;;  %v9772_v11 = vmul.f32 1.442695, %v9751_v48 }
0x1516   : > { %v9712_v60 = vpop.xlane.xlu0 %9711 }
0x1517   : > { %20054 = vpow2.f32 %v9774_v32  ;;  %v9750_v40 = vsub.f32 %v9245_v36, %v9712_v60  ;;  %v9511_v36 = vpop.f32.mrf.mxu0  ;;  %v23959_v32 = vld [vmem:[%s20866_s29 + $0x50] sm:$0xff] }
0x1518   : > { %v23922_v61 = vpop.eup %20044  ;;  %20056 = vpow2.f32 %v9772_v11  ;;  %26578 = vst [vmem:[#allocation34_spill] sm:$0xff] %v23959_v32  ;;  %v23962_v11 = vadd.f32 %v23959_v32, %v9511_v36 }
0x1519   : > { %v9770_v38 = vmul.f32 1.442695, %v9750_v40  ;;  %v9803_v4 = vsel %vm1572_vm2, %v23922_v61, 0.0  ;;  %v23926_v24 = vpop.eup %20046  ;;  %v23967_v40 = vld [vmem:[%s20866_s29 + $0x48] sm:$0xff] }
0x151a   : > { %9804 = vadd.xlane.f32.xlu1 %v9803_v4  ;;  %v9797_v30 = vsel %vm1572_vm2, %v23926_v24, 0.0  ;;  %26579 = vst [vmem:[#allocation43_spill] sm:$0xff] %v23967_v40  ;;  %v9422_v4 = vpop.f32.mrf.mxu1 }
0x151b   : > { %20058 = vpow2.f32 %v9770_v38  ;;  %v23970_v38 = vadd.f32 %v23967_v40, %v18992_v47 }
0x151c   : > { %v23928_v21 = vpop.eup %20048  ;;  %v19006_v36 = vpop.f32.mrf.mxu1 }
0x151d   : > { %v9800_v29 = vsel %vm1572_vm2, %v23928_v21, 0.0 }
0x151e   : > { %9801 = vadd.xlane.f32.xlu0 %v9800_v29  ;;  %9798 = vadd.xlane.f32.xlu1 %v9797_v30  ;;  %v19013_v29 = vpop.f32.mrf.mxu0  ;;  %v9731_v30 = vsel %vm1572_vm2, %v23952_v18, -inf  ;;  %v9600_v33 = vpop.f32.mrf.mxu1 }
0x1520   : > { %v23934_v63 = vpop.eup %20050 }
0x1521   : > { %v23936_v5 = vpop.eup %20052  ;;  %v9794_v52 = vsel %vm1572_vm2, %v23934_v63, 0.0 }
0x1522   : > { %9795 = vadd.xlane.f32.xlu0 %v9794_v52  ;;  %v9815_v14 = vsel %vm1572_vm2, %v23936_v5, 0.0  ;;  %v23975_v52 = vld [vmem:[%s20866_s29 + $0x40] sm:$0xff] }
0x1523   : > { %9816 = vadd.xlane.f32.xlu1 %v9815_v14  ;;  %26580 = vst [vmem:[#allocation35_spill] sm:$0xff] %v23975_v52  ;;  %v23978_v9 = vadd.f32 %v23975_v52, %v9422_v4  ;;  %v9728_v14 = vsel %vm1572_vm2, %v23962_v11, -inf }
0x1524   : > { %v23942_v26 = vpop.eup %20054 }
0x1525   : > { %v23944_v54 = vpop.eup %20056  ;;  %v9812_v41 = vsel %vm1572_vm2, %v23942_v26, 0.0  ;;  %v9722_v19 = vsel %vm1572_vm2, %v23978_v9, -inf }
0x1526   : > { %9813 = vadd.xlane.f32.xlu0 %v9812_v41  ;;  %v9809_v31 = vsel %vm1572_vm2, %v23944_v54, 0.0  ;;  %v23983_v41 = vld [vmem:[%s20866_s29 + $0x78] sm:$0xff] }
0x1527   : > { %9810 = vadd.xlane.f32.xlu1 %v9809_v31  ;;  %26581 = vst [vmem:[#allocation41_spill] sm:$0xff] %v23983_v41  ;;  %v23986_v47 = vadd.f32 %v23983_v41, %v19013_v29  ;;  %v9689_v31 = vpop.f32.mrf.mxu0  ;;  %v24002_v29 = vadd.f32 %v23999_v16, %v19006_v36 }
0x1528   : > { %v23956_v48 = vpop.eup %20058 }
0x1529   : > { %v9806_v60 = vsel %vm1572_vm2, %v23956_v48, 0.0 }
0x152a   : > { %9807 = vadd.xlane.f32.xlu0 %v9806_v60  ;;  %v9725_v60 = vsel %vm1572_vm2, %v23970_v38, -inf }
0x152b   : > { %9732 = vmax.xlane.f32.xlu1 %v9731_v30  ;;  %v23991_v30 = vld [vmem:[%s20866_s29 + $0x70] sm:$0xff] }
0x152c   : > { %26582 = vst [vmem:[#allocation37_spill] sm:$0xff] %v23991_v30  ;;  %v23994_v4 = vadd.f32 %v23991_v30, %v9689_v31  ;;  %v9737_v30 = vsel %vm1572_vm2, %v24002_v29, -inf }
0x152e   : > { %9729 = vmax.xlane.f32.xlu0 %v9728_v14  ;;  %v9743_v14 = vsel %vm1572_vm2, %v23986_v47, -inf  ;;  %v9740_v31 = vsel %vm1572_vm2, %v23994_v4, -inf }
0x152f   : > { %9726 = vmax.xlane.f32.xlu1 %v9725_v60  ;;  %v24007_v60 = vld [vmem:[%s20866_s29 + $0x60] sm:$0xff] }
0x1530   : > { %26584 = vst [vmem:[#allocation36_spill] sm:$0xff] %v24007_v60  ;;  %v24010_v41 = vadd.f32 %v24007_v60, %v9600_v33 }
0x1532   : > { %9723 = vmax.xlane.f32.xlu0 %v9722_v19  ;;  %v9734_v19 = vsel %vm1572_vm2, %v24010_v41, -inf }
0x1533   : > { %9744 = vmax.xlane.f32.xlu1 %v9743_v14 }
0x1536   : > { %9741 = vmax.xlane.f32.xlu0 %v9740_v31 }
0x1537   : > { %9738 = vmax.xlane.f32.xlu1 %v9737_v30 }
0x153a   : > { %9735 = vmax.xlane.f32.xlu0 %v9734_v19 }
0x1548   : > { %10677 = vrot.lane.b32.xlu1 %v23689_v27, %s20628_s18 }
0x154c   : > { %10675 = vrot.lane.b32.xlu1 %v23681_v8, %s20628_s18 }
0x1550   : > { %10582 = vrot.lane.b32.xlu1 %v23694_v34, %s20629_s26  ;;  %10586 = vrot.lane.b32.xlu0 %v23694_v34, %s20628_s18 }
0x1554   : > { %10768 = vrot.lane.b32.xlu1 %v23703_v46, %s20628_s18  ;;  %10584 = vrot.lane.b32.xlu0 %v23684_v28, %s20628_s18 }
0x1558   : > { %10859 = vrot.lane.b32.xlu1 %v23708_v50, %s20628_s18  ;;  %10580 = vrot.lane.b32.xlu0 %v23684_v28, %s20629_s26 }
0x155c   : > { %10857 = vrot.lane.b32.xlu1 %v23718_v23, %s20628_s18  ;;  %10671 = vrot.lane.b32.xlu0 %v23681_v8, %s20629_s26 }
0x1560   : > { %10764 = vrot.lane.b32.xlu1 %v23703_v46, %s20629_s26  ;;  %10673 = vrot.lane.b32.xlu0 %v23689_v27, %s20629_s26 }
0x1564   : > { %10766 = vrot.lane.b32.xlu0 %v23713_v59, %s20628_s18 }
0x1568   : > { %10762 = vrot.lane.b32.xlu0 %v23713_v59, %s20629_s26 }
0x15a3   : > { %v9805_v33 = vpop.xlane.xlu1 %9804 }
0x15a7   : > { %v9802_v36 = vpop.xlane.xlu0 %9801  ;;  %v9799_v30 = vpop.xlane.xlu1 %9798 }
0x15a8   : > { %20060 = vrcp.f32 %v9802_v36 }
0x15a9   : > { %20062 = vrcp.f32 %v9799_v30 }
0x15ab   : > { %v9796_v14 = vpop.xlane.xlu0 %9795 }
0x15ac   : > { %20064 = vrcp.f32 %v9796_v14  ;;  %v9817_v31 = vpop.xlane.xlu1 %9816 }
0x15ad   : > { %20066 = vrcp.f32 %v9805_v33 }
0x15af   : > { %v9814_v19 = vpop.xlane.xlu0 %9813 }
0x15b0   : > { %20068 = vrcp.f32 %v9814_v19  ;;  %v9811_v60 = vpop.xlane.xlu1 %9810 }
0x15b1   : > { %20070 = vrcp.f32 %v9817_v31 }
0x15b2   : > { %20072 = vrcp.f32 %v9811_v60 }
0x15b3   : > { %v9808_v16 = vpop.xlane.xlu0 %9807 }
0x15b4   : > { %20074 = vrcp.f32 %v9808_v16  ;;  %v9733_v52 = vpop.xlane.xlu1 %9732 }
0x15b5   : > { %v9757_v40 = vsub.f32 %v23952_v18, %v9733_v52  ;;  %v20061_v32 = vpop.eup %20060 }
0x15b6   : > { %v20063_v37 = vpop.eup %20062 }
0x15b7   : > { %v9784_v42 = vmul.f32 1.442695, %v9757_v40  ;;  %v9730_v7 = vpop.xlane.xlu0 %9729  ;;  %v9859_v60 = vmul.f32 %v20063_v37, %v23926_v24 }
0x15b8   : > { %v9756_v36 = vsub.f32 %v23962_v11, %v9730_v7  ;;  %v9727_v30 = vpop.xlane.xlu1 %9726  ;;  %v9860_v7 = vmul.f32 %v20061_v32, %v23928_v21 }
0x15b9   : > { %v20065_v14 = vpop.eup %20064  ;;  %20076 = vpow2.f32 %v9784_v42  ;;  %v9755_v33 = vsub.f32 %v23970_v38, %v9727_v30 }
0x15ba   : > { %v9782_v19 = vmul.f32 1.442695, %v9756_v36  ;;  %v9858_v31 = vmul.f32 %v20065_v14, %v23934_v63  ;;  %v20067_v0 = vpop.eup %20066 }
0x15bb   : > { %v9780_v16 = vmul.f32 1.442695, %v9755_v33  ;;  %v9724_v55 = vpop.xlane.xlu0 %9723  ;;  %v9861_v24 = vmul.f32 %v20067_v0, %v23922_v61 }
0x15bc   : > { %20078 = vpow2.f32 %v9782_v19  ;;  %v9754_v18 = vsub.f32 %v23978_v9, %v9724_v55  ;;  %v9745_v40 = vpop.xlane.xlu1 %9744  ;;  %19018 = vmatprep.mubr.msk.f32.mxu1 %vm1572_vm2, %v9858_v31 }
0x15bd   : > { %v20069_v11 = vpop.eup %20068  ;;  %20080 = vpow2.f32 %v9780_v16  ;;  %v9761_v42 = vsub.f32 %v23986_v47, %v9745_v40  ;;  %19019 = vmatmul.mubr.msk.f32.vlgmr.msra.gmra.mxu1 %vm1572_vm2, %v9859_v60 }
0x15be   : > { %v9778_v63 = vmul.f32 1.442695, %v9754_v18  ;;  %19022 = vmatpush3.msra.mxu1 %v23856_v51  ;;  %19025 = vmatprep.mubr.msk.f32.mxu1 %vm1572_vm2, %v9860_v7  ;;  %v20071_v37 = vpop.eup %20070  ;;  %v9864_v9 = vmul.f32 %v20069_v11, %v23942_v26 }
0x15bf   : > { %v9792_v55 = vmul.f32 1.442695, %v9761_v42  ;;  %19023 = vmatprep.subr.mxu1 %v23902_v17  ;;  %v9742_v38 = vpop.xlane.xlu0 %9741  ;;  %v20073_v52 = vpop.eup %20072  ;;  %v9865_v36 = vmul.f32 %v20071_v37, %v23936_v5 }
0x15c0   : > { %20082 = vpow2.f32 %v9778_v63  ;;  %v9760_v21 = vsub.f32 %v23994_v4, %v9742_v38  ;;  %19024 = vmatpush3.msra.mxu1 %v23902_v17  ;;  %v9739_v32 = vpop.xlane.xlu1 %9738  ;;  %v9863_v17 = vmul.f32 %v20073_v52, %v23944_v54 }
0x15c1   : > { %v20075_v47 = vpop.eup %20074  ;;  %20084 = vpow2.f32 %v9792_v55  ;;  %v9759_v51 = vsub.f32 %v24002_v29, %v9739_v32  ;;  %19035 = vmatprep.subr.mxu1 %v23904_v22  ;;  %19026 = vmatmul.mubr.msk.f32.vlgmr.msra.gmra.mxu1 %vm1572_vm2, %v9861_v24 }
0x15c2   : > { %v9790_v0 = vmul.f32 1.442695, %v9760_v21  ;;  %19036 = vmatpush3.msra.mxu1 %v23904_v22  ;;  %19039 = vmatprep.mubr.msk.f32.mxu1 %vm1572_vm2, %v9864_v9  ;;  %v9862_v61 = vmul.f32 %v20075_v47, %v23956_v48 }
0x15c3   : > { %v9788_v4 = vmul.f32 1.442695, %v9759_v51  ;;  %19037 = vmatprep.subr.mxu1 %v23906_v53  ;;  %v9736_v26 = vpop.xlane.xlu0 %9735 }
0x15c4   : > { %20086 = vpow2.f32 %v9790_v0  ;;  %v9758_v29 = vsub.f32 %v24010_v41, %v9736_v26  ;;  %19038 = vmatpush3.msra.mxu1 %v23906_v53  ;;  %19032 = vmatprep.mubr.msk.f32.mxu0 %vm1572_vm2, %v9862_v61  ;;  %v24176_v18 = vpop.permute.xlu1 %10677 }
0x15c5   : > { %20088 = vpow2.f32 %v9788_v4  ;;  %19049 = vmatprep.subr.mxu1 %v23908_v3  ;;  %19033 = vmatmul.mubr.msk.f32.vlgmr.msra.gmra.mxu0 %vm1572_vm2, %v9863_v17 }
0x15c6   : > { %v24077_v22 = vpop.eup %20076  ;;  %v9786_v54 = vmul.f32 1.442695, %v9758_v29  ;;  %19040 = vmatmul.mubr.msk.f32.vlgmr.msra.gmra.mxu1 %vm1572_vm2, %v9865_v36  ;;  %19043 = vmatpush3.msra.mxu0 %v23859_v49 }
0x15c7   : > { %19050 = vmatpush3.msra.mxu1 %v23908_v3  ;;  %19044 = vmatprep.subr.mxu0 %v23912_v15  ;;  %v9827_v53 = vsel %vm1572_vm2, %v24077_v22, 0.0  ;;  %v24178_v40 = vpop.permute.xlu0 %10586 }
0x15c8   : > { %20090 = vpow2.f32 %v9786_v54  ;;  %19051 = vmatprep.subr.mxu1 %v23910_v12  ;;  %19045 = vmatpush3.msra.mxu0 %v23912_v15  ;;  %v24180_v7 = vpop.permute.xlu1 %10675 }
0x15c9   : > { %v24087_v5 = vpop.eup %20078  ;;  %19052 = vmatpush3.msra.mxu1 %v23910_v12  ;;  %9828 = vadd.xlane.f32.xlu1 %v9827_v53 }
0x15ca   : > { %v24090_v48 = vpop.eup %20080  ;;  %19056 = vmatprep.subr.mxu0 %v23920_v56  ;;  %19063 = vmatprep.subr.mxu1 %v23914_v45  ;;  %v9824_v49 = vsel %vm1572_vm2, %v24087_v5, 0.0 }
0x15cb   : > { %9825 = vadd.xlane.f32.xlu0 %v9824_v49  ;;  %v9821_v3 = vsel %vm1572_vm2, %v24090_v48, 0.0  ;;  %v24182_v11 = vpop.permute.xlu0 %10584 }
0x15cc   : > { %v24184_v42 = vpop.permute.xlu1 %10582 }
0x15cd   : > { %v24098_v41 = vpop.eup %20082  ;;  %9822 = vadd.xlane.f32.xlu1 %v9821_v3 }
0x15ce   : > { %v24100_v15 = vpop.eup %20084  ;;  %v9818_v12 = vsel %vm1572_vm2, %v24098_v41, 0.0 }
0x15cf   : > { %9819 = vadd.xlane.f32.xlu0 %v9818_v12  ;;  %v9839_v30 = vsel %vm1572_vm2, %v24100_v15, 0.0  ;;  %v24186_v63 = vpop.permute.xlu0 %10580 }
0x15d0   : > { %v24188_v37 = vpop.permute.xlu1 %10768 }
0x15d1   : > { %v24106_v14 = vpop.eup %20086  ;;  %9840 = vadd.xlane.f32.xlu1 %v9839_v30 }
0x15d2   : > { %v24108_v33 = vpop.eup %20088  ;;  %v9836_v19 = vsel %vm1572_vm2, %v24106_v14, 0.0 }
0x15d3   : > { %9837 = vadd.xlane.f32.xlu0 %v9836_v19  ;;  %v9833_v31 = vsel %vm1572_vm2, %v24108_v33, 0.0  ;;  %v10672_v24 = vpop.permute.xlu0 %10671 }
0x15d4   : > { %v24190_v55 = vpop.permute.xlu1 %10859 }
0x15d5   : > { %v24114_v60 = vpop.eup %20090  ;;  %9834 = vadd.xlane.f32.xlu1 %v9833_v31 }
0x15d6   : > { %v9830_v16 = vsel %vm1572_vm2, %v24114_v60, 0.0 }
0x15d7   : > { %9831 = vadd.xlane.f32.xlu0 %v9830_v16  ;;  %v24192_v38 = vpop.permute.xlu0 %10673 }
0x15d8   : > { %v24194_v52 = vpop.permute.xlu1 %10857 }
0x15db   : > { %v24196_v21 = vpop.permute.xlu0 %10766 }
0x15dc   : > { %v24198_v32 = vpop.permute.xlu1 %10764 }
0x15df   : > { %v24200_v9 = vpop.permute.xlu0 %10762 }
0x15e6   : > { %10950 = vrot.lane.b32.xlu1 %v23728_v58, %s20628_s18 }
0x15ea   : > { %11041 = vrot.lane.b32.xlu1 %v23725_v39, %s20628_s18 }
0x15ed   : > { %10853 = vrot.lane.b32.xlu0 %v23718_v23, %s20629_s26 }
0x15ee   : > { %11039 = vrot.lane.b32.xlu1 %v23733_v20, %s20628_s18 }
0x15f1   : > { %10855 = vrot.lane.b32.xlu0 %v23708_v50, %s20629_s26 }
0x15f2   : > { %10946 = vrot.lane.b32.xlu1 %v23728_v58, %s20629_s26 }
0x15f5   : > { %10948 = vrot.lane.b32.xlu0 %v23738_v44, %s20628_s18 }
0x15f6   : > { %11132 = vrot.lane.b32.xlu1 %v23778_v13, %s20628_s18 }
0x15f9   : > { %10944 = vrot.lane.b32.xlu0 %v23738_v44, %s20629_s26 }
0x15fa   : > { %11223 = vrot.lane.b32.xlu1 %v23771_v57, %s20628_s18 }
0x15fd   : > { %11035 = vrot.lane.b32.xlu0 %v23733_v20, %s20629_s26 }
0x15fe   : > { %11221 = vrot.lane.b32.xlu1 %v23785_v1, %s20628_s18 }
0x1601   : > { %11037 = vrot.lane.b32.xlu0 %v23725_v39, %s20629_s26 }
0x1602   : > { %11128 = vrot.lane.b32.xlu1 %v23778_v13, %s20629_s26 }
0x1605   : > { %11130 = vrot.lane.b32.xlu0 %v23790_v25, %s20628_s18  ;;  %s26604_s18 = smov 48  }
0x1606   : > { %11219 = vrot.lane.b32.xlu1 %v23771_v57, %s20629_s26 }
0x1609   : > { %11126 = vrot.lane.b32.xlu0 %v23790_v25, %s20629_s26 }
0x160a   : > { %11486 = vrot.lane.b32.xlu1 %v23694_v34, %s20630_s24 }
0x160d   : > { %11217 = vrot.lane.b32.xlu0 %v23785_v1, %s20629_s26 }
0x160e   : > { %11484 = vrot.lane.b32.xlu1 %v23684_v28, %s20630_s24 }
0x1611   : > { %11573 = vrot.lane.b32.xlu0 %v23689_v27, %s20630_s24 }
0x1612   : > { %11571 = vrot.lane.b32.xlu1 %v23681_v8, %s20630_s24 }
0x1615   : > { %11658 = vrot.lane.b32.xlu0 %v23713_v59, %s20630_s24 }
0x1616   : > { %11660 = vrot.lane.b32.xlu1 %v23703_v46, %s20630_s24 }
0x1619   : > { %11834 = vrot.lane.b32.xlu0 %v23728_v58, %s20630_s24 }
0x161a   : > { %11747 = vrot.lane.b32.xlu1 %v23708_v50, %s20630_s24 }
0x161d   : > { %11832 = vrot.lane.b32.xlu0 %v23738_v44, %s20630_s24 }
0x161e   : > { %11745 = vrot.lane.b32.xlu1 %v23718_v23, %s20630_s24 }
0x1622   : > { %11921 = vrot.lane.b32.xlu1 %v23725_v39, %s20630_s24 }
0x1652   : > { %v9829_v47 = vpop.xlane.xlu1 %9828 }
0x1653   : > { %20092 = vrcp.f32 %v9829_v47 }
0x1654   : > { %v9826_v51 = vpop.xlane.xlu0 %9825 }
0x1655   : > { %20094 = vrcp.f32 %v9826_v51 }
0x1656   : > { %v9823_v0 = vpop.xlane.xlu1 %9822 }
0x1657   : > { %20096 = vrcp.f32 %v9823_v0 }
0x1658   : > { %v9820_v61 = vpop.xlane.xlu0 %9819 }
0x1659   : > { %20098 = vrcp.f32 %v9820_v61 }
0x165a   : > { %v9841_v17 = vpop.xlane.xlu1 %9840 }
0x165b   : > { %20100 = vrcp.f32 %v9841_v17 }
0x165c   : > { %v9838_v4 = vpop.xlane.xlu0 %9837 }
0x165d   : > { %20102 = vrcp.f32 %v9838_v4 }
0x165e   : > { %v9835_v26 = vpop.xlane.xlu1 %9834 }
0x165f   : > { %20104 = vrcp.f32 %v9835_v26 }
0x1660   : > { %v9832_v36 = vpop.xlane.xlu0 %9831  ;;  %v20093_v29 = vpop.eup %20092 }
0x1661   : > { %20106 = vrcp.f32 %v9832_v36  ;;  %v9869_v3 = vmul.f32 %v20093_v29, %v24077_v22 }
0x1662   : > { %v20095_v54 = vpop.eup %20094  ;;  %v24202_v53 = vpop.permute.xlu1 %10950 }
0x1663   : > { %v9868_v49 = vmul.f32 %v20095_v54, %v24087_v5 }
0x1664   : > { %v10854_v12 = vpop.permute.xlu0 %10853  ;;  %v20097_v30 = vpop.eup %20096 }
0x1665   : > { %19053 = vmatprep.mubr.msk.f32.mxu1 %vm1572_vm2, %v9868_v49  ;;  %v9867_v47 = vmul.f32 %v20097_v30, %v24090_v48 }
0x1666   : > { %v20099_v19 = vpop.eup %20098  ;;  %v11042_v31 = vpop.permute.xlu1 %11041  ;;  %19054 = vmatmul.mubr.msk.f32.vlgmr.msra.gmra.mxu1 %vm1572_vm2, %v9869_v3 }
0x1667   : > { %19064 = vmatpush3.msra.mxu1 %v23914_v45  ;;  %v9866_v16 = vmul.f32 %v20099_v19, %v24098_v41 }
0x1668   : > { %19065 = vmatprep.subr.mxu1 %v23918_v6  ;;  %v10856_v51 = vpop.permute.xlu0 %10855  ;;  %v20101_v5 = vpop.eup %20100 }
0x1669   : > { %19066 = vmatpush3.msra.mxu1 %v23918_v6  ;;  %19046 = vmatprep.mubr.msk.f32.mxu0 %vm1572_vm2, %v9866_v16  ;;  %v9873_v48 = vmul.f32 %v20101_v5, %v24100_v15 }
0x166a   : > { %v20103_v22 = vpop.eup %20102  ;;  %v24214_v0 = vpop.permute.xlu1 %11039  ;;  %19077 = vmatprep.subr.msk.mxu1 %vm865_vm1, %v24176_v18  ;;  %19047 = vmatmul.mubr.msk.f32.vlgmr.msra.gmra.mxu0 %vm1572_vm2, %v9867_v47 }
0x166b   : > { %19057 = vmatpush3.msra.mxu0 %v23920_v56  ;;  %v9872_v45 = vmul.f32 %v20103_v22, %v24106_v14 }
0x166c   : > { %19058 = vmatprep.subr.mxu0 %v23916_v2  ;;  %v24223_v41 = vpop.permute.xlu0 %10948  ;;  %v20105_v6 = vpop.eup %20104 }
0x166d   : > { %19059 = vmatpush3.msra.mxu0 %v23916_v2  ;;  %19067 = vmatprep.mubr.msk.f32.mxu1 %vm1572_vm2, %v9872_v45  ;;  %v9871_v15 = vmul.f32 %v20105_v6, %v24108_v33 }
0x166e   : > { %v20107_v61 = vpop.eup %20106  ;;  %v24227_v17 = vpop.permute.xlu1 %10946  ;;  %19070 = vmatprep.subr.msk.mxu0 %vm865_vm1, %v24178_v40  ;;  %19068 = vmatmul.mubr.msk.f32.vlgmr.msra.gmra.mxu1 %vm1572_vm2, %v9873_v48 }
0x166f   : > { %19078 = vmatpush3.xpose.msk.msra.mxu1 %vm865_vm1, %v24176_v18  ;;  %19081 = vmatprep.mubr.msk.f32.mxu1 %vm865_vm1, %v10672_v24  ;;  %v9870_v56 = vmul.f32 %v20107_v61, %v24114_v60 }
0x1670   : > { %19079 = vmatprep.subr.msk.mxu1 %vm865_vm1, %v24180_v7  ;;  %v10945_v2 = vpop.permute.xlu0 %10944 }
0x1671   : > { %19060 = vmatprep.mubr.msk.f32.mxu0 %vm1572_vm2, %v9870_v56 }
0x1672   : > { %v11133_v14 = vpop.permute.xlu1 %11132  ;;  %19061 = vmatmul.mubr.msk.f32.vlgmr.msra.gmra.mxu0 %vm1572_vm2, %v9871_v15 }
0x1673   : > { %19071 = vmatpush3.xpose.msk.msra.mxu0 %vm865_vm1, %v24178_v40  ;;  %19080 = vmatpush3.xpose.msk.msra.mxu1 %vm865_vm1, %v24180_v7 }
0x1674   : > { %19072 = vmatprep.subr.msk.mxu0 %vm865_vm1, %v24182_v11  ;;  %19074 = vmatprep.mubr.msk.f32.mxu0 %vm865_vm1, %v24186_v63  ;;  %v11036_v33 = vpop.permute.xlu0 %11035 }
0x1675   : > { %19091 = vmatprep.subr.msk.mxu1 %vm865_vm1, %v24190_v55 }
0x1676   : > { %v11224_v60 = vpop.permute.xlu1 %11223  ;;  %19082 = vmatmul.mubr.msk.f32.vlgmr.msra.gmra.mxu1 %vm865_vm1, %v24192_v38 }
0x1677   : > { %19073 = vmatpush3.xpose.msk.msra.mxu0 %vm865_vm1, %v24182_v11  ;;  %19092 = vmatpush3.xpose.msk.msra.mxu1 %vm865_vm1, %v24190_v55 }
0x1678   : > { %19095 = vmatprep.mubr.msk.f32.mxu1 %vm865_vm1, %v10854_v12  ;;  %19084 = vmatprep.subr.msk.mxu0 %vm865_vm1, %v24188_v37  ;;  %v11038_v18 = vpop.permute.xlu0 %11037 }
0x1679   : > { %19093 = vmatprep.subr.msk.mxu1 %vm865_vm1, %v24194_v52 }
0x167a   : > { %v11222_v40 = vpop.permute.xlu1 %11221  ;;  %19075 = vmatmul.mubr.msk.f32.vlgmr.msra.gmra.mxu0 %vm865_vm1, %v24184_v42 }
0x167b   : > { %19085 = vmatpush3.xpose.msk.msra.mxu0 %vm865_vm1, %v24188_v37  ;;  %19088 = vmatprep.mubr.msk.f32.mxu0 %vm865_vm1, %v24200_v9 }
0x167c   : > { %19094 = vmatpush3.xpose.msk.msra.mxu1 %vm865_vm1, %v24194_v52  ;;  %19086 = vmatprep.subr.msk.mxu0 %vm865_vm1, %v24196_v21  ;;  %v11131_v7 = vpop.permute.xlu0 %11130 }
0x167d   : > { %19105 = vmatprep.subr.msk.mxu1 %vm865_vm1, %v11042_v31  ;;  %v24273_v11 = vpop.f32.mrf.mxu1 }
0x167e   : > { %v11129_v63 = vpop.permute.xlu1 %11128 }
0x167f   : > { %19096 = vmatmul.mubr.msk.f32.vlgmr.msra.gmra.mxu1 %vm865_vm1, %v10856_v51  ;;  %19087 = vmatpush3.xpose.msk.msra.mxu0 %vm865_vm1, %v24196_v21  ;;  %v24278_v42 = vpop.f32.mrf.mxu1 }
0x1680   : > { %19106 = vmatpush3.xpose.msk.msra.mxu1 %vm865_vm1, %v11042_v31  ;;  %19109 = vmatprep.mubr.msk.f32.mxu1 %vm865_vm1, %v11036_v33  ;;  %v11127_v24 = vpop.permute.xlu0 %11126 }
0x1681   : > { %19098 = vmatprep.subr.msk.mxu0 %vm865_vm1, %v24202_v53  ;;  %19107 = vmatprep.subr.msk.mxu1 %vm865_vm1, %v24214_v0  ;;  %v24288_v55 = vpop.f32.mrf.mxu1 }
0x1682   : > { %v11220_v38 = vpop.permute.xlu1 %11219  ;;  %19089 = vmatmul.mubr.msk.f32.vlgmr.msra.gmra.mxu0 %vm865_vm1, %v24198_v32 }
0x1683   : > { %19099 = vmatpush3.xpose.msk.msra.mxu0 %vm865_vm1, %v24202_v53  ;;  %19102 = vmatprep.mubr.msk.f32.mxu0 %vm865_vm1, %v10945_v2  ;;  %v24295_v52 = vpop.f32.mrf.mxu1 }
0x1684   : > { %19108 = vmatpush3.xpose.msk.msra.mxu1 %vm865_vm1, %v24214_v0  ;;  %19100 = vmatprep.subr.msk.mxu0 %vm865_vm1, %v24223_v41  ;;  %v11218_v9 = vpop.permute.xlu0 %11217 }
0x1685   : > { %19119 = vmatprep.subr.msk.mxu1 %vm865_vm1, %v11224_v60  ;;  %v24328_v49 = vpop.f32.mrf.mxu0 }
0x1686   : > { %v11487_v32 = vpop.permute.xlu1 %11486  ;;  %v24326_v53 = vpop.f32.mrf.mxu1 }
0x1687   : > { %19110 = vmatmul.mubr.msk.f32.vlgmr.msra.gmra.mxu1 %vm865_vm1, %v11038_v18  ;;  %19101 = vmatpush3.xpose.msk.msra.mxu0 %vm865_vm1, %v24223_v41  ;;  %v24334_v30 = vpop.f32.mrf.mxu0 }
0x1688   : > { %19120 = vmatpush3.xpose.msk.msra.mxu1 %vm865_vm1, %v11224_v60  ;;  %19123 = vmatprep.mubr.msk.f32.mxu1 %vm865_vm1, %v11218_v9  ;;  %v11574_v26 = vpop.permute.xlu0 %11573  ;;  %v24330_v3 = vpop.f32.mrf.mxu1 }
0x1689   : > { %19112 = vmatprep.subr.msk.mxu0 %vm865_vm1, %v11133_v14  ;;  %19121 = vmatprep.subr.msk.mxu1 %vm865_vm1, %v11222_v40 }
0x168a   : > { %v11485_v4 = vpop.permute.xlu1 %11484  ;;  %19103 = vmatmul.mubr.msk.f32.vlgmr.msra.gmra.mxu0 %vm865_vm1, %v24227_v17 }
0x168b   : > { %19113 = vmatpush3.xpose.msk.msra.mxu0 %vm865_vm1, %v11133_v14  ;;  %19116 = vmatprep.mubr.msk.f32.mxu0 %vm865_vm1, %v11127_v24  ;;  %v26591_v24 = vld [vmem:[#allocation49_spill] sm:$0xff] }
0x168c   : > { %19122 = vmatpush3.xpose.msk.msra.mxu1 %vm865_vm1, %v11222_v40  ;;  %19114 = vmatprep.subr.msk.mxu0 %vm865_vm1, %v11131_v7  ;;  %v26590_v40 = vld [vmem:[#allocation33_spill] sm:$0xff] }
0x168d   : > { %19133 = vmatprep.subr.mxu1 %v11574_v26 }
0x168e   : > { %v11572_v36 = vpop.permute.xlu1 %11571 }
0x168f   : > { %19124 = vmatmul.mubr.msk.f32.vlgmr.msra.gmra.mxu1 %vm865_vm1, %v11220_v38  ;;  %19115 = vmatpush3.xpose.msk.msra.mxu0 %vm865_vm1, %v11131_v7 }
0x1690   : > { %19134 = vmatpush3.msra.mxu1 %v11574_v26  ;;  %19126 = vmatprep.subr.mxu0 %v11487_v32 }
0x1691   : > { %19135 = vmatprep.subr.mxu1 %v11572_v36 }
0x1692   : > { %19136 = vmatpush3.msra.mxu1 %v11572_v36  ;;  %v24319_v29 = vpop.permute.xlu1 %11660  ;;  %19117 = vmatmul.mubr.msk.f32.vlgmr.msra.gmra.mxu0 %vm865_vm1, %v11129_v63  ;;  %v26593_v36 = vld [vmem:[#allocation50_spill] sm:$0xff] }
0x1693   : > { %19127 = vmatpush3.msra.mxu0 %v11487_v32  ;;  %v26592_v32 = vld [vmem:[#allocation48_spill] sm:$0xff] }
0x1694   : > { %19128 = vmatprep.subr.mxu0 %v11485_v4 }
0x1695   : > { %19129 = vmatpush3.msra.mxu0 %v11485_v4 }
0x1696   : > { %v24322_v54 = vpop.permute.xlu1 %11747  ;;  %19140 = vmatprep.subr.mxu0 %v24319_v29 }
0x1697   : > { %19147 = vmatprep.subr.mxu1 %v24322_v54 }
0x1726   : > { %v24332_v12 = vpop.f32.mrf.mxu1 }
0x1728   : > { %v24336_v19 = vpop.f32.mrf.mxu1 }
0x1729   : > { %26585 = vst [vmem:[#allocation27_spill] sm:$0xff] %v24336_v19 }
0x172a   : > { %v24340_v16 = vpop.f32.mrf.mxu0 }
0x172c   : > { %v24342_v47 = vpop.f32.mrf.mxu0 }
0x172e   : > { %v24346_v5 = vpop.f32.mrf.mxu1 }
0x172f   : > { %26586 = vst [vmem:[#allocation39_spill] sm:$0xff] %v24346_v5 }
0x1730   : > { %v24348_v22 = vpop.f32.mrf.mxu1 }
0x1731   : > { %26587 = vst [vmem:[#allocation25_spill] sm:$0xff] %v24348_v22 }
0x1732   : > { %v24352_v45 = vpop.f32.mrf.mxu0 }
0x1733   : > { %26588 = vst [vmem:[#allocation17_spill] sm:$0xff] %v24352_v45 }
0x1734   : > { %v24354_v48 = vpop.f32.mrf.mxu0 }
0x1735   : > { %26589 = vst [vmem:[#allocation29_spill] sm:$0xff] %v24354_v48 }
0x1736   : > { %v19083_v6 = vpop.f32.mrf.mxu1 }
0x1737   : > { %v24359_v61 = vadd.f32 %v23867_v43, %v19083_v6 }
0x1738   : > { %v10753_v17 = vpop.f32.mrf.mxu1 }
0x1739   : > { %v24362_v56 = vadd.f32 %v23872_v62, %v10753_v17  ;;  %v11317_v15 = vsel %vm1572_vm2, %v24359_v61, -inf }
0x173a   : > { %11318 = vmax.xlane.f32.xlu0 %v11317_v15  ;;  %v19076_v2 = vpop.f32.mrf.mxu0 }
0x173b   : > { %v24367_v14 = vadd.f32 %v23863_v35, %v19076_v2  ;;  %v11314_v43 = vsel %vm1572_vm2, %v24362_v56, -inf }
0x173c   : > { %v10662_v33 = vpop.f32.mrf.mxu0 }
0x173d   : > { %v24370_v60 = vadd.f32 %v23877_v10, %v10662_v33  ;;  %v11311_v18 = vsel %vm1572_vm2, %v24367_v14, -inf  ;;  %v26594_v33 = vld [vmem:[#allocation51_spill] sm:$0xff] }
0x173e   : > { %11315 = vmax.xlane.f32.xlu0 %v11314_v43  ;;  %11312 = vmax.xlane.f32.xlu1 %v11311_v18 }
0x173f   : > { %v19097_v62 = vpop.f32.mrf.mxu1  ;;  %v11308_v35 = vsel %vm1572_vm2, %v24370_v60, -inf }
0x1740   : > { %v24377_v7 = vadd.f32 %v26590_v40, %v19097_v62  ;;  %v26595_v40 = vld [vmem:[#allocation34_spill] sm:$0xff] }
0x1741   : > { %v10935_v63 = vpop.f32.mrf.mxu1 }
0x1742   : > { %v24382_v38 = vadd.f32 %v26591_v24, %v10935_v63  ;;  %v11329_v10 = vsel %vm1572_vm2, %v24377_v7, -inf  ;;  %v19090_v9 = vpop.f32.mrf.mxu0  ;;  %11309 = vmax.xlane.f32.xlu0 %v11308_v35 }
0x1743   : > { %11330 = vmax.xlane.f32.xlu1 %v11329_v10  ;;  %v24387_v4 = vadd.f32 %v26592_v32, %v19090_v9  ;;  %v26596_v10 = vld [vmem:[#allocation43_spill] sm:$0xff] }
0x1744   : > { %v10844_v26 = vpop.f32.mrf.mxu0  ;;  %v11326_v15 = vsel %vm1572_vm2, %v24382_v38, -inf }
0x1745   : > { %v24390_v6 = vadd.f32 %v26593_v36, %v10844_v26  ;;  %v11323_v17 = vsel %vm1572_vm2, %v24387_v4, -inf  ;;  %v26597_v26 = vld [vmem:[#allocation35_spill] sm:$0xff] }
0x1746   : > { %11327 = vmax.xlane.f32.xlu0 %v11326_v15 }
0x1747   : > { %11324 = vmax.xlane.f32.xlu1 %v11323_v17  ;;  %v19111_v2 = vpop.f32.mrf.mxu1  ;;  %v11320_v62 = vsel %vm1572_vm2, %v24390_v6, -inf }
0x1748   : > { %v24397_v43 = vadd.f32 %v26594_v33, %v19111_v2  ;;  %v26598_v33 = vld [vmem:[#allocation41_spill] sm:$0xff] }
0x1749   : > { %v11117_v18 = vpop.f32.mrf.mxu1 }
0x174a   : > { %v24402_v63 = vadd.f32 %v26595_v40, %v11117_v18  ;;  %11321 = vmax.xlane.f32.xlu0 %v11320_v62  ;;  %v11341_v35 = vsel %vm1572_vm2, %v24397_v43, -inf  ;;  %v19104_v24 = vpop.f32.mrf.mxu0 }
0x174b   : > { %11342 = vmax.xlane.f32.xlu1 %v11341_v35  ;;  %v24407_v9 = vadd.f32 %v26596_v10, %v19104_v24  ;;  %v26599_v35 = vld [vmem:[#allocation37_spill] sm:$0xff] }
0x174c   : > { %v11026_v32 = vpop.f32.mrf.mxu0  ;;  %v11338_v17 = vsel %vm1572_vm2, %v24402_v63, -inf }
0x174d   : > { %v24410_v36 = vadd.f32 %v26597_v26, %v11026_v32  ;;  %v11335_v15 = vsel %vm1572_vm2, %v24407_v9, -inf  ;;  %v26600_v26 = vld [vmem:[#allocation44_spill] sm:$0xff] }
0x174e   : > { %11339 = vmax.xlane.f32.xlu0 %v11338_v17 }
0x174f   : > { %11336 = vmax.xlane.f32.xlu1 %v11335_v15  ;;  %v19125_v2 = vpop.f32.mrf.mxu1  ;;  %v11332_v40 = vsel %vm1572_vm2, %v24410_v36, -inf  ;;  %v26601_v15 = vld [vmem:[#allocation36_spill] sm:$0xff] }
0x1750   : > { %v24417_v18 = vadd.f32 %v26598_v33, %v19125_v2 }
0x1751   : > { %v11299_v62 = vpop.f32.mrf.mxu1 }
0x1752   : > { %v24422_v24 = vadd.f32 %v26599_v35, %v11299_v62  ;;  %11333 = vmax.xlane.f32.xlu0 %v11332_v40  ;;  %v19118_v10 = vpop.f32.mrf.mxu0  ;;  %v11353_v32 = vsel %vm1572_vm2, %v24417_v18, -inf  ;;  %v24444_v35 = vpop.permute.xlu0 %11658 }
0x1753   : > { %v24427_v0 = vadd.f32 %v26600_v26, %v19118_v10  ;;  %11354 = vmax.xlane.f32.xlu1 %v11353_v32  ;;  %v24448_v32 = vpop.permute.xlu1 %11745 }
0x1754   : > { %v11208_v17 = vpop.f32.mrf.mxu0  ;;  %v11350_v62 = vsel %vm1572_vm2, %v24422_v24, -inf }
0x1755   : > { %v24430_v2 = vadd.f32 %v26601_v15, %v11208_v17  ;;  %v11347_v33 = vsel %vm1572_vm2, %v24427_v0, -inf }
0x1756   : > { %11351 = vmax.xlane.f32.xlu0 %v11350_v62  ;;  %v24446_v10 = vpop.permute.xlu0 %11834 }
0x1757   : > { %11348 = vmax.xlane.f32.xlu1 %v11347_v33  ;;  %v11344_v40 = vsel %vm1572_vm2, %v24430_v2, -inf  ;;  %v24452_v17 = vpop.permute.xlu1 %11921 }
0x175a   : > { %11345 = vmax.xlane.f32.xlu0 %v11344_v40  ;;  %v24450_v26 = vpop.permute.xlu0 %11832 }
0x1768   : > { %11919 = vrot.lane.b32.xlu1 %v23733_v20, %s20630_s24 }
0x176c   : > { %12095 = vrot.lane.b32.xlu1 %v23771_v57, %s20630_s24 }
0x1770   : > { %12008 = vrot.lane.b32.xlu0 %v23778_v13, %s20630_s24 }
0x17c3   : > { %v11319_v15 = vpop.xlane.xlu0 %11318 }
0x17c4   : > { %v11359_v33 = vsub.f32 %v24359_v61, %v11319_v15 }
0x17c6   : > { %v11378_v62 = vmul.f32 1.442695, %v11359_v33 }
0x17c7   : > { %v11316_v40 = vpop.xlane.xlu0 %11315  ;;  %v11313_v41 = vpop.xlane.xlu1 %11312 }
0x17c8   : > { %20108 = vpow2.f32 %v11378_v62  ;;  %v11358_v31 = vsub.f32 %v24362_v56, %v11316_v40  ;;  %v11357_v51 = vsub.f32 %v24367_v14, %v11313_v41 }
0x17ca   : > { %v11376_v21 = vmul.f32 1.442695, %v11358_v31  ;;  %v11374_v37 = vmul.f32 1.442695, %v11357_v51 }
0x17cb   : > { %v11310_v22 = vpop.xlane.xlu0 %11309 }
0x17cc   : > { %20110 = vpow2.f32 %v11376_v21  ;;  %v11356_v5 = vsub.f32 %v24370_v60, %v11310_v22  ;;  %v11331_v48 = vpop.xlane.xlu1 %11330 }
0x17cd   : > { %20112 = vpow2.f32 %v11374_v37  ;;  %v11363_v45 = vsub.f32 %v24377_v7, %v11331_v48 }
0x17ce   : > { %v11372_v19 = vmul.f32 1.442695, %v11356_v5 }
0x17cf   : > { %v11386_v61 = vmul.f32 1.442695, %v11363_v45  ;;  %v11328_v15 = vpop.xlane.xlu0 %11327 }
0x17d0   : > { %20114 = vpow2.f32 %v11372_v19  ;;  %v11362_v33 = vsub.f32 %v24382_v38, %v11328_v15  ;;  %v11325_v62 = vpop.xlane.xlu1 %11324 }
0x17d1   : > { %20116 = vpow2.f32 %v11386_v61  ;;  %v11361_v41 = vsub.f32 %v24387_v4, %v11325_v62 }
0x17d2   : > { %v11384_v31 = vmul.f32 1.442695, %v11362_v33 }
0x17d3   : > { %v11382_v51 = vmul.f32 1.442695, %v11361_v41  ;;  %v11322_v56 = vpop.xlane.xlu0 %11321 }
0x17d4   : > { %20118 = vpow2.f32 %v11384_v31  ;;  %v11360_v21 = vsub.f32 %v24390_v6, %v11322_v56  ;;  %v11343_v22 = vpop.xlane.xlu1 %11342 }
0x17d5   : > { %v24462_v37 = vpop.eup %20108  ;;  %20120 = vpow2.f32 %v11382_v51  ;;  %v11367_v5 = vsub.f32 %v24397_v43, %v11343_v22 }
0x17d6   : > { %v11380_v45 = vmul.f32 1.442695, %v11360_v21  ;;  %v11413_v19 = vsel %vm1572_vm2, %v24462_v37, 0.0 }
0x17d7   : > { %v11394_v48 = vmul.f32 1.442695, %v11367_v5  ;;  %v11340_v14 = vpop.xlane.xlu0 %11339  ;;  %11414 = vadd.xlane.f32.xlu1 %v11413_v19 }
0x17d8   : > { %20122 = vpow2.f32 %v11380_v45  ;;  %v11366_v60 = vsub.f32 %v24402_v63, %v11340_v14  ;;  %v11337_v7 = vpop.xlane.xlu1 %11336 }
0x17d9   : > { %v24468_v38 = vpop.eup %20110  ;;  %20124 = vpow2.f32 %v11394_v48  ;;  %v11365_v4 = vsub.f32 %v24407_v9, %v11337_v7 }
0x17da   : > { %v24471_v6 = vpop.eup %20112  ;;  %v11392_v40 = vmul.f32 1.442695, %v11366_v60  ;;  %v11410_v43 = vsel %vm1572_vm2, %v24468_v38, 0.0 }
0x17db   : > { %v11390_v61 = vmul.f32 1.442695, %v11365_v4  ;;  %v11334_v15 = vpop.xlane.xlu0 %11333  ;;  %11411 = vadd.xlane.f32.xlu0 %v11410_v43  ;;  %v11407_v33 = vsel %vm1572_vm2, %v24471_v6, 0.0 }
0x17dc   : > { %20126 = vpow2.f32 %v11392_v40  ;;  %v11364_v63 = vsub.f32 %v24410_v36, %v11334_v15  ;;  %11408 = vadd.xlane.f32.xlu1 %v11407_v33  ;;  %v11355_v62 = vpop.xlane.xlu1 %11354 }
0x17dd   : > { %v24478_v41 = vpop.eup %20114  ;;  %20128 = vpow2.f32 %v11390_v61  ;;  %v11371_v9 = vsub.f32 %v24417_v18, %v11355_v62 }
0x17de   : > { %v24481_v31 = vpop.eup %20116  ;;  %v11388_v51 = vmul.f32 1.442695, %v11364_v63  ;;  %v11404_v56 = vsel %vm1572_vm2, %v24478_v41, 0.0 }
0x17df   : > { %v11402_v21 = vmul.f32 1.442695, %v11371_v9  ;;  %11405 = vadd.xlane.f32.xlu0 %v11404_v56  ;;  %v11352_v22 = vpop.xlane.xlu0 %11351  ;;  %v11425_v5 = vsel %vm1572_vm2, %v24481_v31, 0.0 }
0x17e0   : > { %20130 = vpow2.f32 %v11388_v51  ;;  %v11370_v36 = vsub.f32 %v24422_v24, %v11352_v22  ;;  %11426 = vadd.xlane.f32.xlu1 %v11425_v5  ;;  %v11349_v45 = vpop.xlane.xlu1 %11348 }
0x17e1   : > { %v24488_v19 = vpop.eup %20118  ;;  %v11369_v18 = vsub.f32 %v24427_v0, %v11349_v45  ;;  %20132 = vpow2.f32 %v11402_v21 }
0x17e2   : > { %v24491_v48 = vpop.eup %20120  ;;  %v11400_v14 = vmul.f32 1.442695, %v11370_v36  ;;  %v11422_v60 = vsel %vm1572_vm2, %v24488_v19, 0.0 }
0x17e3   : > { %v11398_v7 = vmul.f32 1.442695, %v11369_v18  ;;  %11423 = vadd.xlane.f32.xlu0 %v11422_v60  ;;  %v11346_v4 = vpop.xlane.xlu0 %11345  ;;  %v11419_v40 = vsel %vm1572_vm2, %v24491_v48, 0.0 }
0x17e4   : > { %v11368_v24 = vsub.f32 %v24430_v2, %v11346_v4  ;;  %11420 = vadd.xlane.f32.xlu1 %v11419_v40 }
0x17e5   : > { %v24498_v43 = vpop.eup %20122  ;;  %20134 = vpow2.f32 %v11398_v7  ;;  %v24612_v7 = vpop.permute.xlu1 %11919 }
0x17e6   : > { %v24500_v0 = vpop.eup %20124  ;;  %20136 = vpow2.f32 %v11400_v14  ;;  %v11396_v61 = vmul.f32 1.442695, %v11368_v24  ;;  %v11416_v15 = vsel %vm1572_vm2, %v24498_v43, 0.0 }
0x17e7   : > { %11417 = vadd.xlane.f32.xlu0 %v11416_v15  ;;  %v11437_v33 = vsel %vm1572_vm2, %v24500_v0, 0.0  ;;  %v24624_v40 = vpop.permute.xlu0 %12008 }
0x17e8   : > { %11438 = vadd.xlane.f32.xlu1 %v11437_v33  ;;  %20138 = vpow2.f32 %v11396_v61 }
0x17e9   : > { %v24506_v63 = vpop.eup %20126  ;;  %v24618_v4 = vpop.permute.xlu1 %12095 }
0x17ea   : > { %v24508_v62 = vpop.eup %20128  ;;  %v11434_v2 = vsel %vm1572_vm2, %v24506_v63, 0.0 }
0x17eb   : > { %11435 = vadd.xlane.f32.xlu0 %v11434_v2  ;;  %v11431_v9 = vsel %vm1572_vm2, %v24508_v62, 0.0 }
0x17ec   : > { %11432 = vadd.xlane.f32.xlu1 %v11431_v9 }
0x17ed   : > { %v24514_v51 = vpop.eup %20130 }
0x17ee   : > { %v11428_v56 = vsel %vm1572_vm2, %v24514_v51, 0.0  ;;  %v24518_v21 = vpop.eup %20132 }
0x17ef   : > { %11429 = vadd.xlane.f32.xlu0 %v11428_v56  ;;  %v11449_v5 = vsel %vm1572_vm2, %v24518_v21, 0.0 }
0x17f2   : > { %v24520_v22 = vpop.eup %20134 }
0x17f3   : > { %v24524_v36 = vpop.eup %20136  ;;  %11450 = vadd.xlane.f32.xlu0 %v11449_v5  ;;  %v11443_v45 = vsel %vm1572_vm2, %v24520_v22, 0.0 }
0x17f4   : > { %11444 = vadd.xlane.f32.xlu1 %v11443_v45  ;;  %v11446_v18 = vsel %vm1572_vm2, %v24524_v36, 0.0 }
0x17f5   : > { %v24530_v14 = vpop.eup %20138 }
0x17f6   : > { %v11440_v60 = vsel %vm1572_vm2, %v24530_v14, 0.0 }
0x17f7   : > { %11447 = vadd.xlane.f32.xlu0 %v11446_v18 }
0x17fb   : > { %11441 = vadd.xlane.f32.xlu0 %v11440_v60 }
0x1805   : > { %12093 = vrot.lane.b32.xlu1 %v23785_v1, %s20630_s24 }
0x1809   : > { %12535 = vrot.lane.b32.xlu1 %v23689_v27, %s26602_s15 }
0x180d   : > { %12533 = vrot.lane.b32.xlu1 %v23681_v8, %s26602_s15 }
0x1811   : > { %12440 = vrot.lane.b32.xlu1 %v23694_v34, %s26603_s20  ;;  %12006 = vrot.lane.b32.xlu0 %v23790_v25, %s20630_s24 }
0x1815   : > { %12626 = vrot.lane.b32.xlu1 %v23703_v46, %s26602_s15  ;;  %12444 = vrot.lane.b32.xlu0 %v23694_v34, %s26602_s15 }
0x1819   : > { %12717 = vrot.lane.b32.xlu1 %v23708_v50, %s26602_s15  ;;  %12442 = vrot.lane.b32.xlu0 %v23684_v28, %s26602_s15 }
0x181d   : > { %12715 = vrot.lane.b32.xlu1 %v23718_v23, %s26602_s15  ;;  %12438 = vrot.lane.b32.xlu0 %v23684_v28, %s26603_s20 }
0x1821   : > { %12622 = vrot.lane.b32.xlu1 %v23703_v46, %s26603_s20  ;;  %12529 = vrot.lane.b32.xlu0 %v23681_v8, %s26603_s20 }
0x1825   : > { %12808 = vrot.lane.b32.xlu1 %v23728_v58, %s26602_s15  ;;  %12531 = vrot.lane.b32.xlu0 %v23689_v27, %s26603_s20 }
0x1829   : > { %12899 = vrot.lane.b32.xlu1 %v23725_v39, %s26602_s15  ;;  %12624 = vrot.lane.b32.xlu0 %v23713_v59, %s26602_s15 }
0x182d   : > { %12897 = vrot.lane.b32.xlu1 %v23733_v20, %s26602_s15  ;;  %12620 = vrot.lane.b32.xlu0 %v23713_v59, %s26603_s20 }
0x1831   : > { %12804 = vrot.lane.b32.xlu1 %v23728_v58, %s26603_s20  ;;  %12711 = vrot.lane.b32.xlu0 %v23718_v23, %s26603_s20 }
0x1835   : > { %12990 = vrot.lane.b32.xlu1 %v23778_v13, %s26602_s15  ;;  %12713 = vrot.lane.b32.xlu0 %v23708_v50, %s26603_s20 }
0x1839   : > { %13081 = vrot.lane.b32.xlu1 %v23771_v57, %s26602_s15  ;;  %12806 = vrot.lane.b32.xlu0 %v23738_v44, %s26602_s15 }
0x183d   : > { %13079 = vrot.lane.b32.xlu1 %v23785_v1, %s26602_s15  ;;  %12802 = vrot.lane.b32.xlu0 %v23738_v44, %s26603_s20 }
0x1841   : > { %12986 = vrot.lane.b32.xlu1 %v23778_v13, %s26603_s20  ;;  %12893 = vrot.lane.b32.xlu0 %v23733_v20, %s26603_s20 }
0x1845   : > { %13077 = vrot.lane.b32.xlu1 %v23771_v57, %s26603_s20  ;;  %12895 = vrot.lane.b32.xlu0 %v23725_v39, %s26603_s20 }
0x1849   : > { %13344 = vrot.lane.b32.xlu1 %v23694_v34, %s26604_s18  ;;  %12988 = vrot.lane.b32.xlu0 %v23790_v25, %s26602_s15 }
0x184d   : > { %13342 = vrot.lane.b32.xlu1 %v23684_v28, %s26604_s18  ;;  %12984 = vrot.lane.b32.xlu0 %v23790_v25, %s26603_s20 }
0x1851   : > { %13429 = vrot.lane.b32.xlu1 %v23681_v8, %s26604_s18  ;;  %13075 = vrot.lane.b32.xlu0 %v23785_v1, %s26603_s20 }
0x1855   : > { %13518 = vrot.lane.b32.xlu1 %v23703_v46, %s26604_s18  ;;  %13431 = vrot.lane.b32.xlu0 %v23689_v27, %s26604_s18 }
0x1859   : > { %13605 = vrot.lane.b32.xlu1 %v23708_v50, %s26604_s18  ;;  %13516 = vrot.lane.b32.xlu0 %v23713_v59, %s26604_s18 }
0x185d   : > { %13603 = vrot.lane.b32.xlu1 %v23718_v23, %s26604_s18  ;;  %13692 = vrot.lane.b32.xlu0 %v23728_v58, %s26604_s18 }
0x1860   : > { %v11415_v24 = vpop.xlane.xlu1 %11414 }
0x1861   : > { %13779 = vrot.lane.b32.xlu1 %v23725_v39, %s26604_s18  ;;  %20140 = vrcp.f32 %v11415_v24 }
0x1864   : > { %v11412_v61 = vpop.xlane.xlu0 %11411 }
0x1865   : > { %20142 = vrcp.f32 %v11412_v61  ;;  %v11409_v15 = vpop.xlane.xlu1 %11408 }
0x1866   : > { %20144 = vrcp.f32 %v11409_v15 }
0x1868   : > { %v11406_v33 = vpop.xlane.xlu0 %11405 }
0x1869   : > { %20146 = vrcp.f32 %v11406_v33  ;;  %v11427_v2 = vpop.xlane.xlu1 %11426 }
0x186a   : > { %20148 = vrcp.f32 %v11427_v2 }
0x186c   : > { %v11424_v9 = vpop.xlane.xlu0 %11423 }
0x186d   : > { %20150 = vrcp.f32 %v11424_v9  ;;  %v11421_v56 = vpop.xlane.xlu1 %11420 }
0x186e   : > { %20152 = vrcp.f32 %v11421_v56  ;;  %v20141_v45 = vpop.eup %20140 }
0x186f   : > { %v11471_v24 = vmul.f32 %v20141_v45, %v24462_v37 }
0x1870   : > { %v11418_v5 = vpop.xlane.xlu0 %11417 }
0x1871   : > { %20154 = vrcp.f32 %v11418_v5  ;;  %v11439_v18 = vpop.xlane.xlu1 %11438 }
0x1872   : > { %v20143_v60 = vpop.eup %20142  ;;  %20156 = vrcp.f32 %v11439_v18 }
0x1873   : > { %v11470_v39 = vmul.f32 %v20143_v60, %v24468_v38  ;;  %v20145_v15 = vpop.eup %20144 }
0x1874   : > { %v11436_v61 = vpop.xlane.xlu0 %11435  ;;  %v11469_v56 = vmul.f32 %v20145_v15, %v24471_v6 }
0x1875   : > { %20158 = vrcp.f32 %v11436_v61  ;;  %v11433_v33 = vpop.xlane.xlu1 %11432  ;;  %19137 = vmatprep.mubr.msk.f32.mxu1 %vm1572_vm2, %v11470_v39 }
0x1876   : > { %v20147_v2 = vpop.eup %20146  ;;  %19138 = vmatmul.mubr.msk.f32.vlgmr.msra.gmra.mxu1 %vm1572_vm2, %v11471_v24  ;;  %20160 = vrcp.f32 %v11433_v33 }
0x1877   : > { %19148 = vmatpush3.msra.mxu1 %v24322_v54  ;;  %v11468_v9 = vmul.f32 %v20147_v2, %v24478_v41  ;;  %v20149_v38 = vpop.eup %20148 }
0x1878   : > { %19149 = vmatprep.subr.mxu1 %v24448_v32  ;;  %v11430_v37 = vpop.xlane.xlu0 %11429  ;;  %v11475_v6 = vmul.f32 %v20149_v38, %v24481_v31 }
0x1879   : > { %20162 = vrcp.f32 %v11430_v37  ;;  %19150 = vmatpush3.msra.mxu1 %v24448_v32  ;;  %19130 = vmatprep.mubr.msk.f32.mxu0 %vm1572_vm2, %v11468_v9 }
0x187a   : > { %v20151_v39 = vpop.eup %20150  ;;  %19161 = vmatprep.subr.mxu1 %v24452_v17  ;;  %19131 = vmatmul.mubr.msk.f32.vlgmr.msra.gmra.mxu0 %vm1572_vm2, %v11469_v56 }
0x187b   : > { %19141 = vmatpush3.msra.mxu0 %v24319_v29  ;;  %v11474_v54 = vmul.f32 %v20151_v39, %v24488_v19  ;;  %v20153_v5 = vpop.eup %20152 }
0x187c   : > { %19142 = vmatprep.subr.mxu0 %v24444_v35  ;;  %v11451_v41 = vpop.xlane.xlu0 %11450  ;;  %v11473_v31 = vmul.f32 %v20153_v5, %v24491_v48 }
0x187d   : > { %19143 = vmatpush3.msra.mxu0 %v24444_v35  ;;  %v11445_v32 = vpop.xlane.xlu1 %11444  ;;  %19151 = vmatprep.mubr.msk.f32.mxu1 %vm1572_vm2, %v11474_v54  ;;  %20164 = vrcp.f32 %v11451_v41 }
0x187e   : > { %v20155_v45 = vpop.eup %20154  ;;  %19154 = vmatprep.subr.mxu0 %v24446_v10  ;;  %19152 = vmatmul.mubr.msk.f32.vlgmr.msra.gmra.mxu1 %vm1572_vm2, %v11475_v6  ;;  %v26605_v6 = vpack.c.bf16 %v24273_v11, %v24278_v42  ;;  %v26606_v11 = vpack.c.bf16 %v24288_v55, %v24295_v52 }
0x187f   : > { %19162 = vmatpush3.msra.mxu1 %v24452_v17  ;;  %v11472_v29 = vmul.f32 %v20155_v45, %v24498_v43  ;;  %v20157_v18 = vpop.eup %20156  ;;  %v10572_v45 = vpack.c.bf16 %v24328_v49, %v24334_v30  ;;  %v10573_v49 = vpack.c.bf16 %v24326_v53, %v24330_v3  ;;  %v26607_v30 = vpack.c.bf16 %v24340_v16, %v24342_v47  ;;  %v26608_v53 = vld [vmem:[#allocation27_spill] sm:$0xff] }
0x1880   : > { %19163 = vmatprep.subr.mxu1 %v24612_v7  ;;  %v11448_v19 = vpop.xlane.xlu0 %11447  ;;  %v11479_v48 = vmul.f32 %v20157_v18, %v24500_v0  ;;  %v17440_v0 = vld [vmem:[%s26296_s5 + $0x10] sm:$0xf]  ;;  %v26609_v3 = vpack.c.bf16 %v24332_v12, %v26608_v53 }
0x1881   : > { %20166 = vrcp.f32 %v11448_v19  ;;  %19164 = vmatpush3.msra.mxu1 %v24612_v7  ;;  %v12094_v35 = vpop.permute.xlu1 %12093  ;;  %19144 = vmatprep.mubr.msk.f32.mxu0 %vm1572_vm2, %v11472_v29  ;;  %v26610_v18 = vld [vmem:[#allocation17_spill] sm:$0xff] }
0x1882   : > { %v20159_v60 = vpop.eup %20158  ;;  %19175 = vmatprep.subr.mxu1 %v24618_v4  ;;  %19145 = vmatmul.mubr.msk.f32.vlgmr.msra.gmra.mxu0 %vm1572_vm2, %v11473_v31  ;;  %20168 = vrcp.f32 %v11445_v32 }
0x1883   : > { %19155 = vmatpush3.msra.mxu0 %v24446_v10  ;;  %v11478_v17 = vmul.f32 %v20159_v60, %v24506_v63  ;;  %v20161_v24 = vpop.eup %20160 }
0x1884   : > { %19156 = vmatprep.subr.mxu0 %v24450_v26  ;;  %v11442_v43 = vpop.xlane.xlu0 %11441  ;;  %v11477_v63 = vmul.f32 %v20161_v24, %v24508_v62  ;;  %v26614_v24 = vld [vmem:[#allocation25_spill] sm:$0xff] }
0x1885   : > { %20170 = vrcp.f32 %v11442_v43  ;;  %19157 = vmatpush3.msra.mxu0 %v24450_v26  ;;  %v12536_v7 = vpop.permute.xlu1 %12535  ;;  %19165 = vmatprep.mubr.msk.f32.mxu1 %vm1572_vm2, %v11478_v17  ;;  %v26613_v43 = vld [vmem:[#allocation39_spill] sm:$0xff] }
0x1886   : > { %v20163_v61 = vpop.eup %20162  ;;  %19168 = vmatprep.subr.mxu0 %v24624_v40  ;;  %19166 = vmatmul.mubr.msk.f32.vlgmr.msra.gmra.mxu1 %vm1572_vm2, %v11479_v48 }
0x1887   : > { %19176 = vmatpush3.msra.mxu1 %v24618_v4  ;;  %v11476_v10 = vmul.f32 %v20163_v61, %v24514_v51  ;;  %v17489_v51 = vld [vmem:[%s26296_s5 + $0x14] sm:$0xf] }
0x1888   : > { %19177 = vmatprep.subr.mxu1 %v12094_v35  ;;  %v12007_v26 = vpop.permute.xlu0 %12006  ;;  %v12215_v5 = vsel %vm4088_vm3, %v17489_v51, 0 }
0x1889   : > { %19178 = vmatpush3.msra.mxu1 %v12094_v35  ;;  %v12534_v15 = vpop.permute.xlu1 %12533  ;;  %19158 = vmatprep.mubr.msk.f32.mxu0 %vm1572_vm2, %v11476_v10  ;;  %v26611_v35 = vld [vmem:[#allocation29_spill] sm:$0xff] }
0x188a   : > { %19159 = vmatmul.mubr.msk.f32.vlgmr.msra.gmra.mxu0 %vm1572_vm2, %v11477_v63  ;;  %19535 = vmatprep.subr.msk.bf16.mxu1 %vm4088_vm3, %v17440_v0  ;;  %v20165_v62 = vpop.eup %20164  ;;  %v26612_v60 = vpack.c.bf16 %v26610_v18, %v26611_v35 }
0x188b   : > { %19169 = vmatpush3.msra.mxu0 %v24624_v40  ;;  %v11483_v56 = vmul.f32 %v20165_v62, %v24518_v21  ;;  %v12339_v40 = vsel %vm4088_vm3, %v17440_v0, 0 }
0x188c   : > { %19170 = vmatprep.subr.mxu0 %v12007_v26  ;;  %v24677_v4 = vpop.permute.xlu0 %12444 }
0x188d   : > { %19171 = vmatpush3.msra.mxu0 %v12007_v26  ;;  %v24679_v33 = vpop.permute.xlu1 %12440 }
0x188e   : > { %v20167_v2 = vpop.eup %20166  ;;  %19534 = vmatprep.subr.msk.bf16.mxu0 %vm4088_vm3, %v17489_v51 }
0x188f   : > { %v11482_v9 = vmul.f32 %v20167_v2, %v24524_v36  ;;  %v20169_v38 = vpop.eup %20168 }
0x1890   : > { %v24684_v37 = vpop.permute.xlu0 %12442  ;;  %v11481_v36 = vmul.f32 %v20169_v38, %v24520_v22 }
0x1891   : > { %v24687_v39 = vpop.permute.xlu1 %12626  ;;  %19179 = vmatprep.mubr.msk.f32.mxu1 %vm1572_vm2, %v11482_v9 }
0x1892   : > { %v20171_v54 = vpop.eup %20170  ;;  %19180 = vmatmul.mubr.msk.f32.vlgmr.msra.gmra.mxu1 %vm1572_vm2, %v11483_v56 }
0x1893   : > { %19201 = vmatpush3.bf16.msra.mxu1 %v12339_v40  ;;  %19202 = vmatprep.mubr.msk.bf16.mxu1 %vm865_vm1, %v26605_v6  ;;  %v11480_v21 = vmul.f32 %v20171_v54, %v24530_v14 }
0x1894   : > { %19225 = vmatprep.subr.msk.mxu1 %vm865_vm1, %v12536_v7  ;;  %v24698_v41 = vpop.permute.xlu0 %12438 }
0x1895   : > { %v12718_v32 = vpop.permute.xlu1 %12717  ;;  %19172 = vmatprep.mubr.msk.f32.mxu0 %vm1572_vm2, %v11480_v21 }
0x1896   : > { %19173 = vmatmul.mubr.msk.f32.vlgmr.msra.gmra.mxu0 %vm1572_vm2, %v11481_v36  ;;  %19203 = vmatmul.mubr.msk.bf16.vlgmr.msra.gmra.mxu1 %vm865_vm1, %v26606_v11 }
0x1897   : > { %19183 = vmatpush3.bf16.msra.mxu0 %v12215_v5  ;;  %19226 = vmatpush3.xpose.msk.msra.mxu1 %vm865_vm1, %v12536_v7  ;;  %v26615_v7 = vpack.c.bf16 %v26613_v43, %v26614_v24 }
0x1898   : > { %19206 = vmatprep.mubr.msk.bf16.mxu1 %vm865_vm1, %v10572_v45  ;;  %19218 = vmatprep.subr.msk.mxu0 %vm865_vm1, %v24677_v4  ;;  %v12530_v42 = vpop.permute.xlu0 %12529 }
0x1899   : > { %19227 = vmatprep.subr.msk.mxu1 %vm865_vm1, %v12534_v15  ;;  %v12716_v22 = vpop.permute.xlu1 %12715 }
0x189b   : > { %19228 = vmatpush3.xpose.msk.msra.mxu1 %vm865_vm1, %v12534_v15 }
0x189c   : > { %19239 = vmatprep.subr.msk.mxu1 %vm865_vm1, %v12718_v32  ;;  %v12532_v55 = vpop.permute.xlu0 %12531 }
0x189d   : > { %v24718_v52 = vpop.permute.xlu1 %12622 }
0x189e   : > { %19207 = vmatmul.mubr.msk.bf16.gmra.mxu1 %vm865_vm1, %v10573_v49 }
0x189f   : > { %19210 = vmatprep.mubr.msk.bf16.mxu1 %vm865_vm1, %v26607_v30 }
0x18a0   : > { %v24725_v14 = vpop.permute.xlu0 %12624 }
0x18a1   : > { %v24727_v29 = vpop.permute.xlu1 %12808 }
0x18a4   : > { %v24729_v31 = vpop.permute.xlu0 %12620 }
0x18a5   : > { %v12900_v19 = vpop.permute.xlu1 %12899 }
0x18a6   : > { %19211 = vmatmul.mubr.msk.bf16.gmra.mxu1 %vm865_vm1, %v26609_v3 }
0x18a7   : > { %19214 = vmatprep.mubr.msk.bf16.mxu1 %vm865_vm1, %v26612_v60 }
0x18a8   : > { %v12712_v16 = vpop.permute.xlu0 %12711 }
0x18a9   : > { %v12898_v47 = vpop.permute.xlu1 %12897 }
0x18ac   : > { %v12714_v17 = vpop.permute.xlu0 %12713 }
0x18ad   : > { %v24739_v48 = vpop.permute.xlu1 %12804 }
0x18ae   : > { %19215 = vmatmul.mubr.msk.bf16.gmra.mxu1 %vm865_vm1, %v26615_v7 }
0x18af   : > { %19229 = vmatprep.mubr.msk.f32.mxu1 %vm865_vm1, %v12530_v42 }
0x18b0   : > { %v24746_v12 = vpop.permute.xlu0 %12806 }
0x18b1   : > { %v24748_v61 = vpop.permute.xlu1 %12990 }
0x18b4   : > { %v24750_v10 = vpop.permute.xlu0 %12802 }
0x18b5   : > { %v13082_v0 = vpop.permute.xlu1 %13081 }
0x18b6   : > { %19230 = vmatmul.mubr.msk.f32.vlgmr.msra.gmra.mxu1 %vm865_vm1, %v12532_v55 }
0x18b7   : > { %19240 = vmatpush3.xpose.msk.msra.mxu1 %vm865_vm1, %v12718_v32  ;;  %19243 = vmatprep.mubr.msk.f32.mxu1 %vm865_vm1, %v12712_v16 }
0x18b8   : > { %19241 = vmatprep.subr.msk.mxu1 %vm865_vm1, %v12716_v22  ;;  %v12894_v63 = vpop.permute.xlu0 %12893 }
0x18b9   : > { %v13080_v26 = vpop.permute.xlu1 %13079 }
0x18bb   : > { %19242 = vmatpush3.xpose.msk.msra.mxu1 %vm865_vm1, %v12716_v22 }
0x18bc   : > { %19253 = vmatprep.subr.msk.mxu1 %vm865_vm1, %v12900_v19  ;;  %v12896_v15 = vpop.permute.xlu0 %12895 }
0x18bd   : > { %v24758_v51 = vpop.permute.xlu1 %12986 }
0x18be   : > { %19244 = vmatmul.mubr.msk.f32.vlgmr.msra.gmra.mxu1 %vm865_vm1, %v12714_v17 }
0x18bf   : > { %19254 = vmatpush3.xpose.msk.msra.mxu1 %vm865_vm1, %v12900_v19  ;;  %19257 = vmatprep.mubr.msk.f32.mxu1 %vm865_vm1, %v12894_v63 }
0x18c0   : > { %19255 = vmatprep.subr.msk.mxu1 %vm865_vm1, %v12898_v47  ;;  %v24764_v62 = vpop.permute.xlu0 %12988 }
0x18c1   : > { %v13078_v2 = vpop.permute.xlu1 %13077 }
0x18c3   : > { %19256 = vmatpush3.xpose.msk.msra.mxu1 %vm865_vm1, %v12898_v47 }
0x18c4   : > { %19267 = vmatprep.subr.msk.mxu1 %vm865_vm1, %v13082_v0  ;;  %v24768_v9 = vpop.permute.xlu0 %12984 }
0x18c5   : > { %v24770_v56 = vpop.permute.xlu1 %13344 }
0x18c6   : > { %19258 = vmatmul.mubr.msk.f32.vlgmr.msra.gmra.mxu1 %vm865_vm1, %v12896_v15 }
0x18c7   : > { %19268 = vmatpush3.xpose.msk.msra.mxu1 %vm865_vm1, %v13082_v0 }
0x18c8   : > { %19269 = vmatprep.subr.msk.mxu1 %vm865_vm1, %v13080_v26  ;;  %v13076_v40 = vpop.permute.xlu0 %13075 }
0x18c9   : > { %v24775_v38 = vpop.permute.xlu1 %13342  ;;  %19271 = vmatprep.mubr.msk.f32.mxu1 %vm865_vm1, %v13076_v40 }
0x18cb   : > { %19270 = vmatpush3.xpose.msk.msra.mxu1 %vm865_vm1, %v13080_v26 }
0x18cc   : > { %v13432_v54 = vpop.permute.xlu0 %13431 }
0x18cd   : > { %v13430_v6 = vpop.permute.xlu1 %13429  ;;  %19281 = vmatprep.subr.mxu1 %v13432_v54 }
0x18ce   : > { %19272 = vmatmul.mubr.msk.f32.vlgmr.msra.gmra.mxu1 %vm865_vm1, %v13078_v2 }
0x18cf   : > { %19282 = vmatpush3.msra.mxu1 %v13432_v54 }
0x18d0   : > { %19283 = vmatprep.subr.mxu1 %v13430_v6 }
0x18d1   : > { %19284 = vmatpush3.msra.mxu1 %v13430_v6  ;;  %v24780_v21 = vpop.permute.xlu1 %13518 }
0x18d5   : > { %v24782_v36 = vpop.permute.xlu1 %13605 }
0x18d6   : > { %19295 = vmatprep.subr.mxu1 %v24782_v36 }
0x1936   : > { %v19139_v5 = vpop.f32.mrf.mxu1 }
0x1938   : > { %v11649_v45 = vpop.f32.mrf.mxu1 }
0x1939   : > { %v12181_v22 = vpack.c.bf16 %v19139_v5, %v11649_v45 }
0x193a   : > { %v19132_v32 = vpop.f32.mrf.mxu0 }
0x193c   : > { %v11562_v11 = vpop.f32.mrf.mxu0 }
0x193d   : > { %v12180_v42 = vpack.c.bf16 %v19132_v32, %v11562_v11 }
0x193e   : > { %v19153_v49 = vpop.f32.mrf.mxu1 }
0x193f   : > { %19184 = vmatprep.mubr.msk.bf16.mxu0 %vm865_vm1, %v12180_v42  ;;  %v24872_v42 = vld [vmem:[%s20866_s29 + $0x10] sm:$0xff] }
0x1940   : > { %19185 = vmatmul.mubr.msk.bf16.vlgmr.msra.gmra.mxu0 %vm865_vm1, %v12181_v22  ;;  %v11823_v30 = vpop.f32.mrf.mxu1 }
0x1941   : > { %19219 = vmatpush3.xpose.msk.msra.mxu0 %vm865_vm1, %v24677_v4  ;;  %v12183_v3 = vpack.c.bf16 %v19153_v49, %v11823_v30  ;;  %v24885_v49 = vld [vmem:[%s20866_s29 + $0x38] sm:$0xff] }
0x1942   : > { %19220 = vmatprep.subr.msk.mxu0 %vm865_vm1, %v24684_v37  ;;  %v19146_v55 = vpop.f32.mrf.mxu0 }
0x1944   : > { %v11736_v19 = vpop.f32.mrf.mxu0 }
0x1945   : > { %v12182_v53 = vpack.c.bf16 %v19146_v55, %v11736_v19  ;;  %19221 = vmatpush3.xpose.msk.msra.mxu0 %vm865_vm1, %v24684_v37 }
0x1946   : > { %19232 = vmatprep.subr.msk.mxu0 %vm865_vm1, %v24687_v39  ;;  %v19167_v18 = vpop.f32.mrf.mxu1 }
0x1947   : > { %19188 = vmatprep.mubr.msk.bf16.mxu0 %vm865_vm1, %v12182_v53 }
0x1948   : > { %19189 = vmatmul.mubr.msk.bf16.gmra.mxu0 %vm865_vm1, %v12183_v3  ;;  %v11997_v35 = vpop.f32.mrf.mxu1  ;;  %v24897_v3 = vld [vmem:[%s20866_s29 + $0x58] sm:$0xff] }
0x1949   : > { %v12185_v47 = vpack.c.bf16 %v19167_v18, %v11997_v35 }
0x194a   : > { %v19160_v4 = vpop.f32.mrf.mxu0 }
0x194c   : > { %v11910_v60 = vpop.f32.mrf.mxu0 }
0x194d   : > { %v12184_v16 = vpack.c.bf16 %v19160_v4, %v11910_v60  ;;  %v24901_v4 = vld [vmem:[%s20866_s29 + $0x50] sm:$0xff] }
0x194f   : > { %19192 = vmatprep.mubr.msk.bf16.mxu0 %vm865_vm1, %v12184_v16 }
0x1950   : > { %19193 = vmatmul.mubr.msk.bf16.gmra.mxu0 %vm865_vm1, %v12185_v47 }
0x1952   : > { %v19181_v17 = vpop.f32.mrf.mxu1 }
0x1954   : > { %v12171_v37 = vpop.f32.mrf.mxu1 }
0x1955   : > { %v12187_v26 = vpack.c.bf16 %v19181_v17, %v12171_v37  ;;  %v24907_v17 = vld [vmem:[%s20866_s29 + $0x78] sm:$0xff] }
0x1956   : > { %v19174_v43 = vpop.f32.mrf.mxu0  ;;  %v24799_v24 = vpop.f32.mrf.mxu1 }
0x1958   : > { %v12084_v7 = vpop.f32.mrf.mxu0  ;;  %v24801_v0 = vpop.f32.mrf.mxu1 }
0x1959   : > { %26616 = vst [vmem:[#allocation47_spill] sm:$0xff] %v24801_v0  ;;  %v12186_v63 = vpack.c.bf16 %v19174_v43, %v12084_v7  ;;  %v24911_v7 = vld [vmem:[%s20866_s29 + $0x70] sm:$0xff] }
0x195a   : > { %v24803_v15 = vpop.f32.mrf.mxu1 }
0x195b   : > { %26617 = vst [vmem:[#allocation32_spill] sm:$0xff] %v24803_v15  ;;  %19196 = vmatprep.mubr.msk.bf16.mxu0 %vm865_vm1, %v12186_v63 }
0x195c   : > { %19197 = vmatmul.mubr.msk.bf16.gmra.mxu0 %vm865_vm1, %v12187_v26  ;;  %v24807_v2 = vpop.f32.mrf.mxu1 }
0x195d   : > { %26618 = vst [vmem:[#allocation33_spill] sm:$0xff] %v24807_v2  ;;  %19222 = vmatprep.mubr.msk.f32.mxu0 %vm865_vm1, %v24698_v41 }
0x195e   : > { %v24811_v40 = vpop.f32.mrf.mxu1 }
0x195f   : > { %26619 = vst [vmem:[#allocation49_spill] sm:$0xff] %v24811_v40 }
0x1960   : > { %v24813_v54 = vpop.f32.mrf.mxu1 }
0x1961   : > { %26620 = vst [vmem:[#allocation48_spill] sm:$0xff] %v24813_v54  ;;  %v25031_v54 = vld [vmem:[%s20866_s29 + $0x40] sm:$0xff] }
0x1962   : > { %v24815_v6 = vpop.f32.mrf.mxu1  ;;  %26647 = vst [vmem:[#allocation64_spill] sm:$0xff] %v25031_v54 }
0x1963   : > { %26621 = vst [vmem:[#allocation50_spill] sm:$0xff] %v24815_v6 }
0x1964   : > { %v24817_v5 = vpop.f32.mrf.mxu1  ;;  %19223 = vmatmul.mubr.msk.f32.vlgmr.msra.gmra.mxu0 %vm865_vm1, %v24679_v33 }
0x1965   : > { %26622 = vst [vmem:[#allocation51_spill] sm:$0xff] %v24817_v5  ;;  %19233 = vmatpush3.xpose.msk.msra.mxu0 %vm865_vm1, %v24687_v39  ;;  %19236 = vmatprep.mubr.msk.f32.mxu0 %vm865_vm1, %v24729_v31 }
0x1966   : > { %19234 = vmatprep.subr.msk.mxu0 %vm865_vm1, %v24725_v14  ;;  %v24827_v41 = vpop.f32.mrf.mxu1 }
0x1967   : > { %26623 = vst [vmem:[#allocation34_spill] sm:$0xff] %v24827_v41 }
0x1968   : > { %v24829_v32 = vpop.f32.mrf.mxu1 }
0x1969   : > { %26624 = vst [vmem:[#allocation43_spill] sm:$0xff] %v24829_v32  ;;  %19235 = vmatpush3.xpose.msk.msra.mxu0 %vm865_vm1, %v24725_v14 }
0x196a   : > { %19246 = vmatprep.subr.msk.mxu0 %vm865_vm1, %v24727_v29  ;;  %v24835_v33 = vpop.f32.mrf.mxu1 }
0x196b   : > { %26625 = vst [vmem:[#allocation35_spill] sm:$0xff] %v24835_v33 }
0x196c   : > { %19237 = vmatmul.mubr.msk.f32.vlgmr.msra.gmra.mxu0 %vm865_vm1, %v24718_v52  ;;  %v24839_v39 = vpop.f32.mrf.mxu1 }
0x196d   : > { %26626 = vst [vmem:[#allocation41_spill] sm:$0xff] %v24839_v39  ;;  %19247 = vmatpush3.xpose.msk.msra.mxu0 %vm865_vm1, %v24727_v29  ;;  %19250 = vmatprep.mubr.msk.f32.mxu0 %vm865_vm1, %v24750_v10  ;;  %v24868_v10 = vld [vmem:[%s20866_s29 + $0x18] sm:$0xff] }
0x196e   : > { %19248 = vmatprep.subr.msk.mxu0 %vm865_vm1, %v24746_v12  ;;  %v24847_v14 = vpop.f32.mrf.mxu1 }
0x196f   : > { %26627 = vst [vmem:[#allocation37_spill] sm:$0xff] %v24847_v14 }
0x1970   : > { %v24849_v31 = vpop.f32.mrf.mxu1 }
0x1971   : > { %26628 = vst [vmem:[#allocation44_spill] sm:$0xff] %v24849_v31  ;;  %19249 = vmatpush3.xpose.msk.msra.mxu0 %vm865_vm1, %v24746_v12 }
0x1972   : > { %19260 = vmatprep.subr.msk.mxu0 %vm865_vm1, %v24748_v61  ;;  %v24855_v52 = vpop.f32.mrf.mxu1 }
0x1973   : > { %26629 = vst [vmem:[#allocation36_spill] sm:$0xff] %v24855_v52 }
0x1974   : > { %19251 = vmatmul.mubr.msk.f32.vlgmr.msra.gmra.mxu0 %vm865_vm1, %v24739_v48  ;;  %v24859_v29 = vpop.f32.mrf.mxu1 }
0x1975   : > { %26630 = vst [vmem:[#allocation27_spill] sm:$0xff] %v24859_v29  ;;  %19261 = vmatpush3.xpose.msk.msra.mxu0 %vm865_vm1, %v24748_v61  ;;  %19264 = vmatprep.mubr.msk.f32.mxu0 %vm865_vm1, %v24768_v9 }
0x1976   : > { %19262 = vmatprep.subr.msk.mxu0 %vm865_vm1, %v24764_v62  ;;  %v19231_v12 = vpop.f32.mrf.mxu1 }
0x1977   : > { %v12617_v45 = vadd.f32 %v24868_v10, %v19231_v12 }
0x1978   : > { %v12611_v11 = vpop.f32.mrf.mxu1 }
0x1979   : > { %v12612_v48 = vadd.f32 %v24872_v42, %v12611_v11  ;;  %19263 = vmatpush3.xpose.msk.msra.mxu0 %vm865_vm1, %v24764_v62  ;;  %v13175_v61 = vsel %vm1572_vm2, %v12617_v45, -inf  ;;  %v24919_v11 = vpop.permute.xlu0 %13516 }
0x197a   : > { %19274 = vmatprep.subr.mxu0 %v24770_v56  ;;  %13176 = vmax.xlane.f32.xlu0 %v13175_v61 }
0x197b   : > { %v13172_v9 = vsel %vm1572_vm2, %v12612_v48, -inf }
0x197c   : > { %19265 = vmatmul.mubr.msk.f32.vlgmr.msra.gmra.mxu0 %vm865_vm1, %v24758_v51  ;;  %v24891_v51 = vld [vmem:[%s20866_s29 + $0x30] sm:$0xff] }
0x197d   : > { %19275 = vmatpush3.msra.mxu0 %v24770_v56  ;;  %v24921_v61 = vpop.permute.xlu0 %13692 }
0x197e   : > { %v19245_v22 = vpop.f32.mrf.mxu1  ;;  %19276 = vmatprep.subr.mxu0 %v24775_v38  ;;  %13173 = vmax.xlane.f32.xlu0 %v13172_v9 }
0x197f   : > { %v12799_v62 = vadd.f32 %v24885_v49, %v19245_v22  ;;  %19277 = vmatpush3.msra.mxu0 %v24775_v38  ;;  %v24925_v22 = vpop.permute.xlu1 %13603 }
0x1980   : > { %v12793_v55 = vpop.f32.mrf.mxu1  ;;  %19288 = vmatprep.subr.mxu0 %v24780_v21 }
0x1981   : > { %v12794_v56 = vadd.f32 %v24891_v51, %v12793_v55  ;;  %v13187_v30 = vsel %vm1572_vm2, %v12799_v62, -inf }
0x1982   : > { %13188 = vmax.xlane.f32.xlu1 %v13187_v30 }
0x1983   : > { %v13184_v19 = vsel %vm1572_vm2, %v12794_v56, -inf }
0x1984   : > { %13185 = vmax.xlane.f32.xlu0 %v13184_v19 }
0x1986   : > { %v19259_v53 = vpop.f32.mrf.mxu1 }
0x1987   : > { %v12981_v38 = vadd.f32 %v24897_v3, %v19259_v53 }
0x1988   : > { %v12975_v18 = vpop.f32.mrf.mxu1 }
0x1989   : > { %v12976_v35 = vadd.f32 %v24901_v4, %v12975_v18  ;;  %v13199_v60 = vsel %vm1572_vm2, %v12981_v38, -inf }
0x198a   : > { %13200 = vmax.xlane.f32.xlu1 %v13199_v60 }
0x198b   : > { %v13196_v16 = vsel %vm1572_vm2, %v12976_v35, -inf }
0x198c   : > { %13197 = vmax.xlane.f32.xlu0 %v13196_v16  ;;  %v24933_v16 = vpop.permute.xlu1 %13779 }
0x198e   : > { %v19273_v47 = vpop.f32.mrf.mxu1 }
0x198f   : > { %v13163_v37 = vadd.f32 %v24907_v17, %v19273_v47 }
0x1990   : > { %v13157_v43 = vpop.f32.mrf.mxu1 }
0x1991   : > { %v24914_v63 = vadd.f32 %v24911_v7, %v13157_v43  ;;  %v13211_v26 = vsel %vm1572_vm2, %v13163_v37, -inf }
0x1992   : > { %13212 = vmax.xlane.f32.xlu1 %v13211_v26 }
0x1993   : > { %v13208_v12 = vsel %vm1572_vm2, %v24914_v63, -inf }
0x1994   : > { %13209 = vmax.xlane.f32.xlu0 %v13208_v12 }
0x1a00   : > { %v24923_v9 = vpop.f32.mrf.mxu0 }
0x1a02   : > { %v24927_v55 = vpop.f32.mrf.mxu0 }
0x1a03   : > { %26631 = vst [vmem:[#allocation17_spill] sm:$0xff] %v24927_v55  ;;  %v13177_v30 = vpop.xlane.xlu0 %13176 }
0x1a04   : > { %v13217_v19 = vsub.f32 %v12617_v45, %v13177_v30  ;;  %v24929_v53 = vpop.f32.mrf.mxu0 }
0x1a05   : > { %26632 = vst [vmem:[#allocation29_spill] sm:$0xff] %v24929_v53 }
0x1a06   : > { %v13236_v18 = vmul.f32 1.442695, %v13217_v19  ;;  %v24931_v60 = vpop.f32.mrf.mxu0 }
0x1a07   : > { %26633 = vst [vmem:[#allocation39_spill] sm:$0xff] %v24931_v60  ;;  %v13174_v47 = vpop.xlane.xlu0 %13173 }
0x1a08   : > { %20172 = vpow2.f32 %v13236_v18  ;;  %v13216_v43 = vsub.f32 %v12612_v48, %v13174_v47  ;;  %v24935_v26 = vpop.f32.mrf.mxu0 }
0x1a09   : > { %26634 = vst [vmem:[#allocation25_spill] sm:$0xff] %v24935_v26 }
0x1a0a   : > { %v13234_v12 = vmul.f32 1.442695, %v13216_v43  ;;  %v24937_v29 = vpop.f32.mrf.mxu0 }
0x1a0b   : > { %26635 = vst [vmem:[#allocation52_spill] sm:$0xff] %v24937_v29  ;;  %v13189_v52 = vpop.xlane.xlu1 %13188  ;;  %v25039_v29 = vld [vmem:[%s20866_s29 + $0x68] sm:$0xff] }
0x1a0c   : > { %20174 = vpow2.f32 %v13234_v12  ;;  %v13221_v31 = vsub.f32 %v12799_v62, %v13189_v52  ;;  %v24939_v14 = vpop.f32.mrf.mxu0  ;;  %26648 = vst [vmem:[#allocation65_spill] sm:$0xff] %v25039_v29 }
0x1a0d   : > { %26636 = vst [vmem:[#allocation53_spill] sm:$0xff] %v24939_v14  ;;  %v13186_v45 = vpop.xlane.xlu0 %13185 }
0x1a0e   : > { %v13244_v30 = vmul.f32 1.442695, %v13221_v31  ;;  %v13220_v19 = vsub.f32 %v12794_v56, %v13186_v45  ;;  %v24941_v39 = vpop.f32.mrf.mxu0 }
0x1a0f   : > { %26637 = vst [vmem:[#allocation54_spill] sm:$0xff] %v24941_v39  ;;  %v25019_v39 = vld [vmem:[%s20866_s29 + $0x48] sm:$0xff] }
0x1a10   : > { %20176 = vpow2.f32 %v13244_v30  ;;  %v13242_v33 = vmul.f32 1.442695, %v13220_v19  ;;  %v24943_v32 = vpop.f32.mrf.mxu0  ;;  %26646 = vst [vmem:[#allocation63_spill] sm:$0xff] %v25019_v39 }
0x1a11   : > { %26638 = vst [vmem:[#allocation55_spill] sm:$0xff] %v24943_v32  ;;  %v25011_v32 = vld [vmem:[%s20866_s29 + $0x20] sm:$0xff] }
0x1a12   : > { %20178 = vpow2.f32 %v13242_v33  ;;  %v24945_v48 = vpop.f32.mrf.mxu0 }
0x1a13   : > { %26639 = vst [vmem:[#allocation56_spill] sm:$0xff] %v24945_v48  ;;  %v13201_v18 = vpop.xlane.xlu1 %13200 }
0x1a14   : > { %v13225_v47 = vsub.f32 %v12981_v38, %v13201_v18  ;;  %v24949_v52 = vpop.f32.mrf.mxu0 }
0x1a15   : > { %v24947_v43 = vpop.eup %20172  ;;  %v13198_v12 = vpop.xlane.xlu0 %13197  ;;  %26640 = vst [vmem:[#allocation57_spill] sm:$0xff] %v24949_v52  ;;  %v24983_v52 = vld [vmem:[%s20866_s29] sm:$0xff] }
0x1a16   : > { %v13224_v62 = vsub.f32 %v12976_v35, %v13198_v12  ;;  %v13271_v31 = vsel %vm1572_vm2, %v24947_v43, 0.0  ;;  %v13252_v56 = vmul.f32 1.442695, %v13225_v47  ;;  %v24955_v19 = vpop.f32.mrf.mxu0 }
0x1a17   : > { %13272 = vadd.xlane.f32.xlu1 %v13271_v31  ;;  %26641 = vst [vmem:[#allocation58_spill] sm:$0xff] %v24955_v19 }
0x1a18   : > { %v13250_v30 = vmul.f32 1.442695, %v13224_v62  ;;  %20180 = vpow2.f32 %v13252_v56 }
0x1a19   : > { %v24953_v45 = vpop.eup %20174 }
0x1a1a   : > { %v13268_v33 = vsel %vm1572_vm2, %v24953_v45, 0.0  ;;  %20182 = vpow2.f32 %v13250_v30 }
0x1a1b   : > { %v13213_v38 = vpop.xlane.xlu1 %13212  ;;  %13269 = vadd.xlane.f32.xlu0 %v13268_v33 }
0x1a1c   : > { %v13229_v18 = vsub.f32 %v13163_v37, %v13213_v38  ;;  %v24959_v48 = vpop.f32.mrf.mxu0 }
0x1a1d   : > { %26642 = vst [vmem:[#allocation59_spill] sm:$0xff] %v24959_v48  ;;  %v24961_v35 = vpop.eup %20176  ;;  %v13210_v12 = vpop.xlane.xlu0 %13209 }
0x1a1e   : > { %v13260_v47 = vmul.f32 1.442695, %v13229_v18  ;;  %v24963_v31 = vpop.f32.mrf.mxu0  ;;  %v13283_v62 = vsel %vm1572_vm2, %v24961_v35, 0.0  ;;  %v13228_v33 = vsub.f32 %v24914_v63, %v13210_v12 }
0x1a1f   : > { %26643 = vst [vmem:[#allocation60_spill] sm:$0xff] %v24963_v31  ;;  %v24967_v19 = vpop.eup %20178  ;;  %13284 = vadd.xlane.f32.xlu1 %v13283_v62  ;;  %v24977_v31 = vld [vmem:[%s20866_s29 + $0x8] sm:$0xff] }
0x1a20   : > { %v24969_v56 = vpop.f32.mrf.mxu0  ;;  %v13280_v37 = vsel %vm1572_vm2, %v24967_v19, 0.0  ;;  %20184 = vpow2.f32 %v13260_v47  ;;  %v13258_v18 = vmul.f32 1.442695, %v13228_v33 }
0x1a21   : > { %26644 = vst [vmem:[#allocation61_spill] sm:$0xff] %v24969_v56  ;;  %13281 = vadd.xlane.f32.xlu0 %v13280_v37 }
0x1a22   : > { %v24974_v30 = vpop.f32.mrf.mxu0  ;;  %20186 = vpow2.f32 %v13258_v18 }
0x1a23   : > { %26645 = vst [vmem:[#allocation62_spill] sm:$0xff] %v24974_v30 }
0x1a24   : > { %v19224_v38 = vpop.f32.mrf.mxu0 }
0x1a25   : > { %v24980_v48 = vadd.f32 %v24977_v31, %v19224_v38  ;;  %v24990_v47 = vpop.eup %20180 }
0x1a26   : > { %v12520_v62 = vpop.f32.mrf.mxu0  ;;  %v13295_v33 = vsel %vm1572_vm2, %v24990_v47, 0.0 }
0x1a27   : > { %v24986_v56 = vadd.f32 %v24983_v52, %v12520_v62  ;;  %v13169_v63 = vsel %vm1572_vm2, %v24980_v48, -inf  ;;  %v24994_v37 = vpop.eup %20182  ;;  %v24999_v62 = vld [vmem:[%s20866_s29 + $0x28] sm:$0xff] }
0x1a28   : > { %13170 = vmax.xlane.f32.xlu1 %v13169_v63  ;;  %v13292_v18 = vsel %vm1572_vm2, %v24994_v37, 0.0 }
0x1a29   : > { %v13166_v12 = vsel %vm1572_vm2, %v24986_v56, -inf }
0x1a2a   : > { %13167 = vmax.xlane.f32.xlu0 %v13166_v12 }
0x1a2c   : > { %v19238_v38 = vpop.f32.mrf.mxu0  ;;  %13296 = vadd.xlane.f32.xlu1 %v13295_v33 }
0x1a2d   : > { %v25002_v30 = vadd.f32 %v24999_v62, %v19238_v38  ;;  %v25006_v63 = vpop.eup %20184 }
0x1a2e   : > { %v12702_v41 = vpop.f32.mrf.mxu0  ;;  %13293 = vadd.xlane.f32.xlu0 %v13292_v18  ;;  %v13307_v38 = vsel %vm1572_vm2, %v25006_v63, 0.0 }
0x1a2f   : > { %v13181_v12 = vsel %vm1572_vm2, %v25002_v30, -inf  ;;  %v25014_v33 = vadd.f32 %v25011_v32, %v12702_v41 }
0x1a30   : > { %13182 = vmax.xlane.f32.xlu1 %v13181_v12  ;;  %v25026_v12 = vpop.eup %20186 }
0x1a31   : > { %v13178_v6 = vsel %vm1572_vm2, %v25014_v33, -inf }
0x1a32   : > { %13308 = vadd.xlane.f32.xlu0 %v13307_v38 }
0x1a34   : > { %v19252_v5 = vpop.f32.mrf.mxu0 }
0x1a35   : > { %v25022_v18 = vadd.f32 %v25019_v39, %v19252_v5  ;;  %v13304_v5 = vsel %vm1572_vm2, %v25026_v12, 0.0 }
0x1a36   : > { %v12884_v14 = vpop.f32.mrf.mxu0  ;;  %13179 = vmax.xlane.f32.xlu0 %v13178_v6 }
0x1a37   : > { %v13193_v41 = vsel %vm1572_vm2, %v25022_v18, -inf  ;;  %v25034_v38 = vadd.f32 %v25031_v54, %v12884_v14 }
0x1a38   : > { %13194 = vmax.xlane.f32.xlu1 %v13193_v41  ;;  %v25047_v41 = vld [vmem:[%s20866_s29 + $0x60] sm:$0xff]  ;;  %s26650_s29 = smov 72  }
0x1a39   : > { %v13190_v6 = vsel %vm1572_vm2, %v25034_v38, -inf  ;;  %26649 = vst [vmem:[#allocation66_spill] sm:$0xff] %v25047_v41 }
0x1a3a   : > { %13305 = vadd.xlane.f32.xlu0 %v13304_v5 }
0x1a3c   : > { %v19266_v39 = vpop.f32.mrf.mxu0 }
0x1a3d   : > { %v25042_v40 = vadd.f32 %v25039_v29, %v19266_v39 }
0x1a3e   : > { %v13066_v26 = vpop.f32.mrf.mxu0  ;;  %13191 = vmax.xlane.f32.xlu0 %v13190_v6 }
0x1a3f   : > { %v25050_v14 = vadd.f32 %v25047_v41, %v13066_v26  ;;  %v13205_v54 = vsel %vm1572_vm2, %v25042_v40, -inf }
0x1a40   : > { %13206 = vmax.xlane.f32.xlu1 %v13205_v54 }
0x1a41   : > { %v13202_v5 = vsel %vm1572_vm2, %v25050_v14, -inf }
0x1a42   : > { %13203 = vmax.xlane.f32.xlu0 %v13202_v5 }
0x1a51   : > { %13777 = vrot.lane.b32.xlu1 %v23733_v20, %s26604_s18 }
0x1a58   : > { %13690 = vrot.lane.b32.xlu0 %v23738_v44, %s26604_s18 }
0x1aa0   : > { %v13273_v39 = vpop.xlane.xlu1 %13272 }
0x1aa1   : > { %20188 = vrcp.f32 %v13273_v39 }
0x1aa4   : > { %v13270_v6 = vpop.xlane.xlu0 %13269 }
0x1aa5   : > { %20190 = vrcp.f32 %v13270_v6 }
0x1aa8   : > { %v13285_v26 = vpop.xlane.xlu1 %13284 }
0x1aa9   : > { %20192 = vrcp.f32 %v13285_v26 }
0x1aaa   : > { %v13282_v41 = vpop.xlane.xlu0 %13281 }
0x1aab   : > { %20194 = vrcp.f32 %v13282_v41 }
0x1aae   : > { %v20189_v29 = vpop.eup %20188 }
0x1aaf   : > { %v13329_v53 = vmul.f32 %v20189_v29, %v24947_v43 }
0x1ab1   : > { %v13171_v54 = vpop.xlane.xlu1 %13170 }
0x1ab2   : > { %v20191_v2 = vpop.eup %20190  ;;  %v13215_v60 = vsub.f32 %v24980_v48, %v13171_v54 }
0x1ab3   : > { %v13168_v5 = vpop.xlane.xlu0 %13167  ;;  %v13328_v15 = vmul.f32 %v20191_v2, %v24953_v45 }
0x1ab4   : > { %v13232_v0 = vmul.f32 1.442695, %v13215_v60  ;;  %v13214_v55 = vsub.f32 %v24986_v56, %v13168_v5 }
0x1ab5   : > { %19285 = vmatprep.mubr.msk.f32.mxu1 %vm1572_vm2, %v13328_v15  ;;  %v13297_v39 = vpop.xlane.xlu1 %13296 }
0x1ab6   : > { %20196 = vpow2.f32 %v13232_v0  ;;  %v13230_v6 = vmul.f32 1.442695, %v13214_v55  ;;  %19286 = vmatmul.mubr.msk.f32.vlgmr.msra.gmra.mxu1 %vm1572_vm2, %v13329_v53  ;;  %v20193_v41 = vpop.eup %20192 }
0x1ab7   : > { %19296 = vmatpush3.msra.mxu1 %v24782_v36  ;;  %v13294_v26 = vpop.xlane.xlu0 %13293  ;;  %v13333_v15 = vmul.f32 %v20193_v41, %v24961_v35 }
0x1ab8   : > { %v20195_v48 = vpop.eup %20194  ;;  %20198 = vpow2.f32 %v13230_v6  ;;  %19297 = vmatprep.subr.mxu1 %v24925_v22 }
0x1ab9   : > { %20200 = vrcp.f32 %v13294_v26  ;;  %19298 = vmatpush3.msra.mxu1 %v24925_v22  ;;  %v13183_v2 = vpop.xlane.xlu1 %13182  ;;  %v13332_v29 = vmul.f32 %v20195_v48, %v24967_v19 }
0x1aba   : > { %19309 = vmatprep.subr.mxu1 %v24933_v16  ;;  %v13219_v0 = vsub.f32 %v25002_v30, %v13183_v2  ;;  %20202 = vrcp.f32 %v13297_v39 }
0x1abb   : > { %19299 = vmatprep.mubr.msk.f32.mxu1 %vm1572_vm2, %v13332_v29  ;;  %v25074_v36 = vpop.xlane.xlu0 %13308 }
0x1abc   : > { %v13240_v55 = vmul.f32 1.442695, %v13219_v0  ;;  %19300 = vmatmul.mubr.msk.f32.vlgmr.msra.gmra.mxu1 %vm1572_vm2, %v13333_v15 }
0x1abd   : > { %19310 = vmatpush3.msra.mxu1 %v24933_v16 }
0x1abe   : > { %20204 = vpow2.f32 %v13240_v55 }
0x1abf   : > { %v13180_v22 = vpop.xlane.xlu0 %13179 }
0x1ac0   : > { %v13218_v53 = vsub.f32 %v25014_v33, %v13180_v22 }
0x1ac1   : > { %v13195_v56 = vpop.xlane.xlu1 %13194 }
0x1ac2   : > { %v13238_v60 = vmul.f32 1.442695, %v13218_v53 }
0x1ac3   : > { %v25079_v43 = vpop.eup %20196  ;;  %v13306_v45 = vpop.xlane.xlu0 %13305 }
0x1ac4   : > { %20206 = vpow2.f32 %v13238_v60  ;;  %v13265_v19 = vsel %vm1572_vm2, %v25079_v43, 0.0 }
0x1ac5   : > { %v25083_v35 = vpop.eup %20198  ;;  %20208 = vrcp.f32 %v13306_v45  ;;  %13266 = vadd.xlane.f32.xlu1 %v13265_v19 }
0x1ac6   : > { %v20201_v30 = vpop.eup %20200  ;;  %v13262_v16 = vsel %vm1572_vm2, %v25083_v35, 0.0 }
0x1ac7   : > { %13263 = vadd.xlane.f32.xlu0 %v13262_v16  ;;  %v13336_v33 = vmul.f32 %v20201_v30, %v24994_v37  ;;  %v20203_v5 = vpop.eup %20202  ;;  %v13192_v15 = vpop.xlane.xlu0 %13191 }
0x1ac8   : > { %v13337_v26 = vmul.f32 %v20203_v5, %v24990_v47  ;;  %v13223_v47 = vsub.f32 %v25022_v18, %v13195_v56  ;;  %v13222_v22 = vsub.f32 %v25034_v38, %v13192_v15 }
0x1ac9   : > { %19313 = vmatprep.mubr.msk.f32.mxu1 %vm1572_vm2, %v13336_v33  ;;  %v13207_v54 = vpop.xlane.xlu1 %13206 }
0x1aca   : > { %v13248_v0 = vmul.f32 1.442695, %v13223_v47  ;;  %v13227_v55 = vsub.f32 %v25042_v40, %v13207_v54  ;;  %v26652_v54 = vld [vmem:[#allocation46_spill] sm:$0xff] }
0x1acb   : > { %v25089_v39 = vpop.eup %20204  ;;  %v13204_v53 = vpop.xlane.xlu0 %13203 }
0x1acc   : > { %v13277_v6 = vsel %vm1572_vm2, %v25089_v39, 0.0  ;;  %20210 = vpow2.f32 %v13248_v0  ;;  %v13256_v60 = vmul.f32 1.442695, %v13227_v55  ;;  %v13226_v45 = vsub.f32 %v25050_v14, %v13204_v53 }
0x1acd   : > { %v13778_v41 = vpop.permute.xlu1 %13777  ;;  %13278 = vadd.xlane.f32.xlu1 %v13277_v6 }
0x1ace   : > { %19311 = vmatprep.subr.mxu1 %v13778_v41  ;;  %20212 = vpow2.f32 %v13256_v60  ;;  %v13254_v19 = vmul.f32 1.442695, %v13226_v45 }
0x1acf   : > { %19312 = vmatpush3.msra.mxu1 %v13778_v41  ;;  %v13691_v5 = vpop.permute.xlu0 %13690 }
0x1ad0   : > { %19314 = vmatmul.mubr.msk.f32.vlgmr.msra.gmra.mxu1 %vm1572_vm2, %v13337_v26 }
0x1ad1   : > { %v25095_v48 = vpop.eup %20206 }
0x1ad2   : > { %v20209_v37 = vpop.eup %20208  ;;  %v13274_v2 = vsel %vm1572_vm2, %v25095_v48, 0.0 }
0x1ad3   : > { %13275 = vadd.xlane.f32.xlu0 %v13274_v2  ;;  %v13340_v29 = vmul.f32 %v20209_v37, %v25026_v12  ;;  %v13246_v12 = vmul.f32 1.442695, %v13222_v22 }
0x1ad5   : > { %19327 = vmatprep.mubr.msk.f32.mxu1 %vm1572_vm2, %v13340_v29  ;;  %20214 = vpow2.f32 %v13246_v12 }
0x1ad6   : > { %20216 = vpow2.f32 %v13254_v19 }
0x1ad9   : > { %v25109_v18 = vpop.eup %20210 }
0x1ada   : > { %v13289_v56 = vsel %vm1572_vm2, %v25109_v18, 0.0 }
0x1adb   : > { %v25113_v30 = vpop.eup %20212 }
0x1adc   : > { %v13301_v38 = vsel %vm1572_vm2, %v25113_v30, 0.0 }
0x1ade   : > { %13953 = vrot.lane.b32.xlu1 %v23771_v57, %s26604_s18 }
0x1ae2   : > { %v25115_v40 = vpop.eup %20214 }
0x1ae3   : > { %v13286_v14 = vsel %vm1572_vm2, %v25115_v40, 0.0  ;;  %v25121_v16 = vpop.eup %20216 }
0x1ae4   : > { %v13298_v33 = vsel %vm1572_vm2, %v25121_v16, 0.0 }
0x1ae9   : > { %13866 = vrot.lane.b32.xlu0 %v23778_v13, %s26604_s18 }
0x1b02   : > { %13290 = vadd.xlane.f32.xlu1 %v13289_v56 }
0x1b06   : > { %13302 = vadd.xlane.f32.xlu1 %v13301_v38 }
0x1b08   : > { %13287 = vadd.xlane.f32.xlu0 %v13286_v14 }
0x1b0c   : > { %13299 = vadd.xlane.f32.xlu0 %v13298_v33 }
0x1b17   : > { %13951 = vrot.lane.b32.xlu1 %v23785_v1, %s26604_s18 }
0x1b1b   : > { %14192 = vrot.lane.b32.xlu1 %v23684_v28, %s26650_s29 }
0x1b1f   : > { %14285 = vrot.lane.b32.xlu1 %v23689_v27, %s26650_s29 }
0x1b22   : > { %13864 = vrot.lane.b32.xlu0 %v23790_v25, %s26604_s18  ;;  %s26164_s18 = scalar_lea.vmem [#allocation7], %s20854_s23  ;;  %s17689_s23 = sshll.u32 %s20716_s17, 11 }
0x1b23   : > { %14283 = vrot.lane.b32.xlu1 %v23681_v8, %s26650_s29  ;;  %s16991_s26 = sshll.u32 %s26164_s18, 4  ;;  %s26243_s30 = scalar_lea.hbm %s26301_s10, %s17689_s23  ;;  %s26245_s26 = int_to_ptr.vmem [resolvable:$true] %s16991_s26 }
0x1b24   : > { %s16977_s17 = scalar_lea.sflag [#allocation4], %s20851_s22 }
0x1b26   : > { %14194 = vrot.lane.b32.xlu0 %v23694_v34, %s26650_s29 }
0x1b27   : > { %14376 = vrot.lane.b32.xlu1 %v23703_v46, %s26650_s29 }
0x1b2a   : > { %14188 = vrot.lane.b32.xlu0 %v23684_v28, %s26651_s28 }
0x1b2b   : > { %14374 = vrot.lane.b32.xlu1 %v23713_v59, %s26650_s29 }
0x1b2e   : > { %14190 = vrot.lane.b32.xlu0 %v23694_v34, %s26651_s28 }
0x1b2f   : > { %14467 = vrot.lane.b32.xlu1 %v23708_v50, %s26650_s29 }
0x1b32   : > { %14279 = vrot.lane.b32.xlu0 %v23681_v8, %s26651_s28 }
0x1b33   : > { %14465 = vrot.lane.b32.xlu1 %v23718_v23, %s26650_s29 }
0x1b36   : > { %14281 = vrot.lane.b32.xlu0 %v23689_v27, %s26651_s28 }
0x1b37   : > { %14558 = vrot.lane.b32.xlu1 %v23728_v58, %s26650_s29 }
0x1b3a   : > { %14370 = vrot.lane.b32.xlu0 %v23713_v59, %s26651_s28 }
0x1b3b   : > { %14649 = vrot.lane.b32.xlu1 %v26652_v54, %s26650_s29 }
0x1b3e   : > { %14372 = vrot.lane.b32.xlu0 %v23703_v46, %s26651_s28 }
0x1b3f   : > { %14647 = vrot.lane.b32.xlu1 %v23733_v20, %s26650_s29 }
0x1b42   : > { %14461 = vrot.lane.b32.xlu0 %v23718_v23, %s26651_s28 }
0x1b43   : > { %14554 = vrot.lane.b32.xlu1 %v23728_v58, %s26651_s28 }
0x1b46   : > { %14463 = vrot.lane.b32.xlu0 %v23708_v50, %s26651_s28 }
0x1b47   : > { %14740 = vrot.lane.b32.xlu1 %v23778_v13, %s26650_s29 }
0x1b4a   : > { %14556 = vrot.lane.b32.xlu0 %v23738_v44, %s26650_s29 }
0x1b4b   : > { %14831 = vrot.lane.b32.xlu1 %v23771_v57, %s26650_s29 }
0x1b4e   : > { %14552 = vrot.lane.b32.xlu0 %v23738_v44, %s26651_s28  ;;  %v13267_v6 = vpop.xlane.xlu1 %13266 }
0x1b4f   : > { %14829 = vrot.lane.b32.xlu1 %v23785_v1, %s26650_s29  ;;  %20218 = vrcp.f32 %v13267_v6 }
0x1b50   : > { %v13264_v41 = vpop.xlane.xlu0 %13263 }
0x1b51   : > { %20220 = vrcp.f32 %v13264_v41 }
0x1b52   : > { %14643 = vrot.lane.b32.xlu0 %v23733_v20, %s26651_s28 }
0x1b53   : > { %14736 = vrot.lane.b32.xlu1 %v23778_v13, %s26651_s28 }
0x1b56   : > { %14645 = vrot.lane.b32.xlu0 %v26652_v54, %s26651_s28  ;;  %v13279_v26 = vpop.xlane.xlu1 %13278 }
0x1b57   : > { %14827 = vrot.lane.b32.xlu1 %v23771_v57, %s26651_s28  ;;  %20222 = vrcp.f32 %v13279_v26 }
0x1b5a   : > { %14738 = vrot.lane.b32.xlu0 %v23790_v25, %s26650_s29  ;;  %v13954_v37 = vpop.permute.xlu1 %13953  ;;  %s20552_s29 = scalar_lea.vmem %s26245_s26, 2048 }
0x1b5b   : > { %19323 = vmatprep.subr.mxu1 %v13954_v37  ;;  %p20553_p13 = scmp.ne.s32.totalorder %s26245_s26, %s20552_s29 }
0x1b5c   : > { %v13276_v2 = vpop.xlane.xlu0 %13275  ;;  %19324 = vmatpush3.msra.mxu1 %v13954_v37  ;;  %v20219_v29 = vpop.eup %20218 }
0x1b5d   : > { %20224 = vrcp.f32 %v13276_v2  ;;  %v13327_v0 = vmul.f32 %v20219_v29, %v25079_v43  ;;  %v17554_v2 = vld [vmem:[%s26296_s5 + $0x18] sm:$0xf]  ;;  %p20554_p12 = pnand %p20553_p13, %p26709_p1 }
0x1b5e   : > { %v20221_v47 = vpop.eup %20220  ;;  %14734 = vrot.lane.b32.xlu0 %v23790_v25, %s26651_s28  ;;  %20226 = vrcp.f32 %v25074_v36 }
0x1b5f   : > { %v13326_v15 = vmul.f32 %v20221_v47, %v25083_v35  ;;  %v14073_v47 = vsel %vm4088_vm3, %v17554_v2, 0  ;;  %p20555_p7 = pneg %p20554_p12 }
0x1b61   : > { %19278 = vmatprep.mubr.msk.f32.mxu0 %vm1572_vm2, %v13326_v15 }
0x1b62   : > { %14825 = vrot.lane.b32.xlu0 %v23785_v1, %s26651_s28  ;;  %19279 = vmatmul.mubr.msk.f32.vlgmr.msra.gmra.mxu0 %vm1572_vm2, %v13327_v0  ;;  %s20637_s28 = smov [#allocation7]  }
0x1b63   : > { %19289 = vmatpush3.msra.mxu0 %v24780_v21  ;;  %v13867_v21 = vpop.permute.xlu0 %13866  ;;  %s20556_s11 = sshll.u32 %s20637_s28, 4  ;;  %s20557_s11 = int_to_ptr.vmem [resolvable:$false] %s20556_s11 }
0x1b64   : > { %19290 = vmatprep.subr.mxu0 %v24919_v11  ;;  %v20223_v55 = vpop.eup %20222  ;;  %s20558_s0 = scalar_lea.vmem %s20557_s11, 4096  ;;  %p20559_p10 = scmp.lt.s32.totalorder %s26245_s26, %s20557_s11 }
0x1b65   : > { %19291 = vmatpush3.msra.mxu0 %v24919_v11  ;;  %v13331_v43 = vmul.f32 %v20223_v55, %v25089_v39  ;;  %p20560_p0 = scmp.lt.s32.totalorder %s20558_s0, %s20552_s29 }
0x1b66   : > { %19302 = vmatprep.subr.mxu0 %v24921_v61 }
0x1b67   : > { %p20561_p2 = por %p20560_p0, %p20559_p10 }
0x1b69   : > { %p20562_p4 = pnand %p20561_p2, %p20555_p7 }
0x1b6a   : > { %v20225_v22 = vpop.eup %20224 }
0x1b6b   : > { %v13330_v35 = vmul.f32 %v20225_v22, %v25095_v48  ;;  %v20227_v60 = vpop.eup %20226 }
0x1b6c   : > { %v13341_v39 = vmul.f32 %v20227_v60, %v25006_v63 }
0x1b6d   : > { %19292 = vmatprep.mubr.msk.f32.mxu0 %vm1572_vm2, %v13330_v35 }
0x1b6e   : > { %19293 = vmatmul.mubr.msk.f32.vlgmr.msra.gmra.mxu0 %vm1572_vm2, %v13331_v43 }
0x1b6f   : > { %19303 = vmatpush3.msra.mxu0 %v24921_v61 }
0x1b70   : > { %19304 = vmatprep.subr.mxu0 %v13691_v5 }
0x1b71   : > { %19305 = vmatpush3.msra.mxu0 %v13691_v5 }
0x1b72   : > { %19316 = vmatprep.subr.mxu0 %v13867_v21 }
0x1b8b   : > { %v13291_v11 = vpop.xlane.xlu1 %13290 }
0x1b8c   : > { %20228 = vrcp.f32 %v13291_v11 }
0x1b8f   : > { %v13303_v53 = vpop.xlane.xlu1 %13302 }
0x1b91   : > { %v13288_v12 = vpop.xlane.xlu0 %13287 }
0x1b92   : > { %20230 = vrcp.f32 %v13288_v12 }
0x1b93   : > { %v13952_v48 = vpop.permute.xlu1 %13951  ;;  %20232 = vrcp.f32 %v13303_v53 }
0x1b94   : > { %19325 = vmatprep.subr.mxu1 %v13952_v48 }
0x1b95   : > { %v13300_v45 = vpop.xlane.xlu0 %13299  ;;  %19326 = vmatpush3.msra.mxu1 %v13952_v48 }
0x1b96   : > { %20234 = vrcp.f32 %v13300_v45  ;;  %19328 = vmatmul.mubr.msk.f32.vlgmr.msra.gmra.mxu1 %vm1572_vm2, %v13341_v39 }
0x1b97   : > { %v14193_v61 = vpop.permute.xlu1 %14192 }
0x1b99   : > { %v13865_v19 = vpop.permute.xlu0 %13864  ;;  %v20229_v38 = vpop.eup %20228 }
0x1b9a   : > { %v13335_v5 = vmul.f32 %v20229_v38, %v25109_v18 }
0x1b9b   : > { %v14286_v56 = vpop.permute.xlu1 %14285 }
0x1b9d   : > { %v14195_v36 = vpop.permute.xlu0 %14194 }
0x1b9e   : > { %19348 = vmatprep.subr.msk.mxu1 %vm865_vm1, %v14195_v36 }
0x1b9f   : > { %v20231_v14 = vpop.eup %20230  ;;  %19349 = vmatpush3.xpose.msk.msra.mxu1 %vm865_vm1, %v14195_v36  ;;  %v14284_v33 = vpop.permute.xlu1 %14283 }
0x1ba0   : > { %19350 = vmatprep.subr.msk.mxu1 %vm865_vm1, %v14193_v61  ;;  %v13334_v63 = vmul.f32 %v20231_v14, %v25115_v40  ;;  %v20233_v41 = vpop.eup %20232 }
0x1ba1   : > { %v14189_v6 = vpop.permute.xlu0 %14188  ;;  %v13339_v40 = vmul.f32 %v20233_v41, %v25113_v30 }
0x1ba2   : > { %19306 = vmatprep.mubr.msk.f32.mxu0 %vm1572_vm2, %v13334_v63  ;;  %19352 = vmatprep.mubr.msk.f32.mxu1 %vm865_vm1, %v14189_v6  ;;  %v19287_v6 = vpop.f32.mrf.mxu1 }
0x1ba3   : > { %v20235_v26 = vpop.eup %20234  ;;  %19307 = vmatmul.mubr.msk.f32.vlgmr.msra.gmra.mxu0 %vm1572_vm2, %v13335_v5  ;;  %19351 = vmatpush3.xpose.msk.msra.mxu1 %vm865_vm1, %v14193_v61  ;;  %v14377_v37 = vpop.permute.xlu1 %14376 }
0x1ba4   : > { %19317 = vmatpush3.msra.mxu0 %v13867_v21  ;;  %19355 = vmatprep.subr.msk.mxu1 %vm865_vm1, %v14286_v56  ;;  %v13338_v18 = vmul.f32 %v20235_v26, %v25121_v16  ;;  %v13507_v26 = vpop.f32.mrf.mxu1 }
0x1ba5   : > { %19318 = vmatprep.subr.mxu0 %v13865_v19  ;;  %v14191_v29 = vpop.permute.xlu0 %14190 }
0x1ba6   : > { %19319 = vmatpush3.msra.mxu0 %v13865_v19  ;;  %19320 = vmatprep.mubr.msk.f32.mxu0 %vm1572_vm2, %v13338_v18  ;;  %v14039_v18 = vpack.c.bf16 %v19287_v6, %v13507_v26 }
0x1ba7   : > { %19353 = vmatmul.mubr.msk.f32.vlgmr.msra.gmra.mxu1 %vm865_vm1, %v14191_v29  ;;  %19321 = vmatmul.mubr.msk.f32.vlgmr.msra.gmra.mxu0 %vm1572_vm2, %v13339_v40  ;;  %v14375_v15 = vpop.permute.xlu1 %14374  ;;  %v19301_v40 = vpop.f32.mrf.mxu1 }
0x1ba8   : > { %19356 = vmatpush3.xpose.msk.msra.mxu1 %vm865_vm1, %v14286_v56  ;;  %19536 = vmatprep.subr.msk.bf16.mxu0 %vm4088_vm3, %v17554_v2 }
0x1ba9   : > { %19357 = vmatprep.subr.msk.mxu1 %vm865_vm1, %v14284_v33  ;;  %v14280_v16 = vpop.permute.xlu0 %14279  ;;  %19331 = vmatpush3.bf16.msra.mxu0 %v14073_v47  ;;  %v13681_v47 = vpop.f32.mrf.mxu1 }
0x1baa   : > { %19359 = vmatprep.mubr.msk.f32.mxu1 %vm865_vm1, %v14280_v16 }
0x1bab   : > { %v14468_v30 = vpop.permute.xlu1 %14467 }
0x1bac   : > { %19358 = vmatpush3.xpose.msk.msra.mxu1 %vm865_vm1, %v14284_v33 }
0x1bad   : > { %19362 = vmatprep.subr.msk.mxu1 %vm865_vm1, %v14377_v37  ;;  %v14282_v0 = vpop.permute.xlu0 %14281 }
0x1baf   : > { %19360 = vmatmul.mubr.msk.f32.vlgmr.msra.gmra.mxu1 %vm865_vm1, %v14282_v0  ;;  %v14466_v55 = vpop.permute.xlu1 %14465  ;;  %v19315_v0 = vpop.f32.mrf.mxu1 }
0x1bb0   : > { %19363 = vmatpush3.xpose.msk.msra.mxu1 %vm865_vm1, %v14377_v37 }
0x1bb1   : > { %19364 = vmatprep.subr.msk.mxu1 %vm865_vm1, %v14375_v15  ;;  %v14371_v22 = vpop.permute.xlu0 %14370 }
0x1bb2   : > { %19366 = vmatprep.mubr.msk.f32.mxu1 %vm865_vm1, %v14371_v22 }
0x1bb3   : > { %v14559_v35 = vpop.permute.xlu1 %14558 }
0x1bb4   : > { %19365 = vmatpush3.xpose.msk.msra.mxu1 %vm865_vm1, %v14375_v15  ;;  %19376 = vmatprep.subr.msk.mxu0 %vm865_vm1, %v14559_v35 }
0x1bb5   : > { %19369 = vmatprep.subr.msk.mxu1 %vm865_vm1, %v14468_v30  ;;  %v14373_v43 = vpop.permute.xlu0 %14372 }
0x1bb7   : > { %19367 = vmatmul.mubr.msk.f32.vlgmr.msra.gmra.mxu1 %vm865_vm1, %v14373_v43  ;;  %v14650_v21 = vpop.permute.xlu1 %14649 }
0x1bb8   : > { %19370 = vmatpush3.xpose.msk.msra.mxu1 %vm865_vm1, %v14468_v30  ;;  %v14041_v30 = vpack.c.bf16 %v19301_v40, %v13681_v47 }
0x1bb9   : > { %19371 = vmatprep.subr.msk.mxu1 %vm865_vm1, %v14466_v55  ;;  %v14462_v11 = vpop.permute.xlu0 %14461 }
0x1bba   : > { %19373 = vmatprep.mubr.msk.f32.mxu1 %vm865_vm1, %v14462_v11 }
0x1bbb   : > { %v14648_v53 = vpop.permute.xlu1 %14647 }
0x1bbc   : > { %19372 = vmatpush3.xpose.msk.msra.mxu1 %vm865_vm1, %v14466_v55  ;;  %v13855_v55 = vpop.f32.mrf.mxu1 }
0x1bbd   : > { %19383 = vmatprep.subr.msk.mxu1 %vm865_vm1, %v14650_v21  ;;  %v14464_v60 = vpop.permute.xlu0 %14463 }
0x1bbf   : > { %19374 = vmatmul.mubr.msk.f32.vlgmr.msra.gmra.mxu1 %vm865_vm1, %v14464_v60  ;;  %v25248_v12 = vpop.permute.xlu1 %14554 }
0x1bc0   : > { %19384 = vmatpush3.xpose.msk.msra.mxu1 %vm865_vm1, %v14650_v21 }
0x1bc1   : > { %19385 = vmatprep.subr.msk.mxu1 %vm865_vm1, %v14648_v53  ;;  %v14557_v48 = vpop.permute.xlu0 %14556 }
0x1bc3   : > { %v25252_v39 = vpop.permute.xlu1 %14740 }
0x1bc4   : > { %19386 = vmatpush3.xpose.msk.msra.mxu1 %vm865_vm1, %v14648_v53  ;;  %v14043_v53 = vpack.c.bf16 %v19315_v0, %v13855_v55 }
0x1bc5   : > { %v25255_v45 = vpop.permute.xlu0 %14552 }
0x1bc7   : > { %v14832_v61 = vpop.permute.xlu1 %14831 }
0x1bc8   : > { %19397 = vmatprep.subr.msk.mxu1 %vm865_vm1, %v14832_v61 }
0x1bc9   : > { %v14644_v19 = vpop.permute.xlu0 %14643 }
0x1bca   : > { %19387 = vmatprep.mubr.msk.f32.mxu1 %vm865_vm1, %v14644_v19 }
0x1bcb   : > { %v14830_v36 = vpop.permute.xlu1 %14829 }
0x1bcd   : > { %v14646_v56 = vpop.permute.xlu0 %14645 }
0x1bce   : > { %19388 = vmatmul.mubr.msk.f32.vlgmr.msra.gmra.mxu1 %vm865_vm1, %v14646_v56 }
0x1bcf   : > { %19398 = vmatpush3.xpose.msk.msra.mxu1 %vm865_vm1, %v14832_v61  ;;  %v25265_v14 = vpop.permute.xlu1 %14736 }
0x1bd0   : > { %19399 = vmatprep.subr.msk.mxu1 %vm865_vm1, %v14830_v36 }
0x1bd1   : > { %v25262_v38 = vpop.permute.xlu0 %14738 }
0x1bd3   : > { %19400 = vmatpush3.xpose.msk.msra.mxu1 %vm865_vm1, %v14830_v36  ;;  %v14828_v5 = vpop.permute.xlu1 %14827 }
0x1bd5   : > { %v25267_v33 = vpop.permute.xlu0 %14734 }
0x1bd9   : > { %v14826_v63 = vpop.permute.xlu0 %14825 }
0x1bda   : > { %19401 = vmatprep.mubr.msk.f32.mxu1 %vm865_vm1, %v14826_v63 }
0x1bdb   : > { %19402 = vmatmul.mubr.msk.f32.vlgmr.msra.gmra.mxu1 %vm865_vm1, %v14828_v5 }
0x1c22   : > { %v19280_v41 = vpop.f32.mrf.mxu0 }
0x1c24   : > { %v13420_v37 = vpop.f32.mrf.mxu0 }
0x1c25   : > { %v14038_v2 = vpack.c.bf16 %v19280_v41, %v13420_v37 }
0x1c27   : > { %19332 = vmatprep.mubr.msk.bf16.mxu0 %vm865_vm1, %v14038_v2 }
0x1c28   : > { %19333 = vmatmul.mubr.msk.bf16.vlgmr.msra.gmra.mxu0 %vm865_vm1, %v14039_v18 }
0x1c29   : > { %19377 = vmatpush3.xpose.msk.msra.mxu0 %vm865_vm1, %v14559_v35 }
0x1c2a   : > { %19378 = vmatprep.subr.msk.mxu0 %vm865_vm1, %v14557_v48 }
0x1c2d   : > { %19379 = vmatpush3.xpose.msk.msra.mxu0 %vm865_vm1, %v14557_v48 }
0x1c2e   : > { %19390 = vmatprep.subr.msk.mxu0 %vm865_vm1, %v25252_v39  ;;  %v19294_v29 = vpop.f32.mrf.mxu0 }
0x1c30   : > { %v13594_v15 = vpop.f32.mrf.mxu0 }
0x1c31   : > { %v14040_v16 = vpack.c.bf16 %v19294_v29, %v13594_v15 }
0x1c33   : > { %19336 = vmatprep.mubr.msk.bf16.mxu0 %vm865_vm1, %v14040_v16 }
0x1c34   : > { %19337 = vmatmul.mubr.msk.bf16.gmra.mxu0 %vm865_vm1, %v14041_v30 }
0x1c56   : > { %v19329_v22 = vpop.f32.mrf.mxu1 }
0x1c58   : > { %v14029_v43 = vpop.f32.mrf.mxu1 }
0x1c59   : > { %v14045_v6 = vpack.c.bf16 %v19329_v22, %v14029_v43  ;;  %v12384_v43 = vadd.f32 %v24799_v24, %v24923_v9  ;;  %v26659_v9 = vld [vmem:[#allocation25_spill] sm:$0xff] }
0x1c63   : > { %v19308_v35 = vpop.f32.mrf.mxu0 }
0x1c65   : > { %v13768_v21 = vpop.f32.mrf.mxu0 }
0x1c66   : > { %v14042_v11 = vpack.c.bf16 %v19308_v35, %v13768_v21 }
0x1c67   : > { %v19354_v60 = vpop.f32.mrf.mxu1  ;;  %v19322_v48 = vpop.f32.mrf.mxu0 }
0x1c68   : > { %v25281_v61 = vadd.f32 %v24977_v31, %v19354_v60  ;;  %19340 = vmatprep.mubr.msk.bf16.mxu0 %vm865_vm1, %v14042_v11  ;;  %v26653_v11 = vld [vmem:[#allocation17_spill] sm:$0xff] }
0x1c69   : > { %v14270_v19 = vpop.f32.mrf.mxu1  ;;  %v13942_v56 = vpop.f32.mrf.mxu0  ;;  %19341 = vmatmul.mubr.msk.bf16.gmra.mxu0 %vm865_vm1, %v14043_v53  ;;  %v26654_v53 = vld [vmem:[#allocation47_spill] sm:$0xff] }
0x1c6a   : > { %v25286_v36 = vadd.f32 %v24983_v52, %v14270_v19  ;;  %v14044_v63 = vpack.c.bf16 %v19322_v48, %v13942_v56  ;;  %v14919_v5 = vsel %vm1572_vm2, %v25281_v61, -inf  ;;  %v26656_v19 = vld [vmem:[#allocation32_spill] sm:$0xff] }
0x1c6b   : > { %14920 = vmax.xlane.f32.xlu1 %v14919_v5 }
0x1c6c   : > { %19344 = vmatprep.mubr.msk.bf16.mxu0 %vm865_vm1, %v14044_v63  ;;  %v14916_v31 = vsel %vm1572_vm2, %v25286_v36, -inf }
0x1c6d   : > { %14917 = vmax.xlane.f32.xlu0 %v14916_v31  ;;  %v26657_v31 = vld [vmem:[#allocation39_spill] sm:$0xff] }
0x1c6f   : > { %v19361_v41 = vpop.f32.mrf.mxu1 }
0x1c70   : > { %v25294_v26 = vadd.f32 %v24868_v10, %v19361_v41 }
0x1c71   : > { %v14361_v37 = vpop.f32.mrf.mxu1  ;;  %19345 = vmatmul.mubr.msk.bf16.gmra.mxu0 %vm865_vm1, %v14045_v6  ;;  %v26658_v6 = vld [vmem:[#allocation33_spill] sm:$0xff] }
0x1c72   : > { %v25298_v52 = vadd.f32 %v24872_v42, %v14361_v37  ;;  %19380 = vmatprep.mubr.msk.f32.mxu0 %vm865_vm1, %v25255_v45  ;;  %v14925_v2 = vsel %vm1572_vm2, %v25294_v26, -inf  ;;  %v12379_v41 = vadd.f32 %v26658_v6, %v26657_v31 }
0x1c73   : > { %14926 = vmax.xlane.f32.xlu0 %v14925_v2 }
0x1c74   : > { %v14922_v18 = vsel %vm1572_vm2, %v25298_v52, -inf }
0x1c77   : > { %14923 = vmax.xlane.f32.xlu0 %v14922_v18  ;;  %v19368_v40 = vpop.f32.mrf.mxu1  ;;  %v26660_v18 = vld [vmem:[#allocation49_spill] sm:$0xff] }
0x1c78   : > { %v25307_v10 = vadd.f32 %v24999_v62, %v19368_v40  ;;  %v12400_v40 = vadd.f32 %v26660_v18, %v26659_v9 }
0x1c79   : > { %v14452_v29 = vpop.f32.mrf.mxu1  ;;  %19381 = vmatmul.mubr.msk.f32.vlgmr.msra.gmra.mxu0 %vm865_vm1, %v25248_v12 }
0x1c7a   : > { %v25312_v42 = vadd.f32 %v25011_v32, %v14452_v29  ;;  %19391 = vmatpush3.xpose.msk.msra.mxu0 %vm865_vm1, %v25252_v39  ;;  %v14931_v45 = vsel %vm1572_vm2, %v25307_v10, -inf  ;;  %19394 = vmatprep.mubr.msk.f32.mxu0 %vm865_vm1, %v25267_v33 }
0x1c7b   : > { %14932 = vmax.xlane.f32.xlu1 %v14931_v45  ;;  %19392 = vmatprep.subr.msk.mxu0 %vm865_vm1, %v25262_v38 }
0x1c7c   : > { %v14928_v62 = vsel %vm1572_vm2, %v25312_v42, -inf }
0x1c7d   : > { %14929 = vmax.xlane.f32.xlu0 %v14928_v62  ;;  %v26661_v62 = vld [vmem:[#allocation52_spill] sm:$0xff] }
0x1c7e   : > { %19393 = vmatpush3.xpose.msk.msra.mxu0 %vm865_vm1, %v25262_v38 }
0x1c7f   : > { %v19375_v32 = vpop.f32.mrf.mxu1 }
0x1c80   : > { %v25327_v12 = vadd.f32 %v24885_v49, %v19375_v32  ;;  %v26662_v32 = vld [vmem:[#allocation48_spill] sm:$0xff] }
0x1c81   : > { %v14543_v39 = vpop.f32.mrf.mxu1  ;;  %19395 = vmatmul.mubr.msk.f32.vlgmr.msra.gmra.mxu0 %vm865_vm1, %v25265_v14 }
0x1c82   : > { %v25332_v33 = vadd.f32 %v24891_v51, %v14543_v39  ;;  %v14937_v47 = vsel %vm1572_vm2, %v25327_v12, -inf  ;;  %v12392_v39 = vadd.f32 %v26662_v32, %v26661_v62 }
0x1c83   : > { %14938 = vmax.xlane.f32.xlu1 %v14937_v47 }
0x1c84   : > { %v14934_v15 = vsel %vm1572_vm2, %v25332_v33, -inf }
0x1c85   : > { %14935 = vmax.xlane.f32.xlu0 %v14934_v15 }
0x1c8e   : > { %v19389_v38 = vpop.f32.mrf.mxu1 }
0x1c8f   : > { %v25339_v16 = vadd.f32 %v24897_v3, %v19389_v38 }
0x1c90   : > { %v14725_v49 = vpop.f32.mrf.mxu1 }
0x1c91   : > { %v25342_v30 = vadd.f32 %v24901_v4, %v14725_v49  ;;  %v14949_v51 = vsel %vm1572_vm2, %v25339_v16, -inf }
0x1c92   : > { %14950 = vmax.xlane.f32.xlu1 %v14949_v51  ;;  %v26663_v51 = vld [vmem:[#allocation53_spill] sm:$0xff] }
0x1c93   : > { %v14946_v14 = vsel %vm1572_vm2, %v25342_v30, -inf }
0x1c94   : > { %14947 = vmax.xlane.f32.xlu0 %v14946_v14  ;;  %v26664_v14 = vld [vmem:[#allocation50_spill] sm:$0xff] }
0x1c9b   : > { %v19403_v0 = vpop.f32.mrf.mxu1 }
0x1c9c   : > { %v25349_v55 = vadd.f32 %v24907_v17, %v19403_v0  ;;  %v12376_v17 = vadd.f32 %v26654_v53, %v26653_v11  ;;  %v12403_v0 = vadd.f32 %v26664_v14, %v26663_v51  ;;  %v26666_v11 = vld [vmem:[#allocation51_spill] sm:$0xff] }
0x1c9d   : > { %v14907_v22 = vpop.f32.mrf.mxu1 }
0x1c9e   : > { %v25352_v3 = vadd.f32 %v24911_v7, %v14907_v22  ;;  %v14961_v4 = vsel %vm1572_vm2, %v25349_v55, -inf  ;;  %v26655_v7 = vld [vmem:[#allocation29_spill] sm:$0xff] }
0x1c9f   : > { %14962 = vmax.xlane.f32.xlu1 %v14961_v4  ;;  %v12387_v56 = vadd.f32 %v26656_v19, %v26655_v7 }
0x1ca0   : > { %v14958_v35 = vsel %vm1572_vm2, %v25352_v3, -inf }
0x1ca1   : > { %14959 = vmax.xlane.f32.xlu0 %v14958_v35 }
0x1ce8   : > { %v19334_v21 = vpop.f32.mrf.mxu0 }
0x1ce9   : > { %v25362_v60 = vadd.f32 %v19334_v21, %v12384_v43  ;;  %v26665_v21 = vld [vmem:[#allocation54_spill] sm:$0xff] }
0x1cea   : > { %v14109_v48 = vpop.f32.mrf.mxu0  ;;  %v12395_v53 = vadd.f32 %v26666_v11, %v26665_v21 }
0x1ceb   : > { %v25366_v63 = vadd.f32 %v14109_v48, %v12376_v17 }
0x1cec   : > { %v19335_v5 = vpop.f32.mrf.mxu0 }
0x1ced   : > { %v25370_v37 = vadd.f32 %v19335_v5, %v12387_v56 }
0x1cee   : > { %v14112_v2 = vpop.f32.mrf.mxu0 }
0x1cef   : > { %v25372_v24 = vadd.f32 %v14112_v2, %v12379_v41 }
0x1cf4   : > { %v14921_v29 = vpop.xlane.xlu1 %14920  ;;  %v19338_v45 = vpop.f32.mrf.mxu0 }
0x1cf5   : > { %v14965_v47 = vsub.f32 %v25281_v61, %v14921_v29  ;;  %v25379_v15 = vadd.f32 %v19338_v45, %v12400_v40 }
0x1cf6   : > { %v14918_v38 = vpop.xlane.xlu0 %14917  ;;  %v14125_v49 = vpop.f32.mrf.mxu0 }
0x1cf7   : > { %v14982_v22 = vmul.f32 1.442695, %v14965_v47  ;;  %v14964_v4 = vsub.f32 %v25286_v36, %v14918_v38  ;;  %v25384_v35 = vadd.f32 %v14125_v49, %v12392_v39 }
0x1cf8   : > { %v19339_v43 = vpop.f32.mrf.mxu0 }
0x1cf9   : > { %20236 = vpow2.f32 %v14982_v22  ;;  %v14980_v17 = vmul.f32 1.442695, %v14964_v4  ;;  %v25388_v48 = vadd.f32 %v19339_v43, %v12403_v0 }
0x1cfa   : > { %v14128_v61 = vpop.f32.mrf.mxu0 }
0x1cfb   : > { %20238 = vpow2.f32 %v14980_v17  ;;  %v25390_v7 = vadd.f32 %v14128_v61, %v12395_v53 }
0x1cfc   : > { %v14927_v19 = vpop.xlane.xlu0 %14926 }
0x1cfd   : > { %v14967_v56 = vsub.f32 %v25294_v26, %v14927_v19 }
0x1cff   : > { %v14986_v5 = vmul.f32 1.442695, %v14967_v56 }
0x1d00   : > { %v14924_v31 = vpop.xlane.xlu0 %14923 }
0x1d01   : > { %20240 = vpow2.f32 %v14986_v5  ;;  %v14966_v36 = vsub.f32 %v25298_v52, %v14924_v31 }
0x1d03   : > { %v14984_v6 = vmul.f32 1.442695, %v14966_v36  ;;  %v26668_v36 = vld [vmem:[#allocation34_spill] sm:$0xff] }
0x1d04   : > { %v14933_v41 = vpop.xlane.xlu1 %14932 }
0x1d05   : > { %20242 = vpow2.f32 %v14984_v6  ;;  %v14969_v2 = vsub.f32 %v25307_v10, %v14933_v41 }
0x1d06   : > { %v25395_v9 = vpop.eup %20236  ;;  %v14930_v18 = vpop.xlane.xlu0 %14929 }
0x1d07   : > { %v14990_v40 = vmul.f32 1.442695, %v14969_v2  ;;  %v14968_v29 = vsub.f32 %v25312_v42, %v14930_v18  ;;  %v15015_v45 = vsel %vm1572_vm2, %v25395_v9, 0.0  ;;  %v26669_v2 = vld [vmem:[#allocation56_spill] sm:$0xff]  ;;  %v26670_v18 = vld [vmem:[#allocation43_spill] sm:$0xff] }
0x1d08   : > { %v25400_v26 = vpop.eup %20238  ;;  %15016 = vadd.xlane.f32.xlu1 %v15015_v45  ;;  %v26671_v45 = vld [vmem:[#allocation57_spill] sm:$0xff] }
0x1d09   : > { %20244 = vpow2.f32 %v14990_v40  ;;  %v14988_v62 = vmul.f32 1.442695, %v14968_v29  ;;  %v15012_v52 = vsel %vm1572_vm2, %v25400_v26, 0.0 }
0x1d0a   : > { %15013 = vadd.xlane.f32.xlu0 %v15012_v52 }
0x1d0b   : > { %20246 = vpow2.f32 %v14988_v62  ;;  %v26672_v62 = vld [vmem:[#allocation35_spill] sm:$0xff] }
0x1d0c   : > { %v14939_v10 = vpop.xlane.xlu1 %14938  ;;  %v12419_v52 = vadd.f32 %v26672_v62, %v26671_v45  ;;  %v26681_v45 = vld [vmem:[#allocation62_spill] sm:$0xff]  ;;  %v26682_v62 = vld [vmem:[#allocation27_spill] sm:$0xff] }
0x1d0d   : > { %v14971_v32 = vsub.f32 %v25327_v12, %v14939_v10 }
0x1d0e   : > { %v25405_v39 = vpop.eup %20240  ;;  %v14936_v47 = vpop.xlane.xlu0 %14935 }
0x1d0f   : > { %v14994_v42 = vmul.f32 1.442695, %v14971_v32  ;;  %v14970_v38 = vsub.f32 %v25332_v33, %v14936_v47  ;;  %v15021_v49 = vsel %vm1572_vm2, %v25405_v39, 0.0 }
0x1d10   : > { %15022 = vadd.xlane.f32.xlu1 %v15021_v49 }
0x1d11   : > { %20248 = vpow2.f32 %v14994_v42  ;;  %v14992_v51 = vmul.f32 1.442695, %v14970_v38  ;;  %v26673_v42 = vld [vmem:[#allocation58_spill] sm:$0xff]  ;;  %v26674_v38 = vld [vmem:[#allocation41_spill] sm:$0xff] }
0x1d12   : > { %v25410_v14 = vpop.eup %20242  ;;  %v12411_v49 = vadd.f32 %v26674_v38, %v26673_v42 }
0x1d13   : > { %20250 = vpow2.f32 %v14992_v51  ;;  %v15018_v0 = vsel %vm1572_vm2, %v25410_v14, 0.0 }
0x1d14   : > { %15019 = vadd.xlane.f32.xlu0 %v15018_v0 }
0x1d16   : > { %v25414_v12 = vpop.eup %20244 }
0x1d17   : > { %v15027_v22 = vsel %vm1572_vm2, %v25414_v12, 0.0 }
0x1d18   : > { %v25418_v4 = vpop.eup %20246  ;;  %15028 = vadd.xlane.f32.xlu1 %v15027_v22 }
0x1d19   : > { %v15024_v33 = vsel %vm1572_vm2, %v25418_v4, 0.0 }
0x1d1a   : > { %15025 = vadd.xlane.f32.xlu0 %v15024_v33 }
0x1d1b   : > { %v14951_v43 = vpop.xlane.xlu1 %14950 }
0x1d1c   : > { %v14975_v21 = vsub.f32 %v25339_v16, %v14951_v43  ;;  %v26667_v16 = vld [vmem:[#allocation55_spill] sm:$0xff] }
0x1d1d   : > { %v14948_v11 = vpop.xlane.xlu0 %14947  ;;  %v12416_v6 = vadd.f32 %v26668_v36, %v26667_v16  ;;  %v26675_v43 = vld [vmem:[#allocation59_spill] sm:$0xff] }
0x1d1e   : > { %v25423_v53 = vpop.eup %20248  ;;  %v15002_v17 = vmul.f32 1.442695, %v14975_v21  ;;  %v14974_v61 = vsub.f32 %v25342_v30, %v14948_v11  ;;  %v12408_v30 = vadd.f32 %v26670_v18, %v26669_v2  ;;  %v26676_v21 = vld [vmem:[#allocation37_spill] sm:$0xff]  ;;  %v26680_v2 = vld [vmem:[#allocation36_spill] sm:$0xff] }
0x1d1f   : > { %v15033_v19 = vsel %vm1572_vm2, %v25423_v53, 0.0  ;;  %v12432_v11 = vadd.f32 %v26676_v21, %v26675_v43  ;;  %v26684_v21 = vld [vmem:[#allocation64_spill] sm:$0xff] }
0x1d20   : > { %v25428_v56 = vpop.eup %20250  ;;  %20252 = vpow2.f32 %v15002_v17  ;;  %v15000_v5 = vmul.f32 1.442695, %v14974_v61  ;;  %15034 = vadd.xlane.f32.xlu1 %v15033_v19 }
0x1d21   : > { %v15030_v31 = vsel %vm1572_vm2, %v25428_v56, 0.0 }
0x1d22   : > { %20254 = vpow2.f32 %v15000_v5  ;;  %15031 = vadd.xlane.f32.xlu0 %v15030_v31  ;;  %v26677_v5 = vld [vmem:[#allocation60_spill] sm:$0xff] }
0x1d23   : > { %v26678_v31 = vld [vmem:[#allocation44_spill] sm:$0xff] }
0x1d24   : > { %v12424_v16 = vadd.f32 %v26678_v31, %v26677_v5  ;;  %v26685_v31 = vld [vmem:[#allocation65_spill] sm:$0xff] }
0x1d29   : > { %v19342_v41 = vpop.f32.mrf.mxu0 }
0x1d2a   : > { %v25436_v40 = vadd.f32 %v19342_v41, %v12416_v6  ;;  %v26679_v41 = vld [vmem:[#allocation61_spill] sm:$0xff] }
0x1d2b   : > { %v14141_v29 = vpop.f32.mrf.mxu0  ;;  %v12435_v18 = vadd.f32 %v26680_v2, %v26679_v41  ;;  %v26686_v41 = vld [vmem:[#allocation66_spill] sm:$0xff] }
0x1d2c   : > { %v25440_v10 = vadd.f32 %v14141_v29, %v12408_v30 }
0x1d2d   : > { %v25442_v32 = vpop.eup %20252  ;;  %v19343_v47 = vpop.f32.mrf.mxu0 }
0x1d2e   : > { %v25446_v51 = vadd.f32 %v19343_v47, %v12419_v52  ;;  %v15045_v0 = vsel %vm1572_vm2, %v25442_v32, 0.0  ;;  %v12427_v52 = vadd.f32 %v26682_v62, %v26681_v45  ;;  %v14960_v45 = vpop.xlane.xlu0 %14959 }
0x1d2f   : > { %v25450_v22 = vpop.eup %20254  ;;  %v14144_v33 = vpop.f32.mrf.mxu0  ;;  %15046 = vadd.xlane.f32.xlu1 %v15045_v0  ;;  %v26683_v0 = vld [vmem:[#allocation63_spill] sm:$0xff]  ;;  %v14978_v62 = vsub.f32 %v25352_v3, %v14960_v45 }
0x1d30   : > { %v25454_v17 = vadd.f32 %v14144_v33, %v12411_v49  ;;  %v15042_v61 = vsel %vm1572_vm2, %v25450_v22, 0.0 }
0x1d31   : > { %v19346_v19 = vpop.f32.mrf.mxu0  ;;  %15043 = vadd.xlane.f32.xlu0 %v15042_v61 }
0x1d32   : > { %v25460_v36 = vadd.f32 %v19346_v19, %v12432_v11 }
0x1d33   : > { %v14157_v6 = vpop.f32.mrf.mxu0 }
0x1d34   : > { %v25464_v30 = vadd.f32 %v14157_v6, %v12424_v16 }
0x1d35   : > { %v19347_v29 = vpop.f32.mrf.mxu0 }
0x1d36   : > { %v25468_v47 = vadd.f32 %v19347_v29, %v12435_v18 }
0x1d37   : > { %v14160_v42 = vpop.f32.mrf.mxu0 }
0x1d38   : > { %v25470_v38 = vadd.f32 %v14160_v42, %v12427_v52  ;;  %v14963_v52 = vpop.xlane.xlu1 %14962  ;;  %v15008_v42 = vmul.f32 1.442695, %v14978_v62 }
0x1d39   : > { %v19382_v49 = vpop.f32.mrf.mxu0 }
0x1d3a   : > { %v25473_v33 = vadd.f32 %v26683_v0, %v19382_v49  ;;  %20256 = vpow2.f32 %v15008_v42 }
0x1d3b   : > { %v14634_v43 = vpop.f32.mrf.mxu0 }
0x1d3c   : > { %v25476_v11 = vadd.f32 %v26684_v21, %v14634_v43  ;;  %v14943_v61 = vsel %vm1572_vm2, %v25473_v33, -inf }
0x1d3d   : > { %14944 = vmax.xlane.f32.xlu1 %v14943_v61 }
0x1d3e   : > { %v14940_v19 = vsel %vm1572_vm2, %v25476_v11, -inf }
0x1d3f   : > { %14941 = vmax.xlane.f32.xlu0 %v14940_v19 }
0x1d41   : > { %v19396_v5 = vpop.f32.mrf.mxu0 }
0x1d42   : > { %v25483_v16 = vadd.f32 %v26685_v31, %v19396_v5 }
0x1d43   : > { %v14816_v6 = vpop.f32.mrf.mxu0 }
0x1d44   : > { %v25486_v2 = vadd.f32 %v26686_v41, %v14816_v6  ;;  %v14955_v18 = vsel %vm1572_vm2, %v25483_v16, -inf }
0x1d45   : > { %14956 = vmax.xlane.f32.xlu1 %v14955_v18 }
0x1d46   : > { %v14952_v29 = vsel %vm1572_vm2, %v25486_v2, -inf }
0x1d47   : > { %14953 = vmax.xlane.f32.xlu0 %v14952_v29 }
0x1d56   : > { %15092 = vrot.lane.b32.xlu1 %v23684_v28, %s26687_s21  ;;  %v14979_v28 = vsub.f32 %v25349_v55, %v14963_v52 }
0x1d5a   : > { %15179 = vrot.lane.b32.xlu1 %v23681_v8, %s26687_s21  ;;  %v15010_v8 = vmul.f32 1.442695, %v14979_v28 }
0x1d5c   : > { %20258 = vpow2.f32 %v15010_v8 }
0x1d5d   : > { %15094 = vrot.lane.b32.xlu0 %v23694_v34, %s26687_s21  ;;  %v25510_v34 = vpop.eup %20256 }
0x1d5e   : > { %15268 = vrot.lane.b32.xlu1 %v23703_v46, %s26687_s21  ;;  %v15054_v46 = vsel %vm1572_vm2, %v25510_v34, 0.0 }
0x1d62   : > { %15355 = vrot.lane.b32.xlu1 %v23708_v50, %s26687_s21 }
0x1d66   : > { %15353 = vrot.lane.b32.xlu1 %v23718_v23, %s26687_s21 }
0x1d69   : > { %v25514_v50 = vpop.eup %20258 }
0x1d6a   : > { %15529 = vrot.lane.b32.xlu1 %v26652_v54, %s26687_s21  ;;  %v15057_v23 = vsel %vm1572_vm2, %v25514_v50, 0.0 }
0x1d6e   : > { %15527 = vrot.lane.b32.xlu1 %v23733_v20, %s26687_s21 }
0x1d7c   : > { %15055 = vadd.xlane.f32.xlu0 %v15054_v46 }
0x1d80   : > { %15058 = vadd.xlane.f32.xlu0 %v15057_v23 }
0x1d91   : > { %v15017_v43 = vpop.xlane.xlu1 %15016 }
0x1d93   : > { %v15014_v55 = vpop.xlane.xlu0 %15013 }
0x1d94   : > { %20260 = vrcp.f32 %v15014_v55 }
0x1d96   : > { %15181 = vrot.lane.b32.xlu0 %v23689_v27, %s26687_s21 }
0x1d9a   : > { %15266 = vrot.lane.b32.xlu0 %v23713_v59, %s26687_s21  ;;  %v15023_v59 = vpop.xlane.xlu1 %15022 }
0x1d9d   : > { %v15020_v20 = vpop.xlane.xlu0 %15019 }
0x1d9e   : > { %15442 = vrot.lane.b32.xlu0 %v23728_v58, %s26687_s21 }
0x1da1   : > { %v20261_v54 = vpop.eup %20260  ;;  %v15029_v21 = vpop.xlane.xlu1 %15028 }
0x1da2   : > { %15440 = vrot.lane.b32.xlu0 %v23738_v44, %s26687_s21  ;;  %v15076_v3 = vmul.f32 %v20261_v54, %v25400_v26 }
0x1da3   : > { %v15026_v49 = vpop.xlane.xlu0 %15025 }
0x1da4   : > { %20262 = vrcp.f32 %v15026_v49  ;;  %19408 = vmatprep.mubr.msk.f32.mxu0 %vm1572_vm2, %v15076_v3 }
0x1da5   : > { %20264 = vrcp.f32 %v15017_v43 }
0x1da6   : > { %20266 = vrcp.f32 %v15020_v20 }
0x1da9   : > { %v15035_v58 = vpop.xlane.xlu1 %15034 }
0x1dab   : > { %v15032_v61 = vpop.xlane.xlu0 %15031 }
0x1db1   : > { %v20263_v0 = vpop.eup %20262 }
0x1db2   : > { %v15080_v27 = vmul.f32 %v20263_v0, %v25418_v4  ;;  %v20265_v62 = vpop.eup %20264 }
0x1db3   : > { %v20267_v28 = vpop.eup %20266  ;;  %v15077_v8 = vmul.f32 %v20265_v62, %v25395_v9 }
0x1db4   : > { %19422 = vmatprep.mubr.msk.f32.mxu1 %vm1572_vm2, %v15080_v27 }
0x1db8   : > { %v15047_v19 = vpop.xlane.xlu1 %15046 }
0x1dba   : > { %v15044_v5 = vpop.xlane.xlu0 %15043 }
0x1dc6   : > { %v14945_v31 = vpop.xlane.xlu1 %14944 }
0x1dc7   : > { %v14973_v44 = vsub.f32 %v25473_v33, %v14945_v31 }
0x1dc8   : > { %v14942_v26 = vpop.xlane.xlu0 %14941 }
0x1dc9   : > { %v14998_v6 = vmul.f32 1.442695, %v14973_v44  ;;  %v14972_v41 = vsub.f32 %v25476_v11, %v14942_v26  ;;  %v15078_v11 = vmul.f32 %v20267_v28, %v25410_v14 }
0x1dcb   : > { %20268 = vpow2.f32 %v14998_v6  ;;  %v14996_v18 = vmul.f32 1.442695, %v14972_v41 }
0x1dcd   : > { %20270 = vpow2.f32 %v14996_v18 }
0x1dce   : > { %v14957_v4 = vpop.xlane.xlu1 %14956 }
0x1dcf   : > { %v14977_v14 = vsub.f32 %v25483_v16, %v14957_v4 }
0x1dd0   : > { %v14954_v29 = vpop.xlane.xlu0 %14953 }
0x1dd1   : > { %v15006_v20 = vmul.f32 1.442695, %v14977_v14  ;;  %v14976_v54 = vsub.f32 %v25486_v2, %v14954_v29 }
0x1dd2   : > { %v15093_v45 = vpop.permute.xlu1 %15092 }
0x1dd3   : > { %20272 = vpow2.f32 %v15006_v20  ;;  %v15004_v3 = vmul.f32 1.442695, %v14976_v54 }
0x1dd4   : > { %v15095_v52 = vpop.permute.xlu0 %15094  ;;  %20274 = vrcp.f32 %v15023_v59 }
0x1dd5   : > { %19404 = vmatprep.subr.mxu0 %v15095_v52  ;;  %20276 = vrcp.f32 %v15032_v61 }
0x1dd6   : > { %19405 = vmatpush3.msra.mxu0 %v15095_v52  ;;  %v15180_v42 = vpop.permute.xlu1 %15179  ;;  %20278 = vrcp.f32 %v15029_v21 }
0x1dd7   : > { %19406 = vmatprep.subr.mxu0 %v15093_v45  ;;  %20280 = vpow2.f32 %v15004_v3 }
0x1dd8   : > { %v25533_v33 = vpop.eup %20268  ;;  %19407 = vmatpush3.msra.mxu0 %v15093_v45  ;;  %20282 = vrcp.f32 %v15035_v58 }
0x1dd9   : > { %19409 = vmatmul.mubr.msk.f32.vlgmr.msra.gmra.mxu0 %vm1572_vm2, %v15077_v8  ;;  %v15039_v46 = vsel %vm1572_vm2, %v25533_v33, 0.0  ;;  %20284 = vrcp.f32 %v15044_v5 }
0x1dda   : > { %v25539_v23 = vpop.eup %20270  ;;  %19415 = vmatprep.mubr.msk.f32.mxu0 %vm1572_vm2, %v15078_v11  ;;  %v15269_v55 = vpop.permute.xlu1 %15268  ;;  %15040 = vadd.xlane.f32.xlu1 %v15039_v46  ;;  %20286 = vrcp.f32 %v15047_v19  ;;  %v17611_v11 = vld [vmem:[%s26296_s5 + $0x1c] sm:$0xf] }
0x1ddb   : > { %19418 = vmatprep.subr.mxu1 %v15269_v55  ;;  %v15036_v9 = vsel %vm1572_vm2, %v25539_v23, 0.0 }
0x1ddc   : > { %19419 = vmatpush3.msra.mxu1 %v15269_v55  ;;  %15037 = vadd.xlane.f32.xlu0 %v15036_v9 }
0x1deb   : > { %15703 = vrot.lane.b32.xlu1 %v23771_v57, %s26687_s21  ;;  %v15356_v57 = vpop.permute.xlu1 %15355 }
0x1def   : > { %v15354_v16 = vpop.permute.xlu1 %15353 }
0x1df2   : > { %15616 = vrot.lane.b32.xlu0 %v23778_v13, %s26687_s21  ;;  %v25554_v13 = vpop.eup %20272 }
0x1df3   : > { %v15051_v2 = vsel %vm1572_vm2, %v25554_v13, 0.0  ;;  %v15530_v44 = vpop.permute.xlu1 %15529 }
0x1df6   : > { %15614 = vrot.lane.b32.xlu0 %v23790_v25, %s26687_s21  ;;  %v20275_v25 = vpop.eup %20274 }
0x1df7   : > { %v20277_v27 = vpop.eup %20276  ;;  %v15079_v21 = vmul.f32 %v20275_v25, %v25405_v39  ;;  %v15528_v4 = vpop.permute.xlu1 %15527 }
0x1df8   : > { %v20279_v59 = vpop.eup %20278  ;;  %v15082_v19 = vmul.f32 %v20277_v27, %v25428_v56 }
0x1df9   : > { %v25559_v58 = vpop.eup %20280  ;;  %v15081_v31 = vmul.f32 %v20279_v59, %v25414_v12 }
0x1dfa   : > { %v20283_v5 = vpop.eup %20282  ;;  %v15048_v39 = vsel %vm1572_vm2, %v25559_v58, 0.0 }
0x1dfb   : > { %v20285_v26 = vpop.eup %20284  ;;  %v15083_v41 = vmul.f32 %v20283_v5, %v25423_v53 }
0x1dfc   : > { %v20287_v56 = vpop.eup %20286  ;;  %v15086_v12 = vmul.f32 %v20285_v26, %v25450_v22 }
0x1dfd   : > { %v15087_v45 = vmul.f32 %v20287_v56, %v25442_v32 }
0x1e05   : > { %v15056_v49 = vpop.xlane.xlu0 %15055 }
0x1e06   : > { %20288 = vrcp.f32 %v15056_v49 }
0x1e09   : > { %v25552_v0 = vpop.xlane.xlu0 %15058 }
0x1e0d   : > { %v15182_v43 = vpop.permute.xlu0 %15181 }
0x1e0e   : > { %19411 = vmatprep.subr.mxu0 %v15182_v43 }
0x1e0f   : > { %19412 = vmatpush3.msra.mxu0 %v15182_v43  ;;  %15052 = vadd.xlane.f32.xlu1 %v15051_v2 }
0x1e10   : > { %19413 = vmatprep.subr.mxu0 %v15180_v42 }
0x1e11   : > { %v15267_v61 = vpop.permute.xlu0 %15266  ;;  %19414 = vmatpush3.msra.mxu0 %v15180_v42 }
0x1e12   : > { %19416 = vmatmul.mubr.msk.f32.vlgmr.msra.gmra.mxu0 %vm1572_vm2, %v15079_v21  ;;  %19420 = vmatprep.subr.mxu1 %v15267_v61 }
0x1e13   : > { %19425 = vmatprep.subr.mxu0 %v15356_v57  ;;  %19421 = vmatpush3.msra.mxu1 %v15267_v61  ;;  %v20289_v18 = vpop.eup %20288 }
0x1e14   : > { %19426 = vmatpush3.msra.mxu0 %v15356_v57  ;;  %19429 = vmatprep.mubr.msk.f32.mxu0 %vm1572_vm2, %v15082_v19  ;;  %v15090_v53 = vmul.f32 %v20289_v18, %v25510_v34 }
0x1e15   : > { %15049 = vadd.xlane.f32.xlu1 %v15048_v39  ;;  %19423 = vmatmul.mubr.msk.f32.vlgmr.msra.gmra.mxu1 %vm1572_vm2, %v15081_v31  ;;  %v15443_v6 = vpop.permute.xlu0 %15442 }
0x1e16   : > { %19427 = vmatprep.subr.mxu0 %v15354_v16  ;;  %19432 = vmatprep.subr.mxu1 %v15443_v6 }
0x1e17   : > { %19428 = vmatpush3.msra.mxu0 %v15354_v16  ;;  %19433 = vmatpush3.msra.mxu1 %v15443_v6 }
0x1e18   : > { %19430 = vmatmul.mubr.msk.f32.vlgmr.msra.gmra.mxu0 %vm1572_vm2, %v15083_v41  ;;  %19439 = vmatprep.subr.mxu0 %v15530_v44 }
0x1e19   : > { %19440 = vmatpush3.msra.mxu0 %v15530_v44  ;;  %19443 = vmatprep.mubr.msk.f32.mxu0 %vm1572_vm2, %v15086_v12  ;;  %v15441_v29 = vpop.permute.xlu0 %15440 }
0x1e1a   : > { %19441 = vmatprep.subr.mxu0 %v15528_v4  ;;  %19434 = vmatprep.subr.mxu1 %v15441_v29 }
0x1e1b   : > { %19442 = vmatpush3.msra.mxu0 %v15528_v4  ;;  %19435 = vmatpush3.msra.mxu1 %v15441_v29 }
0x1e1c   : > { %19444 = vmatmul.mubr.msk.f32.vlgmr.msra.gmra.mxu0 %vm1572_vm2, %v15087_v45 }
0x1e1d   : > { %19457 = vmatprep.mubr.msk.f32.mxu0 %vm1572_vm2, %v15090_v53 }
0x1e26   : > { %15701 = vrot.lane.b32.xlu1 %v23785_v1, %s26687_s21 }
0x1e63   : > { %v15041_v22 = vpop.xlane.xlu1 %15040 }
0x1e64   : > { %20290 = vrcp.f32 %v15041_v22  ;;  %v26688_v22 = vld [vmem:[#allocation18_spill] sm:$0xff] }
0x1e65   : > { %v15038_v62 = vpop.xlane.xlu0 %15037 }
0x1e66   : > { %20292 = vrcp.f32 %v15038_v62 }
0x1e67   : > { %v15704_v52 = vpop.permute.xlu1 %15703  ;;  %20294 = vrcp.f32 %v25552_v0  ;;  %v15823_v0 = vsel %vm4088_vm3, %v17611_v11, 0 }
0x1e68   : > { %19453 = vmatprep.subr.mxu0 %v15704_v52 }
0x1e69   : > { %v15617_v32 = vpop.permute.xlu0 %15616  ;;  %19454 = vmatpush3.msra.mxu0 %v15704_v52  ;;  %v25608_v52 = vld [vmem:[%s26293_s2 + $0x8] sm:$0x3f] }
0x1e6a   : > { %19446 = vmatprep.subr.mxu1 %v15617_v32 }
0x1e6d   : > { %v15615_v1 = vpop.permute.xlu0 %15614 }
0x1e71   : > { %v20291_v28 = vpop.eup %20290 }
0x1e72   : > { %v15085_v8 = vmul.f32 %v20291_v28, %v25533_v33 }
0x1e73   : > { %v20293_v42 = vpop.eup %20292 }
0x1e74   : > { %v15084_v34 = vmul.f32 %v20293_v42, %v25539_v23  ;;  %v20295_v33 = vpop.eup %20294 }
0x1e75   : > { %v15091_v9 = vmul.f32 %v20295_v33, %v25514_v50 }
0x1e76   : > { %19436 = vmatprep.mubr.msk.f32.mxu1 %vm1572_vm2, %v15084_v34 }
0x1e77   : > { %19437 = vmatmul.mubr.msk.f32.vlgmr.msra.gmra.mxu1 %vm1572_vm2, %v15085_v8  ;;  %v26691_v8 = vld [vmem:[#allocation16_spill] sm:$0xff] }
0x1e78   : > { %19447 = vmatpush3.msra.mxu1 %v15617_v32  ;;  %v26689_v32 = vld [vmem:[#allocation15_spill] sm:$0xff] }
0x1e79   : > { %19448 = vmatprep.subr.mxu1 %v15615_v1  ;;  %v26690_v28 = vsub.s32 4, %v26689_v32 }
0x1e7a   : > { %19449 = vmatpush3.msra.mxu1 %v15615_v1 }
0x1e7b   : > { %19537 = vmatprep.subr.msk.bf16.mxu1 %vm4088_vm3, %v17611_v11  ;;  %v25613_v42 = vrot.slane %v25608_v52, %v26690_v28 }
0x1e98   : > { %v15053_v46 = vpop.xlane.xlu1 %15052 }
0x1e99   : > { %20296 = vrcp.f32 %v15053_v46  ;;  %v19410_v14 = vpop.f32.mrf.mxu0 }
0x1e9b   : > { %v15170_v3 = vpop.f32.mrf.mxu0 }
0x1e9c   : > { %v15788_v25 = vpack.c.bf16 %v19410_v14, %v15170_v3  ;;  %v26693_v14 = vld [vmem:[#allocation19_spill] sm:$0xff] }
0x1e9e   : > { %v15050_v23 = vpop.xlane.xlu1 %15049 }
0x1e9f   : > { %20298 = vrcp.f32 %v15050_v23 }
0x1ea2   : > { %v15702_v55 = vpop.permute.xlu1 %15701 }
0x1ea3   : > { %19455 = vmatprep.subr.mxu0 %v15702_v55 }
0x1ea4   : > { %19456 = vmatpush3.msra.mxu0 %v15702_v55  ;;  %v26692_v55 = vld [vmem:[#allocation20_spill] sm:$0xff] }
0x1ea5   : > { %19458 = vmatmul.mubr.msk.f32.vlgmr.msra.gmra.mxu0 %vm1572_vm2, %v15091_v9 }
0x1ea6   : > { %v20297_v20 = vpop.eup %20296 }
0x1ea7   : > { %v15089_v57 = vmul.f32 %v20297_v20, %v25554_v13 }
0x1eac   : > { %v20299_v54 = vpop.eup %20298 }
0x1ead   : > { %v15088_v49 = vmul.f32 %v20299_v54, %v25559_v58 }
0x1eaf   : > { %19450 = vmatprep.mubr.msk.f32.mxu1 %vm1572_vm2, %v15088_v49 }
0x1eb0   : > { %19451 = vmatmul.mubr.msk.f32.vlgmr.msra.gmra.mxu1 %vm1572_vm2, %v15089_v57 }
0x1eb1   : > { %19462 = vmatprep.mubr.msk.bf16.mxu1 %vm865_vm1, %v15788_v25  ;;  %19461 = vmatpush3.bf16.msra.mxu1 %v15823_v0 }
0x1ed2   : > { %v19417_v50 = vpop.f32.mrf.mxu0 }
0x1ed4   : > { %v15257_v16 = vpop.f32.mrf.mxu0 }
0x1ed5   : > { %v15789_v43 = vpack.c.bf16 %v19417_v50, %v15257_v16  ;;  %v19424_v2 = vpop.f32.mrf.mxu1  ;;  %v26694_v50 = vld [vmem:[#allocation22_spill] sm:$0xff] }
0x1ed7   : > { %v15344_v27 = vpop.f32.mrf.mxu1  ;;  %19463 = vmatmul.mubr.msk.bf16.vlgmr.msra.gmra.mxu1 %vm865_vm1, %v15789_v43 }
0x1ed8   : > { %v15790_v59 = vpack.c.bf16 %v19424_v2, %v15344_v27  ;;  %v19431_v21 = vpop.f32.mrf.mxu0 }
0x1eda   : > { %v15431_v13 = vpop.f32.mrf.mxu0  ;;  %19466 = vmatprep.mubr.msk.bf16.mxu1 %vm865_vm1, %v15790_v59 }
0x1edb   : > { %v15791_v58 = vpack.c.bf16 %v19431_v21, %v15431_v13  ;;  %v26696_v13 = vld [vmem:[#allocation42_spill] sm:$0xff] }
0x1edc   : > { %v19445_v61 = vpop.f32.mrf.mxu0 }
0x1ede   : > { %v15605_v5 = vpop.f32.mrf.mxu0 }
0x1edf   : > { %19467 = vmatmul.mubr.msk.bf16.gmra.mxu1 %vm865_vm1, %v15791_v58  ;;  %v15793_v26 = vpack.c.bf16 %v19445_v61, %v15605_v5  ;;  %v26697_v61 = vld [vmem:[#allocation24_spill] sm:$0xff] }
0x1f37   : > { %v19438_v19 = vpop.f32.mrf.mxu1 }
0x1f39   : > { %v15518_v31 = vpop.f32.mrf.mxu1 }
0x1f3a   : > { %v15792_v44 = vpack.c.bf16 %v19438_v19, %v15518_v31 }
0x1f3c   : > { %19470 = vmatprep.mubr.msk.bf16.mxu1 %vm865_vm1, %v15792_v44 }
0x1f3d   : > { %19471 = vmatmul.mubr.msk.bf16.gmra.mxu1 %vm865_vm1, %v15793_v26 }
0x1f65   : > { %v19459_v39 = vpop.f32.mrf.mxu0 }
0x1f67   : > { %v15779_v41 = vpop.f32.mrf.mxu0 }
0x1f68   : > { %v15795_v18 = vpack.c.bf16 %v19459_v39, %v15779_v41 }
0x1f70   : > { %v19452_v6 = vpop.f32.mrf.mxu1 }
0x1f72   : > { %v15692_v56 = vpop.f32.mrf.mxu1 }
0x1f73   : > { %v15794_v12 = vpack.c.bf16 %v19452_v6, %v15692_v56 }
0x1f75   : > { %19474 = vmatprep.mubr.msk.bf16.mxu1 %vm865_vm1, %v15794_v12 }
0x1f76   : > { %19475 = vmatmul.mubr.msk.bf16.gmra.mxu1 %vm865_vm1, %v15795_v18 }
0x1f97   : > { %v19464_v4 = vpop.f32.mrf.mxu1 }
0x1f98   : > { %v15924_v29 = vadd.f32 %v19464_v4, %v25362_v60 }
0x1f99   : > { %v15859_v45 = vpop.f32.mrf.mxu1 }
0x1f9a   : > { %v15922_v53 = vadd.f32 %v15859_v45, %v25366_v63  ;;  %v15940_v62 = vadd.f32 %v15924_v29, %v26688_v22  ;;  %v26698_v29 = vld [vmem:[#allocation28_spill] sm:$0xff] }
0x1f9b   : > { %v19465_v34 = vpop.f32.mrf.mxu1 }
0x1f9c   : > { %v15938_v1 = vadd.f32 %v15922_v53, %v26691_v8  ;;  %v15925_v60 = vadd.f32 %v19465_v34, %v25370_v37  ;;  %v25622_v23 = vadd.f32 %v25613_v42, %v15940_v62  ;;  %v26699_v53 = vld [vmem:[#allocation38_spill] sm:$0xff] }
0x1f9d   : > { %v15862_v11 = vpop.f32.mrf.mxu1 }
0x1f9e   : > { %v25618_v63 = vadd.f32 %v25613_v42, %v15938_v1  ;;  %v15923_v46 = vadd.f32 %v15862_v11, %v25372_v24  ;;  %v15941_v9 = vadd.f32 %v15925_v60, %v26692_v55  ;;  %v15980_v0 = vsel %vm457_vm0, %v25622_v23, 0.0  ;;  %v26701_v11 = vld [vmem:[#allocation40_spill] sm:$0xff] }
0x1f9f   : > { %v19468_v33 = vpop.f32.mrf.mxu1 }
0x1fa0   : > { %v15939_v20 = vadd.f32 %v15923_v46, %v26693_v14  ;;  %v15974_v54 = vsel %vm457_vm0, %v25618_v63, 0.0  ;;  %v15928_v24 = vadd.f32 %v19468_v33, %v25379_v15  ;;  %v25636_v25 = vadd.f32 %v25613_v42, %v15941_v9  ;;  %v26695_v15 = vld [vmem:[#allocation21_spill] sm:$0xff] }
0x1fa1   : > { %15975 = vadd.xlane.f32.xlu0 %v15974_v54  ;;  %v15875_v3 = vpop.f32.mrf.mxu1 }
0x1fa2   : > { %v25629_v37 = vadd.f32 %v25613_v42, %v15939_v20  ;;  %v15926_v49 = vadd.f32 %v15875_v3, %v25384_v35  ;;  %v15944_v59 = vadd.f32 %v15928_v24, %v26695_v15 }
0x1fa3   : > { %v19469_v57 = vpop.f32.mrf.mxu1 }
0x1fa4   : > { %v15942_v16 = vadd.f32 %v15926_v49, %v26694_v50  ;;  %v15929_v43 = vadd.f32 %v19469_v57, %v25388_v48  ;;  %v15977_v2 = vsel %vm457_vm0, %v25629_v37, 0.0  ;;  %v15983_v48 = vsel %vm457_vm0, %v25636_v25, 0.0 }
0x1fa5   : > { %15981 = vadd.xlane.f32.xlu0 %v15980_v0  ;;  %15978 = vadd.xlane.f32.xlu1 %v15977_v2  ;;  %v15878_v27 = vpop.f32.mrf.mxu1  ;;  %v25655_v31 = vadd.f32 %v25613_v42, %v15944_v59 }
0x1fa6   : > { %v15927_v35 = vadd.f32 %v15878_v27, %v25390_v7  ;;  %v25645_v21 = vadd.f32 %v25613_v42, %v15942_v16  ;;  %v15945_v58 = vadd.f32 %v15929_v43, %v26696_v13  ;;  %v26702_v43 = vld [vmem:[#allocation30_spill] sm:$0xff]  ;;  %v26703_v27 = vld [vmem:[#allocation23_spill] sm:$0xff] }
0x1fa7   : > { %v15992_v39 = vsel %vm457_vm0, %v25655_v31, 0.0 }
0x1fa8   : > { %v15943_v19 = vadd.f32 %v15927_v35, %v26697_v61  ;;  %v25658_v7 = vadd.f32 %v25613_v42, %v15945_v58  ;;  %v15986_v44 = vsel %vm457_vm0, %v25645_v21, 0.0 }
0x1fa9   : > { %15984 = vadd.xlane.f32.xlu0 %v15983_v48 }
0x1faa   : > { %v25652_v5 = vadd.f32 %v25613_v42, %v15943_v19  ;;  %v15995_v6 = vsel %vm457_vm0, %v25658_v7, 0.0 }
0x1fac   : > { %v15989_v26 = vsel %vm457_vm0, %v25652_v5, 0.0 }
0x1fad   : > { %15987 = vadd.xlane.f32.xlu0 %v15986_v44  ;;  %15990 = vadd.xlane.f32.xlu1 %v15989_v26  ;;  %v26704_v44 = vld [vmem:[#allocation31_spill] sm:$0xff] }
0x1fb1   : > { %15993 = vadd.xlane.f32.xlu0 %v15992_v39  ;;  %15996 = vadd.xlane.f32.xlu1 %v15995_v6  ;;  %v26705_v39 = vld [vmem:[#allocation45_spill] sm:$0xff] }
0x1ffd   : > { %v19472_v41 = vpop.f32.mrf.mxu1 }
0x1ffe   : > { %v15932_v56 = vadd.f32 %v19472_v41, %v25436_v40  ;;  %v26700_v40 = vld [vmem:[#allocation26_spill] sm:$0xff] }
0x1fff   : > { %v15891_v12 = vpop.f32.mrf.mxu1 }
0x2000   : > { %v15930_v18 = vadd.f32 %v15891_v12, %v25440_v10  ;;  %v15948_v45 = vadd.f32 %v15932_v56, %v26698_v29 }
0x2001   : > { %v19473_v4 = vpop.f32.mrf.mxu1 }
0x2002   : > { %v15946_v22 = vadd.f32 %v15930_v18, %v26699_v53  ;;  %v15933_v62 = vadd.f32 %v19473_v4, %v25446_v51  ;;  %v25678_v1 = vadd.f32 %v25613_v42, %v15948_v45 }
0x2003   : > { %v15894_v28 = vpop.f32.mrf.mxu1 }
0x2004   : > { %v25674_v34 = vadd.f32 %v25613_v42, %v15946_v22  ;;  %v15931_v8 = vadd.f32 %v15894_v28, %v25454_v17  ;;  %v15949_v60 = vadd.f32 %v15933_v62, %v26700_v40  ;;  %v16004_v17 = vsel %vm457_vm0, %v25678_v1, 0.0 }
0x2006   : > { %v15947_v10 = vadd.f32 %v15931_v8, %v26701_v11  ;;  %v15998_v46 = vsel %vm457_vm0, %v25674_v34, 0.0  ;;  %v25688_v51 = vadd.f32 %v25613_v42, %v15949_v60 }
0x2007   : > { %15999 = vadd.xlane.f32.xlu0 %v15998_v46 }
0x2008   : > { %v25685_v33 = vadd.f32 %v25613_v42, %v15947_v10  ;;  %v16007_v9 = vsel %vm457_vm0, %v25688_v51, 0.0 }
0x200a   : > { %v16001_v55 = vsel %vm457_vm0, %v25685_v33, 0.0 }
0x200b   : > { %16005 = vadd.xlane.f32.xlu0 %v16004_v17  ;;  %16002 = vadd.xlane.f32.xlu1 %v16001_v55 }
0x200f   : > { %16008 = vadd.xlane.f32.xlu1 %v16007_v9 }
0x202a   : > { %v15976_v14 = vpop.xlane.xlu0 %15975 }
0x202b   : > { %v16022_v0 = vmul.f32 0.03125, %v15976_v14 }
0x202e   : > { %v15982_v20 = vpop.xlane.xlu0 %15981  ;;  %v15979_v16 = vpop.xlane.xlu1 %15978 }
0x202f   : > { %v16024_v61 = vmul.f32 0.03125, %v15982_v20 }
0x2032   : > { %v15985_v49 = vpop.xlane.xlu0 %15984 }
0x2033   : > { %v16025_v12 = vmul.f32 0.03125, %v15985_v49 }
0x2035   : > { %v25734_v28 = vsub.f32 %v25636_v25, %v16025_v12 }
0x2036   : > { %v19476_v54 = vpop.f32.mrf.mxu1  ;;  %v15988_v19 = vpop.xlane.xlu0 %15987 }
0x2037   : > { %v15936_v3 = vadd.f32 %v19476_v54, %v25460_v36  ;;  %v25706_v36 = vsub.f32 %v25618_v63, %v16022_v0  ;;  %v15991_v18 = vpop.xlane.xlu1 %15990  ;;  %v16026_v29 = vmul.f32 0.03125, %v15988_v19  ;;  %v16057_v14 = vmul.f32 %v25734_v28, %v25734_v28 }
0x2038   : > { %v15907_v24 = vpop.f32.mrf.mxu1  ;;  %v16027_v11 = vmul.f32 0.03125, %v15991_v18 }
0x2039   : > { %v15934_v57 = vadd.f32 %v15907_v24, %v25464_v30  ;;  %v15952_v2 = vadd.f32 %v15936_v3, %v26702_v43  ;;  %v16023_v30 = vmul.f32 0.03125, %v15979_v16  ;;  %v16054_v4 = vmul.f32 %v25706_v36, %v25706_v36 }
0x203a   : > { %v19477_v50 = vpop.f32.mrf.mxu1  ;;  %v15994_v62 = vpop.xlane.xlu0 %15993  ;;  %v25742_v60 = vsub.f32 %v25645_v21, %v16026_v29  ;;  %v25751_v20 = vsub.f32 %v25652_v5, %v16027_v11  ;;  %v16079_v24 = vsel %vm457_vm0, %v16057_v14, 0.0 }
0x203b   : > { %v15950_v35 = vadd.f32 %v15934_v57, %v26703_v27  ;;  %v15937_v15 = vadd.f32 %v19477_v50, %v25468_v47  ;;  %v25709_v48 = vadd.f32 %v25613_v42, %v15952_v2  ;;  %v25722_v56 = vsub.f32 %v25629_v37, %v16023_v30  ;;  %v15997_v17 = vpop.xlane.xlu1 %15996 }
0x203c   : > { %v15910_v59 = vpop.f32.mrf.mxu1  ;;  %v16070_v8 = vsel %vm457_vm0, %v16054_v4, 0.0  ;;  %v16028_v10 = vmul.f32 0.03125, %v15994_v62  ;;  %v16029_v3 = vmul.f32 0.03125, %v15997_v17  ;;  %v16058_v49 = vmul.f32 %v25742_v60, %v25742_v60 }
0x203d   : > { %v25702_v13 = vadd.f32 %v25613_v42, %v15950_v35  ;;  %v15935_v58 = vadd.f32 %v15910_v59, %v25470_v38  ;;  %v15953_v26 = vadd.f32 %v15937_v15, %v26704_v44  ;;  %v25719_v38 = vsub.f32 %v25622_v23, %v16024_v61  ;;  %v19618_v15 = vld [vmem:[%s26297_s6 + $0x18] sm:$0xff]   ;;  %v19619_v59 = vld [vmem:[%s26297_s6 + $0x10] sm:$0xff]  }
0x203e   : > { %v16016_v53 = vsel %vm457_vm0, %v25709_v48, 0.0  ;;  %v25754_v54 = vsub.f32 %v25655_v31, %v16028_v10  ;;  %v25760_v57 = vsub.f32 %v25658_v7, %v16029_v3  ;;  %v16082_v0 = vsel %vm457_vm0, %v16058_v49, 0.0  ;;  %19478 = vmatprep.subr.bf16.mxu0 %v19618_v15 }
0x203f   : > { %v15951_v6 = vadd.f32 %v15935_v58, %v26705_v39  ;;  %v16010_v47 = vsel %vm457_vm0, %v25702_v13, 0.0  ;;  %v25727_v45 = vadd.f32 %v25613_v42, %v15953_v26  ;;  %v16056_v40 = vmul.f32 %v25719_v38, %v25719_v38  ;;  %19479 = vmatpush3.bf16.msra.mxu0 %v19618_v15 }
0x2040   : > { %16011 = vadd.xlane.f32.xlu0 %v16010_v47  ;;  %v16060_v50 = vmul.f32 %v25754_v54, %v25754_v54  ;;  %v16059_v16 = vmul.f32 %v25751_v20, %v25751_v20  ;;  %v16061_v27 = vmul.f32 %v25760_v57, %v25760_v57  ;;  %19480 = vmatprep.subr.bf16.mxu0 %v19619_v59 }
0x2041   : > { %v25716_v41 = vadd.f32 %v25613_v42, %v15951_v6  ;;  %v16055_v42 = vmul.f32 %v25722_v56, %v25722_v56  ;;  %v16019_v46 = vsel %vm457_vm0, %v25727_v45, 0.0  ;;  %v16076_v55 = vsel %vm457_vm0, %v16056_v40, 0.0 }
0x2042   : > { %v16088_v43 = vsel %vm457_vm0, %v16060_v50, 0.0  ;;  %v16085_v2 = vsel %vm457_vm0, %v16059_v16, 0.0  ;;  %v16091_v35 = vsel %vm457_vm0, %v16061_v27, 0.0 }
0x2043   : > { %v16013_v22 = vsel %vm457_vm0, %v25716_v41, 0.0  ;;  %v16073_v9 = vsel %vm457_vm0, %v16055_v42, 0.0  ;;  %19481 = vmatpush3.bf16.msra.mxu0 %v19619_v59 }
0x2044   : > { %16017 = vadd.xlane.f32.xlu0 %v16016_v53  ;;  %16014 = vadd.xlane.f32.xlu1 %v16013_v22 }
0x2048   : > { %16071 = vadd.xlane.f32.xlu0 %v16070_v8  ;;  %16020 = vadd.xlane.f32.xlu1 %v16019_v46 }
0x204c   : > { %16077 = vadd.xlane.f32.xlu0 %v16076_v55  ;;  %16074 = vadd.xlane.f32.xlu1 %v16073_v9 }
0x2050   : > { %16083 = vadd.xlane.f32.xlu0 %v16082_v0  ;;  %16080 = vadd.xlane.f32.xlu1 %v16079_v24 }
0x2054   : > { %16089 = vadd.xlane.f32.xlu0 %v16088_v43  ;;  %16086 = vadd.xlane.f32.xlu1 %v16085_v2 }
0x2058   : > { %16092 = vadd.xlane.f32.xlu1 %v16091_v35 }
0x2090   : > { %v16000_v58 = vpop.xlane.xlu0 %15999 }
0x2091   : > { %v16030_v61 = vmul.f32 0.03125, %v16000_v58 }
0x2093   : > { %v25779_v30 = vsub.f32 %v25674_v34, %v16030_v61 }
0x2094   : > { %v16006_v19 = vpop.xlane.xlu0 %16005  ;;  %v16003_v44 = vpop.xlane.xlu1 %16002 }
0x2095   : > { %v16032_v26 = vmul.f32 0.03125, %v16006_v19  ;;  %v16031_v39 = vmul.f32 0.03125, %v16003_v44  ;;  %v16062_v6 = vmul.f32 %v25779_v30, %v25779_v30 }
0x2097   : > { %v25784_v47 = vsub.f32 %v25678_v1, %v16032_v26  ;;  %v25787_v12 = vsub.f32 %v25685_v33, %v16031_v39  ;;  %v16094_v18 = vsel %vm457_vm0, %v16062_v6, 0.0 }
0x2098   : > { %16095 = vadd.xlane.f32.xlu0 %v16094_v18  ;;  %v16009_v4 = vpop.xlane.xlu1 %16008 }
0x2099   : > { %v16033_v29 = vmul.f32 0.03125, %v16009_v4  ;;  %v16064_v53 = vmul.f32 %v25784_v47, %v25784_v47  ;;  %v16063_v22 = vmul.f32 %v25787_v12, %v25787_v12 }
0x209b   : > { %v25795_v62 = vsub.f32 %v25688_v51, %v16033_v29  ;;  %v16100_v8 = vsel %vm457_vm0, %v16064_v53, 0.0  ;;  %v16097_v40 = vsel %vm457_vm0, %v16063_v22, 0.0 }
0x209c   : > { %16101 = vadd.xlane.f32.xlu0 %v16100_v8  ;;  %16098 = vadd.xlane.f32.xlu1 %v16097_v40 }
0x209d   : > { %v16065_v42 = vmul.f32 %v25795_v62, %v25795_v62 }
0x209f   : > { %v16103_v11 = vsel %vm457_vm0, %v16065_v42, 0.0 }
0x20a0   : > { %16104 = vadd.xlane.f32.xlu1 %v16103_v11 }
0x20c9   : > { %v16012_v10 = vpop.xlane.xlu0 %16011 }
0x20ca   : > { %v16034_v46 = vmul.f32 0.03125, %v16012_v10 }
0x20cc   : > { %v25803_v17 = vsub.f32 %v25702_v13, %v16034_v46 }
0x20cd   : > { %v16018_v55 = vpop.xlane.xlu0 %16017  ;;  %v16015_v9 = vpop.xlane.xlu1 %16014 }
0x20ce   : > { %v16036_v14 = vmul.f32 0.03125, %v16018_v55  ;;  %v16035_v3 = vmul.f32 0.03125, %v16015_v9  ;;  %v16066_v49 = vmul.f32 %v25803_v17, %v25803_v17 }
0x20d0   : > { %v25808_v24 = vsub.f32 %v25709_v48, %v16036_v14  ;;  %v25811_v0 = vsub.f32 %v25716_v41, %v16035_v3  ;;  %v16106_v50 = vsel %vm457_vm0, %v16066_v49, 0.0 }
0x20d1   : > { %16107 = vadd.xlane.f32.xlu0 %v16106_v50  ;;  %v16072_v16 = vpop.xlane.xlu0 %16071  ;;  %v16021_v43 = vpop.xlane.xlu1 %16020 }
0x20d2   : > { %v16118_v2 = vmul.f32 0.03125, %v16072_v16  ;;  %v16037_v27 = vmul.f32 0.03125, %v16021_v43  ;;  %v16068_v35 = vmul.f32 %v25808_v24, %v25808_v24  ;;  %v16067_v15 = vmul.f32 %v25811_v0, %v25811_v0 }
0x20d4   : > { %v16134_v59 = vadd.f32 1e-05, %v16118_v2  ;;  %v25819_v58 = vsub.f32 %v25727_v45, %v16037_v27  ;;  %v16112_v61 = vsel %vm457_vm0, %v16068_v35, 0.0  ;;  %v16109_v19 = vsel %vm457_vm0, %v16067_v15, 0.0 }
0x20d5   : > { %16113 = vadd.xlane.f32.xlu0 %v16112_v61  ;;  %v16078_v44 = vpop.xlane.xlu0 %16077  ;;  %16110 = vadd.xlane.f32.xlu1 %v16109_v19  ;;  %v16075_v26 = vpop.xlane.xlu1 %16074  ;;  %v26706_v2 = vsub.s32 2, %v26689_v32 }
0x20d6   : > { %20300 = vrsqrt.f32 %v16134_v59  ;;  %v16120_v39 = vmul.f32 0.03125, %v16078_v44  ;;  %v16119_v6 = vmul.f32 0.03125, %v16075_v26  ;;  %v16069_v18 = vmul.f32 %v25819_v58, %v25819_v58 }
0x20d7   : > { %v25829_v27 = vrot.slane %v25608_v52, %v26706_v2  ;;  %v26707_v44 = vsub.s32 3, %v26689_v32 }
0x20d8   : > { %v16136_v4 = vadd.f32 1e-05, %v16120_v39  ;;  %v16135_v29 = vadd.f32 1e-05, %v16119_v6  ;;  %v16115_v53 = vsel %vm457_vm0, %v16069_v18, 0.0 }
0x20d9   : > { %v16084_v22 = vpop.xlane.xlu0 %16083  ;;  %16116 = vadd.xlane.f32.xlu1 %v16115_v53  ;;  %v16081_v8 = vpop.xlane.xlu1 %16080  ;;  %v25836_v26 = vrot.slane %v25608_v52, %v26707_v44 }
0x20da   : > { %20302 = vrsqrt.f32 %v16136_v4  ;;  %v16122_v40 = vmul.f32 0.03125, %v16084_v22  ;;  %v16121_v42 = vmul.f32 0.03125, %v16081_v8 }
0x20db   : > { %20304 = vrsqrt.f32 %v16135_v29 }
0x20dc   : > { %v16138_v11 = vadd.f32 1e-05, %v16122_v40  ;;  %v16137_v10 = vadd.f32 1e-05, %v16121_v42 }
0x20dd   : > { %v16090_v46 = vpop.xlane.xlu0 %16089  ;;  %v16087_v55 = vpop.xlane.xlu1 %16086 }
0x20de   : > { %20306 = vrsqrt.f32 %v16138_v11  ;;  %v16124_v9 = vmul.f32 0.03125, %v16090_v46  ;;  %v16123_v14 = vmul.f32 0.03125, %v16087_v55 }
0x20df   : > { %20308 = vrsqrt.f32 %v16137_v10 }
0x20e0   : > { %v16140_v3 = vadd.f32 1e-05, %v16124_v9  ;;  %v16139_v49 = vadd.f32 1e-05, %v16123_v14 }
0x20e1   : > { %v16093_v50 = vpop.xlane.xlu1 %16092 }
0x20e2   : > { %20310 = vrsqrt.f32 %v16140_v3  ;;  %v16125_v16 = vmul.f32 0.03125, %v16093_v50 }
0x20e3   : > { %v20301_v43 = vpop.eup %20300  ;;  %20312 = vrsqrt.f32 %v16139_v49 }
0x20e4   : > { %v16141_v35 = vadd.f32 1e-05, %v16125_v16  ;;  %v16166_v15 = vmul.f32 %v20301_v43, %v25706_v36 }
0x20e6   : > { %20314 = vrsqrt.f32 %v16141_v35  ;;  %v16186_v19 = vmul.f32 %v25829_v27, %v16166_v15 }
0x20e7   : > { %v20303_v59 = vpop.eup %20302 }
0x20e8   : > { %v20305_v61 = vpop.eup %20304  ;;  %v16168_v39 = vmul.f32 %v20303_v59, %v25719_v38  ;;  %v16206_v36 = vadd.f32 %v25836_v26, %v16186_v19 }
0x20e9   : > { %v16167_v6 = vmul.f32 %v20305_v61, %v25722_v56 }
0x20ea   : > { %v16188_v53 = vmul.f32 %v25829_v27, %v16168_v39 }
0x20eb   : > { %v20307_v18 = vpop.eup %20306  ;;  %v16187_v4 = vmul.f32 %v25829_v27, %v16167_v6 }
0x20ec   : > { %v20309_v29 = vpop.eup %20308  ;;  %v16170_v40 = vmul.f32 %v20307_v18, %v25742_v60  ;;  %v16208_v10 = vadd.f32 %v25836_v26, %v16188_v53 }
0x20ed   : > { %v16169_v22 = vmul.f32 %v20309_v29, %v25734_v28  ;;  %v16207_v8 = vadd.f32 %v25836_v26, %v16187_v4 }
0x20ee   : > { %v16190_v28 = vmul.f32 %v25829_v27, %v16170_v40 }
0x20ef   : > { %v20311_v52 = vpop.eup %20310  ;;  %v16189_v42 = vmul.f32 %v25829_v27, %v16169_v22  ;;  %v16222_v38 = vpack.c.bf16 %v16207_v8, %v16206_v36 }
0x20f0   : > { %v20313_v11 = vpop.eup %20312  ;;  %v16172_v56 = vmul.f32 %v20311_v52, %v25754_v54  ;;  %v16210_v54 = vadd.f32 %v25836_v26, %v16190_v28 }
0x20f1   : > { %19482 = vmatprep.mubr.msk.bf16.mxu0 %vm457_vm0, %v16222_v38  ;;  %v16209_v46 = vadd.f32 %v25836_v26, %v16189_v42  ;;  %v16171_v55 = vmul.f32 %v20313_v11, %v25751_v20 }
0x20f2   : > { %v16192_v49 = vmul.f32 %v25829_v27, %v16172_v56 }
0x20f3   : > { %v20315_v9 = vpop.eup %20314  ;;  %v16223_v14 = vpack.c.bf16 %v16209_v46, %v16208_v10  ;;  %v16191_v60 = vmul.f32 %v25829_v27, %v16171_v55 }
0x20f4   : > { %v16173_v3 = vmul.f32 %v20315_v9, %v25760_v57  ;;  %v16212_v20 = vadd.f32 %v25836_v26, %v16192_v49  ;;  %v19623_v49 = vld [vmem:[%s26299_s8 + $0x60] sm:$0xff]  }
0x20f5   : > { %19483 = vmatmul.mubr.msk.bf16.vlgmr.msra.gmra.mxu0 %vm457_vm0, %v16223_v14  ;;  %v16211_v50 = vadd.f32 %v25836_v26, %v16191_v60  ;;  %v19621_v60 = vld [vmem:[%s26299_s8 + $0x70] sm:$0xff]  }
0x20f6   : > { %v16193_v16 = vmul.f32 %v25829_v27, %v16173_v3  ;;  %v19622_v3 = vld [vmem:[%s26299_s8 + $0x68] sm:$0xff]  }
0x20f7   : > { %v16224_v43 = vpack.c.bf16 %v16211_v50, %v16210_v54  ;;  %v19624_v54 = vld [vmem:[%s26299_s8 + $0x58] sm:$0xff]   ;;  %v19625_v50 = vld [vmem:[%s26299_s8 + $0x50] sm:$0xff]  }
0x20f8   : > { %v16213_v2 = vadd.f32 %v25836_v26, %v16193_v16 }
0x20f9   : > { %19486 = vmatprep.mubr.msk.bf16.mxu0 %vm457_vm0, %v16224_v43 }
0x20fa   : > { %v16225_v35 = vpack.c.bf16 %v16213_v2, %v16212_v20  ;;  %v19626_v20 = vld [vmem:[%s26299_s8 + $0x48] sm:$0xff]  }
0x20fd   : > { %19487 = vmatmul.mubr.msk.bf16.gmra.mxu0 %vm457_vm0, %v16225_v35 }
0x2121   : > { %v16096_v57 = vpop.xlane.xlu0 %16095 }
0x2122   : > { %v16126_v15 = vmul.f32 0.03125, %v16096_v57 }
0x2124   : > { %v16142_v59 = vadd.f32 1e-05, %v16126_v15 }
0x2125   : > { %v16102_v61 = vpop.xlane.xlu0 %16101  ;;  %v16099_v19 = vpop.xlane.xlu1 %16098 }
0x2126   : > { %20316 = vrsqrt.f32 %v16142_v59  ;;  %v16128_v44 = vmul.f32 0.03125, %v16102_v61  ;;  %v16127_v39 = vmul.f32 0.03125, %v16099_v19  ;;  %v19627_v61 = vld [vmem:[%s26299_s8 + $0x40] sm:$0xff]  }
0x2128   : > { %v16144_v6 = vadd.f32 1e-05, %v16128_v44  ;;  %v16143_v18 = vadd.f32 1e-05, %v16127_v39 }
0x2129   : > { %v16105_v4 = vpop.xlane.xlu1 %16104 }
0x212a   : > { %20318 = vrsqrt.f32 %v16144_v6  ;;  %v16129_v29 = vmul.f32 0.03125, %v16105_v4 }
0x212b   : > { %20320 = vrsqrt.f32 %v16143_v18 }
0x212c   : > { %v16145_v36 = vadd.f32 1e-05, %v16129_v29 }
0x212e   : > { %20322 = vrsqrt.f32 %v16145_v36 }
0x2133   : > { %v20317_v53 = vpop.eup %20316 }
0x2134   : > { %v16174_v22 = vmul.f32 %v20317_v53, %v25779_v30 }
0x2136   : > { %v16194_v38 = vmul.f32 %v25829_v27, %v16174_v22 }
0x2137   : > { %v20319_v8 = vpop.eup %20318 }
0x2138   : > { %v20321_v40 = vpop.eup %20320  ;;  %v16176_v52 = vmul.f32 %v20319_v8, %v25784_v47  ;;  %v16214_v55 = vadd.f32 %v25836_v26, %v16194_v38 }
0x2139   : > { %v16175_v42 = vmul.f32 %v20321_v40, %v25787_v12 }
0x213a   : > { %v16196_v46 = vmul.f32 %v25829_v27, %v16176_v52 }
0x213b   : > { %v20323_v11 = vpop.eup %20322  ;;  %v16195_v56 = vmul.f32 %v25829_v27, %v16175_v42 }
0x213c   : > { %v16177_v10 = vmul.f32 %v20323_v11, %v25795_v62  ;;  %v16216_v47 = vadd.f32 %v25836_v26, %v16196_v46  ;;  %v19620_v62 = vld [vmem:[%s26299_s8 + $0x78] sm:$0xff]  }
0x213d   : > { %v16215_v28 = vadd.f32 %v25836_v26, %v16195_v56  ;;  %19498 = vmatprep.subr.bf16.mxu1 %v19620_v62 }
0x213e   : > { %v16197_v30 = vmul.f32 %v25829_v27, %v16177_v10  ;;  %19499 = vmatpush3.bf16.msra.mxu1 %v19620_v62 }
0x213f   : > { %v16226_v9 = vpack.c.bf16 %v16215_v28, %v16214_v55  ;;  %19500 = vmatprep.subr.bf16.mxu1 %v19621_v60 }
0x2140   : > { %v16217_v12 = vadd.f32 %v25836_v26, %v16197_v30 }
0x2141   : > { %19490 = vmatprep.mubr.msk.bf16.mxu0 %vm457_vm0, %v16226_v9 }
0x2142   : > { %v16227_v14 = vpack.c.bf16 %v16217_v12, %v16216_v47  ;;  %19501 = vmatpush3.bf16.msra.mxu1 %v19621_v60 }
0x2143   : > { %19502 = vmatprep.subr.bf16.mxu1 %v19622_v3 }
0x2144   : > { %19491 = vmatmul.mubr.msk.bf16.gmra.mxu0 %vm457_vm0, %v16227_v14 }
0x2146   : > { %19503 = vmatpush3.bf16.msra.mxu1 %v19622_v3 }
0x2147   : > { %19504 = vmatprep.subr.bf16.mxu1 %v19623_v49 }
0x214a   : > { %19505 = vmatpush3.bf16.msra.mxu1 %v19623_v49 }
0x214b   : > { %19506 = vmatprep.subr.bf16.mxu1 %v19624_v54 }
0x214e   : > { %19507 = vmatpush3.bf16.msra.mxu1 %v19624_v54 }
0x214f   : > { %19508 = vmatprep.subr.bf16.mxu1 %v19625_v50 }
0x2152   : > { %19509 = vmatpush3.bf16.msra.mxu1 %v19625_v50 }
0x2153   : > { %19510 = vmatprep.subr.bf16.mxu1 %v19626_v20 }
0x2156   : > { %19511 = vmatpush3.bf16.msra.mxu1 %v19626_v20 }
0x2157   : > { %19512 = vmatprep.subr.bf16.mxu1 %v19627_v61 }
0x215a   : > { %v16108_v16 = vpop.xlane.xlu0 %16107  ;;  %19513 = vmatpush3.bf16.msra.mxu1 %v19627_v61 }
0x215b   : > { %v16130_v43 = vmul.f32 0.03125, %v16108_v16 }
0x215d   : > { %v16146_v2 = vadd.f32 1e-05, %v16130_v43 }
0x215e   : > { %v16114_v35 = vpop.xlane.xlu0 %16113  ;;  %v16111_v57 = vpop.xlane.xlu1 %16110 }
0x215f   : > { %20324 = vrsqrt.f32 %v16146_v2  ;;  %v16132_v15 = vmul.f32 0.03125, %v16114_v35  ;;  %v16131_v59 = vmul.f32 0.03125, %v16111_v57 }
0x2161   : > { %v16148_v19 = vadd.f32 1e-05, %v16132_v15  ;;  %v16147_v44 = vadd.f32 1e-05, %v16131_v59 }
0x2162   : > { %v16117_v39 = vpop.xlane.xlu1 %16116 }
0x2163   : > { %20326 = vrsqrt.f32 %v16148_v19  ;;  %v16133_v6 = vmul.f32 0.03125, %v16117_v39 }
0x2164   : > { %20328 = vrsqrt.f32 %v16147_v44 }
0x2165   : > { %v16149_v18 = vadd.f32 1e-05, %v16133_v6 }
0x2167   : > { %20330 = vrsqrt.f32 %v16149_v18 }
0x216c   : > { %v20325_v4 = vpop.eup %20324 }
0x216d   : > { %v16178_v29 = vmul.f32 %v20325_v4, %v25803_v17 }
0x216f   : > { %v16198_v40 = vmul.f32 %v25829_v27, %v16178_v29 }
0x2170   : > { %v20327_v36 = vpop.eup %20326 }
0x2171   : > { %v20329_v53 = vpop.eup %20328  ;;  %v16180_v22 = vmul.f32 %v20327_v36, %v25808_v24  ;;  %v16218_v56 = vadd.f32 %v25836_v26, %v16198_v40 }
0x2172   : > { %v16179_v8 = vmul.f32 %v20329_v53, %v25811_v0 }
0x2173   : > { %v16200_v11 = vmul.f32 %v25829_v27, %v16180_v22 }
0x2174   : > { %v20331_v52 = vpop.eup %20330  ;;  %v16199_v42 = vmul.f32 %v25829_v27, %v16179_v8 }
0x2175   : > { %v16181_v38 = vmul.f32 %v20331_v52, %v25819_v58  ;;  %v16220_v24 = vadd.f32 %v25836_v26, %v16200_v11  ;;  %v25919_v58 = vld [vmem:[%s26298_s7 + $0x1] ss:$0 sm:$0xff] }
0x2176   : > { %v16219_v10 = vadd.f32 %v25836_v26, %v16199_v42 }
0x2177   : > { %v16201_v17 = vmul.f32 %v25829_v27, %v16181_v38 }
0x2178   : > { %v16228_v46 = vpack.c.bf16 %v16219_v10, %v16218_v56 }
0x2179   : > { %v16221_v0 = vadd.f32 %v25836_v26, %v16201_v17 }
0x217a   : > { %19494 = vmatprep.mubr.msk.bf16.mxu0 %vm457_vm0, %v16228_v46 }
0x217b   : > { %v16229_v55 = vpack.c.bf16 %v16221_v0, %v16220_v24 }
0x217d   : > { %19495 = vmatmul.mubr.msk.bf16.gmra.mxu0 %vm457_vm0, %v16229_v55 }
0x21b5   : > { %v19484_v28 = vpop.f32.mrf.mxu0 }
0x21b6   : > { %v25922_v30 = vadd.f32 %v19484_v28, %v25919_v58 }
0x21b7   : > { %v16313_v27 = vpop.f32.mrf.mxu0 }
0x21b8   : > { %v17638_v9 = vmul.f32 -1.702, %v25922_v30  ;;  %v25926_v47 = vadd.f32 %v25919_v58, %v16313_v27 }
0x21b9   : > { %v19485_v26 = vpop.f32.mrf.mxu0 }
0x21ba   : > { %v16412_v12 = vmul.f32 1.442695, %v17638_v9  ;;  %v17636_v14 = vmul.f32 -1.702, %v25926_v47  ;;  %v16325_v62 = vadd.f32 %v19485_v26, %v25919_v58 }
0x21bb   : > { %v16316_v60 = vpop.f32.mrf.mxu0 }
0x21bc   : > { %v16408_v3 = vmul.f32 1.442695, %v17636_v14  ;;  %v17639_v49 = vmul.f32 -1.702, %v16325_v62  ;;  %v16317_v54 = vadd.f32 %v25919_v58, %v16316_v60  ;;  %20332 = vpow2.f32 %v16412_v12 }
0x21bd   : > { %v19488_v50 = vpop.f32.mrf.mxu0 }
0x21be   : > { %20334 = vpow2.f32 %v16408_v3  ;;  %v16414_v16 = vmul.f32 1.442695, %v17639_v49  ;;  %v17637_v43 = vmul.f32 -1.702, %v16317_v54  ;;  %v25932_v20 = vadd.f32 %v19488_v50, %v25919_v58 }
0x21bf   : > { %v16329_v2 = vpop.f32.mrf.mxu0 }
0x21c0   : > { %20336 = vpow2.f32 %v16414_v16  ;;  %v16410_v35 = vmul.f32 1.442695, %v17637_v43  ;;  %v17642_v57 = vmul.f32 -1.702, %v25932_v20  ;;  %v16330_v15 = vadd.f32 %v25919_v58, %v16329_v2 }
0x21c1   : > { %v19489_v59 = vpop.f32.mrf.mxu0 }
0x21c2   : > { %20338 = vpow2.f32 %v16410_v35  ;;  %v16420_v61 = vmul.f32 1.442695, %v17642_v57  ;;  %v17640_v19 = vmul.f32 -1.702, %v16330_v15  ;;  %v16341_v44 = vadd.f32 %v19489_v59, %v25919_v58 }
0x21c3   : > { %v16332_v39 = vpop.f32.mrf.mxu0 }
0x21c4   : > { %v16416_v6 = vmul.f32 1.442695, %v17640_v19  ;;  %v17643_v18 = vmul.f32 -1.702, %v16341_v44  ;;  %v16333_v4 = vadd.f32 %v25919_v58, %v16332_v39  ;;  %20340 = vpow2.f32 %v16420_v61 }
0x21c6   : > { %20342 = vpow2.f32 %v16416_v6  ;;  %v16422_v29 = vmul.f32 1.442695, %v17643_v18  ;;  %v17641_v36 = vmul.f32 -1.702, %v16333_v4 }
0x21c8   : > { %20344 = vpow2.f32 %v16422_v29  ;;  %v16418_v53 = vmul.f32 1.442695, %v17641_v36 }
0x21c9   : > { %v20333_v22 = vpop.eup %20332 }
0x21ca   : > { %20346 = vpow2.f32 %v16418_v53  ;;  %v16442_v42 = vadd.f32 1.0, %v20333_v22 }
0x21cb   : > { %v20335_v8 = vpop.eup %20334 }
0x21cc   : > { %v16440_v40 = vadd.f32 1.0, %v20335_v8 }
0x21cd   : > { %v20337_v52 = vpop.eup %20336 }
0x21ce   : > { %v16443_v38 = vadd.f32 1.0, %v20337_v52  ;;  %20348 = vrcp.f32 %v16440_v40 }
0x21cf   : > { %v20339_v11 = vpop.eup %20338 }
0x21d0   : > { %20350 = vrcp.f32 %v16443_v38  ;;  %v16441_v56 = vadd.f32 1.0, %v20339_v11 }
0x21d1   : > { %20352 = vrcp.f32 %v16442_v42  ;;  %v20341_v10 = vpop.eup %20340 }
0x21d2   : > { %20354 = vrcp.f32 %v16441_v56  ;;  %v16446_v0 = vadd.f32 1.0, %v20341_v10 }
0x21d3   : > { %v20343_v17 = vpop.eup %20342 }
0x21d4   : > { %v16444_v46 = vadd.f32 1.0, %v20343_v17 }
0x21d5   : > { %v20345_v24 = vpop.eup %20344 }
0x21d6   : > { %v16447_v55 = vadd.f32 1.0, %v20345_v24  ;;  %20356 = vrcp.f32 %v16444_v46 }
0x21d7   : > { %v20347_v28 = vpop.eup %20346 }
0x21d8   : > { %20358 = vrcp.f32 %v16447_v55  ;;  %v16445_v27 = vadd.f32 1.0, %v20347_v28 }
0x21d9   : > { %20360 = vrcp.f32 %v16446_v0 }
0x21da   : > { %20362 = vrcp.f32 %v16445_v27 }
0x21db   : > { %v20349_v9 = vpop.eup %20348 }
0x21dc   : > { %v16488_v3 = vmul.f32 %v20349_v9, %v25926_v47 }
0x21dd   : > { %v20351_v26 = vpop.eup %20350 }
0x21de   : > { %v20353_v12 = vpop.eup %20352  ;;  %v16491_v60 = vmul.f32 %v20351_v26, %v16325_v62 }
0x21df   : > { %v20355_v14 = vpop.eup %20354  ;;  %v16490_v50 = vmul.f32 %v20353_v12, %v25922_v30 }
0x21e0   : > { %v16489_v49 = vmul.f32 %v20355_v14, %v16317_v54 }
0x21e1   : > { %v16505_v43 = vpack.c.bf16 %v16491_v60, %v16490_v50 }
0x21e2   : > { %v16504_v16 = vpack.c.bf16 %v16489_v49, %v16488_v3 }
0x21e3   : > { %v20357_v2 = vpop.eup %20356 }
0x21e4   : > { %19514 = vmatprep.mubr.bf16.mxu1 %v16504_v16  ;;  %v16492_v19 = vmul.f32 %v20357_v2, %v16330_v15 }
0x21e5   : > { %v20359_v35 = vpop.eup %20358  ;;  %19515 = vmatmul.mubr.bf16.vlgmr.msra.gmra.mxu1 %v16505_v43 }
0x21e6   : > { %v20361_v57 = vpop.eup %20360  ;;  %v16495_v61 = vmul.f32 %v20359_v35, %v16341_v44 }
0x21e7   : > { %v20363_v59 = vpop.eup %20362  ;;  %v16494_v6 = vmul.f32 %v20361_v57, %v25932_v20 }
0x21e8   : > { %v16493_v39 = vmul.f32 %v20363_v59, %v16333_v4 }
0x21e9   : > { %v16507_v62 = vpack.c.bf16 %v16495_v61, %v16494_v6 }
0x21ea   : > { %v16506_v18 = vpack.c.bf16 %v16493_v39, %v16492_v19 }
0x21ec   : > { %19518 = vmatprep.mubr.bf16.mxu1 %v16506_v18 }
0x21ed   : > { %19519 = vmatmul.mubr.bf16.gmra.mxu1 %v16507_v62 }
0x2204   : > { %v19492_v47 = vpop.f32.mrf.mxu0 }
0x2205   : > { %v16354_v30 = vadd.f32 %v19492_v47, %v25919_v58 }
0x2206   : > { %v16345_v54 = vpop.f32.mrf.mxu0 }
0x2207   : > { %v17646_v29 = vmul.f32 -1.702, %v16354_v30  ;;  %v16346_v36 = vadd.f32 %v25919_v58, %v16345_v54 }
0x2208   : > { %v19493_v53 = vpop.f32.mrf.mxu0 }
0x2209   : > { %v16428_v22 = vmul.f32 1.442695, %v17646_v29  ;;  %v17644_v8 = vmul.f32 -1.702, %v16346_v36  ;;  %v16357_v44 = vadd.f32 %v19493_v53, %v25919_v58 }
0x220a   : > { %v16348_v15 = vpop.f32.mrf.mxu0 }
0x220b   : > { %v16424_v4 = vmul.f32 1.442695, %v17644_v8  ;;  %v17647_v40 = vmul.f32 -1.702, %v16357_v44  ;;  %v16349_v20 = vadd.f32 %v25919_v58, %v16348_v15  ;;  %20364 = vpow2.f32 %v16428_v22 }
0x220d   : > { %20366 = vpow2.f32 %v16424_v4  ;;  %v16430_v52 = vmul.f32 1.442695, %v17647_v40  ;;  %v17645_v42 = vmul.f32 -1.702, %v16349_v20 }
0x220f   : > { %20368 = vpow2.f32 %v16430_v52  ;;  %v16426_v38 = vmul.f32 1.442695, %v17645_v42 }
0x2211   : > { %20370 = vpow2.f32 %v16426_v38 }
0x2218   : > { %v20365_v11 = vpop.eup %20364 }
0x2219   : > { %v16450_v46 = vadd.f32 1.0, %v20365_v11 }
0x221a   : > { %v20367_v56 = vpop.eup %20366 }
0x221b   : > { %v16448_v10 = vadd.f32 1.0, %v20367_v56 }
0x221c   : > { %v20369_v17 = vpop.eup %20368 }
0x221d   : > { %v16451_v24 = vadd.f32 1.0, %v20369_v17  ;;  %20372 = vrcp.f32 %v16448_v10 }
0x221e   : > { %v20371_v0 = vpop.eup %20370 }
0x221f   : > { %20374 = vrcp.f32 %v16451_v24  ;;  %v16449_v55 = vadd.f32 1.0, %v20371_v0  ;;  %v20495_v24 = vld [vmem:[%s26293_s2 + $0x8] sm:$0x3f]  ;;  %v26708_v0 = vsub.s32 5, %v26689_v32 }
0x2220   : > { %20376 = vrcp.f32 %v16450_v46 }
0x2221   : > { %20378 = vrcp.f32 %v16449_v55  ;;  %v25954_v55 = vrot.slane %v20495_v24, %v26708_v0 }
0x222a   : > { %v20373_v28 = vpop.eup %20372 }
0x222b   : > { %v16496_v14 = vmul.f32 %v20373_v28, %v16346_v36 }
0x222c   : > { %v20375_v27 = vpop.eup %20374 }
0x222d   : > { %v20377_v9 = vpop.eup %20376  ;;  %v16499_v12 = vmul.f32 %v20375_v27, %v16357_v44 }
0x222e   : > { %v20379_v26 = vpop.eup %20378  ;;  %v16498_v3 = vmul.f32 %v20377_v9, %v16354_v30 }
0x222f   : > { %v16497_v60 = vmul.f32 %v20379_v26, %v16349_v20 }
0x2230   : > { %v16509_v50 = vpack.c.bf16 %v16499_v12, %v16498_v3 }
0x2231   : > { %v16508_v49 = vpack.c.bf16 %v16497_v60, %v16496_v14 }
0x2233   : > { %19522 = vmatprep.mubr.bf16.mxu1 %v16508_v49 }
0x2234   : > { %19523 = vmatmul.mubr.bf16.gmra.mxu1 %v16509_v50 }
0x223d   : > { %v19496_v16 = vpop.f32.mrf.mxu0 }
0x223e   : > { %v16370_v43 = vadd.f32 %v19496_v16, %v25919_v58 }
0x223f   : > { %v16361_v2 = vpop.f32.mrf.mxu0 }
0x2240   : > { %v17650_v35 = vmul.f32 -1.702, %v16370_v43  ;;  %v16362_v57 = vadd.f32 %v25919_v58, %v16361_v2 }
0x2241   : > { %v19497_v59 = vpop.f32.mrf.mxu0 }
0x2242   : > { %v16436_v61 = vmul.f32 1.442695, %v17650_v35  ;;  %v17648_v19 = vmul.f32 -1.702, %v16362_v57  ;;  %v16373_v39 = vadd.f32 %v19497_v59, %v25919_v58 }
0x2243   : > { %v16364_v6 = vpop.f32.mrf.mxu0 }
0x2244   : > { %v16432_v18 = vmul.f32 1.442695, %v17648_v19  ;;  %v17651_v62 = vmul.f32 -1.702, %v16373_v39  ;;  %v16365_v47 = vadd.f32 %v25919_v58, %v16364_v6  ;;  %20380 = vpow2.f32 %v16436_v61 }
0x2246   : > { %20382 = vpow2.f32 %v16432_v18  ;;  %v16438_v30 = vmul.f32 1.442695, %v17651_v62  ;;  %v17649_v54 = vmul.f32 -1.702, %v16365_v47 }
0x2248   : > { %20384 = vpow2.f32 %v16438_v30  ;;  %v16434_v29 = vmul.f32 1.442695, %v17649_v54 }
0x224a   : > { %20386 = vpow2.f32 %v16434_v29 }
0x2251   : > { %v20381_v36 = vpop.eup %20380 }
0x2252   : > { %v16454_v44 = vadd.f32 1.0, %v20381_v36 }
0x2253   : > { %v20383_v53 = vpop.eup %20382 }
0x2254   : > { %v16452_v22 = vadd.f32 1.0, %v20383_v53 }
0x2255   : > { %v20385_v8 = vpop.eup %20384 }
0x2256   : > { %v16455_v15 = vadd.f32 1.0, %v20385_v8  ;;  %20388 = vrcp.f32 %v16452_v22 }
0x2257   : > { %v20387_v4 = vpop.eup %20386 }
0x2258   : > { %20390 = vrcp.f32 %v16455_v15  ;;  %v16453_v40 = vadd.f32 1.0, %v20387_v4 }
0x2259   : > { %20392 = vrcp.f32 %v16454_v44 }
0x225a   : > { %20394 = vrcp.f32 %v16453_v40 }
0x2263   : > { %v20389_v58 = vpop.eup %20388 }
0x2264   : > { %v16500_v11 = vmul.f32 %v20389_v58, %v16362_v57 }
0x2265   : > { %v20391_v20 = vpop.eup %20390 }
0x2266   : > { %v20393_v52 = vpop.eup %20392  ;;  %v16503_v38 = vmul.f32 %v20391_v20, %v16373_v39 }
0x2267   : > { %v20395_v42 = vpop.eup %20394  ;;  %v16502_v10 = vmul.f32 %v20393_v52, %v16370_v43 }
0x2268   : > { %v16501_v56 = vmul.f32 %v20395_v42, %v16365_v47 }
0x2269   : > { %v16511_v46 = vpack.c.bf16 %v16503_v38, %v16502_v10 }
0x226a   : > { %v16510_v17 = vpack.c.bf16 %v16501_v56, %v16500_v11 }
0x226c   : > { %19526 = vmatprep.mubr.bf16.mxu1 %v16510_v17 }
0x226d   : > { %19527 = vmatmul.mubr.bf16.gmra.mxu1 %v16511_v46 }
0x22a5   : > { %v19516_v28 = vpop.f32.mrf.mxu1 }
0x22a6   : > { %v16676_v27 = vadd.f32 %v19516_v28, %v25622_v23 }
0x22a7   : > { %v16611_v9 = vpop.f32.mrf.mxu1 }
0x22a8   : > { %v25958_v26 = vadd.f32 %v25954_v55, %v16676_v27  ;;  %v16674_v12 = vadd.f32 %v16611_v9, %v25618_v63 }
0x22a9   : > { %v19517_v14 = vpop.f32.mrf.mxu1 }
0x22aa   : > { %v25962_v60 = vadd.f32 %v25954_v55, %v16674_v12  ;;  %v16677_v3 = vadd.f32 %v19517_v14, %v25636_v25  ;;  %v16716_v32 = vsel %vm457_vm0, %v25958_v26, 0.0 }
0x22ab   : > { %16717 = vadd.xlane.f32.xlu0 %v16716_v32  ;;  %v16614_v49 = vpop.f32.mrf.mxu1 }
0x22ac   : > { %v25968_v50 = vadd.f32 %v25954_v55, %v16677_v3  ;;  %v16675_v23 = vadd.f32 %v16614_v49, %v25629_v37  ;;  %v16710_v2 = vsel %vm457_vm0, %v25962_v60, 0.0 }
0x22ad   : > { %v19520_v16 = vpop.f32.mrf.mxu1 }
0x22ae   : > { %v25972_v43 = vadd.f32 %v25954_v55, %v16675_v23  ;;  %v16680_v63 = vadd.f32 %v19520_v16, %v25655_v31  ;;  %v16719_v25 = vsel %vm457_vm0, %v25968_v50, 0.0 }
0x22af   : > { %16711 = vadd.xlane.f32.xlu0 %v16710_v2  ;;  %16720 = vadd.xlane.f32.xlu1 %v16719_v25  ;;  %v16627_v35 = vpop.f32.mrf.mxu1 }
0x22b0   : > { %v25980_v57 = vadd.f32 %v25954_v55, %v16680_v63  ;;  %v16678_v37 = vadd.f32 %v16627_v35, %v25645_v21  ;;  %v16713_v19 = vsel %vm457_vm0, %v25972_v43, 0.0 }
0x22b1   : > { %v19521_v59 = vpop.f32.mrf.mxu1 }
0x22b2   : > { %v25984_v61 = vadd.f32 %v25954_v55, %v16678_v37  ;;  %v16681_v31 = vadd.f32 %v19521_v59, %v25658_v7  ;;  %v16728_v39 = vsel %vm457_vm0, %v25980_v57, 0.0 }
0x22b3   : > { %16714 = vadd.xlane.f32.xlu1 %v16713_v19  ;;  %16729 = vadd.xlane.f32.xlu0 %v16728_v39  ;;  %v16630_v6 = vpop.f32.mrf.mxu1 }
0x22b4   : > { %v25992_v18 = vadd.f32 %v25954_v55, %v16681_v31  ;;  %v16679_v21 = vadd.f32 %v16630_v6, %v25652_v5  ;;  %v16722_v7 = vsel %vm457_vm0, %v25984_v61, 0.0 }
0x22b6   : > { %v25996_v62 = vadd.f32 %v25954_v55, %v16679_v21  ;;  %v16731_v47 = vsel %vm457_vm0, %v25992_v18, 0.0 }
0x22b7   : > { %16723 = vadd.xlane.f32.xlu0 %v16722_v7  ;;  %16732 = vadd.xlane.f32.xlu1 %v16731_v47 }
0x22b8   : > { %v16725_v30 = vsel %vm457_vm0, %v25996_v62, 0.0 }
0x22bb   : > { %16726 = vadd.xlane.f32.xlu1 %v16725_v30 }
0x22f4   : > { %v19524_v54 = vpop.f32.mrf.mxu1 }
0x22f5   : > { %v16684_v29 = vadd.f32 %v19524_v54, %v25678_v1 }
0x22f6   : > { %v16643_v36 = vpop.f32.mrf.mxu1 }
0x22f7   : > { %v26006_v5 = vadd.f32 %v25954_v55, %v16684_v29  ;;  %v16682_v53 = vadd.f32 %v16643_v36, %v25674_v34 }
0x22f8   : > { %v19525_v22 = vpop.f32.mrf.mxu1 }
0x22f9   : > { %v26010_v8 = vadd.f32 %v25954_v55, %v16682_v53  ;;  %v16685_v44 = vadd.f32 %v19525_v22, %v25688_v51  ;;  %v16740_v15 = vsel %vm457_vm0, %v26006_v5, 0.0 }
0x22fa   : > { %16741 = vadd.xlane.f32.xlu0 %v16740_v15  ;;  %v16646_v4 = vpop.f32.mrf.mxu1 }
0x22fb   : > { %v26016_v40 = vadd.f32 %v25954_v55, %v16685_v44  ;;  %v16683_v1 = vadd.f32 %v16646_v4, %v25685_v33  ;;  %v16734_v34 = vsel %vm457_vm0, %v26010_v8, 0.0 }
0x22fd   : > { %v26020_v58 = vadd.f32 %v25954_v55, %v16683_v1  ;;  %v16743_v20 = vsel %vm457_vm0, %v26016_v40, 0.0 }
0x22fe   : > { %16735 = vadd.xlane.f32.xlu0 %v16734_v34  ;;  %16744 = vadd.xlane.f32.xlu1 %v16743_v20 }
0x22ff   : > { %v16737_v51 = vsel %vm457_vm0, %v26020_v58, 0.0 }
0x2302   : > { %16738 = vadd.xlane.f32.xlu1 %v16737_v51 }
0x232d   : > { %v19528_v52 = vpop.f32.mrf.mxu1 }
0x232e   : > { %v16688_v38 = vadd.f32 %v19528_v52, %v25709_v48 }
0x232f   : > { %v16659_v42 = vpop.f32.mrf.mxu1 }
0x2330   : > { %v16686_v33 = vadd.f32 %v16659_v42, %v25702_v13  ;;  %v26034_v17 = vadd.f32 %v25954_v55, %v16688_v38 }
0x2331   : > { %v19529_v11 = vpop.f32.mrf.mxu1 }
0x2332   : > { %v26031_v56 = vadd.f32 %v25954_v55, %v16686_v33  ;;  %v16689_v46 = vadd.f32 %v19529_v11, %v25727_v45  ;;  %v16752_v14 = vsel %vm457_vm0, %v26034_v17, 0.0 }
0x2333   : > { %v16662_v10 = vpop.f32.mrf.mxu1 }
0x2334   : > { %v16718_v24 = vpop.xlane.xlu0 %16717  ;;  %v16687_v0 = vadd.f32 %v16662_v10, %v25716_v41  ;;  %v16746_v28 = vsel %vm457_vm0, %v26031_v56, 0.0  ;;  %v26044_v27 = vadd.f32 %v25954_v55, %v16689_v46 }
0x2335   : > { %16747 = vadd.xlane.f32.xlu0 %v16746_v28  ;;  %v16760_v48 = vmul.f32 0.03125, %v16718_v24 }
0x2336   : > { %v26041_v13 = vadd.f32 %v25954_v55, %v16687_v0  ;;  %v16755_v16 = vsel %vm457_vm0, %v26044_v27, 0.0 }
0x2337   : > { %v26051_v3 = vsub.f32 %v25958_v26, %v16760_v48 }
0x2338   : > { %v16712_v9 = vpop.xlane.xlu0 %16711  ;;  %v16721_v12 = vpop.xlane.xlu1 %16720  ;;  %v16749_v45 = vsel %vm457_vm0, %v26041_v13, 0.0 }
0x2339   : > { %v16758_v41 = vmul.f32 0.03125, %v16712_v9  ;;  %16753 = vadd.xlane.f32.xlu0 %v16752_v14  ;;  %16750 = vadd.xlane.f32.xlu1 %v16749_v45  ;;  %v16761_v32 = vmul.f32 0.03125, %v16721_v12  ;;  %v16792_v26 = vmul.f32 %v26051_v3, %v26051_v3 }
0x233b   : > { %v26054_v49 = vsub.f32 %v25962_v60, %v16758_v41  ;;  %v26061_v25 = vsub.f32 %v25968_v50, %v16761_v32  ;;  %v16812_v6 = vsel %vm457_vm0, %v16792_v26, 0.0 }
0x233c   : > { %v16730_v55 = vpop.xlane.xlu0 %16729  ;;  %v16715_v23 = vpop.xlane.xlu1 %16714 }
0x233d   : > { %v16759_v63 = vmul.f32 0.03125, %v16715_v23  ;;  %16756 = vadd.xlane.f32.xlu1 %v16755_v16  ;;  %v16790_v2 = vmul.f32 %v26054_v49, %v26054_v49  ;;  %v16764_v35 = vmul.f32 0.03125, %v16730_v55  ;;  %v16793_v50 = vmul.f32 %v26061_v25, %v26061_v25 }
0x233f   : > { %v26066_v60 = vsub.f32 %v25972_v43, %v16759_v63  ;;  %v16806_v37 = vsel %vm457_vm0, %v16790_v2, 0.0  ;;  %v26075_v21 = vsub.f32 %v25980_v57, %v16764_v35  ;;  %v16815_v36 = vsel %vm457_vm0, %v16793_v50, 0.0 }
0x2340   : > { %v16724_v59 = vpop.xlane.xlu0 %16723  ;;  %16807 = vadd.xlane.f32.xlu0 %v16806_v37  ;;  %v16733_v31 = vpop.xlane.xlu1 %16732 }
0x2341   : > { %v16762_v19 = vmul.f32 0.03125, %v16724_v59  ;;  %v16791_v39 = vmul.f32 %v26066_v60, %v26066_v60  ;;  %v16765_v7 = vmul.f32 0.03125, %v16733_v31  ;;  %v16796_v22 = vmul.f32 %v26075_v21, %v26075_v21 }
0x2343   : > { %v26078_v43 = vsub.f32 %v25984_v61, %v16762_v19  ;;  %v16809_v47 = vsel %vm457_vm0, %v16791_v39, 0.0  ;;  %v26085_v53 = vsub.f32 %v25992_v18, %v16765_v7  ;;  %v16824_v15 = vsel %vm457_vm0, %v16796_v22, 0.0 }
0x2344   : > { %16813 = vadd.xlane.f32.xlu0 %v16812_v6  ;;  %16810 = vadd.xlane.f32.xlu1 %v16809_v47  ;;  %v16727_v30 = vpop.xlane.xlu1 %16726 }
0x2345   : > { %v16763_v54 = vmul.f32 0.03125, %v16727_v30  ;;  %v16794_v29 = vmul.f32 %v26078_v43, %v26078_v43  ;;  %v16797_v18 = vmul.f32 %v26085_v53, %v26085_v53 }
0x2347   : > { %v26088_v57 = vsub.f32 %v25996_v62, %v16763_v54  ;;  %v16818_v61 = vsel %vm457_vm0, %v16794_v29, 0.0  ;;  %v16827_v62 = vsel %vm457_vm0, %v16797_v18, 0.0 }
0x2348   : > { %16819 = vadd.xlane.f32.xlu0 %v16818_v61  ;;  %16816 = vadd.xlane.f32.xlu1 %v16815_v36 }
0x2349   : > { %v16795_v44 = vmul.f32 %v26088_v57, %v26088_v57 }
0x234b   : > { %v16821_v4 = vsel %vm457_vm0, %v16795_v44, 0.0 }
0x234c   : > { %16825 = vadd.xlane.f32.xlu0 %v16824_v15  ;;  %16822 = vadd.xlane.f32.xlu1 %v16821_v4 }
0x2350   : > { %16828 = vadd.xlane.f32.xlu1 %v16827_v62 }
0x2383   : > { %v16742_v1 = vpop.xlane.xlu0 %16741 }
0x2384   : > { %v16768_v34 = vmul.f32 0.03125, %v16742_v1 }
0x2386   : > { %v26101_v20 = vsub.f32 %v26006_v5, %v16768_v34 }
0x2387   : > { %v16736_v51 = vpop.xlane.xlu0 %16735  ;;  %v16745_v52 = vpop.xlane.xlu1 %16744 }
0x2388   : > { %v16766_v42 = vmul.f32 0.03125, %v16736_v51  ;;  %v16769_v38 = vmul.f32 0.03125, %v16745_v52  ;;  %v16800_v33 = vmul.f32 %v26101_v20, %v26101_v20 }
0x238a   : > { %v26106_v11 = vsub.f32 %v26010_v8, %v16766_v42  ;;  %v26109_v10 = vsub.f32 %v26016_v40, %v16769_v38  ;;  %v16836_v46 = vsel %vm457_vm0, %v16800_v33, 0.0 }
0x238b   : > { %16837 = vadd.xlane.f32.xlu0 %v16836_v46  ;;  %v16739_v24 = vpop.xlane.xlu1 %16738 }
0x238c   : > { %v16767_v0 = vmul.f32 0.03125, %v16739_v24  ;;  %v16798_v5 = vmul.f32 %v26106_v11, %v26106_v11  ;;  %v16801_v28 = vmul.f32 %v26109_v10, %v26109_v10  ;;  %v26151_v24 = vld [vmem:[%s26300_s9] ss:$0 sm:$0xff] }
0x238e   : > { %v26117_v48 = vsub.f32 %v26020_v58, %v16767_v0  ;;  %v16830_v8 = vsel %vm457_vm0, %v16798_v5, 0.0  ;;  %v16839_v9 = vsel %vm457_vm0, %v16801_v28, 0.0  ;;  %v26157_v28 = vld [vmem:[%s26300_s9 + $0x1] ss:$0 sm:$0xff] }
0x238f   : > { %16831 = vadd.xlane.f32.xlu0 %v16830_v8  ;;  %16840 = vadd.xlane.f32.xlu1 %v16839_v9 }
0x2390   : > { %v16799_v40 = vmul.f32 %v26117_v48, %v26117_v48 }
0x2392   : > { %v16833_v12 = vsel %vm457_vm0, %v16799_v40, 0.0 }
0x2393   : > { %16834 = vadd.xlane.f32.xlu1 %v16833_v12 }
0x23be   : > { %v16748_v14 = vpop.xlane.xlu0 %16747 }
0x23bf   : > { %v16770_v45 = vmul.f32 0.03125, %v16748_v14 }
0x23c1   : > { %v26125_v41 = vsub.f32 %v26031_v56, %v16770_v45 }
0x23c2   : > { %v16754_v32 = vpop.xlane.xlu0 %16753  ;;  %v16751_v58 = vpop.xlane.xlu1 %16750 }
0x23c3   : > { %v16772_v55 = vmul.f32 0.03125, %v16754_v32  ;;  %v16771_v23 = vmul.f32 0.03125, %v16751_v58  ;;  %v16802_v16 = vmul.f32 %v26125_v41, %v26125_v41 }
0x23c5   : > { %v26130_v63 = vsub.f32 %v26034_v17, %v16772_v55  ;;  %v26133_v2 = vsub.f32 %v26041_v13, %v16771_v23  ;;  %v16842_v26 = vsel %vm457_vm0, %v16802_v16, 0.0 }
0x23c6   : > { %16843 = vadd.xlane.f32.xlu0 %v16842_v26  ;;  %v16757_v35 = vpop.xlane.xlu1 %16756 }
0x23c7   : > { %v16773_v37 = vmul.f32 0.03125, %v16757_v35  ;;  %v16804_v56 = vmul.f32 %v26130_v63, %v26130_v63  ;;  %v16803_v59 = vmul.f32 %v26133_v2, %v26133_v2 }
0x23c9   : > { %v26141_v31 = vsub.f32 %v26044_v27, %v16773_v37  ;;  %v16808_v19 = vpop.xlane.xlu0 %16807  ;;  %v16848_v17 = vsel %vm457_vm0, %v16804_v56, 0.0  ;;  %v16845_v13 = vsel %vm457_vm0, %v16803_v59, 0.0 }
0x23ca   : > { %v16854_v39 = vmul.f32 0.03125, %v16808_v19  ;;  %16849 = vadd.xlane.f32.xlu0 %v16848_v17  ;;  %16846 = vadd.xlane.f32.xlu1 %v16845_v13 }
0x23cb   : > { %v16805_v6 = vmul.f32 %v26141_v31, %v26141_v31 }
0x23cc   : > { %v16870_v50 = vadd.f32 1e-05, %v16854_v39 }
0x23cd   : > { %v16814_v7 = vpop.xlane.xlu0 %16813  ;;  %v16811_v47 = vpop.xlane.xlu1 %16810  ;;  %v16851_v30 = vsel %vm457_vm0, %v16805_v6, 0.0 }
0x23ce   : > { %20396 = vrsqrt.f32 %v16870_v50  ;;  %v16856_v54 = vmul.f32 0.03125, %v16814_v7  ;;  %v16855_v27 = vmul.f32 0.03125, %v16811_v47  ;;  %16852 = vadd.xlane.f32.xlu1 %v16851_v30 }
0x23d0   : > { %v16872_v29 = vadd.f32 1e-05, %v16856_v54  ;;  %v16871_v36 = vadd.f32 1e-05, %v16855_v27 }
0x23d1   : > { %v16820_v61 = vpop.xlane.xlu0 %16819  ;;  %v16817_v22 = vpop.xlane.xlu1 %16816 }
0x23d2   : > { %20398 = vrsqrt.f32 %v16872_v29  ;;  %v16858_v44 = vmul.f32 0.03125, %v16820_v61  ;;  %v16857_v15 = vmul.f32 0.03125, %v16817_v22 }
0x23d3   : > { %20400 = vrsqrt.f32 %v16871_v36 }
0x23d4   : > { %v16874_v4 = vadd.f32 1e-05, %v16858_v44  ;;  %v16873_v18 = vadd.f32 1e-05, %v16857_v15 }
0x23d5   : > { %v16826_v62 = vpop.xlane.xlu0 %16825  ;;  %v16823_v1 = vpop.xlane.xlu1 %16822 }
0x23d6   : > { %20402 = vrsqrt.f32 %v16874_v4  ;;  %v16860_v34 = vmul.f32 0.03125, %v16826_v62  ;;  %v16859_v51 = vmul.f32 0.03125, %v16823_v1 }
0x23d7   : > { %20404 = vrsqrt.f32 %v16873_v18 }
0x23d8   : > { %v16876_v52 = vadd.f32 1e-05, %v16860_v34  ;;  %v16875_v42 = vadd.f32 1e-05, %v16859_v51 }
0x23d9   : > { %v16829_v38 = vpop.xlane.xlu1 %16828 }
0x23da   : > { %20406 = vrsqrt.f32 %v16876_v52  ;;  %v16861_v33 = vmul.f32 0.03125, %v16829_v38 }
0x23db   : > { %v20397_v46 = vpop.eup %20396  ;;  %20408 = vrsqrt.f32 %v16875_v42 }
0x23dc   : > { %v16902_v0 = vmul.f32 %v20397_v46, %v26054_v49  ;;  %v16877_v5 = vadd.f32 1e-05, %v16861_v33 }
0x23de   : > { %v16923_v8 = vmul.f32 %v26151_v24, %v16902_v0  ;;  %20410 = vrsqrt.f32 %v16877_v5 }
0x23df   : > { %v20399_v9 = vpop.eup %20398 }
0x23e0   : > { %v20401_v40 = vpop.eup %20400  ;;  %v16944_v12 = vadd.f32 %v26157_v28, %v16923_v8  ;;  %v16904_v14 = vmul.f32 %v20399_v9, %v26051_v3 }
0x23e1   : > { %v16903_v45 = vmul.f32 %v20401_v40, %v26066_v60 }
0x23e2   : > { %16960 = vst.msk [vmem:[%s26164_s18] sm:$0xff] %vm457_vm0, %v16944_v12  ;;  %v16925_v49 = vmul.f32 %v26151_v24, %v16904_v14 }
0x23e3   : > { %v20403_v32 = vpop.eup %20402  ;;  %v16924_v58 = vmul.f32 %v26151_v24, %v16903_v45 }
0x23e4   : > { %v20405_v55 = vpop.eup %20404  ;;  %v16946_v23 = vadd.f32 %v26157_v28, %v16925_v49  ;;  %v16906_v3 = vmul.f32 %v20403_v32, %v26078_v43 }
0x23e5   : > { %v16945_v60 = vadd.f32 %v26157_v28, %v16924_v58  ;;  %v16905_v16 = vmul.f32 %v20405_v55, %v26061_v25 }
0x23e6   : > { %16962 = vst.msk [vmem:[%s26164_s18 + $0x10] sm:$0xff] %vm457_vm0, %v16946_v23  ;;  %v16927_v26 = vmul.f32 %v26151_v24, %v16906_v3 }
0x23e7   : > { %v20407_v35 = vpop.eup %20406  ;;  %16961 = vst.msk [vmem:[%s26164_s18 + $0x8] sm:$0xff] %vm457_vm0, %v16945_v60  ;;  %v16926_v37 = vmul.f32 %v26151_v24, %v16905_v16 }
0x23e8   : > { %v20409_v56 = vpop.eup %20408  ;;  %v16948_v59 = vadd.f32 %v26157_v28, %v16927_v26  ;;  %v16908_v43 = vmul.f32 %v20407_v35, %v26075_v21 }
0x23e9   : > { %v16947_v19 = vadd.f32 %v26157_v28, %v16926_v37  ;;  %v16907_v25 = vmul.f32 %v20409_v56, %v26088_v57 }
0x23ea   : > { %16964 = vst.msk [vmem:[%s26164_s18 + $0x20] sm:$0xff] %vm457_vm0, %v16948_v59  ;;  %v16929_v17 = vmul.f32 %v26151_v24, %v16908_v43 }
0x23eb   : > { %v20411_v13 = vpop.eup %20410  ;;  %16963 = vst.msk [vmem:[%s26164_s18 + $0x18] sm:$0xff] %vm457_vm0, %v16947_v19  ;;  %v16928_v39 = vmul.f32 %v26151_v24, %v16907_v25 }
0x23ec   : > { %v16950_v6 = vadd.f32 %v26157_v28, %v16929_v17  ;;  %v16909_v50 = vmul.f32 %v20411_v13, %v26085_v53 }
0x23ed   : > { %v16949_v7 = vadd.f32 %v26157_v28, %v16928_v39 }
0x23ee   : > { %16966 = vst.msk [vmem:[%s26164_s18 + $0x30] sm:$0xff] %vm457_vm0, %v16950_v6  ;;  %v16930_v21 = vmul.f32 %v26151_v24, %v16909_v50 }
0x23ef   : > { %16965 = vst.msk [vmem:[%s26164_s18 + $0x28] sm:$0xff] %vm457_vm0, %v16949_v7 }
0x23f0   : > { %v16951_v57 = vadd.f32 %v26157_v28, %v16930_v21 }
0x23f2   : > { %16967 = vst.msk [vmem:[%s26164_s18 + $0x38] sm:$0xff] %vm457_vm0, %v16951_v57 }
0x2414   : > { %v16838_v47 = vpop.xlane.xlu0 %16837 }
0x2415   : > { %v16864_v30 = vmul.f32 0.03125, %v16838_v47 }
0x2417   : > { %v16880_v54 = vadd.f32 1e-05, %v16864_v30 }
0x2418   : > { %v16832_v27 = vpop.xlane.xlu0 %16831  ;;  %v16841_v29 = vpop.xlane.xlu1 %16840 }
0x2419   : > { %20412 = vrsqrt.f32 %v16880_v54  ;;  %v16862_v36 = vmul.f32 0.03125, %v16832_v27  ;;  %v16865_v53 = vmul.f32 0.03125, %v16841_v29 }
0x241b   : > { %v16878_v61 = vadd.f32 1e-05, %v16862_v36  ;;  %v16881_v22 = vadd.f32 1e-05, %v16865_v53 }
0x241c   : > { %v16835_v44 = vpop.xlane.xlu1 %16834 }
0x241d   : > { %20414 = vrsqrt.f32 %v16878_v61  ;;  %v16863_v15 = vmul.f32 0.03125, %v16835_v44 }
0x241e   : > { %20416 = vrsqrt.f32 %v16881_v22 }
0x241f   : > { %v16879_v4 = vadd.f32 1e-05, %v16863_v15 }
0x2421   : > { %20418 = vrsqrt.f32 %v16879_v4 }
0x2426   : > { %v20413_v18 = vpop.eup %20412 }
0x2427   : > { %v16912_v62 = vmul.f32 %v20413_v18, %v26101_v20 }
0x2429   : > { %v16933_v1 = vmul.f32 %v26151_v24, %v16912_v62 }
0x242a   : > { %v20415_v34 = vpop.eup %20414 }
0x242b   : > { %v20417_v51 = vpop.eup %20416  ;;  %v16954_v52 = vadd.f32 %v26157_v28, %v16933_v1  ;;  %v16910_v42 = vmul.f32 %v20415_v34, %v26106_v11 }
0x242c   : > { %v16913_v38 = vmul.f32 %v20417_v51, %v26109_v10 }
0x242d   : > { %16970 = vst.msk [vmem:[%s26164_s18 + $0x50] sm:$0xff] %vm457_vm0, %v16954_v52  ;;  %v16931_v33 = vmul.f32 %v26151_v24, %v16910_v42 }
0x242e   : > { %v20419_v46 = vpop.eup %20418  ;;  %v16934_v0 = vmul.f32 %v26151_v24, %v16913_v38 }
0x242f   : > { %v16952_v20 = vadd.f32 %v26157_v28, %v16931_v33  ;;  %v16911_v5 = vmul.f32 %v20419_v46, %v26117_v48 }
0x2430   : > { %v16955_v8 = vadd.f32 %v26157_v28, %v16934_v0 }
0x2431   : > { %16968 = vst.msk [vmem:[%s26164_s18 + $0x40] sm:$0xff] %vm457_vm0, %v16952_v20  ;;  %v16932_v9 = vmul.f32 %v26151_v24, %v16911_v5 }
0x2432   : > { %16971 = vst.msk [vmem:[%s26164_s18 + $0x58] sm:$0xff] %vm457_vm0, %v16955_v8 }
0x2433   : > { %v16953_v11 = vadd.f32 %v26157_v28, %v16932_v9 }
0x2435   : > { %16969 = vst.msk [vmem:[%s26164_s18 + $0x48] sm:$0xff] %vm457_vm0, %v16953_v11 }
0x244f   : > { %v16844_v10 = vpop.xlane.xlu0 %16843 }
0x2450   : > { %v16866_v40 = vmul.f32 0.03125, %v16844_v10 }
0x2452   : > { %v16882_v12 = vadd.f32 1e-05, %v16866_v40 }
0x2453   : > { %v16850_v14 = vpop.xlane.xlu0 %16849  ;;  %v16847_v45 = vpop.xlane.xlu1 %16846 }
0x2454   : > { %20420 = vrsqrt.f32 %v16882_v12  ;;  %v16868_v49 = vmul.f32 0.03125, %v16850_v14  ;;  %v16867_v48 = vmul.f32 0.03125, %v16847_v45 }
0x2456   : > { %v16884_v32 = vadd.f32 1e-05, %v16868_v49  ;;  %v16883_v58 = vadd.f32 1e-05, %v16867_v48 }
0x2457   : > { %v16853_v55 = vpop.xlane.xlu1 %16852 }
0x2458   : > { %20422 = vrsqrt.f32 %v16884_v32  ;;  %v16869_v23 = vmul.f32 0.03125, %v16853_v55 }
0x2459   : > { %20424 = vrsqrt.f32 %v16883_v58 }
0x245a   : > { %v16885_v3 = vadd.f32 1e-05, %v16869_v23 }
0x245c   : > { %20426 = vrsqrt.f32 %v16885_v3 }
0x2461   : > { %v20421_v60 = vpop.eup %20420 }
0x2462   : > { %v16914_v16 = vmul.f32 %v20421_v60, %v26125_v41 }
0x2464   : > { %v16935_v26 = vmul.f32 %v26151_v24, %v16914_v16 }
0x2465   : > { %v20423_v35 = vpop.eup %20422 }
0x2466   : > { %v20425_v37 = vpop.eup %20424  ;;  %v16956_v56 = vadd.f32 %v26157_v28, %v16935_v26  ;;  %v16916_v59 = vmul.f32 %v20423_v35, %v26130_v63 }
0x2467   : > { %v16915_v43 = vmul.f32 %v20425_v37, %v26133_v2 }
0x2468   : > { %16972 = vst.msk [vmem:[%s26164_s18 + $0x60] sm:$0xff] %vm457_vm0, %v16956_v56  ;;  %v16937_v19 = vmul.f32 %v26151_v24, %v16916_v59 }
0x2469   : > { %v20427_v25 = vpop.eup %20426  ;;  %v16936_v41 = vmul.f32 %v26151_v24, %v16915_v43 }
0x246a   : > { %v16958_v17 = vadd.f32 %v26157_v28, %v16937_v19  ;;  %v16917_v13 = vmul.f32 %v20427_v25, %v26141_v31 }
0x246b   : > { %v16957_v63 = vadd.f32 %v26157_v28, %v16936_v41 }
0x246c   : > { %16974 = vst.msk [vmem:[%s26164_s18 + $0x70] sm:$0xff] %vm457_vm0, %v16958_v17  ;;  %v16938_v2 = vmul.f32 %v26151_v24, %v16917_v13 }
0x246d   : > { %16973 = vst.msk [vmem:[%s26164_s18 + $0x68] sm:$0xff] %vm457_vm0, %v16957_v63 }
0x246e   : > { %v16959_v31 = vadd.f32 %v26157_v28, %v16938_v2 }
0x2470   : > { %16975 = vst.msk [vmem:[%s26164_s18 + $0x78] sm:$0xff] %vm457_vm0, %v16959_v31 }
0x2471   : > { %20565 = shalt.err (!%p20562_p4)
}
0x2472   : > { %s20566_s21 = scalar_lea.hbm %s26243_s30, 2048  ;;  %s20570_s15 = scalar_lea.hbm %s26301_s10, 4096 }
0x2473   : > { %p20567_p9 = scmp.ne.s32.totalorder %s26243_s30, %s20566_s21  ;;  %p20571_p5 = scmp.lt.s32.totalorder %s26243_s30, %s26301_s10 }
0x2474   : > { %p20572_p8 = scmp.lt.s32.totalorder %s20570_s15, %s20566_s21 }
0x2475   : > { %p20568_p11 = pnand %p20567_p9, %p26709_p1 }
0x2476   : > { %p20573_p6 = por %p20572_p8, %p20571_p5 }
0x2477   : > { %p20569_p3 = pneg %p20568_p11 }
0x2479   : > { %p20574_p13 = pnand %p20573_p6, %p20569_p3 }
0x247b   : > { %20577 = shalt.err (!%p20574_p13)
}
0x247c   : > { %s20638_s23 = smov 128   ;;  %s20639_s24 = smov 8  }
0x247d   : > { %19542 = dma.vmem_to_hbm [thread:$0]  (%p26709_p1), %s26245_s26, 2048, %s26243_s30, %s16977_s17, %s20638_s23, %s20638_s23, %s20639_s24  }
0x247e PF: > { %s26710_s12 = sld [smem:[#allocation14_spill]]  ;;  %s17006_s29 = sand.u32 1, %s20608_s13  }
0x247f   : > { %p26712_p7 = scmp.ge.s32.totalorder %s20620_s16, 2  ;;  %s17007_s28 = scalar_lea.sflag [#allocation4], %s17006_s29 }
0x2484   : > { %p26711_p12 = scmp.ne.s32.totalorder %s26710_s12, 0 }
0x2486   : > { %p19552_p10 = pnand %p26712_p7, %p26711_p12 }
0x2488   : > { %p19553_p0 = pneg %p19552_p10 }
0x248a   : > { %20603 = dma.done.wait (%p19553_p0), %s17007_s28, 2048  }
0x248b   : > { %20605 = vsyncadd (%p19553_p0), %s17007_s28, 4294965248  ;;  %s26713_s16 = sld [smem:[#allocation12_spill]]  ;;  %s26716_s13 = smov %s20612_s14 }
0x248c   : > { %s26714_s11 = sld [smem:[#allocation11_spill]] }
0x248d   : > { %s26715_s15 = sld [smem:[#allocation13_spill]] }
0x2491   : > { %p26_p2 = scmp.ge.s32.totalorder %s26713_s16, 4  }
0x2492   : > { %s26717_s14 = smov %s26714_s11 }
0x2493   :  { %28 = sbr.rel (!%p26_p2) target bundleno = 9 (0x9), region = 131 }
0x2498   :  { %17012 = vsyncpa [#allocation3], 1 }
0x2499   :  { %17014 = vsyncpa [#allocation3 + $0x1], 1 }
0x249a   :  { %17015 = vsyncpa [#allocation6], 1 }
0x249b   :  { %17017 = vsyncpa [#allocation6 + $0x1], 1 }
0x249c   :  { %17018 = vsyncpa [#allocation4], 1 }
0x249d   :  { %17020 = vsyncpa [#allocation4 + $0x1], 1 }

</bundles_post_ra>
